<compile_context>
chip_gen: v7x
topology: tpu7x:2x2x1
jax: 0.10.0
libtpu: 0.0.40
codegen_flags: <defaults>
</compile_context>

<pallas_src>
import functools
import math

import jax
import jax.numpy as jnp
import numpy as np
from jax import lax
from jax.experimental import pallas as pl
from jax.experimental.pallas import tpu as pltpu

CLASSES = 4
NUM_FEATS = 17          # d_model
SLICE_LEN = 32          # sequence length (pre_classifier expects num_feats*slice_len)
NHEAD = 1
NLAYERS = 2
DIM_FF = 2048           # PyTorch TransformerEncoderLayer default dim_feedforward
HIDDEN = 256            # pre_classifier output width
LN_EPS = 1e-5           # PyTorch default layer_norm_eps


def _layernorm(y, w, b):
    mu = jnp.mean(y, axis=-1, keepdims=True)
    var = jnp.mean((y - mu) ** 2, axis=-1, keepdims=True)
    return (y - mu) * lax.rsqrt(var + LN_EPS) * w + b


# --------------------------------------------------------------------------- #
# Kernel A: the 2-layer transformer encoder over a batch tile of b_tile*S rows #
# --------------------------------------------------------------------------- #
def _encoder_kernel(x_ref,
                    wq_ref, bq_ref, wk_ref, bk_ref, wv_ref, bv_ref,
                    wo_ref, bo_ref, ln1w_ref, ln1b_ref,
                    w1_ref, b1_ref, w2_ref, b2_ref, ln2w_ref, ln2b_ref,
                    out_ref):
    D, S = NUM_FEATS, SLICE_LEN
    M = x_ref.shape[0]                 # = b_tile * S  (static)
    bt = M // S
    scale = 1.0 / math.sqrt(D / NHEAD)  # single head -> 1/sqrt(17)

    x = x_ref[...].astype(jnp.float32)  # (M, D), batch*seq folded into M

    for l in range(NLAYERS):            # static unroll over the 2 layers
        # ---- self-attention (nhead=1); eval mode -> dropout = identity ----
        xb = x.astype(jnp.bfloat16)
        q = jnp.dot(xb, wq_ref[l], preferred_element_type=jnp.float32) + bq_ref[l]
        k = jnp.dot(xb, wk_ref[l], preferred_element_type=jnp.float32) + bk_ref[l]
        v = jnp.dot(xb, wv_ref[l], preferred_element_type=jnp.float32) + bv_ref[l]
        q3 = q.reshape(bt, S, D).astype(jnp.bfloat16)
        k3 = k.reshape(bt, S, D).astype(jnp.bfloat16)
        v3 = v.reshape(bt, S, D).astype(jnp.bfloat16)

        sc = jnp.einsum("bqd,bkd->bqk", q3, k3,
                        preferred_element_type=jnp.float32) * scale     # (bt,S,S) f32
        m = jnp.max(sc, axis=-1, keepdims=True)
        p = jnp.exp(sc - m)
        denom = jnp.sum(p, axis=-1, keepdims=True)
        attn = (p * pl.reciprocal(denom, approx=True)).astype(jnp.bfloat16)
        ao = jnp.einsum("bqk,bkd->bqd", attn, v3,
                        preferred_element_type=jnp.float32)
        ao = ao.reshape(M, D).astype(jnp.bfloat16)
        ao = jnp.dot(ao, wo_ref[l], preferred_element_type=jnp.float32) + bo_ref[l]
        x = _layernorm(x + ao, ln1w_ref[l], ln1b_ref[l])                 # post-norm, f32

        # ---- feed-forward: linear -> relu -> linear ----
        h = jnp.dot(x.astype(jnp.bfloat16), w1_ref[l],
                    preferred_element_type=jnp.float32) + b1_ref[l]      # (M, FF) f32
        h = jnp.maximum(h, 0.0).astype(jnp.bfloat16)
        ff = jnp.dot(h, w2_ref[l], preferred_element_type=jnp.float32) + b2_ref[l]
        x = _layernorm(x + ff, ln2w_ref[l], ln2b_ref[l])

    out_ref[...] = x                    # (M, D) f32 token outputs


# --------------------------------------------------------------------------- #
# Kernel B: flatten -> pre_classifier -> ReLU -> classifier -> log_softmax     #
# (fed a lane-dense (rows, S*D) view produced by a free HBM reshape)           #
# --------------------------------------------------------------------------- #
def _head_kernel(x_ref, wp_ref, bp_ref, wc_ref, bc_ref, out_ref):
    x = x_ref[...].astype(jnp.bfloat16)                                  # (R, S*D)
    pooler = jnp.dot(x, wp_ref[...],
                     preferred_element_type=jnp.float32) + bp_ref[...]   # (R, 256)
    pooler = jnp.maximum(pooler, 0.0).astype(jnp.bfloat16)               # ReLU; dropout=id
    logits = jnp.dot(pooler, wc_ref[...],
                     preferred_element_type=jnp.float32) + bc_ref[...]   # (R, 4)
    mx = jnp.max(logits, axis=-1, keepdims=True)
    lse = jnp.log(jnp.sum(jnp.exp(logits - mx), axis=-1, keepdims=True)) + mx
    out_ref[...] = logits - lse                                          # log-softmax
    # NOTE: output last dim is 4 -> masked partial stores; tiny absolute cost.


def _pick_head_rows(bp, cap=512):
    """Largest multiple of 8 that divides bp (<= cap); fall back to bp itself."""
    best = None
    for d in range(8, min(bp, cap) + 1, 8):
        if bp % d == 0:
            best = d
    return best if best is not None else bp


def transformer_nn_forward(src, params, *, b_tile=32, head_rows=512):
    """src: (B, SLICE_LEN, NUM_FEATS) -> (B, CLASSES) log-probabilities."""
    B, S, D = src.shape
    assert S == SLICE_LEN and D == NUM_FEATS
    b_tile = max(1, min(b_tile, B))
    nb = -(-B // b_tile)                   # keep nb >= 2 for v7x 2-TC sharding when B allows
    Bp = nb * b_tile
    M = b_tile * S

    x = src.astype(jnp.float32)
    if Bp != B:                            # pad batch to a tile multiple
        x = jnp.concatenate([x, jnp.zeros((Bp - B, S, D), jnp.float32)], axis=0)
    x2d = x.reshape(Bp * S, D)             # free row-major reshape

    p = params
    bf = jnp.bfloat16
    # Wrapper-side (trace-time) weight prep: all matmul operands -> bf16, all dots
    # canonical (M,K)@(K,N); no in-kernel transposes or lane-offset slices.
    ipw, ipb = p["in_proj_w"], p["in_proj_b"]                  # (L,3D,D), (L,3D)
    wq = jnp.transpose(ipw[:, 0:D, :], (0, 2, 1)).astype(bf)   # (L, D, D)
    wk = jnp.transpose(ipw[:, D:2 * D, :], (0, 2, 1)).astype(bf)
    wv = jnp.transpose(ipw[:, 2 * D:3 * D, :], (0, 2, 1)).astype(bf)
    bq = ipb[:, None, 0:D]
    bk = ipb[:, None, D:2 * D]
    bv = ipb[:, None, 2 * D:3 * D]
    wo = jnp.transpose(p["out_proj_w"], (0, 2, 1)).astype(bf)  # (L, D, D)
    bo = p["out_proj_b"][:, None, :]
    ln1w = p["norm1_w"][:, None, :]
    ln1b = p["norm1_b"][:, None, :]
    w1 = jnp.transpose(p["lin1_w"], (0, 2, 1)).astype(bf)      # (L, D, FF) lane-dense
    b1 = p["lin1_b"][:, None, :]
    w2 = jnp.transpose(p["lin2_w"], (0, 2, 1)).astype(bf)      # (L, FF, D) canonical (K,N)
    b2 = p["lin2_b"][:, None, :]
    ln2w = p["norm2_w"][:, None, :]
    ln2b = p["norm2_b"][:, None, :]

    enc_weights = [wq, bq, wk, bk, wv, bv, wo, bo, ln1w, ln1b,
                   w1, b1, w2, b2, ln2w, ln2b]

    def rep(arr):                          # weight resident across the grid
        nd = arr.ndim
        return pl.BlockSpec(arr.shape, lambda i, _nd=nd: (0,) * _nd)

    enc_out = pl.pallas_call(
        _encoder_kernel,
        out_shape=jax.ShapeDtypeStruct((Bp * S, D), jnp.float32),
        grid=(nb,),
        in_specs=[pl.BlockSpec((M, D), lambda i: (i, 0))] + [rep(a) for a in enc_weights],
        out_specs=pl.BlockSpec((M, D), lambda i: (i, 0)),
        compiler_params=pltpu.CompilerParams(
            dimension_semantics=("parallel",),
            vmem_limit_bytes=48 * 1024 * 1024),   # v7x-safe (64 MiB VMEM/TC)
    )(x2d, *enc_weights)

    # flatten(t_out, start_dim=1) is a free row-major reshape in HBM.
    t_flat = enc_out.reshape(Bp, S * D)

    wp = jnp.transpose(p["pre_w"], (1, 0)).astype(bf)          # (S*D, HIDDEN)
    bp_b = p["pre_b"][None, :]
    wc = jnp.transpose(p["cls_w"], (1, 0)).astype(bf)          # (HIDDEN, CLASSES)
    bc = p["cls_b"][None, :]
    head_weights = [wp, bp_b, wc, bc]

    hb = _pick_head_rows(Bp, cap=head_rows)
    out = pl.pallas_call(
        _head_kernel,
        out_shape=jax.ShapeDtypeStruct((Bp, CLASSES), jnp.float32),
        grid=(Bp // hb,),
        in_specs=[pl.BlockSpec((hb, S * D), lambda i: (i, 0))] + [rep(a) for a in head_weights],
        out_specs=pl.BlockSpec((hb, CLASSES), lambda i: (i, 0)),
        compiler_params=pltpu.CompilerParams(dimension_semantics=("parallel",)),
    )(t_flat, *head_weights)

    return out[:B]


def init_params(key):
    """Parameters in PyTorch-native layouts (stacked over the 2 encoder layers)."""
    D, S, L, FF, H, C = NUM_FEATS, SLICE_LEN, NLAYERS, DIM_FF, HIDDEN, CLASSES
    ks = list(jax.random.split(key, 12))

    def u(k, shape, fan_in):
        b = 1.0 / math.sqrt(fan_in)
        return jax.random.uniform(k, shape, jnp.float32, -b, b)

    return {
        "in_proj_w":  u(ks[0], (L, 3 * D, D), D),
        "in_proj_b":  u(ks[1], (L, 3 * D), D),
        "out_proj_w": u(ks[2], (L, D, D), D),
        "out_proj_b": u(ks[3], (L, D), D),
        "norm1_w":    jnp.ones((L, D), jnp.float32),
        "norm1_b":    jnp.zeros((L, D), jnp.float32),
        "lin1_w":     u(ks[4], (L, FF, D), D),
        "lin1_b":     u(ks[5], (L, FF), D),
        "lin2_w":     u(ks[6], (L, D, FF), FF),
        "lin2_b":     u(ks[7], (L, D), FF),
        "norm2_w":    jnp.ones((L, D), jnp.float32),
        "norm2_b":    jnp.zeros((L, D), jnp.float32),
        "pre_w":      u(ks[8], (H, S * D), S * D),
        "pre_b":      u(ks[9], (H,), S * D),
        "cls_w":      u(ks[10], (C, H), H),
        "cls_b":      u(ks[11], (C,), H),
    }


def reference_forward(src, p):
    """Pure-JAX f32 reference mirroring the PyTorch forward (eval mode, use_pos=False)."""
    B, S, D = src.shape
    x = src.astype(jnp.float32)
    scale = 1.0 / math.sqrt(D / NHEAD)
    for l in range(NLAYERS):
        qkv = x @ p["in_proj_w"][l].T + p["in_proj_b"][l]
        q, k, v = qkv[..., :D], qkv[..., D:2 * D], qkv[..., 2 * D:]
        sc = jnp.einsum("bqd,bkd->bqk", q, k) * scale
        a = jax.nn.softmax(sc, axis=-1)
        ao = jnp.einsum("bqk,bkd->bqd", a, v) @ p["out_proj_w"][l].T + p["out_proj_b"][l]
        x = _layernorm(x + ao, p["norm1_w"][l], p["norm1_b"][l])
        h = jax.nn.relu(x @ p["lin1_w"][l].T + p["lin1_b"][l])
        ff = h @ p["lin2_w"][l].T + p["lin2_b"][l]
        x = _layernorm(x + ff, p["norm2_w"][l], p["norm2_b"][l])
    t_flat = x.reshape(B, S * D)
    pooler = jax.nn.relu(t_flat @ p["pre_w"].T + p["pre_b"])
    logits = pooler @ p["cls_w"].T + p["cls_b"]
    return jax.nn.log_softmax(logits, axis=1)


if __name__ == "__main__":
    key = jax.random.PRNGKey(0)
    pkey, xkey = jax.random.split(key)
    params = init_params(pkey)

    B = 8
    src = jax.random.normal(xkey, (B, SLICE_LEN, NUM_FEATS), dtype=jnp.float32)

    # b_tile=4 -> encoder grid of 2 batch tiles (exercises the multi-step "parallel" grid).
    fwd = jax.jit(functools.partial(transformer_nn_forward, b_tile=4))
    out = jax.block_until_ready(fwd(src, params))

    ref = reference_forward(src, params)
    # Tolerance accounts for bf16 MXU operands (f32 accumulation / f32 LayerNorm,
    # softmax, residuals) and the approx (EUP) reciprocal in the softmax.
    np.testing.assert_allclose(np.asarray(out), np.asarray(ref), atol=3e-2, rtol=3e-2)
    print("KERNEL_OK")
</pallas_src>

<mosaic_0001>
module attributes {stable_mosaic.version = 11 : i64} {
  func.func @_encoder_kernel(%arg0: i32, %arg1: memref<128x17xf32, #tpu.memory_space<vmem>>, %arg2: memref<2x17x17xbf16, #tpu.memory_space<vmem>>, %arg3: memref<2x1x17xf32, #tpu.memory_space<vmem>>, %arg4: memref<2x17x17xbf16, #tpu.memory_space<vmem>>, %arg5: memref<2x1x17xf32, #tpu.memory_space<vmem>>, %arg6: memref<2x17x17xbf16, #tpu.memory_space<vmem>>, %arg7: memref<2x1x17xf32, #tpu.memory_space<vmem>>, %arg8: memref<2x17x17xbf16, #tpu.memory_space<vmem>>, %arg9: memref<2x1x17xf32, #tpu.memory_space<vmem>>, %arg10: memref<2x1x17xf32, #tpu.memory_space<vmem>>, %arg11: memref<2x1x17xf32, #tpu.memory_space<vmem>>, %arg12: memref<2x17x2048xbf16, #tpu.memory_space<vmem>>, %arg13: memref<2x1x2048xf32, #tpu.memory_space<vmem>>, %arg14: memref<2x2048x17xbf16, #tpu.memory_space<vmem>>, %arg15: memref<2x1x17xf32, #tpu.memory_space<vmem>>, %arg16: memref<2x1x17xf32, #tpu.memory_space<vmem>>, %arg17: memref<2x1x17xf32, #tpu.memory_space<vmem>>, %arg18: memref<128x17xf32, #tpu.memory_space<vmem>>) attributes {dimension_semantics = [#tpu.dimension_semantics<parallel>], iteration_bounds = array<i64: 2>, scalar_prefetch = 0 : i64, scratch_operands = 0 : i64, tpu.core_type = #tpu.core_type<tc>, window_params = [{transform_indices = @transform_0, window_bounds = array<i64: 128, 17>}, {pipeline_mode = #tpu.pipeline_mode<synchronous>, transform_indices = @transform_1, window_bounds = array<i64: 2, 17, 17>}, {pipeline_mode = #tpu.pipeline_mode<synchronous>, transform_indices = @transform_2, window_bounds = array<i64: 2, 1, 17>}, {pipeline_mode = #tpu.pipeline_mode<synchronous>, transform_indices = @transform_3, window_bounds = array<i64: 2, 17, 17>}, {pipeline_mode = #tpu.pipeline_mode<synchronous>, transform_indices = @transform_4, window_bounds = array<i64: 2, 1, 17>}, {pipeline_mode = #tpu.pipeline_mode<synchronous>, transform_indices = @transform_5, window_bounds = array<i64: 2, 17, 17>}, {pipeline_mode = #tpu.pipeline_mode<synchronous>, transform_indices = @transform_6, window_bounds = array<i64: 2, 1, 17>}, {pipeline_mode = #tpu.pipeline_mode<synchronous>, transform_indices = @transform_7, window_bounds = array<i64: 2, 17, 17>}, {pipeline_mode = #tpu.pipeline_mode<synchronous>, transform_indices = @transform_8, window_bounds = array<i64: 2, 1, 17>}, {pipeline_mode = #tpu.pipeline_mode<synchronous>, transform_indices = @transform_9, window_bounds = array<i64: 2, 1, 17>}, {pipeline_mode = #tpu.pipeline_mode<synchronous>, transform_indices = @transform_10, window_bounds = array<i64: 2, 1, 17>}, {pipeline_mode = #tpu.pipeline_mode<synchronous>, transform_indices = @transform_11, window_bounds = array<i64: 2, 17, 2048>}, {pipeline_mode = #tpu.pipeline_mode<synchronous>, transform_indices = @transform_12, window_bounds = array<i64: 2, 1, 2048>}, {pipeline_mode = #tpu.pipeline_mode<synchronous>, transform_indices = @transform_13, window_bounds = array<i64: 2, 2048, 17>}, {pipeline_mode = #tpu.pipeline_mode<synchronous>, transform_indices = @transform_14, window_bounds = array<i64: 2, 1, 17>}, {pipeline_mode = #tpu.pipeline_mode<synchronous>, transform_indices = @transform_15, window_bounds = array<i64: 2, 1, 17>}, {pipeline_mode = #tpu.pipeline_mode<synchronous>, transform_indices = @transform_16, window_bounds = array<i64: 2, 1, 17>}, {transform_indices = @transform_17, window_bounds = array<i64: 128, 17>}]} {
    %c0 = arith.constant 0 : index
    %c0_0 = arith.constant 0 : index
    %0 = vector.load %arg1[%c0, %c0_0] : memref<128x17xf32, #tpu.memory_space<vmem>>, vector<128x17xf32>
    %1 = arith.truncf %0 : vector<128x17xf32> to vector<128x17xbf16>
    %c0_1 = arith.constant 0 : index
    %c0_2 = arith.constant 0 : index
    %c0_3 = arith.constant 0 : index
    %2 = vector.load %arg2[%c0_1, %c0_2, %c0_3] : memref<2x17x17xbf16, #tpu.memory_space<vmem>>, vector<1x17x17xbf16>
    %3 = vector.shape_cast %2 : vector<1x17x17xbf16> to vector<17x17xbf16>
    %cst = arith.constant dense<0.000000e+00> : vector<128x17xf32>
    %4 = tpu.matmul %1, %3, %cst {dimension_numbers = #tpu.dot_dimension_numbers<[1], [0], [0], [1], [0, 0, 1, 1], [], []>} : vector<128x17xbf16>, vector<17x17xbf16>, vector<128x17xf32> -> vector<128x17xf32>
    %c0_4 = arith.constant 0 : index
    %c0_5 = arith.constant 0 : index
    %c0_6 = arith.constant 0 : index
    %5 = vector.load %arg3[%c0_4, %c0_5, %c0_6] : memref<2x1x17xf32, #tpu.memory_space<vmem>>, vector<1x1x17xf32>
    %6 = vector.shape_cast %5 : vector<1x1x17xf32> to vector<1x17xf32>
    %7 = vector.broadcast %6 : vector<1x17xf32> to vector<128x17xf32>
    %8 = arith.addf %4, %7 : vector<128x17xf32>
    %c0_7 = arith.constant 0 : index
    %c0_8 = arith.constant 0 : index
    %c0_9 = arith.constant 0 : index
    %9 = vector.load %arg4[%c0_7, %c0_8, %c0_9] : memref<2x17x17xbf16, #tpu.memory_space<vmem>>, vector<1x17x17xbf16>
    %10 = vector.shape_cast %9 : vector<1x17x17xbf16> to vector<17x17xbf16>
    %cst_10 = arith.constant dense<0.000000e+00> : vector<128x17xf32>
    %11 = tpu.matmul %1, %10, %cst_10 {dimension_numbers = #tpu.dot_dimension_numbers<[1], [0], [0], [1], [0, 0, 1, 1], [], []>} : vector<128x17xbf16>, vector<17x17xbf16>, vector<128x17xf32> -> vector<128x17xf32>
    %c0_11 = arith.constant 0 : index
    %c0_12 = arith.constant 0 : index
    %c0_13 = arith.constant 0 : index
    %12 = vector.load %arg5[%c0_11, %c0_12, %c0_13] : memref<2x1x17xf32, #tpu.memory_space<vmem>>, vector<1x1x17xf32>
    %13 = vector.shape_cast %12 : vector<1x1x17xf32> to vector<1x17xf32>
    %14 = vector.broadcast %13 : vector<1x17xf32> to vector<128x17xf32>
    %15 = arith.addf %11, %14 : vector<128x17xf32>
    %c0_14 = arith.constant 0 : index
    %c0_15 = arith.constant 0 : index
    %c0_16 = arith.constant 0 : index
    %16 = vector.load %arg6[%c0_14, %c0_15, %c0_16] : memref<2x17x17xbf16, #tpu.memory_space<vmem>>, vector<1x17x17xbf16>
    %17 = vector.shape_cast %16 : vector<1x17x17xbf16> to vector<17x17xbf16>
    %cst_17 = arith.constant dense<0.000000e+00> : vector<128x17xf32>
    %18 = tpu.matmul %1, %17, %cst_17 {dimension_numbers = #tpu.dot_dimension_numbers<[1], [0], [0], [1], [0, 0, 1, 1], [], []>} : vector<128x17xbf16>, vector<17x17xbf16>, vector<128x17xf32> -> vector<128x17xf32>
    %c0_18 = arith.constant 0 : index
    %c0_19 = arith.constant 0 : index
    %c0_20 = arith.constant 0 : index
    %19 = vector.load %arg7[%c0_18, %c0_19, %c0_20] : memref<2x1x17xf32, #tpu.memory_space<vmem>>, vector<1x1x17xf32>
    %20 = vector.shape_cast %19 : vector<1x1x17xf32> to vector<1x17xf32>
    %21 = vector.broadcast %20 : vector<1x17xf32> to vector<128x17xf32>
    %22 = arith.addf %18, %21 : vector<128x17xf32>
    %23 = vector.shape_cast %8 : vector<128x17xf32> to vector<4x32x17xf32>
    %24 = arith.truncf %23 : vector<4x32x17xf32> to vector<4x32x17xbf16>
    %25 = vector.shape_cast %15 : vector<128x17xf32> to vector<4x32x17xf32>
    %26 = arith.truncf %25 : vector<4x32x17xf32> to vector<4x32x17xbf16>
    %27 = vector.shape_cast %22 : vector<128x17xf32> to vector<4x32x17xf32>
    %28 = arith.truncf %27 : vector<4x32x17xf32> to vector<4x32x17xbf16>
    "tpu.trace_start"() <{level = 10 : i32, message = "bqd,bkd->bqk"}> : () -> ()
    %cst_21 = arith.constant dense<0.000000e+00> : vector<4x32x32xf32>
    %29 = tpu.matmul %24, %26, %cst_21 {dimension_numbers = #tpu.dot_dimension_numbers<[2], [2], [1], [1], [0, 0, 0, 1, 1, 1], [0], [0]>} : vector<4x32x17xbf16>, vector<4x32x17xbf16>, vector<4x32x32xf32> -> vector<4x32x32xf32>
    "tpu.trace_stop"() : () -> ()
    %cst_22 = arith.constant 0.242535621 : f32
    %30 = vector.broadcast %cst_22 : f32 to vector<4x32x32xf32>
    %31 = arith.mulf %29, %30 : vector<4x32x32xf32>
    %cst_23 = arith.constant dense<0xFF800000> : vector<4x32xf32>
    %32 = vector.multi_reduction <maximumf>, %31, %cst_23 [2] : vector<4x32x32xf32> to vector<4x32xf32>
    %33 = vector.shape_cast %32 : vector<4x32xf32> to vector<4x32x1xf32>
    %34 = vector.broadcast %33 : vector<4x32x1xf32> to vector<4x32x32xf32>
    %35 = arith.subf %31, %34 : vector<4x32x32xf32>
    %36 = math.exp %35 : vector<4x32x32xf32>
    %cst_24 = arith.constant dense<0.000000e+00> : vector<4x32xf32>
    %37 = vector.multi_reduction <add>, %36, %cst_24 [2] : vector<4x32x32xf32> to vector<4x32xf32>
    %38 = vector.shape_cast %37 : vector<4x32xf32> to vector<4x32x1xf32>
    %39 = tpu.reciprocal %38 {approx = true} : vector<4x32x1xf32> -> vector<4x32x1xf32>
    %40 = vector.broadcast %39 : vector<4x32x1xf32> to vector<4x32x32xf32>
    %41 = arith.mulf %36, %40 : vector<4x32x32xf32>
    %42 = arith.truncf %41 : vector<4x32x32xf32> to vector<4x32x32xbf16>
    "tpu.trace_start"() <{level = 10 : i32, message = "bqk,bkd->bqd"}> : () -> ()
    %cst_25 = arith.constant dense<0.000000e+00> : vector<4x32x17xf32>
    %43 = tpu.matmul %42, %28, %cst_25 {dimension_numbers = #tpu.dot_dimension_numbers<[2], [1], [1], [2], [0, 0, 0, 1, 1, 2], [0], [0]>} : vector<4x32x32xbf16>, vector<4x32x17xbf16>, vector<4x32x17xf32> -> vector<4x32x17xf32>
    "tpu.trace_stop"() : () -> ()
    %44 = vector.shape_cast %43 : vector<4x32x17xf32> to vector<128x17xf32>
    %45 = arith.truncf %44 : vector<128x17xf32> to vector<128x17xbf16>
    %c0_26 = arith.constant 0 : index
    %c0_27 = arith.constant 0 : index
    %c0_28 = arith.constant 0 : index
    %46 = vector.load %arg8[%c0_26, %c0_27, %c0_28] : memref<2x17x17xbf16, #tpu.memory_space<vmem>>, vector<1x17x17xbf16>
    %47 = vector.shape_cast %46 : vector<1x17x17xbf16> to vector<17x17xbf16>
    %cst_29 = arith.constant dense<0.000000e+00> : vector<128x17xf32>
    %48 = tpu.matmul %45, %47, %cst_29 {dimension_numbers = #tpu.dot_dimension_numbers<[1], [0], [0], [1], [0, 0, 1, 1], [], []>} : vector<128x17xbf16>, vector<17x17xbf16>, vector<128x17xf32> -> vector<128x17xf32>
    %c0_30 = arith.constant 0 : index
    %c0_31 = arith.constant 0 : index
    %c0_32 = arith.constant 0 : index
    %49 = vector.load %arg9[%c0_30, %c0_31, %c0_32] : memref<2x1x17xf32, #tpu.memory_space<vmem>>, vector<1x1x17xf32>
    %50 = vector.shape_cast %49 : vector<1x1x17xf32> to vector<1x17xf32>
    %51 = vector.broadcast %50 : vector<1x17xf32> to vector<128x17xf32>
    %52 = arith.addf %48, %51 : vector<128x17xf32>
    %53 = arith.addf %0, %52 : vector<128x17xf32>
    %c0_33 = arith.constant 0 : index
    %c0_34 = arith.constant 0 : index
    %c0_35 = arith.constant 0 : index
    %54 = vector.load %arg10[%c0_33, %c0_34, %c0_35] : memref<2x1x17xf32, #tpu.memory_space<vmem>>, vector<1x1x17xf32>
    %55 = vector.shape_cast %54 : vector<1x1x17xf32> to vector<1x17xf32>
    %c0_36 = arith.constant 0 : index
    %c0_37 = arith.constant 0 : index
    %c0_38 = arith.constant 0 : index
    %56 = vector.load %arg11[%c0_36, %c0_37, %c0_38] : memref<2x1x17xf32, #tpu.memory_space<vmem>>, vector<1x1x17xf32>
    %57 = vector.shape_cast %56 : vector<1x1x17xf32> to vector<1x17xf32>
    %cst_39 = arith.constant dense<0.000000e+00> : vector<128xf32>
    %58 = vector.multi_reduction <add>, %53, %cst_39 [1] : vector<128x17xf32> to vector<128xf32>
    %59 = vector.shape_cast %58 : vector<128xf32> to vector<128x1xf32>
    %cst_40 = arith.constant 1.700000e+01 : f32
    %60 = vector.broadcast %cst_40 : f32 to vector<128x1xf32>
    %61 = arith.divf %59, %60 : vector<128x1xf32>
    %62 = vector.broadcast %61 : vector<128x1xf32> to vector<128x17xf32>
    %63 = arith.subf %53, %62 : vector<128x17xf32>
    %64 = arith.mulf %63, %63 : vector<128x17xf32>
    %cst_41 = arith.constant dense<0.000000e+00> : vector<128xf32>
    %65 = vector.multi_reduction <add>, %64, %cst_41 [1] : vector<128x17xf32> to vector<128xf32>
    %66 = vector.shape_cast %65 : vector<128xf32> to vector<128x1xf32>
    %cst_42 = arith.constant 1.700000e+01 : f32
    %67 = vector.broadcast %cst_42 : f32 to vector<128x1xf32>
    %68 = arith.divf %66, %67 : vector<128x1xf32>
    %69 = vector.broadcast %61 : vector<128x1xf32> to vector<128x17xf32>
    %70 = arith.subf %53, %69 : vector<128x17xf32>
    %cst_43 = arith.constant 9.99999974E-6 : f32
    %71 = vector.broadcast %cst_43 : f32 to vector<128x1xf32>
    %72 = arith.addf %68, %71 : vector<128x1xf32>
    %73 = math.rsqrt %72 : vector<128x1xf32>
    %74 = vector.broadcast %73 : vector<128x1xf32> to vector<128x17xf32>
    %75 = arith.mulf %70, %74 : vector<128x17xf32>
    %76 = vector.broadcast %55 : vector<1x17xf32> to vector<128x17xf32>
    %77 = arith.mulf %75, %76 : vector<128x17xf32>
    %78 = vector.broadcast %57 : vector<1x17xf32> to vector<128x17xf32>
    %79 = arith.addf %77, %78 : vector<128x17xf32>
    %80 = arith.truncf %79 : vector<128x17xf32> to vector<128x17xbf16>
    %c0_44 = arith.constant 0 : index
    %c0_45 = arith.constant 0 : index
    %c0_46 = arith.constant 0 : index
    %81 = vector.load %arg12[%c0_44, %c0_45, %c0_46] : memref<2x17x2048xbf16, #tpu.memory_space<vmem>>, vector<1x17x2048xbf16>
    %82 = vector.shape_cast %81 : vector<1x17x2048xbf16> to vector<17x2048xbf16>
    %cst_47 = arith.constant dense<0.000000e+00> : vector<128x2048xf32>
    %83 = tpu.matmul %80, %82, %cst_47 {dimension_numbers = #tpu.dot_dimension_numbers<[1], [0], [0], [1], [0, 0, 1, 1], [], []>} : vector<128x17xbf16>, vector<17x2048xbf16>, vector<128x2048xf32> -> vector<128x2048xf32>
    %c0_48 = arith.constant 0 : index
    %c0_49 = arith.constant 0 : index
    %c0_50 = arith.constant 0 : index
    %84 = vector.load %arg13[%c0_48, %c0_49, %c0_50] : memref<2x1x2048xf32, #tpu.memory_space<vmem>>, vector<1x1x2048xf32>
    %85 = vector.shape_cast %84 : vector<1x1x2048xf32> to vector<1x2048xf32>
    %86 = vector.broadcast %85 : vector<1x2048xf32> to vector<128x2048xf32>
    %87 = arith.addf %83, %86 : vector<128x2048xf32>
    %cst_51 = arith.constant 0.000000e+00 : f32
    %88 = vector.broadcast %cst_51 : f32 to vector<128x2048xf32>
    %89 = arith.maximumf %87, %88 : vector<128x2048xf32>
    %90 = arith.truncf %89 : vector<128x2048xf32> to vector<128x2048xbf16>
    %c0_52 = arith.constant 0 : index
    %c0_53 = arith.constant 0 : index
    %c0_54 = arith.constant 0 : index
    %91 = vector.load %arg14[%c0_52, %c0_53, %c0_54] : memref<2x2048x17xbf16, #tpu.memory_space<vmem>>, vector<1x2048x17xbf16>
    %92 = vector.shape_cast %91 : vector<1x2048x17xbf16> to vector<2048x17xbf16>
    %cst_55 = arith.constant dense<0.000000e+00> : vector<128x17xf32>
    %93 = tpu.matmul %90, %92, %cst_55 {dimension_numbers = #tpu.dot_dimension_numbers<[1], [0], [0], [1], [0, 0, 1, 1], [], []>} : vector<128x2048xbf16>, vector<2048x17xbf16>, vector<128x17xf32> -> vector<128x17xf32>
    %c0_56 = arith.constant 0 : index
    %c0_57 = arith.constant 0 : index
    %c0_58 = arith.constant 0 : index
    %94 = vector.load %arg15[%c0_56, %c0_57, %c0_58] : memref<2x1x17xf32, #tpu.memory_space<vmem>>, vector<1x1x17xf32>
    %95 = vector.shape_cast %94 : vector<1x1x17xf32> to vector<1x17xf32>
    %96 = vector.broadcast %95 : vector<1x17xf32> to vector<128x17xf32>
    %97 = arith.addf %93, %96 : vector<128x17xf32>
    %98 = arith.addf %79, %97 : vector<128x17xf32>
    %c0_59 = arith.constant 0 : index
    %c0_60 = arith.constant 0 : index
    %c0_61 = arith.constant 0 : index
    %99 = vector.load %arg16[%c0_59, %c0_60, %c0_61] : memref<2x1x17xf32, #tpu.memory_space<vmem>>, vector<1x1x17xf32>
    %100 = vector.shape_cast %99 : vector<1x1x17xf32> to vector<1x17xf32>
    %c0_62 = arith.constant 0 : index
    %c0_63 = arith.constant 0 : index
    %c0_64 = arith.constant 0 : index
    %101 = vector.load %arg17[%c0_62, %c0_63, %c0_64] : memref<2x1x17xf32, #tpu.memory_space<vmem>>, vector<1x1x17xf32>
    %102 = vector.shape_cast %101 : vector<1x1x17xf32> to vector<1x17xf32>
    %cst_65 = arith.constant dense<0.000000e+00> : vector<128xf32>
    %103 = vector.multi_reduction <add>, %98, %cst_65 [1] : vector<128x17xf32> to vector<128xf32>
    %104 = vector.shape_cast %103 : vector<128xf32> to vector<128x1xf32>
    %cst_66 = arith.constant 1.700000e+01 : f32
    %105 = vector.broadcast %cst_66 : f32 to vector<128x1xf32>
    %106 = arith.divf %104, %105 : vector<128x1xf32>
    %107 = vector.broadcast %106 : vector<128x1xf32> to vector<128x17xf32>
    %108 = arith.subf %98, %107 : vector<128x17xf32>
    %109 = arith.mulf %108, %108 : vector<128x17xf32>
    %cst_67 = arith.constant dense<0.000000e+00> : vector<128xf32>
    %110 = vector.multi_reduction <add>, %109, %cst_67 [1] : vector<128x17xf32> to vector<128xf32>
    %111 = vector.shape_cast %110 : vector<128xf32> to vector<128x1xf32>
    %cst_68 = arith.constant 1.700000e+01 : f32
    %112 = vector.broadcast %cst_68 : f32 to vector<128x1xf32>
    %113 = arith.divf %111, %112 : vector<128x1xf32>
    %114 = vector.broadcast %106 : vector<128x1xf32> to vector<128x17xf32>
    %115 = arith.subf %98, %114 : vector<128x17xf32>
    %cst_69 = arith.constant 9.99999974E-6 : f32
    %116 = vector.broadcast %cst_69 : f32 to vector<128x1xf32>
    %117 = arith.addf %113, %116 : vector<128x1xf32>
    %118 = math.rsqrt %117 : vector<128x1xf32>
    %119 = vector.broadcast %118 : vector<128x1xf32> to vector<128x17xf32>
    %120 = arith.mulf %115, %119 : vector<128x17xf32>
    %121 = vector.broadcast %100 : vector<1x17xf32> to vector<128x17xf32>
    %122 = arith.mulf %120, %121 : vector<128x17xf32>
    %123 = vector.broadcast %102 : vector<1x17xf32> to vector<128x17xf32>
    %124 = arith.addf %122, %123 : vector<128x17xf32>
    %125 = arith.truncf %124 : vector<128x17xf32> to vector<128x17xbf16>
    %c1 = arith.constant 1 : index
    %c0_70 = arith.constant 0 : index
    %c0_71 = arith.constant 0 : index
    %126 = vector.load %arg2[%c1, %c0_70, %c0_71] : memref<2x17x17xbf16, #tpu.memory_space<vmem>>, vector<1x17x17xbf16>
    %127 = vector.shape_cast %126 : vector<1x17x17xbf16> to vector<17x17xbf16>
    %cst_72 = arith.constant dense<0.000000e+00> : vector<128x17xf32>
    %128 = tpu.matmul %125, %127, %cst_72 {dimension_numbers = #tpu.dot_dimension_numbers<[1], [0], [0], [1], [0, 0, 1, 1], [], []>} : vector<128x17xbf16>, vector<17x17xbf16>, vector<128x17xf32> -> vector<128x17xf32>
    %c1_73 = arith.constant 1 : index
    %c0_74 = arith.constant 0 : index
    %c0_75 = arith.constant 0 : index
    %129 = vector.load %arg3[%c1_73, %c0_74, %c0_75] : memref<2x1x17xf32, #tpu.memory_space<vmem>>, vector<1x1x17xf32>
    %130 = vector.shape_cast %129 : vector<1x1x17xf32> to vector<1x17xf32>
    %131 = vector.broadcast %130 : vector<1x17xf32> to vector<128x17xf32>
    %132 = arith.addf %128, %131 : vector<128x17xf32>
    %c1_76 = arith.constant 1 : index
    %c0_77 = arith.constant 0 : index
    %c0_78 = arith.constant 0 : index
    %133 = vector.load %arg4[%c1_76, %c0_77, %c0_78] : memref<2x17x17xbf16, #tpu.memory_space<vmem>>, vector<1x17x17xbf16>
    %134 = vector.shape_cast %133 : vector<1x17x17xbf16> to vector<17x17xbf16>
    %cst_79 = arith.constant dense<0.000000e+00> : vector<128x17xf32>
    %135 = tpu.matmul %125, %134, %cst_79 {dimension_numbers = #tpu.dot_dimension_numbers<[1], [0], [0], [1], [0, 0, 1, 1], [], []>} : vector<128x17xbf16>, vector<17x17xbf16>, vector<128x17xf32> -> vector<128x17xf32>
    %c1_80 = arith.constant 1 : index
    %c0_81 = arith.constant 0 : index
    %c0_82 = arith.constant 0 : index
    %136 = vector.load %arg5[%c1_80, %c0_81, %c0_82] : memref<2x1x17xf32, #tpu.memory_space<vmem>>, vector<1x1x17xf32>
    %137 = vector.shape_cast %136 : vector<1x1x17xf32> to vector<1x17xf32>
    %138 = vector.broadcast %137 : vector<1x17xf32> to vector<128x17xf32>
    %139 = arith.addf %135, %138 : vector<128x17xf32>
    %c1_83 = arith.constant 1 : index
    %c0_84 = arith.constant 0 : index
    %c0_85 = arith.constant 0 : index
    %140 = vector.load %arg6[%c1_83, %c0_84, %c0_85] : memref<2x17x17xbf16, #tpu.memory_space<vmem>>, vector<1x17x17xbf16>
    %141 = vector.shape_cast %140 : vector<1x17x17xbf16> to vector<17x17xbf16>
    %cst_86 = arith.constant dense<0.000000e+00> : vector<128x17xf32>
    %142 = tpu.matmul %125, %141, %cst_86 {dimension_numbers = #tpu.dot_dimension_numbers<[1], [0], [0], [1], [0, 0, 1, 1], [], []>} : vector<128x17xbf16>, vector<17x17xbf16>, vector<128x17xf32> -> vector<128x17xf32>
    %c1_87 = arith.constant 1 : index
    %c0_88 = arith.constant 0 : index
    %c0_89 = arith.constant 0 : index
    %143 = vector.load %arg7[%c1_87, %c0_88, %c0_89] : memref<2x1x17xf32, #tpu.memory_space<vmem>>, vector<1x1x17xf32>
    %144 = vector.shape_cast %143 : vector<1x1x17xf32> to vector<1x17xf32>
    %145 = vector.broadcast %144 : vector<1x17xf32> to vector<128x17xf32>
    %146 = arith.addf %142, %145 : vector<128x17xf32>
    %147 = vector.shape_cast %132 : vector<128x17xf32> to vector<4x32x17xf32>
    %148 = arith.truncf %147 : vector<4x32x17xf32> to vector<4x32x17xbf16>
    %149 = vector.shape_cast %139 : vector<128x17xf32> to vector<4x32x17xf32>
    %150 = arith.truncf %149 : vector<4x32x17xf32> to vector<4x32x17xbf16>
    %151 = vector.shape_cast %146 : vector<128x17xf32> to vector<4x32x17xf32>
    %152 = arith.truncf %151 : vector<4x32x17xf32> to vector<4x32x17xbf16>
    "tpu.trace_start"() <{level = 10 : i32, message = "bqd,bkd->bqk"}> : () -> ()
    %cst_90 = arith.constant dense<0.000000e+00> : vector<4x32x32xf32>
    %153 = tpu.matmul %148, %150, %cst_90 {dimension_numbers = #tpu.dot_dimension_numbers<[2], [2], [1], [1], [0, 0, 0, 1, 1, 1], [0], [0]>} : vector<4x32x17xbf16>, vector<4x32x17xbf16>, vector<4x32x32xf32> -> vector<4x32x32xf32>
    "tpu.trace_stop"() : () -> ()
    %cst_91 = arith.constant 0.242535621 : f32
    %154 = vector.broadcast %cst_91 : f32 to vector<4x32x32xf32>
    %155 = arith.mulf %153, %154 : vector<4x32x32xf32>
    %cst_92 = arith.constant dense<0xFF800000> : vector<4x32xf32>
    %156 = vector.multi_reduction <maximumf>, %155, %cst_92 [2] : vector<4x32x32xf32> to vector<4x32xf32>
    %157 = vector.shape_cast %156 : vector<4x32xf32> to vector<4x32x1xf32>
    %158 = vector.broadcast %157 : vector<4x32x1xf32> to vector<4x32x32xf32>
    %159 = arith.subf %155, %158 : vector<4x32x32xf32>
    %160 = math.exp %159 : vector<4x32x32xf32>
    %cst_93 = arith.constant dense<0.000000e+00> : vector<4x32xf32>
    %161 = vector.multi_reduction <add>, %160, %cst_93 [2] : vector<4x32x32xf32> to vector<4x32xf32>
    %162 = vector.shape_cast %161 : vector<4x32xf32> to vector<4x32x1xf32>
    %163 = tpu.reciprocal %162 {approx = true} : vector<4x32x1xf32> -> vector<4x32x1xf32>
    %164 = vector.broadcast %163 : vector<4x32x1xf32> to vector<4x32x32xf32>
    %165 = arith.mulf %160, %164 : vector<4x32x32xf32>
    %166 = arith.truncf %165 : vector<4x32x32xf32> to vector<4x32x32xbf16>
    "tpu.trace_start"() <{level = 10 : i32, message = "bqk,bkd->bqd"}> : () -> ()
    %cst_94 = arith.constant dense<0.000000e+00> : vector<4x32x17xf32>
    %167 = tpu.matmul %166, %152, %cst_94 {dimension_numbers = #tpu.dot_dimension_numbers<[2], [1], [1], [2], [0, 0, 0, 1, 1, 2], [0], [0]>} : vector<4x32x32xbf16>, vector<4x32x17xbf16>, vector<4x32x17xf32> -> vector<4x32x17xf32>
    "tpu.trace_stop"() : () -> ()
    %168 = vector.shape_cast %167 : vector<4x32x17xf32> to vector<128x17xf32>
    %169 = arith.truncf %168 : vector<128x17xf32> to vector<128x17xbf16>
    %c1_95 = arith.constant 1 : index
    %c0_96 = arith.constant 0 : index
    %c0_97 = arith.constant 0 : index
    %170 = vector.load %arg8[%c1_95, %c0_96, %c0_97] : memref<2x17x17xbf16, #tpu.memory_space<vmem>>, vector<1x17x17xbf16>
    %171 = vector.shape_cast %170 : vector<1x17x17xbf16> to vector<17x17xbf16>
    %cst_98 = arith.constant dense<0.000000e+00> : vector<128x17xf32>
    %172 = tpu.matmul %169, %171, %cst_98 {dimension_numbers = #tpu.dot_dimension_numbers<[1], [0], [0], [1], [0, 0, 1, 1], [], []>} : vector<128x17xbf16>, vector<17x17xbf16>, vector<128x17xf32> -> vector<128x17xf32>
    %c1_99 = arith.constant 1 : index
    %c0_100 = arith.constant 0 : index
    %c0_101 = arith.constant 0 : index
    %173 = vector.load %arg9[%c1_99, %c0_100, %c0_101] : memref<2x1x17xf32, #tpu.memory_space<vmem>>, vector<1x1x17xf32>
    %174 = vector.shape_cast %173 : vector<1x1x17xf32> to vector<1x17xf32>
    %175 = vector.broadcast %174 : vector<1x17xf32> to vector<128x17xf32>
    %176 = arith.addf %172, %175 : vector<128x17xf32>
    %177 = arith.addf %124, %176 : vector<128x17xf32>
    %c1_102 = arith.constant 1 : index
    %c0_103 = arith.constant 0 : index
    %c0_104 = arith.constant 0 : index
    %178 = vector.load %arg10[%c1_102, %c0_103, %c0_104] : memref<2x1x17xf32, #tpu.memory_space<vmem>>, vector<1x1x17xf32>
    %179 = vector.shape_cast %178 : vector<1x1x17xf32> to vector<1x17xf32>
    %c1_105 = arith.constant 1 : index
    %c0_106 = arith.constant 0 : index
    %c0_107 = arith.constant 0 : index
    %180 = vector.load %arg11[%c1_105, %c0_106, %c0_107] : memref<2x1x17xf32, #tpu.memory_space<vmem>>, vector<1x1x17xf32>
    %181 = vector.shape_cast %180 : vector<1x1x17xf32> to vector<1x17xf32>
    %cst_108 = arith.constant dense<0.000000e+00> : vector<128xf32>
    %182 = vector.multi_reduction <add>, %177, %cst_108 [1] : vector<128x17xf32> to vector<128xf32>
    %183 = vector.shape_cast %182 : vector<128xf32> to vector<128x1xf32>
    %cst_109 = arith.constant 1.700000e+01 : f32
    %184 = vector.broadcast %cst_109 : f32 to vector<128x1xf32>
    %185 = arith.divf %183, %184 : vector<128x1xf32>
    %186 = vector.broadcast %185 : vector<128x1xf32> to vector<128x17xf32>
    %187 = arith.subf %177, %186 : vector<128x17xf32>
    %188 = arith.mulf %187, %187 : vector<128x17xf32>
    %cst_110 = arith.constant dense<0.000000e+00> : vector<128xf32>
    %189 = vector.multi_reduction <add>, %188, %cst_110 [1] : vector<128x17xf32> to vector<128xf32>
    %190 = vector.shape_cast %189 : vector<128xf32> to vector<128x1xf32>
    %cst_111 = arith.constant 1.700000e+01 : f32
    %191 = vector.broadcast %cst_111 : f32 to vector<128x1xf32>
    %192 = arith.divf %190, %191 : vector<128x1xf32>
    %193 = vector.broadcast %185 : vector<128x1xf32> to vector<128x17xf32>
    %194 = arith.subf %177, %193 : vector<128x17xf32>
    %cst_112 = arith.constant 9.99999974E-6 : f32
    %195 = vector.broadcast %cst_112 : f32 to vector<128x1xf32>
    %196 = arith.addf %192, %195 : vector<128x1xf32>
    %197 = math.rsqrt %196 : vector<128x1xf32>
    %198 = vector.broadcast %197 : vector<128x1xf32> to vector<128x17xf32>
    %199 = arith.mulf %194, %198 : vector<128x17xf32>
    %200 = vector.broadcast %179 : vector<1x17xf32> to vector<128x17xf32>
    %201 = arith.mulf %199, %200 : vector<128x17xf32>
    %202 = vector.broadcast %181 : vector<1x17xf32> to vector<128x17xf32>
    %203 = arith.addf %201, %202 : vector<128x17xf32>
    %204 = arith.truncf %203 : vector<128x17xf32> to vector<128x17xbf16>
    %c1_113 = arith.constant 1 : index
    %c0_114 = arith.constant 0 : index
    %c0_115 = arith.constant 0 : index
    %205 = vector.load %arg12[%c1_113, %c0_114, %c0_115] : memref<2x17x2048xbf16, #tpu.memory_space<vmem>>, vector<1x17x2048xbf16>
    %206 = vector.shape_cast %205 : vector<1x17x2048xbf16> to vector<17x2048xbf16>
    %cst_116 = arith.constant dense<0.000000e+00> : vector<128x2048xf32>
    %207 = tpu.matmul %204, %206, %cst_116 {dimension_numbers = #tpu.dot_dimension_numbers<[1], [0], [0], [1], [0, 0, 1, 1], [], []>} : vector<128x17xbf16>, vector<17x2048xbf16>, vector<128x2048xf32> -> vector<128x2048xf32>
    %c1_117 = arith.constant 1 : index
    %c0_118 = arith.constant 0 : index
    %c0_119 = arith.constant 0 : index
    %208 = vector.load %arg13[%c1_117, %c0_118, %c0_119] : memref<2x1x2048xf32, #tpu.memory_space<vmem>>, vector<1x1x2048xf32>
    %209 = vector.shape_cast %208 : vector<1x1x2048xf32> to vector<1x2048xf32>
    %210 = vector.broadcast %209 : vector<1x2048xf32> to vector<128x2048xf32>
    %211 = arith.addf %207, %210 : vector<128x2048xf32>
    %cst_120 = arith.constant 0.000000e+00 : f32
    %212 = vector.broadcast %cst_120 : f32 to vector<128x2048xf32>
    %213 = arith.maximumf %211, %212 : vector<128x2048xf32>
    %214 = arith.truncf %213 : vector<128x2048xf32> to vector<128x2048xbf16>
    %c1_121 = arith.constant 1 : index
    %c0_122 = arith.constant 0 : index
    %c0_123 = arith.constant 0 : index
    %215 = vector.load %arg14[%c1_121, %c0_122, %c0_123] : memref<2x2048x17xbf16, #tpu.memory_space<vmem>>, vector<1x2048x17xbf16>
    %216 = vector.shape_cast %215 : vector<1x2048x17xbf16> to vector<2048x17xbf16>
    %cst_124 = arith.constant dense<0.000000e+00> : vector<128x17xf32>
    %217 = tpu.matmul %214, %216, %cst_124 {dimension_numbers = #tpu.dot_dimension_numbers<[1], [0], [0], [1], [0, 0, 1, 1], [], []>} : vector<128x2048xbf16>, vector<2048x17xbf16>, vector<128x17xf32> -> vector<128x17xf32>
    %c1_125 = arith.constant 1 : index
    %c0_126 = arith.constant 0 : index
    %c0_127 = arith.constant 0 : index
    %218 = vector.load %arg15[%c1_125, %c0_126, %c0_127] : memref<2x1x17xf32, #tpu.memory_space<vmem>>, vector<1x1x17xf32>
    %219 = vector.shape_cast %218 : vector<1x1x17xf32> to vector<1x17xf32>
    %220 = vector.broadcast %219 : vector<1x17xf32> to vector<128x17xf32>
    %221 = arith.addf %217, %220 : vector<128x17xf32>
    %222 = arith.addf %203, %221 : vector<128x17xf32>
    %c1_128 = arith.constant 1 : index
    %c0_129 = arith.constant 0 : index
    %c0_130 = arith.constant 0 : index
    %223 = vector.load %arg16[%c1_128, %c0_129, %c0_130] : memref<2x1x17xf32, #tpu.memory_space<vmem>>, vector<1x1x17xf32>
    %224 = vector.shape_cast %223 : vector<1x1x17xf32> to vector<1x17xf32>
    %c1_131 = arith.constant 1 : index
    %c0_132 = arith.constant 0 : index
    %c0_133 = arith.constant 0 : index
    %225 = vector.load %arg17[%c1_131, %c0_132, %c0_133] : memref<2x1x17xf32, #tpu.memory_space<vmem>>, vector<1x1x17xf32>
    %226 = vector.shape_cast %225 : vector<1x1x17xf32> to vector<1x17xf32>
    %cst_134 = arith.constant dense<0.000000e+00> : vector<128xf32>
    %227 = vector.multi_reduction <add>, %222, %cst_134 [1] : vector<128x17xf32> to vector<128xf32>
    %228 = vector.shape_cast %227 : vector<128xf32> to vector<128x1xf32>
    %cst_135 = arith.constant 1.700000e+01 : f32
    %229 = vector.broadcast %cst_135 : f32 to vector<128x1xf32>
    %230 = arith.divf %228, %229 : vector<128x1xf32>
    %231 = vector.broadcast %230 : vector<128x1xf32> to vector<128x17xf32>
    %232 = arith.subf %222, %231 : vector<128x17xf32>
    %233 = arith.mulf %232, %232 : vector<128x17xf32>
    %cst_136 = arith.constant dense<0.000000e+00> : vector<128xf32>
    %234 = vector.multi_reduction <add>, %233, %cst_136 [1] : vector<128x17xf32> to vector<128xf32>
    %235 = vector.shape_cast %234 : vector<128xf32> to vector<128x1xf32>
    %cst_137 = arith.constant 1.700000e+01 : f32
    %236 = vector.broadcast %cst_137 : f32 to vector<128x1xf32>
    %237 = arith.divf %235, %236 : vector<128x1xf32>
    %238 = vector.broadcast %230 : vector<128x1xf32> to vector<128x17xf32>
    %239 = arith.subf %222, %238 : vector<128x17xf32>
    %cst_138 = arith.constant 9.99999974E-6 : f32
    %240 = vector.broadcast %cst_138 : f32 to vector<128x1xf32>
    %241 = arith.addf %237, %240 : vector<128x1xf32>
    %242 = math.rsqrt %241 : vector<128x1xf32>
    %243 = vector.broadcast %242 : vector<128x1xf32> to vector<128x17xf32>
    %244 = arith.mulf %239, %243 : vector<128x17xf32>
    %245 = vector.broadcast %224 : vector<1x17xf32> to vector<128x17xf32>
    %246 = arith.mulf %244, %245 : vector<128x17xf32>
    %247 = vector.broadcast %226 : vector<1x17xf32> to vector<128x17xf32>
    %248 = arith.addf %246, %247 : vector<128x17xf32>
    %c0_139 = arith.constant 0 : index
    %c0_140 = arith.constant 0 : index
    %249 = vector.load %arg18[%c0_139, %c0_140] : memref<128x17xf32, #tpu.memory_space<vmem>>, vector<128x17xf32>
    tpu.vector_store %arg18[%c0_139, %c0_140], %248 {strides = array<i32>} : memref<128x17xf32, #tpu.memory_space<vmem>>, vector<128x17xf32>,
    return
  }
  func.func @transform_0(%arg0: i32) -> (i32, i32) {
    %c0_i32 = arith.constant 0 : i32
    %c0_i32_0 = arith.constant 0 : i32
    return %arg0, %c0_i32 : i32, i32
  }
  func.func @transform_1(%arg0: i32) -> (i32, i32, i32) {
    %c0_i32 = arith.constant 0 : i32
    %c0_i32_0 = arith.constant 0 : i32
    %c0_i32_1 = arith.constant 0 : i32
    %c0_i32_2 = arith.constant 0 : i32
    return %c0_i32, %c0_i32_0, %c0_i32_1 : i32, i32, i32
  }
  func.func @transform_2(%arg0: i32) -> (i32, i32, i32) {
    %c0_i32 = arith.constant 0 : i32
    %c0_i32_0 = arith.constant 0 : i32
    %c0_i32_1 = arith.constant 0 : i32
    %c0_i32_2 = arith.constant 0 : i32
    return %c0_i32, %c0_i32_0, %c0_i32_1 : i32, i32, i32
  }
  func.func @transform_3(%arg0: i32) -> (i32, i32, i32) {
    %c0_i32 = arith.constant 0 : i32
    %c0_i32_0 = arith.constant 0 : i32
    %c0_i32_1 = arith.constant 0 : i32
    %c0_i32_2 = arith.constant 0 : i32
    return %c0_i32, %c0_i32_0, %c0_i32_1 : i32, i32, i32
  }
  func.func @transform_4(%arg0: i32) -> (i32, i32, i32) {
    %c0_i32 = arith.constant 0 : i32
    %c0_i32_0 = arith.constant 0 : i32
    %c0_i32_1 = arith.constant 0 : i32
    %c0_i32_2 = arith.constant 0 : i32
    return %c0_i32, %c0_i32_0, %c0_i32_1 : i32, i32, i32
  }
  func.func @transform_5(%arg0: i32) -> (i32, i32, i32) {
    %c0_i32 = arith.constant 0 : i32
    %c0_i32_0 = arith.constant 0 : i32
    %c0_i32_1 = arith.constant 0 : i32
    %c0_i32_2 = arith.constant 0 : i32
    return %c0_i32, %c0_i32_0, %c0_i32_1 : i32, i32, i32
  }
  func.func @transform_6(%arg0: i32) -> (i32, i32, i32) {
    %c0_i32 = arith.constant 0 : i32
    %c0_i32_0 = arith.constant 0 : i32
    %c0_i32_1 = arith.constant 0 : i32
    %c0_i32_2 = arith.constant 0 : i32
    return %c0_i32, %c0_i32_0, %c0_i32_1 : i32, i32, i32
  }
  func.func @transform_7(%arg0: i32) -> (i32, i32, i32) {
    %c0_i32 = arith.constant 0 : i32
    %c0_i32_0 = arith.constant 0 : i32
    %c0_i32_1 = arith.constant 0 : i32
    %c0_i32_2 = arith.constant 0 : i32
    return %c0_i32, %c0_i32_0, %c0_i32_1 : i32, i32, i32
  }
  func.func @transform_8(%arg0: i32) -> (i32, i32, i32) {
    %c0_i32 = arith.constant 0 : i32
    %c0_i32_0 = arith.constant 0 : i32
    %c0_i32_1 = arith.constant 0 : i32
    %c0_i32_2 = arith.constant 0 : i32
    return %c0_i32, %c0_i32_0, %c0_i32_1 : i32, i32, i32
  }
  func.func @transform_9(%arg0: i32) -> (i32, i32, i32) {
    %c0_i32 = arith.constant 0 : i32
    %c0_i32_0 = arith.constant 0 : i32
    %c0_i32_1 = arith.constant 0 : i32
    %c0_i32_2 = arith.constant 0 : i32
    return %c0_i32, %c0_i32_0, %c0_i32_1 : i32, i32, i32
  }
  func.func @transform_10(%arg0: i32) -> (i32, i32, i32) {
    %c0_i32 = arith.constant 0 : i32
    %c0_i32_0 = arith.constant 0 : i32
    %c0_i32_1 = arith.constant 0 : i32
    %c0_i32_2 = arith.constant 0 : i32
    return %c0_i32, %c0_i32_0, %c0_i32_1 : i32, i32, i32
  }
  func.func @transform_11(%arg0: i32) -> (i32, i32, i32) {
    %c0_i32 = arith.constant 0 : i32
    %c0_i32_0 = arith.constant 0 : i32
    %c0_i32_1 = arith.constant 0 : i32
    %c0_i32_2 = arith.constant 0 : i32
    return %c0_i32, %c0_i32_0, %c0_i32_1 : i32, i32, i32
  }
  func.func @transform_12(%arg0: i32) -> (i32, i32, i32) {
    %c0_i32 = arith.constant 0 : i32
    %c0_i32_0 = arith.constant 0 : i32
    %c0_i32_1 = arith.constant 0 : i32
    %c0_i32_2 = arith.constant 0 : i32
    return %c0_i32, %c0_i32_0, %c0_i32_1 : i32, i32, i32
  }
  func.func @transform_13(%arg0: i32) -> (i32, i32, i32) {
    %c0_i32 = arith.constant 0 : i32
    %c0_i32_0 = arith.constant 0 : i32
    %c0_i32_1 = arith.constant 0 : i32
    %c0_i32_2 = arith.constant 0 : i32
    return %c0_i32, %c0_i32_0, %c0_i32_1 : i32, i32, i32
  }
  func.func @transform_14(%arg0: i32) -> (i32, i32, i32) {
    %c0_i32 = arith.constant 0 : i32
    %c0_i32_0 = arith.constant 0 : i32
    %c0_i32_1 = arith.constant 0 : i32
    %c0_i32_2 = arith.constant 0 : i32
    return %c0_i32, %c0_i32_0, %c0_i32_1 : i32, i32, i32
  }
  func.func @transform_15(%arg0: i32) -> (i32, i32, i32) {
    %c0_i32 = arith.constant 0 : i32
    %c0_i32_0 = arith.constant 0 : i32
    %c0_i32_1 = arith.constant 0 : i32
    %c0_i32_2 = arith.constant 0 : i32
    return %c0_i32, %c0_i32_0, %c0_i32_1 : i32, i32, i32
  }
  func.func @transform_16(%arg0: i32) -> (i32, i32, i32) {
    %c0_i32 = arith.constant 0 : i32
    %c0_i32_0 = arith.constant 0 : i32
    %c0_i32_1 = arith.constant 0 : i32
    %c0_i32_2 = arith.constant 0 : i32
    return %c0_i32, %c0_i32_0, %c0_i32_1 : i32, i32, i32
  }
  func.func @transform_17(%arg0: i32) -> (i32, i32) {
    %c0_i32 = arith.constant 0 : i32
    %c0_i32_0 = arith.constant 0 : i32
    return %arg0, %c0_i32 : i32, i32
  }
}

module attributes {stable_mosaic.version = 11 : i64} {
  func.func @_head_kernel(%arg0: i32, %arg1: memref<8x544xf32, #tpu.memory_space<vmem>>, %arg2: memref<544x256xbf16, #tpu.memory_space<vmem>>, %arg3: memref<1x256xf32, #tpu.memory_space<vmem>>, %arg4: memref<256x4xbf16, #tpu.memory_space<vmem>>, %arg5: memref<1x4xf32, #tpu.memory_space<vmem>>, %arg6: memref<8x4xf32, #tpu.memory_space<vmem>>) attributes {dimension_semantics = [#tpu.dimension_semantics<parallel>], iteration_bounds = array<i64: 1>, scalar_prefetch = 0 : i64, scratch_operands = 0 : i64, tpu.core_type = #tpu.core_type<tc>, window_params = [{transform_indices = @transform_0, window_bounds = array<i64: 8, 544>}, {pipeline_mode = #tpu.pipeline_mode<synchronous>, transform_indices = @transform_1, window_bounds = array<i64: 544, 256>}, {pipeline_mode = #tpu.pipeline_mode<synchronous>, transform_indices = @transform_2, window_bounds = array<i64: 1, 256>}, {pipeline_mode = #tpu.pipeline_mode<synchronous>, transform_indices = @transform_3, window_bounds = array<i64: 256, 4>}, {pipeline_mode = #tpu.pipeline_mode<synchronous>, transform_indices = @transform_4, window_bounds = array<i64: 1, 4>}, {transform_indices = @transform_5, window_bounds = array<i64: 8, 4>}]} {
    %c0 = arith.constant 0 : index
    %c0_0 = arith.constant 0 : index
    %0 = vector.load %arg1[%c0, %c0_0] : memref<8x544xf32, #tpu.memory_space<vmem>>, vector<8x544xf32>
    %1 = arith.truncf %0 : vector<8x544xf32> to vector<8x544xbf16>
    %c0_1 = arith.constant 0 : index
    %c0_2 = arith.constant 0 : index
    %2 = vector.load %arg2[%c0_1, %c0_2] : memref<544x256xbf16, #tpu.memory_space<vmem>>, vector<544x256xbf16>
    %cst = arith.constant dense<0.000000e+00> : vector<8x256xf32>
    %3 = tpu.matmul %1, %2, %cst {dimension_numbers = #tpu.dot_dimension_numbers<[1], [0], [0], [1], [0, 0, 1, 1], [], []>} : vector<8x544xbf16>, vector<544x256xbf16>, vector<8x256xf32> -> vector<8x256xf32>
    %c0_3 = arith.constant 0 : index
    %c0_4 = arith.constant 0 : index
    %4 = vector.load %arg3[%c0_3, %c0_4] : memref<1x256xf32, #tpu.memory_space<vmem>>, vector<1x256xf32>
    %5 = vector.broadcast %4 : vector<1x256xf32> to vector<8x256xf32>
    %6 = arith.addf %3, %5 : vector<8x256xf32>
    %cst_5 = arith.constant 0.000000e+00 : f32
    %7 = vector.broadcast %cst_5 : f32 to vector<8x256xf32>
    %8 = arith.maximumf %6, %7 : vector<8x256xf32>
    %9 = arith.truncf %8 : vector<8x256xf32> to vector<8x256xbf16>
    %c0_6 = arith.constant 0 : index
    %c0_7 = arith.constant 0 : index
    %10 = vector.load %arg4[%c0_6, %c0_7] : memref<256x4xbf16, #tpu.memory_space<vmem>>, vector<256x4xbf16>
    %cst_8 = arith.constant dense<0.000000e+00> : vector<8x4xf32>
    %11 = tpu.matmul %9, %10, %cst_8 {dimension_numbers = #tpu.dot_dimension_numbers<[1], [0], [0], [1], [0, 0, 1, 1], [], []>} : vector<8x256xbf16>, vector<256x4xbf16>, vector<8x4xf32> -> vector<8x4xf32>
    %c0_9 = arith.constant 0 : index
    %c0_10 = arith.constant 0 : index
    %12 = vector.load %arg5[%c0_9, %c0_10] : memref<1x4xf32, #tpu.memory_space<vmem>>, vector<1x4xf32>
    %13 = vector.broadcast %12 : vector<1x4xf32> to vector<8x4xf32>
    %14 = arith.addf %11, %13 : vector<8x4xf32>
    %cst_11 = arith.constant dense<0xFF800000> : vector<8xf32>
    %15 = vector.multi_reduction <maximumf>, %14, %cst_11 [1] : vector<8x4xf32> to vector<8xf32>
    %16 = vector.shape_cast %15 : vector<8xf32> to vector<8x1xf32>
    %17 = vector.broadcast %16 : vector<8x1xf32> to vector<8x4xf32>
    %18 = arith.subf %14, %17 : vector<8x4xf32>
    %19 = math.exp %18 : vector<8x4xf32>
    %cst_12 = arith.constant dense<0.000000e+00> : vector<8xf32>
    %20 = vector.multi_reduction <add>, %19, %cst_12 [1] : vector<8x4xf32> to vector<8xf32>
    %21 = vector.shape_cast %20 : vector<8xf32> to vector<8x1xf32>
    %22 = math.log %21 : vector<8x1xf32>
    %23 = arith.addf %22, %16 : vector<8x1xf32>
    %24 = vector.broadcast %23 : vector<8x1xf32> to vector<8x4xf32>
    %25 = arith.subf %14, %24 : vector<8x4xf32>
    %c0_13 = arith.constant 0 : index
    %c0_14 = arith.constant 0 : index
    %26 = vector.load %arg6[%c0_13, %c0_14] : memref<8x4xf32, #tpu.memory_space<vmem>>, vector<8x4xf32>
    tpu.vector_store %arg6[%c0_13, %c0_14], %25 {strides = array<i32>} : memref<8x4xf32, #tpu.memory_space<vmem>>, vector<8x4xf32>,
    return
  }
  func.func @transform_0(%arg0: i32) -> (i32, i32) {
    %c0_i32 = arith.constant 0 : i32
    %c0_i32_0 = arith.constant 0 : i32
    return %arg0, %c0_i32 : i32, i32
  }
  func.func @transform_1(%arg0: i32) -> (i32, i32) {
    %c0_i32 = arith.constant 0 : i32
    %c0_i32_0 = arith.constant 0 : i32
    %c0_i32_1 = arith.constant 0 : i32
    return %c0_i32, %c0_i32_0 : i32, i32
  }
  func.func @transform_2(%arg0: i32) -> (i32, i32) {
    %c0_i32 = arith.constant 0 : i32
    %c0_i32_0 = arith.constant 0 : i32
    %c0_i32_1 = arith.constant 0 : i32
    return %c0_i32, %c0_i32_0 : i32, i32
  }
  func.func @transform_3(%arg0: i32) -> (i32, i32) {
    %c0_i32 = arith.constant 0 : i32
    %c0_i32_0 = arith.constant 0 : i32
    %c0_i32_1 = arith.constant 0 : i32
    return %c0_i32, %c0_i32_0 : i32, i32
  }
  func.func @transform_4(%arg0: i32) -> (i32, i32) {
    %c0_i32 = arith.constant 0 : i32
    %c0_i32_0 = arith.constant 0 : i32
    %c0_i32_1 = arith.constant 0 : i32
    return %c0_i32, %c0_i32_0 : i32, i32
  }
  func.func @transform_5(%arg0: i32) -> (i32, i32) {
    %c0_i32 = arith.constant 0 : i32
    %c0_i32_0 = arith.constant 0 : i32
    return %arg0, %c0_i32 : i32, i32
  }
}

</mosaic_0001>

<bundles_post_ra>
// kernel: transformer_nn_forward.3
= control target key start
LH: loop header
LB: loop body
LE: loop exit
PB: predicated region body
PF: predicated region fallthrough
CT: control target
= control target key end

     0   :  { %vm451_vm0 = vcmask 261120   ;;  %vm757_vm1 = vcmask 31744   ;;  %s1325_s1 = inlined_call_operand.vmem [shape: bf16[544,256], index: 1, kind: input, shape index: {}]   ;;  %s1326_s0 = inlined_call_operand.vmem [shape: f32[8,544], index: 0, kind: input, shape index: {}]   ;;  %s1327_s3 = inlined_call_operand.vmem [shape: bf16[256,4], index: 3, kind: input, shape index: {}]   ;;  %s1328_s2 = inlined_call_operand.vmem [shape: f32[1,256], index: 2, kind: input, shape index: {}]   ;;  %s1329_s4 = inlined_call_operand.vmem [shape: f32[1,4], index: 4, kind: input, shape index: {}]   ;;  %s1330_s5 = inlined_call_operand.vmem [shape: f32[8,4], index: 5, kind: output, shape index: {}]  }
   0x1   :  { %v893_v0 = vld [vmem:[%s1325_s1 + $0x104] ss:$8 sps:$4 sm:$0xff]   ;;  %v895_v1 = vld [vmem:[%s1325_s1 + $0x100] ss:$8 sps:$4 sm:$0xff]   ;;  %v896_v2 = vld [vmem:[%s1325_s1 + $0x114] ss:$8 sps:$4 sm:$0xff]  }
   0x2   :  { %496 = vmatprep.subr.bf16.mxu0 %v893_v0  ;;  %v898_v3 = vld [vmem:[%s1325_s1 + $0x110] ss:$8 sps:$4 sm:$0xff]   ;;  %v899_v4 = vld [vmem:[%s1325_s1 + $0x4] ss:$8 sps:$4 sm:$0xff]   ;;  %v903_v6 = vld [vmem:[%s1325_s1] ss:$8 sps:$4 sm:$0xff]  }
   0x3   :  { %497 = vmatpush1.bf16.msra.mxu0 %v895_v1  ;;  %v901_v5 = vld [vmem:[%s1325_s1 + $0x124] ss:$8 sps:$4 sm:$0xff]   ;;  %455 = vmatprep.subr.bf16.mxu1 %v899_v4  ;;  %v905_v7 = vld [vmem:[%s1325_s1 + $0x14] ss:$8 sps:$4 sm:$0xff]   ;;  %v904_v8 = vld [vmem:[%s1325_s1 + $0x120] ss:$8 sps:$4 sm:$0xff]  }
   0x4   :  { %498 = vmatprep.subr.bf16.mxu0 %v896_v2  ;;  %456 = vmatpush1.bf16.msra.mxu1 %v903_v6  ;;  %v907_v9 = vld [vmem:[%s1325_s1 + $0x134] ss:$8 sps:$4 sm:$0xff]   ;;  %v909_v10 = vld [vmem:[%s1325_s1 + $0x10] ss:$8 sps:$4 sm:$0xff]   ;;  %v911_v11 = vld [vmem:[%s1325_s1 + $0x24] ss:$8 sps:$4 sm:$0xff]  }
   0x5   :  { %457 = vmatprep.subr.bf16.mxu1 %v905_v7  ;;  %v910_v12 = vld [vmem:[%s1325_s1 + $0x130] ss:$8 sps:$4 sm:$0xff]   ;;  %v915_v13 = vld [vmem:[%s1325_s1 + $0x20] ss:$8 sps:$4 sm:$0xff]   ;;  %v917_v14 = vld [vmem:[%s1325_s1 + $0x34] ss:$8 sps:$4 sm:$0xff]  }
   0x6   :  { %v913_v15 = vld [vmem:[%s1325_s1 + $0x144] ss:$8 sps:$4 sm:$0xff]   ;;  %v921_v16 = vld [vmem:[%s1325_s1 + $0x30] ss:$8 sps:$4 sm:$0xff]   ;;  %v916_v17 = vld [vmem:[%s1325_s1 + $0x140] ss:$8 sps:$4 sm:$0xff]  }
   0x7   :  { %499 = vmatpush1.bf16.msra.mxu0 %v898_v3  ;;  %v923_v18 = vld [vmem:[%s1325_s1 + $0x44] ss:$8 sps:$4 sm:$0xff]   ;;  %v919_v19 = vld [vmem:[%s1325_s1 + $0x154] ss:$8 sps:$4 sm:$0xff]   ;;  %v922_v20 = vld [vmem:[%s1325_s1 + $0x150] ss:$8 sps:$4 sm:$0xff]  }
   0x8   :  { %500 = vmatprep.subr.bf16.mxu0 %v901_v5  ;;  %458 = vmatpush1.bf16.msra.mxu1 %v909_v10  ;;  %v927_v21 = vld [vmem:[%s1325_s1 + $0x40] ss:$8 sps:$4 sm:$0xff]   ;;  %v929_v22 = vld [vmem:[%s1325_s1 + $0x54] ss:$8 sps:$4 sm:$0xff]   ;;  %v925_v23 = vld [vmem:[%s1325_s1 + $0x164] ss:$8 sps:$4 sm:$0xff]  }
   0x9   :  { %459 = vmatprep.subr.bf16.mxu1 %v911_v11  ;;  %v933_v24 = vld [vmem:[%s1325_s1 + $0x50] ss:$8 sps:$4 sm:$0xff]   ;;  %v928_v25 = vld [vmem:[%s1325_s1 + $0x160] ss:$8 sps:$4 sm:$0xff]   ;;  %v935_v26 = vld [vmem:[%s1325_s1 + $0x64] ss:$8 sps:$4 sm:$0xff]  }
   0xa   :  { %v931_v27 = vld [vmem:[%s1325_s1 + $0x174] ss:$8 sps:$4 sm:$0xff]   ;;  %v934_v28 = vld [vmem:[%s1325_s1 + $0x170] ss:$8 sps:$4 sm:$0xff]   ;;  %v939_v29 = vld [vmem:[%s1325_s1 + $0x60] ss:$8 sps:$4 sm:$0xff]  }
   0xb   :  { %501 = vmatpush1.bf16.msra.mxu0 %v904_v8  ;;  %v941_v30 = vld [vmem:[%s1325_s1 + $0x74] ss:$8 sps:$4 sm:$0xff]   ;;  %v937_v31 = vld [vmem:[%s1325_s1 + $0x184] ss:$8 sps:$4 sm:$0xff]   ;;  %v945_v32 = vld [vmem:[%s1325_s1 + $0x70] ss:$8 sps:$4 sm:$0xff]  }
   0xc   :  { %502 = vmatprep.subr.bf16.mxu0 %v907_v9  ;;  %460 = vmatpush1.bf16.msra.mxu1 %v915_v13  ;;  %v940_v33 = vld [vmem:[%s1325_s1 + $0x180] ss:$8 sps:$4 sm:$0xff]   ;;  %v947_v34 = vld [vmem:[%s1325_s1 + $0x84] ss:$8 sps:$4 sm:$0xff]   ;;  %v943_v35 = vld [vmem:[%s1325_s1 + $0x194] ss:$8 sps:$4 sm:$0xff]  }
   0xd   :  { %461 = vmatprep.subr.bf16.mxu1 %v917_v14  ;;  %v946_v36 = vld [vmem:[%s1325_s1 + $0x190] ss:$8 sps:$4 sm:$0xff]   ;;  %v951_v37 = vld [vmem:[%s1325_s1 + $0x80] ss:$8 sps:$4 sm:$0xff]   ;;  %v953_v38 = vld [vmem:[%s1325_s1 + $0x94] ss:$8 sps:$4 sm:$0xff]  }
   0xe   :  { %v949_v39 = vld [vmem:[%s1325_s1 + $0x1a4] ss:$8 sps:$4 sm:$0xff]   ;;  %v957_v40 = vld [vmem:[%s1325_s1 + $0x90] ss:$8 sps:$4 sm:$0xff]   ;;  %v952_v41 = vld [vmem:[%s1325_s1 + $0x1a0] ss:$8 sps:$4 sm:$0xff]  }
   0xf   :  { %503 = vmatpush1.bf16.msra.mxu0 %v910_v12  ;;  %v955_v42 = vld [vmem:[%s1325_s1 + $0x1b4] ss:$8 sps:$4 sm:$0xff]   ;;  %v959_v43 = vld [vmem:[%s1325_s1 + $0xa4] ss:$8 sps:$4 sm:$0xff]   ;;  %v958_v46 = vld [vmem:[%s1325_s1 + $0x1b0] ss:$8 sps:$4 sm:$0xff]  }
  0x10   :  { %504 = vmatprep.subr.bf16.mxu0 %v913_v15  ;;  %462 = vmatpush1.bf16.msra.mxu1 %v921_v16  ;;  %v24_v44 = vld [vmem:[%s1326_s0 + $0x18] sm:$0xff]  ;;  %v963_v47 = vld [vmem:[%s1325_s1 + $0xa0] ss:$8 sps:$4 sm:$0xff]   ;;  %v961_v49 = vld [vmem:[%s1325_s1 + $0x1c4] ss:$8 sps:$4 sm:$0xff]   ;;  %v1015_v14 = vmov 0  }
  0x11   :  { %463 = vmatprep.subr.bf16.mxu1 %v923_v18  ;;  %v29_v45 = vpack.c.bf16 %v24_v44, %v24_v44  ;;  %v965_v48 = vld [vmem:[%s1325_s1 + $0xb4] ss:$8 sps:$4 sm:$0xff]   ;;  %v964_v50 = vld [vmem:[%s1325_s1 + $0x1c0] ss:$8 sps:$4 sm:$0xff]   ;;  %v969_v51 = vld [vmem:[%s1325_s1 + $0xb0] ss:$8 sps:$4 sm:$0xff]  }
  0x12   :  { %v22_v52 = vld [vmem:[%s1326_s0 + $0x8] sm:$0xff]  ;;  %v967_v55 = vld [vmem:[%s1325_s1 + $0x1d4] ss:$8 sps:$4 sm:$0xff]   ;;  %v970_v56 = vld [vmem:[%s1325_s1 + $0x1d0] ss:$8 sps:$4 sm:$0xff]  }
  0x13   :  { %505 = vmatpush1.bf16.msra.mxu0 %v916_v17  ;;  %528 = vmatprep.mubr.bf16.mxu0 %v29_v45  ;;  %v971_v53 = vld [vmem:[%s1325_s1 + $0xc4] ss:$8 sps:$4 sm:$0xff]   ;;  %v27_v54 = vpack.c.bf16 %v22_v52, %v22_v52  ;;  %v975_v57 = vld [vmem:[%s1325_s1 + $0xc0] ss:$8 sps:$4 sm:$0xff]   ;;  %v977_v58 = vld [vmem:[%s1325_s1 + $0xd4] ss:$8 sps:$4 sm:$0xff]  }
  0x14   :  { %506 = vmatprep.subr.bf16.mxu0 %v919_v19  ;;  %464 = vmatpush1.bf16.msra.mxu1 %v927_v21  ;;  %v973_v59 = vld [vmem:[%s1325_s1 + $0x1e4] ss:$8 sps:$4 sm:$0xff]   ;;  %v976_v60 = vld [vmem:[%s1325_s1 + $0x1e0] ss:$8 sps:$4 sm:$0xff]   ;;  %v979_v61 = vld [vmem:[%s1325_s1 + $0x1f4] ss:$8 sps:$4 sm:$0xff]  }
  0x15   :  { %465 = vmatprep.subr.bf16.mxu1 %v929_v22  ;;  %487 = vmatprep.mubr.bf16.mxu1 %v27_v54  ;;  %v981_v62 = vld [vmem:[%s1325_s1 + $0xd0] ss:$8 sps:$4 sm:$0xff]   ;;  %v983_v63 = vld [vmem:[%s1325_s1 + $0xe4] ss:$8 sps:$4 sm:$0xff]   ;;  %v988_v0 = vld [vmem:[%s1325_s1 + $0xe0] ss:$8 sps:$4 sm:$0xff]  }
  0x16   :  { %v982_v1 = vld [vmem:[%s1325_s1 + $0x1f0] ss:$8 sps:$4 sm:$0xff]   ;;  %v989_v3 = vld [vmem:[%s1325_s1 + $0xf4] ss:$8 sps:$4 sm:$0xff]   ;;  %v987_v4 = vld [vmem:[%s1325_s1 + $0x204] ss:$8 sps:$4 sm:$0xff]  }
  0x17   :  { %507 = vmatpush1.bf16.msra.mxu0 %v922_v20  ;;  %v23_v2 = vld [vmem:[%s1326_s0 + $0x10] sm:$0xff]  ;;  %v21_v7 = vld [vmem:[%s1326_s0] sm:$0xff]  ;;  %v997_v15 = vld [vmem:[%s1327_s3 + $0x48] sm:$0xff]  }
  0x18   :  { %508 = vmatprep.subr.bf16.mxu0 %v925_v23  ;;  %466 = vmatpush1.bf16.msra.mxu1 %v933_v24  ;;  %v28_v5 = vpack.c.bf16 %v23_v2, %v23_v2  ;;  %v991_v6 = vld [vmem:[%s1325_s1 + $0xf0] ss:$8 sps:$4 sm:$0xff]   ;;  %v985_v8 = vld [vmem:[%s1325_s1 + $0x200] ss:$8 sps:$4 sm:$0xff]   ;;  %v994_v9 = vld [vmem:[%s1325_s1 + $0x214] ss:$8 sps:$4 sm:$0xff]   ;;  %v26_v11 = vpack.c.bf16 %v21_v7, %v21_v7 }
  0x19   :  { %467 = vmatprep.subr.bf16.mxu1 %v935_v26  ;;  %v995_v10 = vld [vmem:[%s1327_s3 + $0x40] sm:$0xff]   ;;  %v992_v13 = vld [vmem:[%s1325_s1 + $0x210] ss:$8 sps:$4 sm:$0xff]   ;;  %v998_v16 = vld [vmem:[%s1327_s3 + $0x8] sm:$0xff]  }
  0x1a   :  { %v996_v12 = vld [vmem:[%s1327_s3] sm:$0xff]   ;;  %v999_v18 = vld [vmem:[%s1327_s3 + $0x50] sm:$0xff]   ;;  %v1001_v21 = vld [vmem:[%s1327_s3 + $0x58] sm:$0xff]  }
  0x1b   :  { %509 = vmatpush1.bf16.msra.mxu0 %v928_v25  ;;  %v25_v17 = vld [vmem:[%s1326_s0 + $0x20] sm:$0xff]  ;;  %v1000_v20 = vld [vmem:[%s1327_s3 + $0x10] sm:$0xff]   ;;  %v1002_v22 = vld [vmem:[%s1327_s3 + $0x18] sm:$0xff]  }
  0x1c   :  { %510 = vmatprep.subr.bf16.mxu0 %v931_v27  ;;  %468 = vmatpush1.bf16.msra.mxu1 %v939_v29  ;;  %v30_v19 = vpack.c.bf16 %v25_v17, %v25_v17  ;;  %v1003_v23 = vld [vmem:[%s1327_s3 + $0x60] sm:$0xff]   ;;  %v1005_v25 = vld [vmem:[%s1327_s3 + $0x68] sm:$0xff]   ;;  %v1007_v27 = vld [vmem:[%s1327_s3 + $0x70] sm:$0xff]  }
  0x1d   :  { %469 = vmatprep.subr.bf16.mxu1 %v941_v30  ;;  %v1004_v24 = vld [vmem:[%s1327_s3 + $0x20] sm:$0xff]   ;;  %v1006_v26 = vld [vmem:[%s1327_s3 + $0x28] sm:$0xff]   ;;  %v1009_v29 = vld [vmem:[%s1327_s3 + $0x78] sm:$0xff]  }
  0x1e   :  { %v1010_v30 = vld [vmem:[%s1327_s3 + $0x38] sm:$0xff]  }
  0x1f   :  { %511 = vmatpush1.bf16.msra.mxu0 %v934_v28  ;;  %v1008_v28 = vld [vmem:[%s1327_s3 + $0x30] sm:$0xff]  }
  0x20   :  { %512 = vmatprep.subr.bf16.mxu0 %v937_v31  ;;  %470 = vmatpush1.bf16.msra.mxu1 %v945_v32  ;;  %v101_v31 = vlaneseq }
  0x21   :  { %471 = vmatprep.subr.bf16.mxu1 %v947_v34  ;;  %v99_v34 = vld [vmem:[%s1328_s2] sm:$0x3] }
  0x22   :  { %v102_v32 = vshrl.u32 %v101_v31, 7 }
  0x23   :  { %513 = vmatpush1.bf16.msra.mxu0 %v940_v33 }
  0x24   :  { %514 = vmatprep.subr.bf16.mxu0 %v943_v35  ;;  %472 = vmatpush1.bf16.msra.mxu1 %v951_v37  ;;  %v103_v33 = vsub.s32 0, %v102_v32  ;;  %v107_v35 = vsub.s32 1, %v102_v32 }
  0x25   :  { %473 = vmatprep.subr.bf16.mxu1 %v953_v38 }
  0x26   :  { %v104_v38 = vrot.slane %v99_v34, %v103_v33 }
  0x27   :  { %515 = vmatpush1.bf16.msra.mxu0 %v946_v36 }
  0x28   :  { %516 = vmatprep.subr.bf16.mxu0 %v949_v39  ;;  %474 = vmatpush1.bf16.msra.mxu1 %v957_v40  ;;  %v108_v40 = vrot.slane %v99_v34, %v107_v35 }
  0x29   :  { %475 = vmatprep.subr.bf16.mxu1 %v959_v43 }
  0x2b   :  { %517 = vmatpush1.bf16.msra.mxu0 %v952_v41 }
  0x2c   :  { %518 = vmatprep.subr.bf16.mxu0 %v955_v42  ;;  %476 = vmatpush1.bf16.msra.mxu1 %v963_v47 }
  0x2d   :  { %477 = vmatprep.subr.bf16.mxu1 %v965_v48 }
  0x2f   :  { %519 = vmatpush1.bf16.msra.mxu0 %v958_v46 }
  0x30   :  { %520 = vmatprep.subr.bf16.mxu0 %v961_v49  ;;  %478 = vmatpush1.bf16.msra.mxu1 %v969_v51 }
  0x31   :  { %479 = vmatprep.subr.bf16.mxu1 %v971_v53 }
  0x33   :  { %521 = vmatpush1.bf16.msra.mxu0 %v964_v50 }
  0x34   :  { %522 = vmatprep.subr.bf16.mxu0 %v967_v55  ;;  %480 = vmatpush1.bf16.msra.mxu1 %v975_v57  ;;  %v845_v55 = vld [vmem:[%s1329_s4] ss:$0 sm:$0xff] }
  0x35   :  { %481 = vmatprep.subr.bf16.mxu1 %v977_v58 }
  0x37   :  { %523 = vmatpush1.bf16.msra.mxu0 %v970_v56 }
  0x38   :  { %524 = vmatprep.subr.bf16.mxu0 %v973_v59  ;;  %482 = vmatpush1.bf16.msra.mxu1 %v981_v62 }
  0x39   :  { %483 = vmatprep.subr.bf16.mxu1 %v983_v63 }
  0x3b   :  { %525 = vmatpush1.bf16.msra.mxu0 %v976_v60 }
  0x3c   :  { %526 = vmatprep.subr.bf16.mxu0 %v979_v61  ;;  %484 = vmatpush1.bf16.msra.mxu1 %v988_v0 }
  0x3d   :  { %485 = vmatprep.subr.bf16.mxu1 %v989_v3 }
  0x3f   :  { %527 = vmatpush1.bf16.msra.mxu0 %v982_v1 }
  0x40   :  { %537 = vmatprep.subr.bf16.mxu0 %v987_v4  ;;  %486 = vmatpush1.bf16.msra.mxu1 %v991_v6 }
  0x41   :  { %862 = vmatprep.subr.bf16.mxu1 %v995_v10 }
  0x42   :  { %529 = vmatmul.mubr.bf16.vlgmr.msra.gmra.mrb[0].mxu0 %v28_v5 }
  0x43   :  { %538 = vmatpush1.bf16.msra.mxu0 %v985_v8  ;;  %569 = vmatprep.mubr.bf16.mxu0 %v1015_v14 }
  0x44   :  { %539 = vmatprep.subr.bf16.mxu0 %v994_v9  ;;  %488 = vmatmul.mubr.bf16.vlgmr.msra.gmra.mrb[0].mxu1 %v26_v11 }
  0x45   :  { %863 = vmatpush3.bf16.msra.mxu1 %v996_v12 }
  0x46   :  { %864 = vmatprep.subr.bf16.mxu1 %v997_v15 }
  0x47   :  { %540 = vmatpush1.bf16.msra.mxu0 %v992_v13 }
  0x49   :  { %865 = vmatpush3.bf16.msra.mxu1 %v998_v16 }
  0x4a   :  { %866 = vmatprep.subr.bf16.mxu1 %v999_v18 }
  0x4d   :  { %867 = vmatpush3.bf16.msra.mxu1 %v1000_v20 }
  0x4e   :  { %844 = vmatmul.mubr.msk.bf16.vlgmr.msra.gmra.mrb[0].mxu0 %vm451_vm0, %v30_v19  ;;  %868 = vmatprep.subr.bf16.mxu1 %v1001_v21 }
  0x51   :  { %869 = vmatpush3.bf16.msra.mxu1 %v1002_v22 }
  0x52   :  { %870 = vmatprep.subr.bf16.mxu1 %v1003_v23 }
  0x55   :  { %871 = vmatpush3.bf16.msra.mxu1 %v1004_v24 }
  0x56   :  { %872 = vmatprep.subr.bf16.mxu1 %v1005_v25 }
  0x59   :  { %873 = vmatpush3.bf16.msra.mxu1 %v1006_v26 }
  0x5a   :  { %874 = vmatprep.subr.bf16.mxu1 %v1007_v27 }
  0x5d   :  { %875 = vmatpush3.bf16.msra.mxu1 %v1008_v28 }
  0x5e   :  { %876 = vmatprep.subr.bf16.mxu1 %v1009_v29 }
  0x61   :  { %877 = vmatpush3.bf16.msra.mxu1 %v1010_v30 }
 0x117   :  { %v489_v36 = vpop.f32.mrb[0].mxu1 }
 0x118   :  { %v491_v37 = vpop.f32.mrb[1].mxu1  ;;  %v490_v42 = vadd.f32 %v489_v36, %v104_v38 }
 0x119   :  { %v493_v39 = vpop.f32.mrb[2].mxu1  ;;  %v492_v43 = vadd.f32 %v491_v37, %v108_v40 }
 0x11a   :  { %v494_v41 = vpop.f32.mrb[3].mxu1 }
 0x121   :  { %v571_v44 = vpop.f32.mrb[0].mxu0 }
 0x122   :  { %v885_v45 = vadd.f32 %v571_v44, %v490_v42  ;;  %v573_v46 = vpop.f32.mrb[1].mxu0 }
 0x123   :  { %v887_v47 = vadd.f32 %v573_v46, %v492_v43  ;;  %v575_v48 = vpop.f32.mrb[2].mxu0 }
 0x124   :  { %v578_v49 = vmax.f32 %v885_v45, 0.0  ;;  %v576_v50 = vpop.f32.mrb[3].mxu0 }
 0x125   :  { %v579_v51 = vmax.f32 %v887_v47, 0.0 }
 0x126   :  { %v580_v53 = vpack.c.bf16 %v578_v49, %v578_v49 }
 0x127   :  { %v581_v52 = vpack.c.bf16 %v579_v51, %v579_v51 }
 0x129   :  { %749 = vmatprep.mubr.bf16.mxu1 %v581_v52 }
 0x12a   :  { %750 = vmatmul.mubr.bf16.vlgmr.msra.gmra.mrb[4].mxu1 %v580_v53 }
 0x1fd   :  { %v878_v54 = vpop.f32.mrb[4].mxu1 }
 0x1fe   :  { %v879_v56 = vpop.f32.mrb[5].mxu1 }
 0x1ff   :  { %v880_v57 = vadd.f32 %v879_v56, %v878_v54  ;;  %v881_v58 = vpop.f32.mrb[6].mxu1 }
 0x200   :  { %v882_v59 = vpop.f32.mrb[7].mxu1 }
 0x201   :  { %v752_v60 = vadd.f32 %v880_v57, %v845_v55 }
 0x203   :  { %v758_v61 = vsel %vm757_vm1, %v752_v60, -inf }
 0x204   :  { %759 = vmax.xlane.f32.xlu0 %v758_v61 }
 0x291   :  { %v760_v62 = vpop.xlane.xlu0 %759 }
 0x292   :  { %v761_v63 = vsub.f32 %v752_v60, %v760_v62 }
 0x294   :  { %v762_v0 = vmul.f32 1.442695, %v761_v63 }
 0x296   :  { %1011 = vpow2.f32 %v762_v0 }
 0x2a0   :  { %v1012_v1 = vpop.eup %1011 }
 0x2a1   :  { %v764_v2 = vsel %vm757_vm1, %v1012_v1, 0.0 }
 0x2a2   :  { %765 = vadd.xlane.f32.xlu0 %v764_v2 }
 0x32f   :  { %v766_v3 = vpop.xlane.xlu0 %765 }
 0x330   :  { %1013 = vlog2.f32 %v766_v3 }
 0x33a   :  { %v1014_v4 = vpop.eup %1013 }
 0x33b   :  { %v768_v5 = vmul.f32 0.6931472, %v1014_v4 }
 0x33d   :  { %v769_v6 = vadd.f32 %v768_v5, %v760_v62 }
 0x33f   :  { %v770_v7 = vsub.f32 %v752_v60, %v769_v6 }
 0x341   :  { %771 = vst.msk [vmem:[%s1330_s5] sm:$0xff] %vm757_vm1, %v770_v7 }

// kernel: transformer_nn_forward.2
= control target key start
LH: loop header
LB: loop body
LE: loop exit
PB: predicated region body
PF: predicated region fallthrough
CT: control target
= control target key end

     0   :  { %s14057_s24 = smov 0   ;;  %s19152_s0 = inlined_call_operand.vmem [shape: f32[256,17], index: 0, kind: input, shape index: {}]   ;;  %s19153_s1 = inlined_call_operand.vmem [shape: bf16[2,17,17], index: 1, kind: input, shape index: {}]   ;;  %s19154_s2 = inlined_call_operand.vmem [shape: f32[2,1,17], index: 2, kind: input, shape index: {}]   ;;  %s19155_s3 = inlined_call_operand.vmem [shape: bf16[2,17,17], index: 3, kind: input, shape index: {}]   ;;  %s19156_s4 = inlined_call_operand.vmem [shape: f32[2,1,17], index: 4, kind: input, shape index: {}]   ;;  %s19157_s5 = inlined_call_operand.vmem [shape: bf16[2,17,17], index: 5, kind: input, shape index: {}]   ;;  %s19158_s6 = inlined_call_operand.vmem [shape: f32[2,1,17], index: 6, kind: input, shape index: {}]   ;;  %s19159_s7 = inlined_call_operand.vmem [shape: bf16[2,17,17], index: 7, kind: input, shape index: {}]   ;;  %s19160_s8 = inlined_call_operand.vmem [shape: f32[2,1,17], index: 8, kind: input, shape index: {}]   ;;  %s19161_s9 = inlined_call_operand.vmem [shape: f32[2,1,17], index: 9, kind: input, shape index: {}]   ;;  %s19162_s10 = inlined_call_operand.vmem [shape: f32[2,1,17], index: 10, kind: input, shape index: {}]   ;;  %s19163_s11 = inlined_call_operand.vmem [shape: bf16[2,17,2048], index: 11, kind: input, shape index: {}]   ;;  %s19164_s12 = inlined_call_operand.vmem [shape: f32[2,1,2048], index: 12, kind: input, shape index: {}]   ;;  %s19165_s13 = inlined_call_operand.vmem [shape: bf16[2,2048,17], index: 13, kind: input, shape index: {}]   ;;  %s19166_s14 = inlined_call_operand.vmem [shape: f32[2,1,17], index: 14, kind: input, shape index: {}]   ;;  %s19167_s15 = inlined_call_operand.vmem [shape: f32[2,1,17], index: 15, kind: input, shape index: {}]   ;;  %s19168_s16 = inlined_call_operand.vmem [shape: f32[2,1,17], index: 16, kind: input, shape index: {}]   ;;  %s19169_s17 = inlined_call_operand.vmem [shape: f32[256,17], index: 17, kind: output, shape index: {}]  }
   0x1   :  { %19185 = sst [smem:[#allocation8_spill]] %s19152_s0 }
   0x2   :  { %19186 = sst [smem:[#allocation9_spill]] %s19153_s1 }
   0x3 LB: > { %s11005_s25 = sadd.s32 4294967295, %s13964_s24   ;;  %p11009_p0 = scmp.ge.s32.totalorder %s13964_s24, 1  ;;  %s13964_s24 = sphi %s14057_s24, %s27_s24  }
   0x4   : > { %p488_p1 = scmp.lt.s32.totalorder %s13964_s24, 3 }
   0x6   : > { %p489_p2 = pnand %p11009_p0, %p488_p1 }
   0x8   : > { %492 = sbr.rel (%p489_p2) target bundleno = 5131 (0x140b), region = 88 }
   0xf   : > { %s19187_s28 = sld [smem:[#allocation9_spill]]  ;;  %vm621_vm0 = vcmask 1040384   ;;  %v19171_v2 = vmov 0   ;;  %s11010_s30 = sshll.u32 %s11005_s25, 4  ;;  %v13384_v5 = vld [vmem:[%s19155_s3] sm:$0xff]   ;;  %vm596_vm1 = vcmask 138240  }
  0x10   : > { %v14072_v3 = vsel %vm621_vm0, 65535, %v19171_v2  ;;  %p541_p3 = scmp.lt.s32.totalorder %s11010_s30, 31  ;;  %v13386_v6 = vld [vmem:[%s19157_s5] sm:$0xff]   ;;  %v13385_v7 = vld [vmem:[%s19155_s3 + $0x8] ss:$0 sps:$4 sm:$0x11]  }
  0x11   : > { %19188 = vst [vmem:[#allocation2_spill] sm:$0xff] %v14072_v3  ;;  %s19189_s27 = sld [smem:[#allocation8_spill]]  ;;  %v13387_v8 = vld [vmem:[%s19157_s5 + $0x8] ss:$0 sps:$4 sm:$0x11]   ;;  %v744_v18 = vand.u32 %v13385_v7, %v14072_v3  ;;  %vm1246_vm2 = vcmask 261120  }
  0x12   : > { %s19211_s30 = smov (!%p541_p3, %s11010_s30), 31  ;;  %v863_v29 = vand.u32 %v13387_v8, %v14072_v3  ;;  %v11014_v35 = vld [vmem:[%s19154_s2] ss:$0 sm:$0xff] }
  0x13   : > { %s11011_s23 = sshll.u32 %s19211_s30, 3 }
  0x14   : > { %s19070_s21 = scalar_lea.vmem %s19169_s17, %s11011_s23 }
  0x15   : > { %v13382_v0 = vld [vmem:[%s19187_s28] sm:$0xff]   ;;  %v13383_v1 = vld [vmem:[%s19187_s28 + $0x8] ss:$0 sps:$4 sm:$0x11]  }
  0x16   : > { %13353 = vmatprep.subr.bf16.mxu1 %v13382_v0  ;;  %13065 = vmatprep.subr.bf16.mxu0 %v13382_v0  ;;  %v625_v4 = vand.u32 %v13383_v1, %v14072_v3 }
  0x17   : > { %13355 = vmatpush3.bf16.msra.mxu1 %v13382_v0  ;;  %13066 = vmatpush3.bf16.msra.mxu0 %v13382_v0  ;;  %s14092_s29 = scalar_lea.vmem %s19189_s27, %s11011_s23 }
  0x18   : > { %13354 = vmatprep.subr.bf16.mxu1 %v625_v4  ;;  %13067 = vmatprep.subr.bf16.mxu0 %v625_v4  ;;  %v561_v9 = vld [vmem:[%s14092_s29 + $0x40] sm:$0xff]  ;;  %v562_v10 = vld [vmem:[%s14092_s29 + $0x48] sm:$0xff]  ;;  %v563_v11 = vld [vmem:[%s14092_s29 + $0x50] sm:$0xff] }
  0x19   : > { %v573_v12 = vpack.c.bf16 %v562_v10, %v561_v9  ;;  %v564_v13 = vld [vmem:[%s14092_s29 + $0x58] sm:$0xff]  ;;  %v565_v14 = vld [vmem:[%s14092_s29 + $0x60] sm:$0xff]  ;;  %v566_v15 = vld [vmem:[%s14092_s29 + $0x68] sm:$0xff] }
  0x1a   : > { %v574_v16 = vpack.c.bf16 %v564_v13, %v563_v11  ;;  %v575_v17 = vpack.c.bf16 %v566_v15, %v565_v14  ;;  %v553_v19 = vld [vmem:[%s14092_s29] sm:$0xff]  ;;  %v554_v20 = vld [vmem:[%s14092_s29 + $0x8] sm:$0xff]  ;;  %v555_v21 = vld [vmem:[%s14092_s29 + $0x10] sm:$0xff] }
  0x1b   : > { %13356 = vmatpush3.bf16.msra.mxu1 %v625_v4  ;;  %13068 = vmatpush3.bf16.msra.mxu0 %v625_v4  ;;  %v556_v22 = vld [vmem:[%s14092_s29 + $0x18] sm:$0xff]  ;;  %v567_v23 = vld [vmem:[%s14092_s29 + $0x70] sm:$0xff]  ;;  %v569_v24 = vpack.c.bf16 %v554_v20, %v553_v19  ;;  %v557_v25 = vld [vmem:[%s14092_s29 + $0x20] sm:$0xff] }
  0x1c   : > { %13085 = vmatprep.subr.bf16.mxu1 %v13384_v5  ;;  %13105 = vmatprep.subr.bf16.mxu0 %v13386_v6  ;;  %v558_v26 = vld [vmem:[%s14092_s29 + $0x28] sm:$0xff]  ;;  %v568_v27 = vld [vmem:[%s14092_s29 + $0x78] sm:$0xff]  ;;  %v570_v28 = vpack.c.bf16 %v556_v22, %v555_v21  ;;  %v559_v32 = vld [vmem:[%s14092_s29 + $0x30] sm:$0xff] }
  0x1d   : > { %13077 = vmatprep.mubr.msk.bf16.mxu1 %vm596_vm1, %v573_v12  ;;  %v571_v30 = vpack.c.bf16 %v558_v26, %v557_v25  ;;  %13069 = vmatprep.mubr.msk.bf16.mxu0 %vm596_vm1, %v569_v24  ;;  %v576_v31 = vpack.c.bf16 %v568_v27, %v567_v23  ;;  %v560_v33 = vld [vmem:[%s14092_s29 + $0x38] sm:$0xff]  ;;  %v11025_v13 = vld [vmem:[%s19156_s4] ss:$0 sm:$0xff] }
  0x1e   : > { %13078 = vmatmul.mubr.msk.bf16.vlgmr.msra.gmra.mrb[0].mxu1 %vm596_vm1, %v574_v16  ;;  %13070 = vmatmul.mubr.msk.bf16.vlgmr.msra.gmra.mrb[0].mxu0 %vm596_vm1, %v570_v28  ;;  %v572_v34 = vpack.c.bf16 %v560_v33, %v559_v32 }
  0x1f   : > { %13081 = vmatprep.mubr.msk.bf16.mxu1 %vm596_vm1, %v575_v17  ;;  %13086 = vmatpush3.bf16.msra.mxu1 %v13384_v5 }
  0x20   : > { %13087 = vmatprep.subr.bf16.mxu1 %v744_v18  ;;  %13073 = vmatprep.mubr.msk.bf16.mxu0 %vm596_vm1, %v571_v30 }
  0x21   : > { %13106 = vmatpush3.bf16.msra.mxu0 %v13386_v6 }
  0x22   : > { %13107 = vmatprep.subr.bf16.mxu0 %v863_v29 }
  0x23   : > { %13088 = vmatpush3.bf16.msra.mxu1 %v744_v18 }
  0x25   : > { %13108 = vmatpush3.bf16.msra.mxu0 %v863_v29 }
  0x26   : > { %13082 = vmatmul.mubr.msk.bf16.gmra.mrb[4].mxu1 %vm596_vm1, %v576_v31  ;;  %13074 = vmatmul.mubr.msk.bf16.gmra.mrb[4].mxu0 %vm596_vm1, %v572_v34 }
  0x27   : > { %13089 = vmatprep.mubr.msk.bf16.mxu1 %vm596_vm1, %v569_v24  ;;  %13109 = vmatprep.mubr.msk.bf16.mxu0 %vm596_vm1, %v569_v24 }
  0x2e   : > { %13090 = vmatmul.mubr.msk.bf16.vlgmr.msra.gmra.mrb[8].mxu1 %vm596_vm1, %v570_v28  ;;  %13110 = vmatmul.mubr.msk.bf16.vlgmr.msra.gmra.mrb[8].mxu0 %vm596_vm1, %v570_v28 }
  0x2f   : > { %13093 = vmatprep.mubr.msk.bf16.mxu1 %vm596_vm1, %v571_v30  ;;  %13113 = vmatprep.mubr.msk.bf16.mxu0 %vm596_vm1, %v571_v30 }
  0x36   : > { %13094 = vmatmul.mubr.msk.bf16.gmra.mrb[12].mxu1 %vm596_vm1, %v572_v34  ;;  %13114 = vmatmul.mubr.msk.bf16.gmra.mrb[12].mxu0 %vm596_vm1, %v572_v34 }
  0x37   : > { %13097 = vmatprep.mubr.msk.bf16.mxu1 %vm596_vm1, %v573_v12  ;;  %13117 = vmatprep.mubr.msk.bf16.mxu0 %vm596_vm1, %v573_v12 }
  0x3e   : > { %13098 = vmatmul.mubr.msk.bf16.gmra.mrb[16].mxu1 %vm596_vm1, %v574_v16  ;;  %13118 = vmatmul.mubr.msk.bf16.gmra.mrb[16].mxu0 %vm596_vm1, %v574_v16 }
  0x3f   : > { %13101 = vmatprep.mubr.msk.bf16.mxu1 %vm596_vm1, %v575_v17  ;;  %13121 = vmatprep.mubr.msk.bf16.mxu0 %vm596_vm1, %v575_v17 }
  0x46   : > { %13102 = vmatmul.mubr.msk.bf16.gmra.mrb[20].mxu1 %vm596_vm1, %v576_v31  ;;  %13122 = vmatmul.mubr.msk.bf16.gmra.mrb[20].mxu0 %vm596_vm1, %v576_v31 }
  0xf1   : > { %v13079_v36 = vpop.f32.mrb[0].mxu1  ;;  %v13071_v42 = vpop.f32.mrb[0].mxu0 }
  0xf2   : > { %v693_v37 = vpop.f32.mrb[1].mxu1  ;;  %v14142_v39 = vadd.f32 %v13079_v36, %v11014_v35  ;;  %v14146_v45 = vadd.f32 %v13071_v42, %v11014_v35  ;;  %v661_v46 = vpop.f32.mrb[1].mxu0 }
  0xf3   : > { %v13080_v38 = vpop.f32.mrb[2].mxu1  ;;  %v694_v43 = vadd.f32 %v11014_v35, %v693_v37  ;;  %v662_v48 = vadd.f32 %v11014_v35, %v661_v46  ;;  %v13072_v49 = vpop.f32.mrb[2].mxu0 }
  0xf4   : > { %v14144_v40 = vadd.f32 %v13080_v38, %v11014_v35  ;;  %v696_v41 = vpop.f32.mrb[3].mxu1  ;;  %v14150_v51 = vadd.f32 %v13072_v49, %v11014_v35  ;;  %v664_v52 = vpop.f32.mrb[3].mxu0 }
  0xf5   : > { %v697_v44 = vadd.f32 %v11014_v35, %v696_v41  ;;  %v665_v53 = vadd.f32 %v11014_v35, %v664_v52 }
  0xf6   : > { %v967_v47 = vpack.c.bf16 %v14144_v40, %v14142_v39  ;;  %v963_v55 = vpack.c.bf16 %v14150_v51, %v14146_v45  ;;  %v11036_v39 = vld [vmem:[%s19158_s6] ss:$0 sm:$0xff] }
  0xf7   : > { %v966_v50 = vpack.c.bf16 %v697_v44, %v694_v43  ;;  %v962_v58 = vpack.c.bf16 %v665_v53, %v662_v48 }
  0xf9   : > { %v13083_v54 = vpop.f32.mrb[4].mxu1  ;;  %13145 = vmatprep.mubr.msk.bf16.mxu0 %vm596_vm1, %v966_v50  ;;  %13129 = vmatprep.mubr.msk.bf16.mxu1 %vm596_vm1, %v962_v58  ;;  %v13075_v62 = vpop.f32.mrb[4].mxu0 }
  0xfa   : > { %v14155_v56 = vadd.f32 %v13083_v54, %v11014_v35  ;;  %v709_v57 = vpop.f32.mrb[5].mxu1  ;;  %v14164_v1 = vadd.f32 %v13075_v62, %v11014_v35  ;;  %v677_v4 = vpop.f32.mrb[5].mxu0 }
  0xfb   : > { %v13084_v59 = vpop.f32.mrb[6].mxu1  ;;  %v14160_v63 = vadd.f32 %v11014_v35, %v709_v57  ;;  %v14168_v6 = vadd.f32 %v11014_v35, %v677_v4  ;;  %v13076_v7 = vpop.f32.mrb[6].mxu0 }
  0xfc   : > { %v14157_v60 = vadd.f32 %v13084_v59, %v11014_v35  ;;  %v712_v61 = vpop.f32.mrb[7].mxu1  ;;  %v14172_v9 = vadd.f32 %v13076_v7, %v11014_v35  ;;  %v680_v10 = vpop.f32.mrb[7].mxu0 }
  0xfd   : > { %v14162_v0 = vadd.f32 %v11014_v35, %v712_v61  ;;  %v681_v11 = vadd.f32 %v11014_v35, %v680_v10 }
  0xfe   : > { %v969_v5 = vpack.c.bf16 %v14157_v60, %v14155_v56  ;;  %v965_v14 = vpack.c.bf16 %v14172_v9, %v14164_v1 }
  0xff   : > { %v968_v8 = vpack.c.bf16 %v14162_v0, %v14160_v63  ;;  %v964_v16 = vpack.c.bf16 %v681_v11, %v14168_v6 }
 0x101   : > { %v13091_v12 = vpop.f32.mrb[8].mxu1  ;;  %v14180_v21 = vpop.f32.mrb[8].mxu0 }
 0x102   : > { %v780_v15 = vpop.f32.mrb[9].mxu1  ;;  %v789_v18 = vadd.f32 %v13091_v12, %v11025_v13  ;;  %v14182_v24 = vpop.f32.mrb[9].mxu0  ;;  %v908_v63 = vadd.f32 %v14180_v21, %v11036_v39 }
 0x103   : > { %v13092_v17 = vpop.f32.mrb[10].mxu1  ;;  %v781_v22 = vadd.f32 %v11025_v13, %v780_v15  ;;  %v14184_v26 = vpop.f32.mrb[10].mxu0  ;;  %v900_v40 = vadd.f32 %v11036_v39, %v14182_v24 }
 0x104   : > { %v792_v19 = vadd.f32 %v13092_v17, %v11025_v13  ;;  %v783_v20 = vpop.f32.mrb[11].mxu1  ;;  %v14186_v28 = vpop.f32.mrb[11].mxu0  ;;  %v911_v0 = vadd.f32 %v14184_v26, %v11036_v39 }
 0x105   : > { %v784_v23 = vadd.f32 %v11025_v13, %v783_v20 }
 0x106   : > { %v971_v25 = vpack.c.bf16 %v792_v19, %v789_v18 }
 0x107   : > { %v970_v27 = vpack.c.bf16 %v784_v23, %v781_v22 }
 0x108   : > { %v996_v43 = vsel %vm596_vm1, %v971_v25, 0 }
 0x109   : > { %13357 = vmatprep.subr.msk.bf16.mxu1 %vm596_vm1, %v970_v27  ;;  %v993_v29 = vsel %vm596_vm1, %v970_v27, 0  ;;  %v13095_v30 = vpop.f32.mrb[12].mxu1 }
 0x10a   : > { %13126 = vmatpush3.bf16.xpose.msra.mxu1 %v993_v29  ;;  %v805_v31 = vadd.f32 %v13095_v30, %v11025_v13  ;;  %v796_v32 = vpop.f32.mrb[13].mxu1 }
 0x10b   : > { %13358 = vmatprep.subr.msk.bf16.mxu1 %vm596_vm1, %v971_v25  ;;  %v797_v33 = vadd.f32 %v11025_v13, %v796_v32  ;;  %v13096_v34 = vpop.f32.mrb[14].mxu1 }
 0x10c   : > { %v808_v35 = vadd.f32 %v13096_v34, %v11025_v13  ;;  %v799_v36 = vpop.f32.mrb[15].mxu1 }
 0x10d   : > { %v800_v37 = vadd.f32 %v11025_v13, %v799_v36 }
 0x10e   : > { %v973_v38 = vpack.c.bf16 %v808_v35, %v805_v31 }
 0x10f   : > { %v972_v41 = vpack.c.bf16 %v800_v37, %v797_v33 }
 0x110   : > { %v1057_v15 = vsel %vm596_vm1, %v973_v38, 0 }
 0x111   : > { %v13099_v42 = vpop.f32.mrb[16].mxu1  ;;  %v1054_v58 = vsel %vm596_vm1, %v972_v41, 0 }
 0x112   : > { %v821_v44 = vadd.f32 %v13099_v42, %v11025_v13  ;;  %v812_v46 = vpop.f32.mrb[17].mxu1  ;;  %13128 = vmatpush3.bf16.xpose.msra.mxu1 %v996_v43 }
 0x113   : > { %v813_v48 = vadd.f32 %v11025_v13, %v812_v46  ;;  %v13100_v49 = vpop.f32.mrb[18].mxu1  ;;  %13359 = vmatprep.subr.msk.bf16.mxu1 %vm596_vm1, %v972_v41 }
 0x114   : > { %v824_v50 = vadd.f32 %v13100_v49, %v11025_v13  ;;  %v815_v52 = vpop.f32.mrb[19].mxu1 }
 0x115   : > { %v816_v53 = vadd.f32 %v11025_v13, %v815_v52 }
 0x116   : > { %v975_v54 = vpack.c.bf16 %v824_v50, %v821_v44 }
 0x117   : > { %v974_v57 = vpack.c.bf16 %v816_v53, %v813_v48 }
 0x119   : > { %13130 = vmatmul.mubr.msk.bf16.vlgmr.msra.gmra.mrb[24].mxu1 %vm596_vm1, %v963_v55  ;;  %13361 = vmatprep.subr.msk.bf16.mxu0 %vm596_vm1, %v974_v57  ;;  %v1115_v59 = vsel %vm596_vm1, %v974_v57, 0  ;;  %v13103_v61 = vpop.f32.mrb[20].mxu1  ;;  %v1118_v55 = vsel %vm596_vm1, %v975_v54, 0 }
 0x11a   : > { %13134 = vmatpush3.bf16.xpose.msra.mxu1 %v1054_v58  ;;  %13142 = vmatpush3.bf16.xpose.msra.mxu0 %v1115_v59  ;;  %v837_v62 = vadd.f32 %v13103_v61, %v11025_v13  ;;  %v828_v4 = vpop.f32.mrb[21].mxu1 }
 0x11b   : > { %13360 = vmatprep.subr.msk.bf16.mxu1 %vm596_vm1, %v973_v38  ;;  %13362 = vmatprep.subr.msk.bf16.mxu0 %vm596_vm1, %v975_v54  ;;  %v829_v6 = vadd.f32 %v11025_v13, %v828_v4  ;;  %v13104_v7 = vpop.f32.mrb[22].mxu1 }
 0x11c   : > { %v840_v10 = vadd.f32 %v13104_v7, %v11025_v13  ;;  %v831_v11 = vpop.f32.mrb[23].mxu1  ;;  %13137 = vmatprep.mubr.msk.bf16.mxu1 %vm596_vm1, %v964_v16 }
 0x11d   : > { %v832_v45 = vadd.f32 %v11025_v13, %v831_v11 }
 0x11e   : > { %v977_v51 = vpack.c.bf16 %v840_v10, %v837_v62 }
 0x11f   : > { %v976_v12 = vpack.c.bf16 %v832_v45, %v829_v6 }
 0x120   : > { %v1179_v13 = vsel %vm596_vm1, %v977_v51, 0 }
 0x121   : > { %v1176_v17 = vsel %vm596_vm1, %v976_v12, 0 }
 0x122   : > { %13136 = vmatpush3.bf16.xpose.msra.mxu1 %v1057_v15  ;;  %13144 = vmatpush3.bf16.xpose.msra.mxu0 %v1118_v55 }
 0x123   : > { %13363 = vmatprep.subr.msk.bf16.mxu1 %vm596_vm1, %v976_v12 }
 0x129   : > { %13138 = vmatmul.mubr.msk.bf16.vlgmr.msra.gmra.mrb[28].mxu1 %vm596_vm1, %v965_v14  ;;  %13146 = vmatmul.mubr.msk.bf16.vlgmr.msra.gmra.mrb[24].mxu0 %vm596_vm1, %v967_v47  ;;  %v903_v47 = vadd.f32 %v11036_v39, %v14186_v28  ;;  %v979_v14 = vpack.c.bf16 %v911_v0, %v908_v63 }
 0x12a   : > { %13150 = vmatpush3.bf16.xpose.msra.mxu1 %v1176_v17  ;;  %13153 = vmatprep.mubr.msk.bf16.mxu1 %vm596_vm1, %v968_v8  ;;  %v13115_v8 = vpop.f32.mrb[12].mxu0 }
 0x12b   : > { %13364 = vmatprep.subr.msk.bf16.mxu1 %vm596_vm1, %v977_v51  ;;  %v978_v1 = vpack.c.bf16 %v903_v47, %v900_v40  ;;  %v915_v9 = vpop.f32.mrb[13].mxu0  ;;  %v924_v16 = vadd.f32 %v13115_v8, %v11036_v39 }
 0x12c   : > { %v13116_v56 = vpop.f32.mrb[14].mxu0  ;;  %v916_v60 = vadd.f32 %v11036_v39, %v915_v9 }
 0x12d   : > { %13157 = vmatprep.subr.bf16.mxu0 %v978_v1  ;;  %v927_v18 = vadd.f32 %v13116_v56, %v11036_v39 }
 0x12e   : > { %13158 = vmatpush3.bf16.msra.mxu0 %v978_v1 }
 0x12f   : > { %13159 = vmatprep.subr.bf16.mxu0 %v979_v14  ;;  %v981_v24 = vpack.c.bf16 %v927_v18, %v924_v16 }
 0x132   : > { %13152 = vmatpush3.bf16.xpose.msra.mxu1 %v1179_v13  ;;  %13160 = vmatpush3.bf16.msra.mxu0 %v979_v14 }
 0x139   : > { %13154 = vmatmul.mubr.msk.bf16.vlgmr.msra.gmra.mrb[32].mxu1 %vm596_vm1, %v969_v5  ;;  %v918_v5 = vpop.f32.mrb[15].mxu0 }
 0x13a   : > { %v919_v19 = vadd.f32 %v11036_v39, %v918_v5  ;;  %v13119_v20 = vpop.f32.mrb[16].mxu0 }
 0x13b   : > { %v931_v22 = vpop.f32.mrb[17].mxu0  ;;  %v940_v32 = vadd.f32 %v13119_v20, %v11036_v39 }
 0x13c   : > { %v980_v23 = vpack.c.bf16 %v919_v19, %v916_v60  ;;  %v13120_v21 = vpop.f32.mrb[18].mxu0  ;;  %v932_v30 = vadd.f32 %v11036_v39, %v931_v22 }
 0x13d   : > { %v934_v25 = vpop.f32.mrb[19].mxu0  ;;  %v943_v33 = vadd.f32 %v13120_v21, %v11036_v39 }
 0x13e   : > { %13165 = vmatprep.subr.bf16.mxu1 %v980_v23  ;;  %v13123_v26 = vpop.f32.mrb[20].mxu0  ;;  %v935_v31 = vadd.f32 %v11036_v39, %v934_v25 }
 0x13f   : > { %13166 = vmatpush3.bf16.msra.mxu1 %v980_v23  ;;  %v947_v27 = vpop.f32.mrb[21].mxu0  ;;  %v14235_v35 = vpack.c.bf16 %v943_v33, %v940_v32  ;;  %v956_v38 = vadd.f32 %v13123_v26, %v11036_v39 }
 0x140   : > { %13167 = vmatprep.subr.bf16.mxu1 %v981_v24  ;;  %v13124_v28 = vpop.f32.mrb[22].mxu0  ;;  %v14232_v34 = vpack.c.bf16 %v935_v31, %v932_v30  ;;  %v948_v36 = vadd.f32 %v11036_v39, %v947_v27 }
 0x141   : > { %v950_v29 = vpop.f32.mrb[23].mxu0  ;;  %v959_v41 = vadd.f32 %v13124_v28, %v11036_v39 }
 0x142   : > { %13173 = vmatprep.subr.bf16.mxu0 %v14232_v34  ;;  %v951_v37 = vadd.f32 %v11036_v39, %v950_v29 }
 0x143   : > { %13168 = vmatpush3.bf16.msra.mxu1 %v981_v24  ;;  %v14240_v43 = vpack.c.bf16 %v959_v41, %v956_v38 }
 0x144   : > { %v14237_v42 = vpack.c.bf16 %v951_v37, %v948_v36 }
 0x146   : > { %13181 = vmatprep.subr.bf16.mxu1 %v14237_v42 }
 0x1ec   : > { %v13131_v44 = vpop.f32.mrb[24].mxu1 }
 0x1ed   : > { %v1032_v46 = vpop.f32.mrb[25].mxu1  ;;  %v14242_v48 = vmul.f32 0.24253562, %v13131_v44 }
 0x1ee   : > { %v13132_v49 = vpop.f32.mrb[26].mxu1  ;;  %v14244_v50 = vmul.f32 0.24253562, %v1032_v46 }
 0x1ef   : > { %v1035_v52 = vpop.f32.mrb[27].mxu1  ;;  %v1253_v53 = vsel %vm1246_vm2, %v14242_v48, -inf  ;;  %v14248_v54 = vmul.f32 0.24253562, %v13132_v49 }
 0x1f0   : > { %1254 = vmax.xlane.f32.xlu1 %v1253_v53  ;;  %v1247_v57 = vsel %vm1246_vm2, %v14244_v50, -inf  ;;  %v14252_v58 = vmul.f32 0.24253562, %v1035_v52 }
 0x1f1   : > { %1248 = vmax.xlane.f32.xlu0 %v1247_v57  ;;  %v1256_v59 = vsel %vm1246_vm2, %v14248_v54, -inf }
 0x1f2   : > { %v1250_v61 = vsel %vm1246_vm2, %v14252_v58, -inf }
 0x1f4   : > { %1257 = vmax.xlane.f32.xlu1 %v1256_v59 }
 0x1f5   : > { %1251 = vmax.xlane.f32.xlu0 %v1250_v61 }
 0x1fc   : > { %v13139_v62 = vpop.f32.mrb[28].mxu1  ;;  %v13147_v4 = vpop.f32.mrb[24].mxu0 }
 0x1fd   : > { %v1093_v6 = vpop.f32.mrb[29].mxu1  ;;  %v1154_v7 = vpop.f32.mrb[25].mxu0  ;;  %v14264_v17 = vmul.f32 0.24253562, %v13139_v62  ;;  %v14280_v8 = vmul.f32 0.24253562, %v13147_v4 }
 0x1fe   : > { %v13140_v10 = vpop.f32.mrb[30].mxu1  ;;  %v13148_v11 = vpop.f32.mrb[26].mxu0  ;;  %v14258_v45 = vmul.f32 0.24253562, %v1093_v6  ;;  %v14272_v47 = vmul.f32 0.24253562, %v1154_v7 }
 0x1ff   : > { %v1096_v51 = vpop.f32.mrb[31].mxu1  ;;  %v1157_v55 = vpop.f32.mrb[27].mxu0  ;;  %v14268_v39 = vmul.f32 0.24253562, %v13140_v10  ;;  %v1265_v40 = vsel %vm1246_vm2, %v14264_v17, -inf  ;;  %v1277_v5 = vsel %vm1246_vm2, %v14280_v8, -inf }
 0x200   : > { %v1259_v12 = vsel %vm1246_vm2, %v14258_v45, -inf  ;;  %v14262_v15 = vmul.f32 0.24253562, %v1096_v51  ;;  %v14276_v0 = vmul.f32 0.24253562, %v1157_v55  ;;  %v1271_v1 = vsel %vm1246_vm2, %v14272_v47, -inf }
 0x201   : > { %1260 = vmax.xlane.f32.xlu0 %v1259_v12  ;;  %v1268_v63 = vsel %vm1246_vm2, %v14268_v39, -inf  ;;  %v14284_v56 = vmul.f32 0.24253562, %v13148_v11 }
 0x202   : > { %v1262_v13 = vsel %vm1246_vm2, %v14262_v15, -inf  ;;  %v1274_v9 = vsel %vm1246_vm2, %v14276_v0, -inf }
 0x203   : > { %1263 = vmax.xlane.f32.xlu1 %v1262_v13  ;;  %v1280_v18 = vsel %vm1246_vm2, %v14284_v56, -inf }
 0x205   : > { %1266 = vmax.xlane.f32.xlu0 %v1265_v40 }
 0x207   : > { %1269 = vmax.xlane.f32.xlu1 %v1268_v63 }
 0x209   : > { %1272 = vmax.xlane.f32.xlu0 %v1271_v1 }
 0x20b   : > { %1275 = vmax.xlane.f32.xlu1 %v1274_v9 }
 0x20c   : > { %v13155_v60 = vpop.f32.mrb[32].mxu1 }
 0x20d   : > { %1278 = vmax.xlane.f32.xlu0 %v1277_v5  ;;  %v1215_v14 = vpop.f32.mrb[33].mxu1  ;;  %v14296_v21 = vmul.f32 0.24253562, %v13155_v60 }
 0x20e   : > { %v13156_v16 = vpop.f32.mrb[34].mxu1  ;;  %v14290_v19 = vmul.f32 0.24253562, %v1215_v14 }
 0x20f   : > { %1281 = vmax.xlane.f32.xlu1 %v1280_v18  ;;  %v1218_v20 = vpop.f32.mrb[35].mxu1  ;;  %v14300_v25 = vmul.f32 0.24253562, %v13156_v16  ;;  %v1289_v26 = vsel %vm1246_vm2, %v14296_v21, -inf }
 0x210   : > { %v1283_v22 = vsel %vm1246_vm2, %v14290_v19, -inf  ;;  %v14294_v23 = vmul.f32 0.24253562, %v1218_v20 }
 0x211   : > { %1284 = vmax.xlane.f32.xlu0 %v1283_v22  ;;  %v1292_v27 = vsel %vm1246_vm2, %v14300_v25, -inf }
 0x212   : > { %v1286_v24 = vsel %vm1246_vm2, %v14294_v23, -inf }
 0x213   : > { %1287 = vmax.xlane.f32.xlu1 %v1286_v24 }
 0x215   : > { %1290 = vmax.xlane.f32.xlu0 %v1289_v26 }
 0x217   : > { %1293 = vmax.xlane.f32.xlu1 %v1292_v27 }
 0x27d   : > { %v1255_v28 = vpop.xlane.xlu1 %1254 }
 0x27e   : > { %v1297_v29 = vsub.f32 %v14242_v48, %v1255_v28  ;;  %v1249_v30 = vpop.xlane.xlu0 %1248 }
 0x27f   : > { %v1295_v31 = vsub.f32 %v14244_v50, %v1249_v30 }
 0x280   : > { %v1315_v32 = vmul.f32 1.442695, %v1297_v29 }
 0x281   : > { %v1311_v33 = vmul.f32 1.442695, %v1295_v31  ;;  %v1258_v36 = vpop.xlane.xlu1 %1257 }
 0x282   : > { %v1298_v37 = vsub.f32 %v14248_v54, %v1258_v36  ;;  %v1252_v38 = vpop.xlane.xlu0 %1251 }
 0x283   : > { %13686 = vpow2.f32 %v1311_v33  ;;  %v1296_v41 = vsub.f32 %v14252_v58, %v1252_v38 }
 0x284   : > { %13688 = vpow2.f32 %v1315_v32  ;;  %v1317_v44 = vmul.f32 1.442695, %v1298_v37 }
 0x285   : > { %v1313_v46 = vmul.f32 1.442695, %v1296_v41 }
 0x287   : > { %13690 = vpow2.f32 %v1313_v46 }
 0x288   : > { %13692 = vpow2.f32 %v1317_v44 }
 0x28d   : > { %v14310_v49 = vpop.eup %13686 }
 0x28e   : > { %v1261_v48 = vpop.xlane.xlu0 %1260  ;;  %v1343_v50 = vsel %vm1246_vm2, %v14310_v49, 0.0  ;;  %v14314_v52 = vpop.eup %13688 }
 0x28f   : > { %v1299_v53 = vsub.f32 %v14258_v45, %v1261_v48  ;;  %1344 = vadd.xlane.f32.xlu0 %v1343_v50  ;;  %v1349_v62 = vsel %vm1246_vm2, %v14314_v52, 0.0 }
 0x290   : > { %v1264_v54 = vpop.xlane.xlu1 %1263 }
 0x291   : > { %v14317_v57 = vpop.eup %13690  ;;  %v1319_v58 = vmul.f32 1.442695, %v1299_v53  ;;  %v1300_v59 = vsub.f32 %v14262_v15, %v1264_v54 }
 0x292   : > { %v1267_v61 = vpop.xlane.xlu0 %1266  ;;  %v1346_v4 = vsel %vm1246_vm2, %v14317_v57, 0.0  ;;  %v14324_v6 = vpop.eup %13692 }
 0x293   : > { %13694 = vpow2.f32 %v1319_v58  ;;  %v1321_v7 = vmul.f32 1.442695, %v1300_v59  ;;  %v1301_v10 = vsub.f32 %v14264_v17, %v1267_v61  ;;  %1350 = vadd.xlane.f32.xlu0 %v1349_v62  ;;  %1347 = vadd.xlane.f32.xlu1 %v1346_v4  ;;  %v1352_v12 = vsel %vm1246_vm2, %v14324_v6, 0.0 }
 0x294   : > { %v1270_v11 = vpop.xlane.xlu1 %1269 }
 0x295   : > { %13696 = vpow2.f32 %v1321_v7  ;;  %v1323_v45 = vmul.f32 1.442695, %v1301_v10  ;;  %v1302_v51 = vsub.f32 %v14268_v39, %v1270_v11 }
 0x296   : > { %v1273_v55 = vpop.xlane.xlu0 %1272 }
 0x297   : > { %13698 = vpow2.f32 %v1323_v45  ;;  %v1325_v15 = vmul.f32 1.442695, %v1302_v51  ;;  %v1303_v13 = vsub.f32 %v14272_v47, %v1273_v55  ;;  %1353 = vadd.xlane.f32.xlu1 %v1352_v12 }
 0x298   : > { %v1276_v40 = vpop.xlane.xlu1 %1275 }
 0x299   : > { %13700 = vpow2.f32 %v1325_v15  ;;  %v1327_v63 = vmul.f32 1.442695, %v1303_v13  ;;  %v1304_v17 = vsub.f32 %v14276_v0, %v1276_v40 }
 0x29a   : > { %v1279_v1 = vpop.xlane.xlu0 %1278 }
 0x29b   : > { %13702 = vpow2.f32 %v1327_v63  ;;  %v1329_v9 = vmul.f32 1.442695, %v1304_v17  ;;  %v1305_v60 = vsub.f32 %v14280_v8, %v1279_v1 }
 0x29c   : > { %v1282_v39 = vpop.xlane.xlu1 %1281 }
 0x29d   : > { %v14333_v5 = vpop.eup %13694  ;;  %13704 = vpow2.f32 %v1329_v9  ;;  %v1331_v14 = vmul.f32 1.442695, %v1305_v60  ;;  %v1306_v16 = vsub.f32 %v14284_v56, %v1282_v39 }
 0x29e   : > { %v1285_v18 = vpop.xlane.xlu0 %1284  ;;  %v1355_v47 = vsel %vm1246_vm2, %v14333_v5, 0.0 }
 0x29f   : > { %v14338_v20 = vpop.eup %13696  ;;  %13706 = vpow2.f32 %v1331_v14  ;;  %v1333_v0 = vmul.f32 1.442695, %v1306_v16  ;;  %v1307_v22 = vsub.f32 %v14290_v19, %v1285_v18  ;;  %1356 = vadd.xlane.f32.xlu0 %v1355_v47 }
 0x2a0   : > { %v1288_v24 = vpop.xlane.xlu1 %1287  ;;  %v1358_v8 = vsel %vm1246_vm2, %v14338_v20, 0.0 }
 0x2a1   : > { %v14343_v26 = vpop.eup %13698  ;;  %13708 = vpow2.f32 %v1333_v0  ;;  %v1335_v27 = vmul.f32 1.442695, %v1307_v22  ;;  %v1308_v56 = vsub.f32 %v14294_v23, %v1288_v24  ;;  %1359 = vadd.xlane.f32.xlu1 %v1358_v8 }
 0x2a2   : > { %v1291_v28 = vpop.xlane.xlu0 %1290  ;;  %v1361_v29 = vsel %vm1246_vm2, %v14343_v26, 0.0 }
 0x2a3   : > { %v14348_v30 = vpop.eup %13700  ;;  %13710 = vpow2.f32 %v1335_v27  ;;  %v1337_v19 = vmul.f32 1.442695, %v1308_v56  ;;  %v1309_v31 = vsub.f32 %v14296_v21, %v1291_v28  ;;  %1362 = vadd.xlane.f32.xlu0 %v1361_v29 }
 0x2a4   : > { %v1294_v32 = vpop.xlane.xlu1 %1293  ;;  %v1364_v33 = vsel %vm1246_vm2, %v14348_v30, 0.0 }
 0x2a5   : > { %v14353_v36 = vpop.eup %13702  ;;  %13712 = vpow2.f32 %v1337_v19  ;;  %v1339_v23 = vmul.f32 1.442695, %v1309_v31  ;;  %v1310_v37 = vsub.f32 %v14300_v25, %v1294_v32  ;;  %1365 = vadd.xlane.f32.xlu1 %v1364_v33 }
 0x2a6   : > { %v1367_v38 = vsel %vm1246_vm2, %v14353_v36, 0.0 }
 0x2a7   : > { %v14358_v41 = vpop.eup %13704  ;;  %13714 = vpow2.f32 %v1339_v23  ;;  %v1341_v44 = vmul.f32 1.442695, %v1310_v37  ;;  %1368 = vadd.xlane.f32.xlu0 %v1367_v38 }
 0x2a8   : > { %v1370_v21 = vsel %vm1246_vm2, %v14358_v41, 0.0 }
 0x2a9   : > { %v14362_v46 = vpop.eup %13706  ;;  %13716 = vpow2.f32 %v1341_v44  ;;  %1371 = vadd.xlane.f32.xlu1 %v1370_v21 }
 0x2aa   : > { %v1373_v48 = vsel %vm1246_vm2, %v14362_v46, 0.0 }
 0x2ab   : > { %v14366_v25 = vpop.eup %13708  ;;  %1374 = vadd.xlane.f32.xlu0 %v1373_v48 }
 0x2ac   : > { %v1376_v50 = vsel %vm1246_vm2, %v14366_v25, 0.0 }
 0x2ad   : > { %v14370_v53 = vpop.eup %13710  ;;  %1377 = vadd.xlane.f32.xlu1 %v1376_v50 }
 0x2ae   : > { %v1379_v54 = vsel %vm1246_vm2, %v14370_v53, 0.0 }
 0x2af   : > { %v14374_v58 = vpop.eup %13712  ;;  %1380 = vadd.xlane.f32.xlu0 %v1379_v54 }
 0x2b0   : > { %v1382_v59 = vsel %vm1246_vm2, %v14374_v58, 0.0 }
 0x2b1   : > { %v14378_v61 = vpop.eup %13714  ;;  %1383 = vadd.xlane.f32.xlu1 %v1382_v59 }
 0x2b2   : > { %v1385_v62 = vsel %vm1246_vm2, %v14378_v61, 0.0 }
 0x2b3   : > { %v14382_v4 = vpop.eup %13716  ;;  %1386 = vadd.xlane.f32.xlu0 %v1385_v62 }
 0x2b4   : > { %v1388_v7 = vsel %vm1246_vm2, %v14382_v4, 0.0 }
 0x2b5   : > { %1389 = vadd.xlane.f32.xlu1 %v1388_v7 }
 0x31c   : > { %v1345_v10 = vpop.xlane.xlu0 %1344 }
 0x31d   : > { %13718 = vrcp.f32 %v1345_v10 }
 0x320   : > { %v1351_v11 = vpop.xlane.xlu0 %1350  ;;  %v1348_v45 = vpop.xlane.xlu1 %1347 }
 0x321   : > { %13720 = vrcp.f32 %v1348_v45 }
 0x322   : > { %13722 = vrcp.f32 %v1351_v11 }
 0x324   : > { %v1354_v51 = vpop.xlane.xlu1 %1353 }
 0x325   : > { %13724 = vrcp.f32 %v1354_v51 }
 0x327   : > { %v13719_v55 = vpop.eup %13718 }
 0x328   : > { %v1407_v40 = vmul.f32 %v13719_v55, %v14310_v49 }
 0x32b   : > { %v13721_v12 = vpop.eup %13720 }
 0x32c   : > { %v1357_v15 = vpop.xlane.xlu0 %1356  ;;  %v13723_v13 = vpop.eup %13722  ;;  %v1408_v63 = vmul.f32 %v13721_v12, %v14317_v57 }
 0x32d   : > { %13726 = vrcp.f32 %v1357_v15  ;;  %v1409_v60 = vmul.f32 %v13723_v13, %v14314_v52  ;;  %v13388_v52 = vld [vmem:[%s19159_s7] sm:$0xff]  }
 0x32e   : > { %v1360_v17 = vpop.xlane.xlu1 %1359  ;;  %v1423_v9 = vpack.c.bf16 %v1408_v63, %v1407_v40 }
 0x32f   : > { %v13725_v1 = vpop.eup %13724  ;;  %13728 = vrcp.f32 %v1360_v17 }
 0x330   : > { %v1410_v39 = vmul.f32 %v13725_v1, %v14324_v6  ;;  %v1363_v14 = vpop.xlane.xlu0 %1362  ;;  %13161 = vmatprep.mubr.msk.bf16.mxu0 %vm1246_vm2, %v1423_v9 }
 0x331   : > { %13730 = vrcp.f32 %v1363_v14 }
 0x332   : > { %v1366_v16 = vpop.xlane.xlu1 %1365  ;;  %v1424_v18 = vpack.c.bf16 %v1410_v39, %v1409_v60 }
 0x333   : > { %13732 = vrcp.f32 %v1366_v16 }
 0x334   : > { %v1369_v47 = vpop.xlane.xlu0 %1368  ;;  %13162 = vmatmul.mubr.msk.bf16.vlgmr.msra.gmra.mrb[28].mxu0 %vm1246_vm2, %v1424_v18 }
 0x335   : > { %13734 = vrcp.f32 %v1369_v47  ;;  %13174 = vmatpush3.bf16.msra.mxu0 %v14232_v34 }
 0x336   : > { %13175 = vmatprep.subr.bf16.mxu0 %v14235_v35  ;;  %v1372_v49 = vpop.xlane.xlu1 %1371 }
 0x337   : > { %v13727_v57 = vpop.eup %13726  ;;  %13736 = vrcp.f32 %v1372_v49 }
 0x338   : > { %v1375_v6 = vpop.xlane.xlu0 %1374  ;;  %v1411_v24 = vmul.f32 %v13727_v57, %v14333_v5  ;;  %v14436_v57 = vld [vmem:[%s19160_s8] ss:$0 sm:$0xff] }
 0x339   : > { %v13729_v0 = vpop.eup %13728  ;;  %13738 = vrcp.f32 %v1375_v6  ;;  %13176 = vmatpush3.bf16.msra.mxu0 %v14235_v35 }
 0x33a   : > { %v1378_v22 = vpop.xlane.xlu1 %1377  ;;  %v1412_v8 = vmul.f32 %v13729_v0, %v14338_v20  ;;  %13189 = vmatprep.subr.bf16.mxu0 %v13388_v52 }
 0x33b   : > { %v13731_v34 = vpop.eup %13730  ;;  %13740 = vrcp.f32 %v1378_v22 }
 0x33c   : > { %v1381_v27 = vpop.xlane.xlu0 %1380  ;;  %v1425_v56 = vpack.c.bf16 %v1412_v8, %v1411_v24  ;;  %v1413_v29 = vmul.f32 %v13731_v34, %v14343_v26 }
 0x33d   : > { %v13733_v28 = vpop.eup %13732  ;;  %13742 = vrcp.f32 %v1381_v27 }
 0x33e   : > { %v1414_v19 = vmul.f32 %v13733_v28, %v14348_v30  ;;  %13169 = vmatprep.mubr.msk.bf16.mxu1 %vm1246_vm2, %v1425_v56  ;;  %v1384_v31 = vpop.xlane.xlu1 %1383  ;;  %v13942_v28 = vld [vmem:[%s14092_s29] sm:$0xff] }
 0x33f   : > { %v13735_v35 = vpop.eup %13734  ;;  %13744 = vrcp.f32 %v1384_v31  ;;  %v13943_v31 = vld [vmem:[%s14092_s29 + $0x8] sm:$0xff] }
 0x340   : > { %v1387_v32 = vpop.xlane.xlu0 %1386  ;;  %v1426_v5 = vpack.c.bf16 %v1414_v19, %v1413_v29  ;;  %v1415_v23 = vmul.f32 %v13735_v35, %v14353_v36 }
 0x341   : > { %v13737_v33 = vpop.eup %13736  ;;  %13746 = vrcp.f32 %v1387_v32  ;;  %v13944_v32 = vld [vmem:[%s14092_s29 + $0x10] sm:$0xff] }
 0x342   : > { %13170 = vmatmul.mubr.msk.bf16.vlgmr.msra.gmra.mrb[36].mxu1 %vm1246_vm2, %v1426_v5  ;;  %v1390_v20 = vpop.xlane.xlu1 %1389  ;;  %v1416_v37 = vmul.f32 %v13737_v33, %v14358_v41 }
 0x343   : > { %v13739_v38 = vpop.eup %13738  ;;  %13182 = vmatpush3.bf16.msra.mxu1 %v14237_v42  ;;  %13748 = vrcp.f32 %v1390_v20  ;;  %v13945_v20 = vld [vmem:[%s14092_s29 + $0x18] sm:$0xff] }
 0x344   : > { %13183 = vmatprep.subr.bf16.mxu1 %v14240_v43  ;;  %v1427_v26 = vpack.c.bf16 %v1416_v37, %v1415_v23  ;;  %v1417_v44 = vmul.f32 %v13739_v38, %v14362_v46 }
 0x345   : > { %v13741_v30 = vpop.eup %13740 }
 0x346   : > { %v1418_v21 = vmul.f32 %v13741_v30, %v14366_v25  ;;  %13177 = vmatprep.mubr.msk.bf16.mxu0 %vm1246_vm2, %v1427_v26 }
 0x347   : > { %v13743_v48 = vpop.eup %13742  ;;  %13184 = vmatpush3.bf16.msra.mxu1 %v14240_v43  ;;  %v13389_v43 = vld [vmem:[%s19159_s7 + $0x8] ss:$0 sps:$4 sm:$0x11]  }
 0x348   : > { %v1428_v36 = vpack.c.bf16 %v1418_v21, %v1417_v44  ;;  %v1419_v42 = vmul.f32 %v13743_v48, %v14370_v53  ;;  %v1703_v53 = vand.u32 %v13389_v43, %v14072_v3 }
 0x349   : > { %v13745_v50 = vpop.eup %13744 }
 0x34a   : > { %13178 = vmatmul.mubr.msk.bf16.vlgmr.msra.gmra.mrb[32].mxu0 %vm1246_vm2, %v1428_v36  ;;  %v1420_v41 = vmul.f32 %v13745_v50, %v14374_v58 }
 0x34b   : > { %v13747_v54 = vpop.eup %13746  ;;  %13190 = vmatpush3.bf16.msra.mxu0 %v13388_v52 }
 0x34c   : > { %v1429_v59 = vpack.c.bf16 %v1420_v41, %v1419_v42  ;;  %v1421_v46 = vmul.f32 %v13747_v54, %v14378_v61  ;;  %13191 = vmatprep.subr.bf16.mxu0 %v1703_v53  ;;  %v13946_v41 = vld [vmem:[%s14092_s29 + $0x20] sm:$0xff] }
 0x34d   : > { %v13749_v62 = vpop.eup %13748 }
 0x34e   : > { %v1422_v25 = vmul.f32 %v13749_v62, %v14382_v4  ;;  %13185 = vmatprep.mubr.msk.bf16.mxu1 %vm1246_vm2, %v1429_v59  ;;  %v13947_v62 = vld [vmem:[%s14092_s29 + $0x28] sm:$0xff] }
 0x34f   : > { %13192 = vmatpush3.bf16.msra.mxu0 %v1703_v53 }
 0x350   : > { %v1430_v7 = vpack.c.bf16 %v1422_v25, %v1421_v46  ;;  %v13948_v25 = vld [vmem:[%s14092_s29 + $0x30] sm:$0xff] }
 0x352   : > { %13186 = vmatmul.mubr.msk.bf16.vlgmr.msra.gmra.mrb[40].mxu1 %vm1246_vm2, %v1430_v7 }
 0x353   : > { %2413 = vmatprep.mubr.bf16.mxu1 %v19171_v2 }
 0x407   : > { %v13163_v58 = vpop.f32.mrb[28].mxu0 }
 0x408   : > { %v1471_v10 = vpop.f32.mrb[29].mxu0 }
 0x409   : > { %v13164_v61 = vpop.f32.mrb[30].mxu0 }
 0x40a   : > { %v1652_v11 = vpack.c.bf16 %v13164_v61, %v13163_v58  ;;  %v1474_v4 = vpop.f32.mrb[31].mxu0  ;;  %v13949_v58 = vld [vmem:[%s14092_s29 + $0x38] sm:$0xff] }
 0x40b   : > { %v1651_v45 = vpack.c.bf16 %v1474_v4, %v1471_v10 }
 0x40d   : > { %13193 = vmatprep.mubr.msk.bf16.mxu0 %vm596_vm1, %v1651_v45 }
 0x40e   : > { %13194 = vmatmul.mubr.msk.bf16.vlgmr.msra.gmra.mrb[36].mxu0 %vm596_vm1, %v1652_v11 }
 0x415   : > { %v13171_v51 = vpop.f32.mrb[36].mxu1 }
 0x416   : > { %v1526_v55 = vpop.f32.mrb[37].mxu1 }
 0x417   : > { %v13172_v12 = vpop.f32.mrb[38].mxu1 }
 0x418   : > { %v1654_v15 = vpack.c.bf16 %v13172_v12, %v13171_v51  ;;  %v1529_v13 = vpop.f32.mrb[39].mxu1 }
 0x419   : > { %v1653_v40 = vpack.c.bf16 %v1529_v13, %v1526_v55 }
 0x41b   : > { %13197 = vmatprep.mubr.msk.bf16.mxu0 %vm596_vm1, %v1653_v40  ;;  %v13950_v40 = vld [vmem:[%s14092_s29 + $0x40] sm:$0xff] }
 0x41c   : > { %13198 = vmatmul.mubr.msk.bf16.gmra.mrb[40].mxu0 %vm596_vm1, %v1654_v15 }
 0x41d   : > { %v13179_v63 = vpop.f32.mrb[32].mxu0 }
 0x41e   : > { %v1581_v17 = vpop.f32.mrb[33].mxu0 }
 0x41f   : > { %v13180_v1 = vpop.f32.mrb[34].mxu0 }
 0x420   : > { %v1656_v9 = vpack.c.bf16 %v13180_v1, %v13179_v63  ;;  %v1584_v60 = vpop.f32.mrb[35].mxu0  ;;  %v13951_v1 = vld [vmem:[%s14092_s29 + $0x48] sm:$0xff] }
 0x421   : > { %v1655_v39 = vpack.c.bf16 %v1584_v60, %v1581_v17  ;;  %v13952_v60 = vld [vmem:[%s14092_s29 + $0x50] sm:$0xff] }
 0x423   : > { %13201 = vmatprep.mubr.msk.bf16.mxu0 %vm596_vm1, %v1655_v39 }
 0x424   : > { %13202 = vmatmul.mubr.msk.bf16.gmra.mrb[44].mxu0 %vm596_vm1, %v1656_v9 }
 0x425   : > { %v13187_v14 = vpop.f32.mrb[40].mxu1 }
 0x426   : > { %v1636_v16 = vpop.f32.mrb[41].mxu1 }
 0x427   : > { %v13188_v18 = vpop.f32.mrb[42].mxu1 }
 0x428   : > { %v1658_v47 = vpack.c.bf16 %v13188_v18, %v13187_v14  ;;  %v1639_v49 = vpop.f32.mrb[43].mxu1  ;;  %v13953_v18 = vld [vmem:[%s14092_s29 + $0x58] sm:$0xff] }
 0x429   : > { %v1657_v52 = vpack.c.bf16 %v1639_v49, %v1636_v16 }
 0x42b   : > { %13205 = vmatprep.mubr.msk.bf16.mxu0 %vm596_vm1, %v1657_v52 }
 0x42c   : > { %13206 = vmatmul.mubr.msk.bf16.gmra.mrb[48].mxu0 %vm596_vm1, %v1658_v47 }
 0x42d   : > { %2526 = vmatprep.mubr.bf16.mxu0 %v19171_v2 }
 0x4e1   : > { %v13195_v6 = vpop.f32.mrb[36].mxu0 }
 0x4e2   : > { %v1739_v0 = vpop.f32.mrb[37].mxu0  ;;  %v1748_v22 = vadd.f32 %v13195_v6, %v14436_v57 }
 0x4e3   : > { %v1740_v24 = vadd.f32 %v14436_v57, %v1739_v0  ;;  %v13196_v8 = vpop.f32.mrb[38].mxu0 }
 0x4e4   : > { %v1742_v34 = vpop.f32.mrb[39].mxu0  ;;  %v1751_v27 = vadd.f32 %v13196_v8, %v14436_v57  ;;  %v14451_v5 = vadd.f32 %v13944_v32, %v1748_v22 }
 0x4e5   : > { %v1743_v56 = vadd.f32 %v14436_v57, %v1742_v34  ;;  %v14443_v29 = vadd.f32 %v13942_v28, %v1740_v24 }
 0x4e6   : > { %v14456_v23 = vadd.f32 %v13945_v20, %v1751_v27  ;;  %v1826_v37 = vsel %vm596_vm1, %v14451_v5, 0.0 }
 0x4e7   : > { %v1820_v19 = vsel %vm596_vm1, %v14443_v29, 0.0  ;;  %v14448_v35 = vadd.f32 %v13943_v31, %v1743_v56  ;;  %v13954_v56 = vld [vmem:[%s14092_s29 + $0x60] sm:$0xff]  ;;  %v13955_v31 = vld [vmem:[%s14092_s29 + $0x68] sm:$0xff] }
 0x4e8   : > { %1821 = vadd.xlane.f32.xlu0 %v1820_v19  ;;  %v1829_v38 = vsel %vm596_vm1, %v14456_v23, 0.0 }
 0x4e9   : > { %v1823_v33 = vsel %vm596_vm1, %v14448_v35, 0.0 }
 0x4ea   : > { %1824 = vadd.xlane.f32.xlu1 %v1823_v33  ;;  %v13956_v33 = vld [vmem:[%s14092_s29 + $0x70] sm:$0xff] }
 0x4ec   : > { %1827 = vadd.xlane.f32.xlu0 %v1826_v37  ;;  %v13957_v37 = vld [vmem:[%s14092_s29 + $0x78] sm:$0xff] }
 0x4ee   : > { %1830 = vadd.xlane.f32.xlu1 %v1829_v38 }
 0x4ef   : > { %v13199_v26 = vpop.f32.mrb[40].mxu0 }
 0x4f0   : > { %v1755_v30 = vpop.f32.mrb[41].mxu0  ;;  %v1764_v44 = vadd.f32 %v13199_v26, %v14436_v57 }
 0x4f1   : > { %v1756_v21 = vadd.f32 %v14436_v57, %v1755_v30  ;;  %v13200_v48 = vpop.f32.mrb[42].mxu0 }
 0x4f2   : > { %v1758_v36 = vpop.f32.mrb[43].mxu0  ;;  %v1767_v50 = vadd.f32 %v13200_v48, %v14436_v57  ;;  %v14475_v7 = vadd.f32 %v13948_v25, %v1764_v44 }
 0x4f3   : > { %v1759_v42 = vadd.f32 %v14436_v57, %v1758_v36  ;;  %v14467_v54 = vadd.f32 %v13946_v41, %v1756_v21 }
 0x4f4   : > { %v14480_v10 = vadd.f32 %v13949_v58, %v1767_v50  ;;  %v1838_v51 = vsel %vm596_vm1, %v14475_v7, 0.0 }
 0x4f5   : > { %v1832_v59 = vsel %vm596_vm1, %v14467_v54, 0.0  ;;  %v14472_v46 = vadd.f32 %v13947_v62, %v1759_v42 }
 0x4f6   : > { %1833 = vadd.xlane.f32.xlu0 %v1832_v59  ;;  %v1841_v13 = vsel %vm596_vm1, %v14480_v10, 0.0 }
 0x4f7   : > { %v13203_v43 = vpop.f32.mrb[44].mxu0  ;;  %v1835_v53 = vsel %vm596_vm1, %v14472_v46, 0.0 }
 0x4f8   : > { %1836 = vadd.xlane.f32.xlu1 %v1835_v53  ;;  %v1771_v61 = vpop.f32.mrb[45].mxu0  ;;  %v1780_v11 = vadd.f32 %v13203_v43, %v14436_v57 }
 0x4f9   : > { %v1772_v4 = vadd.f32 %v14436_v57, %v1771_v61  ;;  %v13204_v45 = vpop.f32.mrb[46].mxu0 }
 0x4fa   : > { %1839 = vadd.xlane.f32.xlu0 %v1838_v51  ;;  %v1774_v55 = vpop.f32.mrb[47].mxu0  ;;  %v1783_v12 = vadd.f32 %v13204_v45, %v14436_v57  ;;  %v14499_v39 = vadd.f32 %v13952_v60, %v1780_v11 }
 0x4fb   : > { %v1775_v15 = vadd.f32 %v14436_v57, %v1774_v55  ;;  %v14491_v63 = vadd.f32 %v13950_v40, %v1772_v4 }
 0x4fc   : > { %1842 = vadd.xlane.f32.xlu1 %v1841_v13  ;;  %v14504_v47 = vadd.f32 %v13953_v18, %v1783_v12  ;;  %v1850_v22 = vsel %vm596_vm1, %v14499_v39, 0.0 }
 0x4fd   : > { %v1844_v17 = vsel %vm596_vm1, %v14491_v63, 0.0  ;;  %v14496_v9 = vadd.f32 %v13951_v1, %v1775_v15 }
 0x4fe   : > { %1845 = vadd.xlane.f32.xlu0 %v1844_v17  ;;  %v1853_v27 = vsel %vm596_vm1, %v14504_v47, 0.0 }
 0x4ff   : > { %v13207_v14 = vpop.f32.mrb[48].mxu0  ;;  %v1847_v16 = vsel %vm596_vm1, %v14496_v9, 0.0 }
 0x500   : > { %1848 = vadd.xlane.f32.xlu1 %v1847_v16  ;;  %v1787_v49 = vpop.f32.mrb[49].mxu0  ;;  %v1796_v52 = vadd.f32 %v13207_v14, %v14436_v57 }
 0x501   : > { %v1788_v6 = vadd.f32 %v14436_v57, %v1787_v49  ;;  %v13208_v0 = vpop.f32.mrb[50].mxu0 }
 0x502   : > { %1851 = vadd.xlane.f32.xlu0 %v1850_v22  ;;  %v1790_v24 = vpop.f32.mrb[51].mxu0  ;;  %v1799_v8 = vadd.f32 %v13208_v0, %v14436_v57  ;;  %v14523_v20 = vadd.f32 %v13956_v33, %v1796_v52 }
 0x503   : > { %v1791_v34 = vadd.f32 %v14436_v57, %v1790_v24  ;;  %v14515_v28 = vadd.f32 %v13954_v56, %v1788_v6 }
 0x504   : > { %1854 = vadd.xlane.f32.xlu1 %v1853_v27  ;;  %v14528_v38 = vadd.f32 %v13957_v37, %v1799_v8  ;;  %v1862_v26 = vsel %vm596_vm1, %v14523_v20, 0.0 }
 0x505   : > { %v1856_v19 = vsel %vm596_vm1, %v14515_v28, 0.0  ;;  %v14520_v32 = vadd.f32 %v13955_v31, %v1791_v34 }
 0x506   : > { %1857 = vadd.xlane.f32.xlu0 %v1856_v19  ;;  %v1865_v30 = vsel %vm596_vm1, %v14528_v38, 0.0 }
 0x507   : > { %v1859_v57 = vsel %vm596_vm1, %v14520_v32, 0.0 }
 0x508   : > { %1860 = vadd.xlane.f32.xlu1 %v1859_v57 }
 0x50a   : > { %1863 = vadd.xlane.f32.xlu0 %v1862_v26 }
 0x50c   : > { %1866 = vadd.xlane.f32.xlu1 %v1865_v30 }
 0x575   : > { %v1822_v44 = vpop.xlane.xlu0 %1821 }
 0x576   : > { %v1869_v21 = vmul.f32 0.05882353, %v1822_v44 }
 0x577   : > { %v1825_v48 = vpop.xlane.xlu1 %1824 }
 0x578   : > { %v14535_v36 = vsub.f32 %v14443_v29, %v1869_v21  ;;  %v1870_v50 = vmul.f32 0.05882353, %v1825_v48 }
 0x579   : > { %v1828_v42 = vpop.xlane.xlu0 %1827 }
 0x57a   : > { %v14538_v41 = vsub.f32 %v14448_v35, %v1870_v50  ;;  %v1871_v59 = vmul.f32 0.05882353, %v1828_v42  ;;  %v1901_v62 = vmul.f32 %v14535_v36, %v14535_v36 }
 0x57b   : > { %v1831_v25 = vpop.xlane.xlu1 %1830 }
 0x57c   : > { %v14543_v43 = vsub.f32 %v14451_v5, %v1871_v59  ;;  %v1872_v53 = vmul.f32 0.05882353, %v1831_v25  ;;  %v1917_v58 = vsel %vm596_vm1, %v1901_v62, 0.0  ;;  %v1902_v29 = vmul.f32 %v14538_v41, %v14538_v41 }
 0x57d   : > { %1918 = vadd.xlane.f32.xlu0 %v1917_v58 }
 0x57e   : > { %v14549_v61 = vsub.f32 %v14456_v23, %v1872_v53  ;;  %v1920_v35 = vsel %vm596_vm1, %v1902_v29, 0.0  ;;  %v1903_v11 = vmul.f32 %v14543_v43, %v14543_v43 }
 0x57f   : > { %1921 = vadd.xlane.f32.xlu1 %v1920_v35 }
 0x580   : > { %v1923_v4 = vsel %vm596_vm1, %v1903_v11, 0.0  ;;  %v1904_v5 = vmul.f32 %v14549_v61, %v14549_v61 }
 0x581   : > { %1924 = vadd.xlane.f32.xlu0 %v1923_v4 }
 0x582   : > { %v1926_v45 = vsel %vm596_vm1, %v1904_v5, 0.0 }
 0x583   : > { %v1834_v51 = vpop.xlane.xlu0 %1833  ;;  %1927 = vadd.xlane.f32.xlu1 %v1926_v45  ;;  %v2090_v45 = vld [vmem:[%s19163_s11 + $0x48] sm:$0xff] }
 0x584   : > { %v1873_v55 = vmul.f32 0.05882353, %v1834_v51 }
 0x585   : > { %v1837_v12 = vpop.xlane.xlu1 %1836 }
 0x586   : > { %v14559_v23 = vsub.f32 %v14467_v54, %v1873_v55  ;;  %v1874_v15 = vmul.f32 0.05882353, %v1837_v12 }
 0x587   : > { %v1840_v13 = vpop.xlane.xlu0 %1839 }
 0x588   : > { %v14562_v40 = vsub.f32 %v14472_v46, %v1874_v15  ;;  %v1875_v17 = vmul.f32 0.05882353, %v1840_v13  ;;  %v1905_v1 = vmul.f32 %v14559_v23, %v14559_v23  ;;  %v2089_v13 = vld [vmem:[%s19163_s11 + $0x40] sm:$0xff] }
 0x589   : > { %v1843_v60 = vpop.xlane.xlu1 %1842 }
 0x58a   : > { %v14567_v14 = vsub.f32 %v14475_v7, %v1875_v17  ;;  %v1876_v16 = vmul.f32 0.05882353, %v1843_v60  ;;  %v1929_v18 = vsel %vm596_vm1, %v1905_v1, 0.0  ;;  %v1906_v54 = vmul.f32 %v14562_v40, %v14562_v40 }
 0x58b   : > { %v1846_v49 = vpop.xlane.xlu0 %1845  ;;  %1930 = vadd.xlane.f32.xlu0 %v1929_v18 }
 0x58c   : > { %v14573_v52 = vsub.f32 %v14480_v10, %v1876_v16  ;;  %v1877_v46 = vmul.f32 0.05882353, %v1846_v49  ;;  %v1932_v6 = vsel %vm596_vm1, %v1906_v54, 0.0  ;;  %v1907_v0 = vmul.f32 %v14567_v14, %v14567_v14  ;;  %v2097_v16 = vld [vmem:[%s19163_s11 + $0x80] sm:$0x11] }
 0x58d   : > { %1933 = vadd.xlane.f32.xlu1 %v1932_v6  ;;  %v1849_v7 = vpop.xlane.xlu1 %1848  ;;  %v11093_v49 = vcombine.high %v2097_v16, %v2097_v16  ;;  %v11092_v6 = vcombine.low %v2097_v16, %v2097_v16  ;;  %v2100_v16 = vld [vmem:[%s19163_s11 + $0x98] sm:$0x11] }
 0x58e   : > { %v14579_v22 = vsub.f32 %v14491_v63, %v1877_v46  ;;  %v1878_v24 = vmul.f32 0.05882353, %v1849_v7  ;;  %v1935_v8 = vsel %vm596_vm1, %v1907_v0, 0.0  ;;  %v1908_v34 = vmul.f32 %v14573_v52, %v14573_v52 }
 0x58f   : > { %v1852_v27 = vpop.xlane.xlu0 %1851  ;;  %1936 = vadd.xlane.f32.xlu0 %v1935_v8 }
 0x590   : > { %v14585_v10 = vsub.f32 %v14496_v9, %v1878_v24  ;;  %v1879_v56 = vmul.f32 0.05882353, %v1852_v27  ;;  %v1938_v19 = vsel %vm596_vm1, %v1908_v34, 0.0  ;;  %v1909_v31 = vmul.f32 %v14579_v22, %v14579_v22 }
 0x591   : > { %1939 = vadd.xlane.f32.xlu1 %v1938_v19  ;;  %v1855_v63 = vpop.xlane.xlu1 %1854  ;;  %v2337_v24 = vand.u32 %v11093_v49, %v14072_v3  ;;  %v2334_v34 = vand.u32 %v11092_v6, %v14072_v3  ;;  %v14660_v19 = vld [vmem:[%s19163_s11 + $0x50] sm:$0xff] }
 0x592   : > { %v14591_v33 = vsub.f32 %v14499_v39, %v1879_v56  ;;  %v1880_v57 = vmul.f32 0.05882353, %v1855_v63  ;;  %v1941_v37 = vsel %vm596_vm1, %v1909_v31, 0.0  ;;  %v1910_v26 = vmul.f32 %v14585_v10, %v14585_v10  ;;  %v14655_v56 = vld [vmem:[%s19163_s11 + $0x10] sm:$0xff]  ;;  %v14665_v31 = vld [vmem:[%s19163_s11 + $0x18] sm:$0xff] }
 0x593   : > { %1942 = vadd.xlane.f32.xlu0 %v1941_v37  ;;  %v1858_v9 = vpop.xlane.xlu0 %1857  ;;  %v11080_v63 = vcombine.low %v14655_v56, %v14660_v19  ;;  %v14674_v37 = vld [vmem:[%s19163_s11 + $0x58] sm:$0xff] }
 0x594   : > { %v14597_v30 = vsub.f32 %v14504_v47, %v1880_v57  ;;  %v1881_v44 = vmul.f32 0.05882353, %v1858_v9  ;;  %v1944_v21 = vsel %vm596_vm1, %v1910_v26, 0.0  ;;  %v1911_v48 = vmul.f32 %v14591_v33, %v14591_v33 }
 0x595   : > { %1945 = vadd.xlane.f32.xlu1 %v1944_v21  ;;  %v1861_v39 = vpop.xlane.xlu1 %1860  ;;  %v11081_v57 = vcombine.high %v14655_v56, %v14660_v19  ;;  %v11082_v26 = vcombine.low %v14665_v31, %v14674_v37  ;;  %v11083_v9 = vcombine.high %v14665_v31, %v14674_v37 }
 0x596   : > { %v14603_v50 = vsub.f32 %v14515_v28, %v1881_v44  ;;  %v1882_v42 = vmul.f32 0.05882353, %v1861_v39  ;;  %v1947_v59 = vsel %vm596_vm1, %v1911_v48, 0.0  ;;  %v1912_v62 = vmul.f32 %v14597_v30, %v14597_v30 }
 0x597   : > { %1948 = vadd.xlane.f32.xlu0 %v1947_v59  ;;  %v1864_v47 = vpop.xlane.xlu0 %1863 }
 0x598   : > { %v14609_v25 = vsub.f32 %v14520_v32, %v1882_v42  ;;  %v1883_v53 = vmul.f32 0.05882353, %v1864_v47  ;;  %v1950_v58 = vsel %vm596_vm1, %v1912_v62, 0.0  ;;  %v1913_v29 = vmul.f32 %v14603_v50, %v14603_v50  ;;  %v2082_v32 = vld [vmem:[%s19163_s11 + $0x8] sm:$0xff] }
 0x599   : > { %1951 = vadd.xlane.f32.xlu1 %v1950_v58  ;;  %v1867_v28 = vpop.xlane.xlu1 %1866  ;;  %v11079_v15 = vcombine.high %v2082_v32, %v2090_v45  ;;  %v11078_v17 = vcombine.low %v2082_v32, %v2090_v45 }
 0x59a   : > { %v14615_v35 = vsub.f32 %v14523_v20, %v1883_v53  ;;  %v1884_v11 = vmul.f32 0.05882353, %v1867_v28  ;;  %v1953_v4 = vsel %vm596_vm1, %v1913_v29, 0.0  ;;  %v1914_v5 = vmul.f32 %v14609_v25, %v14609_v25  ;;  %v2081_v20 = vld [vmem:[%s19163_s11] sm:$0xff] }
 0x59b   : > { %1954 = vadd.xlane.f32.xlu0 %v1953_v4  ;;  %v11076_v1 = vcombine.low %v2081_v20, %v2089_v13  ;;  %v11077_v60 = vcombine.high %v2081_v20, %v2089_v13  ;;  %2494 = vmatprep.subr.bf16.mxu0 %v11079_v15  ;;  %v2099_v13 = vld [vmem:[%s19163_s11 + $0x90] sm:$0x11] }
 0x59c   : > { %v14630_v51 = vsub.f32 %v14528_v38, %v1884_v11  ;;  %v1956_v55 = vsel %vm596_vm1, %v1914_v5, 0.0  ;;  %v1915_v12 = vmul.f32 %v14615_v35, %v14615_v35  ;;  %v2098_v38 = vld [vmem:[%s19163_s11 + $0x88] sm:$0x11]  ;;  %2495 = vmatpush1.bf16.msra.mxu0 %v11078_v17  ;;  %v14683_v5 = vld [vmem:[%s19161_s9] ss:$0 sm:$0xff]  ;;  %v11097_v6 = vcombine.high %v2099_v13, %v2099_v13 }
 0x59d   : > { %1957 = vadd.xlane.f32.xlu1 %v1956_v55  ;;  %v11095_v46 = vcombine.high %v2098_v38, %v2098_v38  ;;  %v11094_v0 = vcombine.low %v2098_v38, %v2098_v38  ;;  %2381 = vmatprep.subr.bf16.mxu1 %v11077_v60 }
 0x59e   : > { %v1959_v18 = vsel %vm596_vm1, %v1915_v12, 0.0  ;;  %v1916_v54 = vmul.f32 %v14630_v51, %v14630_v51  ;;  %2382 = vmatpush1.bf16.msra.mxu1 %v11076_v1 }
 0x59f   : > { %1960 = vadd.xlane.f32.xlu0 %v1959_v18  ;;  %v2343_v8 = vand.u32 %v11095_v46, %v14072_v3  ;;  %v2340_v27 = vand.u32 %v11094_v0, %v14072_v3  ;;  %2383 = vmatprep.subr.bf16.mxu1 %v2337_v24  ;;  %v11099_v24 = vcombine.high %v2100_v16, %v2100_v16 }
 0x5a0   : > { %v1962_v7 = vsel %vm596_vm1, %v1916_v54, 0.0 }
 0x5a1   : > { %1963 = vadd.xlane.f32.xlu1 %v1962_v7  ;;  %2496 = vmatprep.subr.bf16.mxu0 %v2343_v8 }
 0x5a2   : > { %2497 = vmatpush1.bf16.msra.mxu0 %v2340_v27  ;;  %2384 = vmatpush1.bf16.msra.mxu1 %v2334_v34 }
 0x5a3   : > { %2607 = vmatprep.subr.bf16.mxu1 %v11081_v57  ;;  %2720 = vmatprep.subr.bf16.mxu0 %v11083_v9 }
 0x60a   : > { %v1919_v44 = vpop.xlane.xlu0 %1918 }
 0x60b   : > { %v1965_v21 = vmul.f32 0.05882353, %v1919_v44 }
 0x60c   : > { %v1922_v48 = vpop.xlane.xlu1 %1921 }
 0x60d   : > { %v1981_v39 = vadd.f32 1e-05, %v1965_v21  ;;  %v1966_v42 = vmul.f32 0.05882353, %v1922_v48  ;;  %v11096_v21 = vcombine.low %v2099_v13, %v2099_v13  ;;  %v11098_v48 = vcombine.low %v2100_v16, %v2100_v16 }
 0x60e   : > { %v1925_v59 = vpop.xlane.xlu0 %1924 }
 0x60f   : > { %13750 = vrsqrt.f32 %v1981_v39  ;;  %v1982_v62 = vadd.f32 1e-05, %v1966_v42  ;;  %v1967_v47 = vmul.f32 0.05882353, %v1925_v59 }
 0x610   : > { %v1928_v53 = vpop.xlane.xlu1 %1927 }
 0x611   : > { %13752 = vrsqrt.f32 %v1982_v62  ;;  %v1983_v58 = vadd.f32 1e-05, %v1967_v47  ;;  %v1968_v29 = vmul.f32 0.05882353, %v1928_v53  ;;  %v2349_v62 = vand.u32 %v11097_v6, %v14072_v3 }
 0x613   : > { %13754 = vrsqrt.f32 %v1983_v58  ;;  %v1984_v28 = vadd.f32 1e-05, %v1968_v29  ;;  %v14728_v29 = vld [vmem:[%s19163_s11 + $0x60] sm:$0xff] }
 0x615   : > { %13756 = vrsqrt.f32 %v1984_v28  ;;  %v14733_v28 = vld [vmem:[%s19163_s11 + $0x28] sm:$0xff] }
 0x618   : > { %v1931_v11 = vpop.xlane.xlu0 %1930 }
 0x619   : > { %v13751_v4 = vpop.eup %13750  ;;  %v1969_v32 = vmul.f32 0.05882353, %v1931_v11  ;;  %v14738_v11 = vld [vmem:[%s19163_s11 + $0x68] sm:$0xff] }
 0x61a   : > { %v2013_v45 = vmul.f32 %v13751_v4, %v14535_v36  ;;  %v1934_v20 = vpop.xlane.xlu1 %1933  ;;  %v14697_v36 = vld [vmem:[%s19162_s10] ss:$0 sm:$0xff] }
 0x61b   : > { %v13753_v55 = vpop.eup %13752  ;;  %v1985_v12 = vadd.f32 1e-05, %v1969_v32  ;;  %v1970_v15 = vmul.f32 0.05882353, %v1934_v20  ;;  %v2346_v20 = vand.u32 %v11096_v21, %v14072_v3 }
 0x61c   : > { %v2035_v17 = vmul.f32 %v14683_v5, %v2013_v45  ;;  %v2014_v1 = vmul.f32 %v13753_v55, %v14538_v41  ;;  %v1937_v60 = vpop.xlane.xlu0 %1936  ;;  %v2352_v55 = vand.u32 %v11098_v48, %v14072_v3 }
 0x61d   : > { %v13755_v38 = vpop.eup %13754  ;;  %13758 = vrsqrt.f32 %v1985_v12  ;;  %v1986_v18 = vadd.f32 1e-05, %v1970_v15  ;;  %v1971_v54 = vmul.f32 0.05882353, %v1937_v60 }
 0x61e   : > { %v2036_v49 = vmul.f32 %v14683_v5, %v2014_v1  ;;  %v1940_v46 = vpop.xlane.xlu1 %1939  ;;  %v14701_v8 = vadd.f32 %v14697_v36, %v2035_v17  ;;  %v2015_v27 = vmul.f32 %v13755_v38, %v14543_v43  ;;  %v2355_v43 = vand.u32 %v11099_v24, %v14072_v3 }
 0x61f   : > { %v13757_v0 = vpop.eup %13756  ;;  %13760 = vrsqrt.f32 %v1986_v18  ;;  %v1987_v41 = vadd.f32 1e-05, %v1971_v54  ;;  %v1972_v7 = vmul.f32 0.05882353, %v1940_v46  ;;  %v11087_v17 = vcombine.high %v14733_v28, %v14738_v11 }
 0x620   : > { %v14704_v34 = vadd.f32 %v14697_v36, %v2036_v49  ;;  %v2016_v57 = vmul.f32 %v13757_v0, %v14549_v61  ;;  %v1943_v9 = vpop.xlane.xlu0 %1942  ;;  %v14718_v61 = vld [vmem:[%s19163_s11 + $0x20] sm:$0xff]  ;;  %v2037_v58 = vmul.f32 %v14683_v5, %v2015_v27 }
 0x621   : > { %v1988_v44 = vadd.f32 1e-05, %v1972_v7  ;;  %13762 = vrsqrt.f32 %v1987_v41  ;;  %v1973_v47 = vmul.f32 0.05882353, %v1943_v9  ;;  %v11085_v13 = vcombine.high %v14718_v61, %v14728_v29 }
 0x622   : > { %v14710_v39 = vpack.c.bf16 %v14704_v34, %v14701_v8  ;;  %v2038_v42 = vmul.f32 %v14683_v5, %v2016_v57  ;;  %v1946_v59 = vpop.xlane.xlu1 %1945  ;;  %v14758_v56 = vadd.f32 %v14697_v36, %v2037_v58 }
 0x623   : > { %13764 = vrsqrt.f32 %v1988_v44  ;;  %v1974_v53 = vmul.f32 0.05882353, %v1946_v59  ;;  %v1989_v15 = vadd.f32 1e-05, %v1973_v47 }
 0x624   : > { %11108 = vmatmul.mubr.msk.bf16.vlgmr.msra.gmra.mrb[44].mxu1 %vm596_vm1, %v14710_v39  ;;  %11116 = vmatmul.mubr.msk.bf16.vlgmr.msra.gmra.mrb[52].mxu0 %vm596_vm1, %v14710_v39  ;;  %v14743_v32 = vadd.f32 %v14697_v36, %v2038_v42  ;;  %v1949_v31 = vpop.xlane.xlu0 %1948 }
 0x625   : > { %v1990_v4 = vadd.f32 1e-05, %v1974_v53  ;;  %2423 = vmatprep.mubr.bf16.mxu1 %v19171_v2  ;;  %2536 = vmatprep.mubr.bf16.mxu0 %v19171_v2  ;;  %v1975_v60 = vmul.f32 0.05882353, %v1949_v31 }
 0x626   : > { %v1952_v45 = vpop.xlane.xlu1 %1951  ;;  %2608 = vmatpush1.bf16.msra.mxu1 %v11080_v63  ;;  %2721 = vmatpush1.bf16.msra.mxu0 %v11082_v26  ;;  %v14763_v26 = vpack.c.bf16 %v14743_v32, %v14758_v56 }
 0x627   : > { %v13759_v12 = vpop.eup %13758  ;;  %2609 = vmatprep.subr.bf16.mxu1 %v2349_v62  ;;  %2722 = vmatprep.subr.bf16.mxu0 %v2355_v43  ;;  %13766 = vrsqrt.f32 %v1990_v4  ;;  %v1976_v37 = vmul.f32 0.05882353, %v1952_v45  ;;  %v1991_v6 = vadd.f32 1e-05, %v1975_v60 }
 0x628   : > { %v2017_v19 = vmul.f32 %v13759_v12, %v14559_v23  ;;  %13768 = vrsqrt.f32 %v1989_v15  ;;  %v1955_v7 = vpop.xlane.xlu0 %1954 }
 0x629   : > { %v13761_v63 = vpop.eup %13760  ;;  %v1992_v54 = vadd.f32 1e-05, %v1976_v37  ;;  %v1977_v44 = vmul.f32 0.05882353, %v1955_v7 }
 0x62a   : > { %v2018_v1 = vmul.f32 %v13761_v63, %v14562_v40  ;;  %2610 = vmatpush1.bf16.msra.mxu1 %v2346_v20  ;;  %2723 = vmatpush1.bf16.msra.mxu0 %v2352_v55  ;;  %v2039_v38 = vmul.f32 %v14683_v5, %v2017_v19  ;;  %v1958_v46 = vpop.xlane.xlu1 %1957 }
 0x62b   : > { %2833 = vmatprep.subr.bf16.mxu1 %v11085_v13  ;;  %2946 = vmatprep.subr.bf16.mxu0 %v11087_v17  ;;  %v13763_v16 = vpop.eup %13762  ;;  %13770 = vrsqrt.f32 %v1992_v54  ;;  %v1978_v24 = vmul.f32 0.05882353, %v1958_v46  ;;  %v1993_v62 = vadd.f32 1e-05, %v1977_v44 }
 0x62c   : > { %v2040_v23 = vmul.f32 %v14683_v5, %v2018_v1  ;;  %11109 = vmatmul.mubr.msk.bf16.gmra.mrb[48].mxu1 %vm596_vm1, %v14763_v26  ;;  %11117 = vmatmul.mubr.msk.bf16.gmra.mrb[56].mxu0 %vm596_vm1, %v14763_v26  ;;  %v14779_v0 = vadd.f32 %v14697_v36, %v2039_v38  ;;  %v2019_v41 = vmul.f32 %v13763_v16, %v14567_v14  ;;  %13772 = vrsqrt.f32 %v1991_v6  ;;  %v1961_v43 = vpop.xlane.xlu0 %1960 }
 0x62d   : > { %v13765_v18 = vpop.eup %13764  ;;  %2433 = vmatprep.mubr.bf16.mxu1 %v19171_v2  ;;  %2546 = vmatprep.mubr.bf16.mxu0 %v19171_v2  ;;  %v1994_v48 = vadd.f32 1e-05, %v1978_v24 }
 0x62e   : > { %v14775_v40 = vadd.f32 %v14697_v36, %v2040_v23  ;;  %v2020_v49 = vmul.f32 %v13765_v18, %v14573_v52  ;;  %v2041_v52 = vmul.f32 %v14683_v5, %v2019_v41  ;;  %v1964_v59 = vpop.xlane.xlu1 %1963 }
 0x62f   : > { %13774 = vrsqrt.f32 %v1994_v48  ;;  %v1980_v58 = vmul.f32 0.05882353, %v1964_v59  ;;  %v11084_v48 = vcombine.low %v14718_v61, %v14728_v29  ;;  %v11086_v59 = vcombine.low %v14733_v28, %v14738_v11  ;;  %v2095_v61 = vld [vmem:[%s19163_s11 + $0x70] sm:$0xff]  ;;  %v2088_v29 = vld [vmem:[%s19163_s11 + $0x38] sm:$0xff] }
 0x630   : > { %v14784_v27 = vpack.c.bf16 %v14775_v40, %v14779_v0  ;;  %v2042_v57 = vmul.f32 %v14683_v5, %v2020_v49  ;;  %v14799_v47 = vadd.f32 %v14697_v36, %v2041_v52  ;;  %13776 = vrsqrt.f32 %v1993_v62  ;;  %v2096_v28 = vld [vmem:[%s19163_s11 + $0x78] sm:$0xff] }
 0x631   : > { %v13767_v9 = vpop.eup %13766  ;;  %v1996_v15 = vadd.f32 1e-05, %v1980_v58  ;;  %v2087_v58 = vld [vmem:[%s19163_s11 + $0x30] sm:$0xff] }
 0x632   : > { %v13769_v21 = vpop.eup %13768  ;;  %v14794_v14 = vadd.f32 %v14697_v36, %v2042_v57  ;;  %v2022_v42 = vmul.f32 %v13767_v9, %v14585_v10  ;;  %v1979_v10 = vmul.f32 0.05882353, %v1961_v43 }
 0x633   : > { %v2021_v53 = vmul.f32 %v13769_v21, %v14579_v22  ;;  %13778 = vrsqrt.f32 %v1996_v15 }
 0x634   : > { %11110 = vmatmul.mubr.msk.bf16.gmra.mrb[52].mxu1 %vm596_vm1, %v14784_v27  ;;  %11118 = vmatmul.mubr.msk.bf16.gmra.mrb[60].mxu0 %vm596_vm1, %v14784_v27  ;;  %v14804_v4 = vpack.c.bf16 %v14794_v14, %v14799_v47  ;;  %v2044_v45 = vmul.f32 %v14683_v5, %v2022_v42  ;;  %v1995_v17 = vadd.f32 1e-05, %v1979_v10  ;;  %v11091_v10 = vcombine.high %v2088_v29, %v2096_v28 }
 0x635   : > { %2443 = vmatprep.mubr.bf16.mxu1 %v19171_v2  ;;  %2556 = vmatprep.mubr.bf16.mxu0 %v19171_v2  ;;  %v13771_v20 = vpop.eup %13770  ;;  %v2043_v55 = vmul.f32 %v14683_v5, %v2021_v53 }
 0x636   : > { %v13773_v12 = vpop.eup %13772  ;;  %v14814_v22 = vadd.f32 %v14697_v36, %v2044_v45  ;;  %v2024_v13 = vmul.f32 %v13771_v20, %v14597_v30  ;;  %13780 = vrsqrt.f32 %v1995_v17  ;;  %v11089_v20 = vcombine.high %v2087_v58, %v2095_v61 }
 0x637   : > { %v14819_v19 = vadd.f32 %v14697_v36, %v2043_v55  ;;  %v2023_v31 = vmul.f32 %v13773_v12, %v14591_v33  ;;  %v2103_v55 = vld [vmem:[%s19163_s11 + $0xb0] sm:$0x11]  ;;  %v2104_v12 = vld [vmem:[%s19163_s11 + $0xb8] sm:$0x11]  ;;  %v11088_v17 = vcombine.low %v2087_v58, %v2095_v61  ;;  %v13423_v61 = vld [vmem:[%s19165_s13 + $0xe0] sm:$0xff]  }
 0x638   : > { %v2046_v37 = vmul.f32 %v14683_v5, %v2024_v13  ;;  %v11105_v15 = vcombine.high %v2103_v55, %v2103_v55  ;;  %v11107_v13 = vcombine.high %v2104_v12, %v2104_v12 }
 0x639   : > { %v14824_v63 = vpack.c.bf16 %v14814_v22, %v14819_v19  ;;  %v13775_v1 = vpop.eup %13774  ;;  %v2045_v60 = vmul.f32 %v14683_v5, %v2023_v31  ;;  %v11104_v31 = vcombine.low %v2103_v55, %v2103_v55 }
 0x63a   : > { %v13777_v30 = vpop.eup %13776  ;;  %v14834_v33 = vadd.f32 %v14697_v36, %v2046_v37  ;;  %v2026_v16 = vmul.f32 %v13775_v1, %v14609_v25  ;;  %v11090_v37 = vcombine.low %v2088_v29, %v2096_v28  ;;  %v2373_v1 = vand.u32 %v11105_v15, %v14072_v3  ;;  %v15099_v29 = vld [vmem:[%s19164_s12] sm:$0xff]  ;;  %v13427_v15 = vld [vmem:[%s19165_s13 + $0xe8] sm:$0xff]  }
 0x63b   : > { %v14839_v38 = vadd.f32 %v14697_v36, %v2045_v60  ;;  %v2025_v23 = vmul.f32 %v13777_v30, %v14603_v50  ;;  %v11106_v60 = vcombine.low %v2104_v12, %v2104_v12  ;;  %v2379_v30 = vand.u32 %v11107_v13, %v14072_v3 }
 0x63c   : > { %11111 = vmatmul.mubr.msk.bf16.gmra.mrb[56].mxu1 %vm596_vm1, %v14804_v4  ;;  %11119 = vmatmul.mubr.msk.bf16.gmra.mrb[64].mxu0 %vm596_vm1, %v14804_v4  ;;  %v2048_v54 = vmul.f32 %v14683_v5, %v2026_v16  ;;  %v2370_v16 = vand.u32 %v11104_v31, %v14072_v3  ;;  %v13428_v31 = vld [vmem:[%s19165_s13 + $0x28] sm:$0xff]  }
 0x63d   : > { %2453 = vmatprep.mubr.bf16.mxu1 %v19171_v2  ;;  %2566 = vmatprep.mubr.bf16.mxu0 %v19171_v2  ;;  %v14844_v18 = vpack.c.bf16 %v14834_v33, %v14839_v38  ;;  %v13779_v49 = vpop.eup %13778  ;;  %v2047_v46 = vmul.f32 %v14683_v5, %v2025_v23  ;;  %v2376_v23 = vand.u32 %v11106_v60, %v14072_v3  ;;  %v13430_v60 = vld [vmem:[%s19165_s13 + $0x70] sm:$0xff]  }
 0x63e   : > { %v14854_v50 = vadd.f32 %v14697_v36, %v2048_v54  ;;  %v2028_v6 = vmul.f32 %v13779_v49, %v14630_v51  ;;  %v13406_v54 = vld [vmem:[%s19165_s13 + $0x40] sm:$0xff]  }
 0x63f   : > { %v14859_v41 = vadd.f32 %v14697_v36, %v2047_v46  ;;  %v13408_v49 = vld [vmem:[%s19165_s13 + $0xc0] sm:$0xff]  }
 0x640   : > { %v13781_v25 = vpop.eup %13780  ;;  %19190 = vst [vmem:[#allocation3_spill] sm:$0xff] %v14854_v50  ;;  %v2050_v57 = vmul.f32 %v14683_v5, %v2028_v6  ;;  %v13407_v46 = vld [vmem:[%s19165_s13] sm:$0xff]   ;;  %v13410_v6 = vld [vmem:[%s19165_s13 + $0x48] sm:$0xff]  }
 0x641   : > { %v2027_v7 = vmul.f32 %v13781_v25, %v14615_v35  ;;  %v14864_v24 = vpack.c.bf16 %v14854_v50, %v14859_v41  ;;  %v13409_v25 = vld [vmem:[%s19165_s13 + $0x80] sm:$0xff]  }
 0x642   : > { %v14874_v51 = vadd.f32 %v14697_v36, %v2050_v57  ;;  %v13411_v57 = vld [vmem:[%s19165_s13 + $0x8] sm:$0xff]  }
 0x643   : > { %v2049_v9 = vmul.f32 %v14683_v5, %v2027_v7  ;;  %v2101_v5 = vld [vmem:[%s19163_s11 + $0xa0] sm:$0x11]  ;;  %v13412_v7 = vld [vmem:[%s19165_s13 + $0xc8] sm:$0xff]  }
 0x644   : > { %11112 = vmatmul.mubr.msk.bf16.gmra.mrb[60].mxu1 %vm596_vm1, %v14824_v63  ;;  %11120 = vmatmul.mubr.msk.bf16.gmra.mrb[68].mxu0 %vm596_vm1, %v14824_v63  ;;  %19191 = vst [vmem:[#allocation4_spill] sm:$0xff] %v14874_v51  ;;  %v11101_v52 = vcombine.high %v2101_v5, %v2101_v5  ;;  %v11100_v42 = vcombine.low %v2101_v5, %v2101_v5  ;;  %v13414_v5 = vld [vmem:[%s19165_s13 + $0x50] sm:$0xff]  }
 0x645   : > { %2463 = vmatprep.mubr.bf16.mxu1 %v19171_v2  ;;  %2576 = vmatprep.mubr.bf16.mxu0 %v19171_v2  ;;  %v14878_v35 = vadd.f32 %v14697_v36, %v2049_v9  ;;  %v2102_v36 = vld [vmem:[%s19163_s11 + $0xa8] sm:$0x11] }
 0x646   : > { %v11103_v21 = vcombine.high %v2102_v36, %v2102_v36  ;;  %v2361_v62 = vand.u32 %v11101_v52, %v14072_v3  ;;  %v11102_v53 = vcombine.low %v2102_v36, %v2102_v36  ;;  %v2358_v11 = vand.u32 %v11100_v42, %v14072_v3  ;;  %v13413_v9 = vld [vmem:[%s19165_s13 + $0x88] sm:$0xff]   ;;  %v13416_v36 = vld [vmem:[%s19165_s13 + $0xd0] sm:$0xff]  }
 0x647   : > { %19192 = vst [vmem:[#allocation5_spill] sm:$0xff] %v14878_v35  ;;  %v14882_v44 = vpack.c.bf16 %v14874_v51, %v14878_v35  ;;  %v13415_v52 = vld [vmem:[%s19165_s13 + $0x10] sm:$0xff]  }
 0x648   : > { %v2367_v43 = vand.u32 %v11103_v21, %v14072_v3  ;;  %v2364_v45 = vand.u32 %v11102_v53, %v14072_v3  ;;  %v13417_v21 = vld [vmem:[%s19165_s13 + $0x90] sm:$0xff]   ;;  %v13421_v53 = vld [vmem:[%s19165_s13 + $0x98] sm:$0xff]  }
 0x64c   : > { %11113 = vmatmul.mubr.msk.bf16.gmra.mrb[64].mxu1 %vm596_vm1, %v14844_v18  ;;  %11121 = vmatmul.mubr.msk.bf16.gmra.mrb[72].mxu0 %vm596_vm1, %v14844_v18 }
 0x64d   : > { %2473 = vmatprep.mubr.bf16.mxu1 %v19171_v2  ;;  %2586 = vmatprep.mubr.bf16.mxu0 %v19171_v2 }
 0x654   : > { %11114 = vmatmul.mubr.msk.bf16.gmra.mrb[68].mxu1 %vm596_vm1, %v14864_v24  ;;  %11122 = vmatmul.mubr.msk.bf16.gmra.mrb[76].mxu0 %vm596_vm1, %v14864_v24 }
 0x655   : > { %2483 = vmatprep.mubr.bf16.mxu1 %v19171_v2  ;;  %2596 = vmatprep.mubr.bf16.mxu0 %v19171_v2 }
 0x65c   : > { %11115 = vmatmul.mubr.msk.bf16.gmra.mrb[72].mxu1 %vm596_vm1, %v14882_v44  ;;  %11123 = vmatmul.mubr.msk.bf16.gmra.mrb[80].mxu0 %vm596_vm1, %v14882_v44 }
 0x65d   : > { %2639 = vmatprep.mubr.bf16.mxu1 %v19171_v2  ;;  %2752 = vmatprep.mubr.bf16.mxu0 %v19171_v2 }
 0x664   : > { %11124 = vmatmul.mubr.msk.bf16.vlgmr.msra.gmra.mrb[76].mxu1 %vm596_vm1, %v14710_v39  ;;  %11132 = vmatmul.mubr.msk.bf16.vlgmr.msra.gmra.mrb[84].mxu0 %vm596_vm1, %v14710_v39 }
 0x665   : > { %2649 = vmatprep.mubr.bf16.mxu1 %v19171_v2  ;;  %2762 = vmatprep.mubr.bf16.mxu0 %v19171_v2 }
 0x666   : > { %2834 = vmatpush1.bf16.msra.mxu1 %v11084_v48  ;;  %2947 = vmatpush1.bf16.msra.mxu0 %v11086_v59  ;;  %v13418_v48 = vld [vmem:[%s19165_s13 + $0x58] sm:$0xff]  }
 0x667   : > { %2835 = vmatprep.subr.bf16.mxu1 %v2361_v62  ;;  %2948 = vmatprep.subr.bf16.mxu0 %v2367_v43  ;;  %v13420_v59 = vld [vmem:[%s19165_s13 + $0xd8] sm:$0xff]   ;;  %v13422_v43 = vld [vmem:[%s19165_s13 + $0x60] sm:$0xff]  }
 0x668   : > { %v13419_v62 = vld [vmem:[%s19165_s13 + $0x18] sm:$0xff]  }
 0x66a   : > { %2836 = vmatpush1.bf16.msra.mxu1 %v2358_v11  ;;  %2949 = vmatpush1.bf16.msra.mxu0 %v2364_v45  ;;  %v13424_v45 = vld [vmem:[%s19165_s13 + $0x20] sm:$0xff]  }
 0x66b   : > { %3059 = vmatprep.subr.bf16.mxu1 %v11089_v20  ;;  %3172 = vmatprep.subr.bf16.mxu0 %v11091_v10  ;;  %v13425_v20 = vld [vmem:[%s19165_s13 + $0xa0] sm:$0xff]   ;;  %v13426_v10 = vld [vmem:[%s19165_s13 + $0x68] sm:$0xff]  }
 0x66c   : > { %11125 = vmatmul.mubr.msk.bf16.gmra.mrb[80].mxu1 %vm596_vm1, %v14763_v26  ;;  %11133 = vmatmul.mubr.msk.bf16.gmra.mrb[88].mxu0 %vm596_vm1, %v14763_v26 }
 0x66d   : > { %2659 = vmatprep.mubr.bf16.mxu1 %v19171_v2  ;;  %2772 = vmatprep.mubr.bf16.mxu0 %v19171_v2 }
 0x674   : > { %11126 = vmatmul.mubr.msk.bf16.gmra.mrb[84].mxu1 %vm596_vm1, %v14784_v27  ;;  %11134 = vmatmul.mubr.msk.bf16.gmra.mrb[92].mxu0 %vm596_vm1, %v14784_v27 }
 0x675   : > { %2669 = vmatprep.mubr.bf16.mxu1 %v19171_v2  ;;  %2782 = vmatprep.mubr.bf16.mxu0 %v19171_v2 }
 0x67c   : > { %11127 = vmatmul.mubr.msk.bf16.gmra.mrb[88].mxu1 %vm596_vm1, %v14804_v4  ;;  %11135 = vmatmul.mubr.msk.bf16.gmra.mrb[96].mxu0 %vm596_vm1, %v14804_v4 }
 0x67d   : > { %2679 = vmatprep.mubr.bf16.mxu1 %v19171_v2  ;;  %2792 = vmatprep.mubr.bf16.mxu0 %v19171_v2 }
 0x684   : > { %11128 = vmatmul.mubr.msk.bf16.gmra.mrb[92].mxu1 %vm596_vm1, %v14824_v63  ;;  %11136 = vmatmul.mubr.msk.bf16.gmra.mrb[100].mxu0 %vm596_vm1, %v14824_v63 }
 0x685   : > { %2689 = vmatprep.mubr.bf16.mxu1 %v19171_v2  ;;  %2802 = vmatprep.mubr.bf16.mxu0 %v19171_v2 }
 0x68c   : > { %11129 = vmatmul.mubr.msk.bf16.gmra.mrb[96].mxu1 %vm596_vm1, %v14844_v18  ;;  %11137 = vmatmul.mubr.msk.bf16.gmra.mrb[104].mxu0 %vm596_vm1, %v14844_v18 }
 0x68d   : > { %2699 = vmatprep.mubr.bf16.mxu1 %v19171_v2  ;;  %2812 = vmatprep.mubr.bf16.mxu0 %v19171_v2 }
 0x694   : > { %11130 = vmatmul.mubr.msk.bf16.gmra.mrb[100].mxu1 %vm596_vm1, %v14864_v24  ;;  %11138 = vmatmul.mubr.msk.bf16.gmra.mrb[108].mxu0 %vm596_vm1, %v14864_v24 }
 0x695   : > { %2709 = vmatprep.mubr.bf16.mxu1 %v19171_v2  ;;  %2822 = vmatprep.mubr.bf16.mxu0 %v19171_v2 }
 0x69c   : > { %11131 = vmatmul.mubr.msk.bf16.gmra.mrb[104].mxu1 %vm596_vm1, %v14882_v44  ;;  %11139 = vmatmul.mubr.msk.bf16.gmra.mrb[112].mxu0 %vm596_vm1, %v14882_v44 }
 0x69d   : > { %2865 = vmatprep.mubr.bf16.mxu1 %v19171_v2  ;;  %2978 = vmatprep.mubr.bf16.mxu0 %v19171_v2 }
 0x6a4   : > { %11140 = vmatmul.mubr.msk.bf16.vlgmr.msra.gmra.mrb[108].mxu1 %vm596_vm1, %v14710_v39  ;;  %11148 = vmatmul.mubr.msk.bf16.vlgmr.msra.gmra.mrb[116].mxu0 %vm596_vm1, %v14710_v39 }
 0x6a5   : > { %2875 = vmatprep.mubr.bf16.mxu1 %v19171_v2  ;;  %2988 = vmatprep.mubr.bf16.mxu0 %v19171_v2 }
 0x6a6   : > { %3060 = vmatpush1.bf16.msra.mxu1 %v11088_v17  ;;  %3173 = vmatpush1.bf16.msra.mxu0 %v11090_v37 }
 0x6a7   : > { %3061 = vmatprep.subr.bf16.mxu1 %v2373_v1  ;;  %3174 = vmatprep.subr.bf16.mxu0 %v2379_v30 }
 0x6aa   : > { %3062 = vmatpush1.bf16.msra.mxu1 %v2370_v16  ;;  %3175 = vmatpush1.bf16.msra.mxu0 %v2376_v23 }
 0x6ab   : > { %11969 = vmatprep.subr.bf16.mxu1 %v13406_v54  ;;  %12033 = vmatprep.subr.bf16.mxu0 %v13408_v49  ;;  %v13431_v49 = vld [vmem:[%s19165_s13 + $0xf0] sm:$0xff]  }
 0x6ac   : > { %11141 = vmatmul.mubr.msk.bf16.gmra.mrb[112].mxu1 %vm596_vm1, %v14763_v26  ;;  %11149 = vmatmul.mubr.msk.bf16.gmra.mrb[120].mxu0 %vm596_vm1, %v14763_v26 }
 0x6ad   : > { %2885 = vmatprep.mubr.bf16.mxu1 %v19171_v2  ;;  %2998 = vmatprep.mubr.bf16.mxu0 %v19171_v2 }
 0x6b4   : > { %11142 = vmatmul.mubr.msk.bf16.gmra.mrb[116].mxu1 %vm596_vm1, %v14784_v27  ;;  %11150 = vmatmul.mubr.msk.bf16.gmra.mrb[124].mxu0 %vm596_vm1, %v14784_v27 }
 0x6b5   : > { %2895 = vmatprep.mubr.bf16.mxu1 %v19171_v2  ;;  %3008 = vmatprep.mubr.bf16.mxu0 %v19171_v2 }
 0x6bc   : > { %11143 = vmatmul.mubr.msk.bf16.gmra.mrb[120].mxu1 %vm596_vm1, %v14804_v4  ;;  %11151 = vmatmul.mubr.msk.bf16.gmra.mrb[128].mxu0 %vm596_vm1, %v14804_v4 }
 0x6bd   : > { %2905 = vmatprep.mubr.bf16.mxu1 %v19171_v2  ;;  %3018 = vmatprep.mubr.bf16.mxu0 %v19171_v2 }
 0x6c4   : > { %11144 = vmatmul.mubr.msk.bf16.gmra.mrb[124].mxu1 %vm596_vm1, %v14824_v63  ;;  %11152 = vmatmul.mubr.msk.bf16.gmra.mrb[132].mxu0 %vm596_vm1, %v14824_v63 }
 0x6c5   : > { %2915 = vmatprep.mubr.bf16.mxu1 %v19171_v2  ;;  %3028 = vmatprep.mubr.bf16.mxu0 %v19171_v2 }
 0x6cc   : > { %11145 = vmatmul.mubr.msk.bf16.gmra.mrb[128].mxu1 %vm596_vm1, %v14844_v18  ;;  %11153 = vmatmul.mubr.msk.bf16.gmra.mrb[136].mxu0 %vm596_vm1, %v14844_v18 }
 0x6cd   : > { %2925 = vmatprep.mubr.bf16.mxu1 %v19171_v2  ;;  %3038 = vmatprep.mubr.bf16.mxu0 %v19171_v2 }
 0x6d4   : > { %11146 = vmatmul.mubr.msk.bf16.gmra.mrb[132].mxu1 %vm596_vm1, %v14864_v24  ;;  %11154 = vmatmul.mubr.msk.bf16.gmra.mrb[140].mxu0 %vm596_vm1, %v14864_v24 }
 0x6d5   : > { %2935 = vmatprep.mubr.bf16.mxu1 %v19171_v2  ;;  %3048 = vmatprep.mubr.bf16.mxu0 %v19171_v2 }
 0x6dc   : > { %11147 = vmatmul.mubr.msk.bf16.gmra.mrb[136].mxu1 %vm596_vm1, %v14882_v44  ;;  %11155 = vmatmul.mubr.msk.bf16.gmra.mrb[144].mxu0 %vm596_vm1, %v14882_v44 }
 0x6dd   : > { %3091 = vmatprep.mubr.bf16.mxu1 %v19171_v2  ;;  %3204 = vmatprep.mubr.bf16.mxu0 %v19171_v2 }
 0x6e4   : > { %11156 = vmatmul.mubr.msk.bf16.vlgmr.msra.gmra.mrb[140].mxu1 %vm596_vm1, %v14710_v39  ;;  %11164 = vmatmul.mubr.msk.bf16.vlgmr.msra.gmra.mrb[148].mxu0 %vm596_vm1, %v14710_v39  ;;  %v2109_v39 = vlaneseq }
 0x6e5   : > { %3101 = vmatprep.mubr.bf16.mxu1 %v19171_v2  ;;  %3214 = vmatprep.mubr.bf16.mxu0 %v19171_v2 }
 0x6e6   : > { %11970 = vmatpush3.bf16.msra.mxu1 %v13407_v46  ;;  %12034 = vmatpush3.bf16.msra.mxu0 %v13409_v25  ;;  %v15069_v42 = vshrl.u32 %v2109_v39, 7 }
 0x6e7   : > { %11971 = vmatprep.subr.bf16.mxu1 %v13410_v6  ;;  %12035 = vmatprep.subr.bf16.mxu0 %v13412_v7 }
 0x6e8   : > { %v15091_v58 = vsub.s32 2, %v15069_v42  ;;  %v15102_v28 = vsub.s32 1, %v15069_v42  ;;  %v15105_v11 = vsub.s32 3, %v15069_v42 }
 0x6ea   : > { %11972 = vmatpush3.bf16.msra.mxu1 %v13411_v57  ;;  %12036 = vmatpush3.bf16.msra.mxu0 %v13413_v9  ;;  %19193 = vst [vmem:[#allocation6_spill] sm:$0xff] %v15105_v11  ;;  %v15124_v12 = vrot.slane %v15099_v29, %v15091_v58  ;;  %v15133_v13 = vrot.slane %v15099_v29, %v15102_v28 }
 0x6eb   : > { %11973 = vmatprep.subr.bf16.mxu1 %v13414_v5  ;;  %12037 = vmatprep.subr.bf16.mxu0 %v13416_v36  ;;  %v15137_v17 = vrot.slane %v15099_v29, %v15105_v11  ;;  %v13432_v36 = vld [vmem:[%s19165_s13 + $0x30] sm:$0xff]  }
 0x6ec   : > { %11157 = vmatmul.mubr.msk.bf16.gmra.mrb[144].mxu1 %vm596_vm1, %v14763_v26  ;;  %11165 = vmatmul.mubr.msk.bf16.gmra.mrb[152].mxu0 %vm596_vm1, %v14763_v26  ;;  %v15088_v26 = vsub.s32 0, %v15069_v42 }
 0x6ed   : > { %3111 = vmatprep.mubr.bf16.mxu1 %v19171_v2  ;;  %3224 = vmatprep.mubr.bf16.mxu0 %v19171_v2 }
 0x6ee   : > { %11974 = vmatpush3.bf16.msra.mxu1 %v13415_v52  ;;  %12038 = vmatpush3.bf16.msra.mxu0 %v13417_v21  ;;  %v15120_v55 = vrot.slane %v15099_v29, %v15088_v26 }
 0x6ef   : > { %11975 = vmatprep.subr.bf16.mxu1 %v13418_v48  ;;  %12039 = vmatprep.subr.bf16.mxu0 %v13420_v59  ;;  %v13433_v48 = vld [vmem:[%s19165_s13 + $0xb0] sm:$0xff]   ;;  %v13434_v59 = vld [vmem:[%s19165_s13 + $0x78] sm:$0xff]  }
 0x6f2   : > { %11976 = vmatpush3.bf16.msra.mxu1 %v13419_v62  ;;  %12040 = vmatpush3.bf16.msra.mxu0 %v13421_v53 }
 0x6f3   : > { %11977 = vmatprep.subr.bf16.mxu1 %v13422_v43  ;;  %12041 = vmatprep.subr.bf16.mxu0 %v13423_v61 }
 0x6f4   : > { %11158 = vmatmul.mubr.msk.bf16.gmra.mrb[148].mxu1 %vm596_vm1, %v14784_v27  ;;  %11166 = vmatmul.mubr.msk.bf16.gmra.mrb[156].mxu0 %vm596_vm1, %v14784_v27  ;;  %v13429_v27 = vld [vmem:[%s19165_s13 + $0xa8] sm:$0xff]  }
 0x6f5   : > { %3121 = vmatprep.mubr.bf16.mxu1 %v19171_v2  ;;  %3234 = vmatprep.mubr.bf16.mxu0 %v19171_v2 }
 0x6f6   : > { %11978 = vmatpush3.bf16.msra.mxu1 %v13424_v45  ;;  %12042 = vmatpush3.bf16.msra.mxu0 %v13425_v20  ;;  %v13435_v45 = vld [vmem:[%s19165_s13 + $0xf8] sm:$0xff]  }
 0x6f7   : > { %v2415_v37 = vpop.f32.mrb[44].mxu1  ;;  %v2528_v1 = vpop.f32.mrb[52].mxu0  ;;  %11979 = vmatprep.subr.bf16.mxu1 %v13426_v10  ;;  %12043 = vmatprep.subr.bf16.mxu0 %v13427_v15 }
 0x6f8   : > { %v2416_v30 = vadd.f32 %v2415_v37, %v15120_v55  ;;  %v2529_v16 = vadd.f32 %v2528_v1, %v15124_v12  ;;  %v2417_v23 = vpop.f32.mrb[45].mxu1  ;;  %v2530_v54 = vpop.f32.mrb[53].mxu0 }
 0x6f9   : > { %v2418_v46 = vadd.f32 %v2417_v23, %v15133_v13  ;;  %v2531_v25 = vadd.f32 %v2530_v54, %v15137_v17  ;;  %v2419_v6 = vpop.f32.mrb[46].mxu1  ;;  %v2532_v7 = vpop.f32.mrb[54].mxu0  ;;  %v13438_v54 = vld [vmem:[%s19165_s13 + $0x140] sm:$0xff]  }
 0x6fa   : > { %v2420_v57 = vadd.f32 %v2419_v6, %v15120_v55  ;;  %v2533_v9 = vadd.f32 %v2532_v7, %v15124_v12  ;;  %v2421_v5 = vpop.f32.mrb[47].mxu1  ;;  %v2534_v39 = vpop.f32.mrb[55].mxu0  ;;  %11980 = vmatpush3.bf16.msra.mxu1 %v13428_v31  ;;  %12044 = vmatpush3.bf16.msra.mxu0 %v13429_v27  ;;  %v3285_v62 = vmax.f32 %v2416_v30, 0.0  ;;  %v3287_v53 = vmax.f32 %v2529_v16, 0.0  ;;  %v13436_v27 = vld [vmem:[%s19165_s13 + $0x38] sm:$0xff]   ;;  %v13440_v7 = vld [vmem:[%s19165_s13 + $0x1c0] sm:$0xff]  }
 0x6fb   : > { %v2422_v52 = vadd.f32 %v2421_v5, %v15133_v13  ;;  %v2535_v21 = vadd.f32 %v2534_v39, %v15137_v17  ;;  %11981 = vmatprep.subr.bf16.mxu1 %v13430_v60  ;;  %12045 = vmatprep.subr.bf16.mxu0 %v13431_v49  ;;  %v3286_v20 = vmax.f32 %v2418_v46, 0.0  ;;  %v3288_v10 = vmax.f32 %v2531_v25, 0.0 }
 0x6fc   : > { %v3301_v43 = vmax.f32 %v2420_v57, 0.0  ;;  %v3303_v61 = vmax.f32 %v2533_v9, 0.0  ;;  %11159 = vmatmul.mubr.msk.bf16.gmra.mrb[152].mxu1 %vm596_vm1, %v14804_v4  ;;  %11167 = vmatmul.mubr.msk.bf16.gmra.mrb[160].mxu0 %vm596_vm1, %v14804_v4  ;;  %v13437_v4 = vld [vmem:[%s19165_s13 + $0xb8] sm:$0xff]  }
 0x6fd   : > { %v3302_v15 = vmax.f32 %v2422_v52, 0.0  ;;  %v3304_v31 = vmax.f32 %v2535_v21, 0.0  ;;  %3131 = vmatprep.mubr.bf16.mxu1 %v19171_v2  ;;  %3244 = vmatprep.mubr.bf16.mxu0 %v19171_v2 }
 0x6fe   : > { %v15178_v37 = vpack.c.bf16 %v3301_v43, %v3285_v62  ;;  %v15180_v1 = vpack.c.bf16 %v3303_v61, %v3287_v53  ;;  %11982 = vmatpush3.bf16.msra.mxu1 %v13432_v36  ;;  %12046 = vmatpush3.bf16.msra.mxu0 %v13433_v48 }
 0x6ff   : > { %v2425_v60 = vpop.f32.mrb[48].mxu1  ;;  %v2538_v30 = vpop.f32.mrb[56].mxu0  ;;  %v15186_v16 = vpack.c.bf16 %v3302_v15, %v3286_v20  ;;  %v15188_v23 = vpack.c.bf16 %v3304_v31, %v3288_v10  ;;  %11983 = vmatprep.subr.bf16.mxu1 %v13434_v59  ;;  %12047 = vmatprep.subr.bf16.mxu0 %v13435_v45 }
 0x700   : > { %v2426_v49 = vadd.f32 %v2425_v60, %v15120_v55  ;;  %v2539_v46 = vadd.f32 %v2538_v30, %v15124_v12  ;;  %v2427_v25 = vpop.f32.mrb[49].mxu1  ;;  %v2540_v6 = vpop.f32.mrb[57].mxu0 }
 0x701   : > { %v2428_v57 = vadd.f32 %v2427_v25, %v15133_v13  ;;  %v2541_v9 = vadd.f32 %v2540_v6, %v15137_v17  ;;  %v2429_v5 = vpop.f32.mrb[50].mxu1  ;;  %v2542_v39 = vpop.f32.mrb[58].mxu0 }
 0x702   : > { %v2430_v36 = vadd.f32 %v2429_v5, %v15120_v55  ;;  %v2543_v52 = vadd.f32 %v2542_v39, %v15124_v12  ;;  %v2431_v21 = vpop.f32.mrb[51].mxu1  ;;  %v2544_v48 = vpop.f32.mrb[59].mxu0  ;;  %11984 = vmatpush3.bf16.msra.mxu1 %v13436_v27  ;;  %12048 = vmatpush3.bf16.msra.mxu0 %v13437_v4  ;;  %v3317_v53 = vmax.f32 %v2426_v49, 0.0  ;;  %v3319_v43 = vmax.f32 %v2539_v46, 0.0 }
 0x703   : > { %v2432_v59 = vadd.f32 %v2431_v21, %v15133_v13  ;;  %v2545_v62 = vadd.f32 %v2544_v48, %v15137_v17  ;;  %12097 = vmatprep.subr.bf16.mxu1 %v13438_v54  ;;  %12161 = vmatprep.subr.bf16.mxu0 %v13440_v7  ;;  %v3318_v20 = vmax.f32 %v2428_v57, 0.0  ;;  %v3320_v10 = vmax.f32 %v2541_v9, 0.0 }
 0x704   : > { %v3333_v61 = vmax.f32 %v2430_v36, 0.0  ;;  %v3335_v45 = vmax.f32 %v2543_v52, 0.0  ;;  %11160 = vmatmul.mubr.msk.bf16.gmra.mrb[156].mxu1 %vm596_vm1, %v14824_v63  ;;  %11168 = vmatmul.mubr.msk.bf16.gmra.mrb[164].mxu0 %vm596_vm1, %v14824_v63 }
 0x705   : > { %v3334_v15 = vmax.f32 %v2432_v59, 0.0  ;;  %v3336_v31 = vmax.f32 %v2545_v62, 0.0  ;;  %3141 = vmatprep.mubr.bf16.mxu1 %v19171_v2  ;;  %3254 = vmatprep.mubr.bf16.mxu0 %v19171_v2 }
 0x706   : > { %v15213_v27 = vpack.c.bf16 %v3333_v61, %v3317_v53  ;;  %v15215_v60 = vpack.c.bf16 %v3335_v45, %v3319_v43 }
 0x707   : > { %v2435_v30 = vpop.f32.mrb[52].mxu1  ;;  %v15217_v4 = vpack.c.bf16 %v3334_v15, %v3318_v20  ;;  %v15219_v54 = vpack.c.bf16 %v3336_v31, %v3320_v10  ;;  %v2548_v46 = vpop.f32.mrb[60].mxu0 }
 0x708   : > { %v2436_v49 = vadd.f32 %v2435_v30, %v15120_v55  ;;  %v2437_v25 = vpop.f32.mrb[53].mxu1  ;;  %v2549_v6 = vadd.f32 %v2548_v46, %v15124_v12  ;;  %v2550_v7 = vpop.f32.mrb[61].mxu0 }
 0x709   : > { %v2438_v63 = vadd.f32 %v2437_v25, %v15133_v13  ;;  %v2439_v57 = vpop.f32.mrb[54].mxu1  ;;  %v2551_v9 = vadd.f32 %v2550_v7, %v15137_v17  ;;  %v2552_v39 = vpop.f32.mrb[62].mxu0 }
 0x70a   : > { %v2440_v5 = vadd.f32 %v2439_v57, %v15120_v55  ;;  %v2441_v36 = vpop.f32.mrb[55].mxu1  ;;  %v2553_v52 = vadd.f32 %v2552_v39, %v15124_v12  ;;  %v2554_v48 = vpop.f32.mrb[63].mxu0  ;;  %v3349_v59 = vmax.f32 %v2436_v49, 0.0  ;;  %v3351_v43 = vmax.f32 %v2549_v6, 0.0 }
 0x70b   : > { %v2442_v21 = vadd.f32 %v2441_v36, %v15133_v13  ;;  %v2555_v53 = vadd.f32 %v2554_v48, %v15137_v17  ;;  %v3350_v61 = vmax.f32 %v2438_v63, 0.0  ;;  %v3352_v10 = vmax.f32 %v2551_v9, 0.0 }
 0x70c   : > { %v3365_v62 = vmax.f32 %v2440_v5, 0.0  ;;  %11161 = vmatmul.mubr.msk.bf16.gmra.mrb[160].mxu1 %vm596_vm1, %v14844_v18  ;;  %v3367_v45 = vmax.f32 %v2553_v52, 0.0  ;;  %11169 = vmatmul.mubr.msk.bf16.gmra.mrb[168].mxu0 %vm596_vm1, %v14844_v18 }
 0x70d   : > { %v3366_v20 = vmax.f32 %v2442_v21, 0.0  ;;  %3151 = vmatprep.mubr.bf16.mxu1 %v19171_v2  ;;  %v3368_v15 = vmax.f32 %v2555_v53, 0.0  ;;  %3264 = vmatprep.mubr.bf16.mxu0 %v19171_v2 }
 0x70e   : > { %v15235_v31 = vpack.c.bf16 %v3365_v62, %v3349_v59  ;;  %v15239_v46 = vpack.c.bf16 %v3367_v45, %v3351_v43 }
 0x70f   : > { %v2445_v30 = vpop.f32.mrb[56].mxu1  ;;  %v15237_v49 = vpack.c.bf16 %v3366_v20, %v3350_v61  ;;  %v2558_v6 = vpop.f32.mrb[64].mxu0  ;;  %v15242_v7 = vpack.c.bf16 %v3368_v15, %v3352_v10 }
 0x710   : > { %v2446_v25 = vadd.f32 %v2445_v30, %v15120_v55  ;;  %v2447_v63 = vpop.f32.mrb[57].mxu1  ;;  %v2559_v18 = vadd.f32 %v2558_v6, %v15124_v12  ;;  %v2560_v9 = vpop.f32.mrb[65].mxu0 }
 0x711   : > { %v2448_v57 = vadd.f32 %v2447_v63, %v15133_v13  ;;  %v2449_v5 = vpop.f32.mrb[58].mxu1  ;;  %v2561_v39 = vadd.f32 %v2560_v9, %v15137_v17  ;;  %v2562_v52 = vpop.f32.mrb[66].mxu0 }
 0x712   : > { %v2450_v36 = vadd.f32 %v2449_v5, %v15120_v55  ;;  %v2451_v21 = vpop.f32.mrb[59].mxu1  ;;  %v2563_v48 = vadd.f32 %v2562_v52, %v15124_v12  ;;  %v2564_v62 = vpop.f32.mrb[67].mxu0  ;;  %v3381_v53 = vmax.f32 %v2446_v25, 0.0  ;;  %v3383_v45 = vmax.f32 %v2559_v18, 0.0 }
 0x713   : > { %v2452_v59 = vadd.f32 %v2451_v21, %v15133_v13  ;;  %v2565_v61 = vadd.f32 %v2564_v62, %v15137_v17  ;;  %v3382_v20 = vmax.f32 %v2448_v57, 0.0  ;;  %v3384_v30 = vmax.f32 %v2561_v39, 0.0 }
 0x714   : > { %v3397_v43 = vmax.f32 %v2450_v36, 0.0  ;;  %11162 = vmatmul.mubr.msk.bf16.gmra.mrb[164].mxu1 %vm596_vm1, %v14864_v24  ;;  %v3399_v10 = vmax.f32 %v2563_v48, 0.0  ;;  %11170 = vmatmul.mubr.msk.bf16.gmra.mrb[172].mxu0 %vm596_vm1, %v14864_v24 }
 0x715   : > { %v3398_v15 = vmax.f32 %v2452_v59, 0.0  ;;  %3161 = vmatprep.mubr.bf16.mxu1 %v19171_v2  ;;  %v3400_v6 = vmax.f32 %v2565_v61, 0.0  ;;  %3274 = vmatprep.mubr.bf16.mxu0 %v19171_v2 }
 0x716   : > { %v15257_v25 = vpack.c.bf16 %v3397_v43, %v3381_v53  ;;  %v15261_v5 = vpack.c.bf16 %v3399_v10, %v3383_v45 }
 0x717   : > { %v2455_v63 = vpop.f32.mrb[60].mxu1  ;;  %v15259_v9 = vpack.c.bf16 %v3398_v15, %v3382_v20  ;;  %v2568_v57 = vpop.f32.mrb[68].mxu0  ;;  %v15264_v52 = vpack.c.bf16 %v3400_v6, %v3384_v30 }
 0x718   : > { %v2456_v18 = vadd.f32 %v2455_v63, %v15120_v55  ;;  %v2457_v36 = vpop.f32.mrb[61].mxu1  ;;  %v2569_v24 = vadd.f32 %v2568_v57, %v15124_v12  ;;  %v2570_v21 = vpop.f32.mrb[69].mxu0 }
 0x719   : > { %v2458_v39 = vadd.f32 %v2457_v36, %v15133_v13  ;;  %v2459_v48 = vpop.f32.mrb[62].mxu1  ;;  %v2571_v59 = vadd.f32 %v2570_v21, %v15137_v17  ;;  %v2572_v53 = vpop.f32.mrb[70].mxu0 }
 0x71a   : > { %v2460_v62 = vadd.f32 %v2459_v48, %v15120_v55  ;;  %v2461_v43 = vpop.f32.mrb[63].mxu1  ;;  %v2573_v61 = vadd.f32 %v2572_v53, %v15124_v12  ;;  %v2574_v20 = vpop.f32.mrb[71].mxu0  ;;  %v3413_v10 = vmax.f32 %v2456_v18, 0.0  ;;  %v3415_v6 = vmax.f32 %v2569_v24, 0.0 }
 0x71b   : > { %v2462_v45 = vadd.f32 %v2461_v43, %v15133_v13  ;;  %v2575_v30 = vadd.f32 %v2574_v20, %v15137_v17  ;;  %v3414_v63 = vmax.f32 %v2458_v39, 0.0  ;;  %v3416_v21 = vmax.f32 %v2571_v59, 0.0 }
 0x71c   : > { %v3429_v15 = vmax.f32 %v2460_v62, 0.0  ;;  %11163 = vmatmul.mubr.msk.bf16.gmra.mrb[168].mxu1 %vm596_vm1, %v14882_v44  ;;  %v3431_v57 = vmax.f32 %v2573_v61, 0.0  ;;  %11171 = vmatmul.mubr.msk.bf16.gmra.mrb[176].mxu0 %vm596_vm1, %v14882_v44 }
 0x71d   : > { %v3430_v36 = vmax.f32 %v2462_v45, 0.0  ;;  %4732 = vmatprep.mubr.bf16.mxu1 %v15186_v16  ;;  %v3432_v48 = vmax.f32 %v2575_v30, 0.0  ;;  %4829 = vmatprep.mubr.bf16.mxu0 %v15188_v23 }
 0x71e   : > { %v15279_v18 = vpack.c.bf16 %v3429_v15, %v3413_v10  ;;  %v15283_v43 = vpack.c.bf16 %v3431_v57, %v3415_v6  ;;  %v13439_v6 = vld [vmem:[%s19165_s13 + $0x100] sm:$0xff]  }
 0x71f   : > { %v2465_v62 = vpop.f32.mrb[64].mxu1  ;;  %v15281_v53 = vpack.c.bf16 %v3430_v36, %v3414_v63  ;;  %v2578_v39 = vpop.f32.mrb[72].mxu0  ;;  %v15286_v45 = vpack.c.bf16 %v3432_v48, %v3416_v21  ;;  %v13441_v21 = vld [vmem:[%s19165_s13 + $0x180] sm:$0xff]   ;;  %v13442_v48 = vld [vmem:[%s19165_s13 + $0x148] sm:$0xff]  }
 0x720   : > { %v2466_v24 = vadd.f32 %v2465_v62, %v15120_v55  ;;  %v2467_v61 = vpop.f32.mrb[65].mxu1  ;;  %v2579_v44 = vadd.f32 %v2578_v39, %v15124_v12  ;;  %v2580_v59 = vpop.f32.mrb[73].mxu0 }
 0x721   : > { %v2468_v16 = vadd.f32 %v2467_v61, %v15133_v13  ;;  %v2469_v20 = vpop.f32.mrb[66].mxu1  ;;  %v2581_v23 = vadd.f32 %v2580_v59, %v15137_v17  ;;  %v2582_v15 = vpop.f32.mrb[74].mxu0  ;;  %v13444_v59 = vld [vmem:[%s19165_s13 + $0x1c8] sm:$0xff]  }
 0x722   : > { %v2470_v10 = vadd.f32 %v2469_v20, %v15120_v55  ;;  %v2471_v30 = vpop.f32.mrb[67].mxu1  ;;  %v2583_v63 = vadd.f32 %v2582_v15, %v15124_v12  ;;  %v2584_v36 = vpop.f32.mrb[75].mxu0  ;;  %v3445_v62 = vmax.f32 %v2466_v24, 0.0  ;;  %v3447_v20 = vmax.f32 %v2579_v44, 0.0 }
 0x723   : > { %v2472_v57 = vadd.f32 %v2471_v30, %v15133_v13  ;;  %v2585_v61 = vadd.f32 %v2584_v36, %v15137_v17  ;;  %v3446_v15 = vmax.f32 %v2468_v16, 0.0  ;;  %v3448_v3 = vmax.f32 %v2581_v23, 0.0 }
 0x724   : > { %v3461_v39 = vmax.f32 %v2470_v10, 0.0  ;;  %4733 = vmatmul.mubr.bf16.vlgmr.msra.gmra.mrb[172].mxu1 %v15178_v37  ;;  %v3463_v30 = vmax.f32 %v2583_v63, 0.0  ;;  %4830 = vmatmul.mubr.bf16.vlgmr.msra.gmra.mrb[180].mxu0 %v15180_v1  ;;  %v13443_v37 = vld [vmem:[%s19165_s13 + $0x108] sm:$0xff]  }
 0x725   : > { %v3462_v2 = vmax.f32 %v2472_v57, 0.0  ;;  %4740 = vmatprep.mubr.bf16.mxu1 %v15217_v4  ;;  %v3464_v51 = vmax.f32 %v2585_v61, 0.0  ;;  %4837 = vmatprep.mubr.bf16.mxu0 %v15219_v54  ;;  %v13445_v1 = vld [vmem:[%s19165_s13 + $0x188] sm:$0xff]   ;;  %v13446_v4 = vld [vmem:[%s19165_s13 + $0x150] sm:$0xff]  }
 0x726   : > { %12098 = vmatpush3.bf16.msra.mxu1 %v13439_v6  ;;  %v15314_v24 = vpack.c.bf16 %v3461_v39, %v3445_v62  ;;  %12162 = vmatpush3.bf16.msra.mxu0 %v13441_v21  ;;  %v15324_v54 = vpack.c.bf16 %v3463_v30, %v3447_v20  ;;  %v13448_v57 = vld [vmem:[%s19165_s13 + $0x1d0] sm:$0xff]  }
 0x727   : > { %v2475_v10 = vpop.f32.mrb[68].mxu1  ;;  %12099 = vmatprep.subr.bf16.mxu1 %v13442_v48  ;;  %v15322_v44 = vpack.c.bf16 %v3462_v2, %v3446_v15  ;;  %v2588_v23 = vpop.f32.mrb[76].mxu0  ;;  %12163 = vmatprep.subr.bf16.mxu0 %v13444_v59  ;;  %v15327_v63 = vpack.c.bf16 %v3464_v51, %v3448_v3  ;;  %v13447_v3 = vld [vmem:[%s19165_s13 + $0x110] sm:$0xff]  }
 0x728   : > { %v2476_v16 = vadd.f32 %v2475_v10, %v15120_v55  ;;  %v2477_v6 = vpop.f32.mrb[69].mxu1  ;;  %v2589_v36 = vadd.f32 %v2588_v23, %v15124_v12  ;;  %v2590_v48 = vpop.f32.mrb[77].mxu0  ;;  %v13449_v30 = vld [vmem:[%s19165_s13 + $0x190] sm:$0xff]   ;;  %v13450_v10 = vld [vmem:[%s19165_s13 + $0x158] sm:$0xff]  }
 0x729   : > { %v2478_v21 = vadd.f32 %v2477_v6, %v15133_v13  ;;  %v2479_v2 = vpop.f32.mrb[70].mxu1  ;;  %v2591_v62 = vadd.f32 %v2590_v48, %v15137_v17  ;;  %v2592_v61 = vpop.f32.mrb[78].mxu0 }
 0x72a   : > { %v2480_v39 = vadd.f32 %v2479_v2, %v15120_v55  ;;  %v2481_v20 = vpop.f32.mrb[71].mxu1  ;;  %12100 = vmatpush3.bf16.msra.mxu1 %v13443_v37  ;;  %v2593_v51 = vadd.f32 %v2592_v61, %v15124_v12  ;;  %v2594_v15 = vpop.f32.mrb[79].mxu0  ;;  %12164 = vmatpush3.bf16.msra.mxu0 %v13445_v1  ;;  %v3477_v37 = vmax.f32 %v2476_v16, 0.0  ;;  %v13452_v1 = vld [vmem:[%s19165_s13 + $0x1d8] sm:$0xff]  }
 0x72b   : > { %v2482_v59 = vadd.f32 %v2481_v20, %v15133_v13  ;;  %12101 = vmatprep.subr.bf16.mxu1 %v13446_v4  ;;  %v2595_v6 = vadd.f32 %v2594_v15, %v15137_v17  ;;  %12165 = vmatprep.subr.bf16.mxu0 %v13448_v57  ;;  %v3479_v4 = vmax.f32 %v2589_v36, 0.0  ;;  %v3478_v48 = vmax.f32 %v2478_v21, 0.0 }
 0x72c   : > { %v3493_v23 = vmax.f32 %v2480_v39, 0.0  ;;  %4741 = vmatmul.mubr.bf16.gmra.mrb[176].mxu1 %v15213_v27  ;;  %v3495_v2 = vmax.f32 %v2593_v51, 0.0  ;;  %4838 = vmatmul.mubr.bf16.gmra.mrb[184].mxu0 %v15215_v60  ;;  %v3480_v20 = vmax.f32 %v2591_v62, 0.0  ;;  %v15356_v39 = vsub.s32 4, %v15069_v42  ;;  %v13451_v27 = vld [vmem:[%s19165_s13 + $0x118] sm:$0xff]   ;;  %v13454_v62 = vld [vmem:[%s19165_s13 + $0x160] sm:$0xff]  }
 0x72d   : > { %v3494_v61 = vmax.f32 %v2482_v59, 0.0  ;;  %4748 = vmatprep.mubr.bf16.mxu1 %v15237_v49  ;;  %v3496_v16 = vmax.f32 %v2595_v6, 0.0  ;;  %4845 = vmatprep.mubr.bf16.mxu0 %v15242_v7  ;;  %v15364_v21 = vsub.s32 6, %v15069_v42  ;;  %v13453_v49 = vld [vmem:[%s19165_s13 + $0x198] sm:$0xff]   ;;  %v15378_v15 = vsub.s32 5, %v15069_v42 }
 0x72e   : > { %12102 = vmatpush3.bf16.msra.mxu1 %v13447_v3  ;;  %v15361_v57 = vpack.c.bf16 %v3493_v23, %v3477_v37  ;;  %12166 = vmatpush3.bf16.msra.mxu0 %v13449_v30  ;;  %v15371_v7 = vpack.c.bf16 %v3495_v2, %v3479_v4 }
 0x72f   : > { %v2485_v36 = vpop.f32.mrb[72].mxu1  ;;  %12103 = vmatprep.subr.bf16.mxu1 %v13450_v10  ;;  %v15366_v60 = vpack.c.bf16 %v3494_v61, %v3478_v48  ;;  %v2598_v51 = vpop.f32.mrb[80].mxu0  ;;  %v15380_v30 = vpack.c.bf16 %v3496_v16, %v3480_v20  ;;  %12167 = vmatprep.subr.bf16.mxu0 %v13452_v1  ;;  %v13455_v10 = vld [vmem:[%s19165_s13 + $0x1e0] sm:$0xff]   ;;  %v15391_v20 = vrot.slane %v15099_v29, %v15356_v39  ;;  %v15394_v1 = vsub.s32 7, %v15069_v42 }
 0x730   : > { %v2486_v3 = vadd.f32 %v2485_v36, %v15120_v55  ;;  %v2487_v59 = vpop.f32.mrb[73].mxu1  ;;  %v2599_v37 = vadd.f32 %v2598_v51, %v15124_v12  ;;  %v2600_v6 = vpop.f32.mrb[81].mxu0  ;;  %v13456_v16 = vld [vmem:[%s19165_s13 + $0x120] sm:$0xff]  }
 0x731   : > { %v2488_v23 = vadd.f32 %v2487_v59, %v15133_v13  ;;  %v2489_v4 = vpop.f32.mrb[74].mxu1  ;;  %v2601_v48 = vadd.f32 %v2600_v6, %v15137_v17  ;;  %v2602_v61 = vpop.f32.mrb[82].mxu0  ;;  %v13457_v42 = vld [vmem:[%s19165_s13 + $0x1a0] sm:$0xff]  }
 0x732   : > { %v2490_v2 = vadd.f32 %v2489_v4, %v15120_v55  ;;  %v2491_v36 = vpop.f32.mrb[75].mxu1  ;;  %12104 = vmatpush3.bf16.msra.mxu1 %v13451_v27  ;;  %v2603_v51 = vadd.f32 %v2602_v61, %v15124_v12  ;;  %v2604_v6 = vpop.f32.mrb[83].mxu0  ;;  %v15403_v55 = vrot.slane %v15099_v29, %v15364_v21  ;;  %12168 = vmatpush3.bf16.msra.mxu0 %v13453_v49  ;;  %v13458_v27 = vld [vmem:[%s19165_s13 + $0x168] sm:$0xff]   ;;  %v3509_v4 = vmax.f32 %v2486_v3, 0.0 }
 0x733   : > { %v2492_v59 = vadd.f32 %v2491_v36, %v15133_v13  ;;  %12105 = vmatprep.subr.bf16.mxu1 %v13454_v62  ;;  %v2605_v12 = vadd.f32 %v2604_v6, %v15137_v17  ;;  %v15415_v13 = vrot.slane %v15099_v29, %v15378_v15  ;;  %12169 = vmatprep.subr.bf16.mxu0 %v13455_v10  ;;  %v13459_v49 = vld [vmem:[%s19165_s13 + $0x1e8] sm:$0xff]   ;;  %v3511_v62 = vmax.f32 %v2599_v37, 0.0 }
 0x734   : > { %v3525_v35 = vmax.f32 %v2490_v2, 0.0  ;;  %4749 = vmatmul.mubr.bf16.gmra.mrb[180].mxu1 %v15235_v31  ;;  %v3510_v61 = vmax.f32 %v2488_v23, 0.0  ;;  %v3527_v36 = vmax.f32 %v2603_v51, 0.0  ;;  %4846 = vmatmul.mubr.bf16.gmra.mrb[188].mxu0 %v15239_v46  ;;  %v3512_v17 = vmax.f32 %v2601_v48, 0.0  ;;  %v13460_v10 = vld [vmem:[%s19165_s13 + $0x128] sm:$0xff]  }
 0x735   : > { %v3526_v50 = vmax.f32 %v2492_v59, 0.0  ;;  %4756 = vmatprep.mubr.bf16.mxu1 %v15259_v9  ;;  %v3528_v3 = vmax.f32 %v2605_v12, 0.0  ;;  %4853 = vmatprep.mubr.bf16.mxu0 %v15264_v52  ;;  %v15425_v31 = vrot.slane %v15099_v29, %v15394_v1  ;;  %v13461_v46 = vld [vmem:[%s19165_s13 + $0x1a8] sm:$0xff]   ;;  %v13462_v29 = vld [vmem:[%s19165_s13 + $0x170] sm:$0xff]  }
 0x736   : > { %12106 = vmatpush3.bf16.msra.mxu1 %v13456_v16  ;;  %v15430_v37 = vpack.c.bf16 %v3525_v35, %v3509_v4  ;;  %12170 = vmatpush3.bf16.msra.mxu0 %v13457_v42  ;;  %v15437_v9 = vpack.c.bf16 %v3527_v36, %v3511_v62 }
 0x737   : > { %v2641_v23 = vpop.f32.mrb[76].mxu1  ;;  %v15432_v2 = vpack.c.bf16 %v3526_v50, %v3510_v61  ;;  %12107 = vmatprep.subr.bf16.mxu1 %v13458_v27  ;;  %v2754_v48 = vpop.f32.mrb[84].mxu0  ;;  %v15443_v16 = vpack.c.bf16 %v3528_v3, %v3512_v17  ;;  %12171 = vmatprep.subr.bf16.mxu0 %v13459_v49  ;;  %v13463_v50 = vld [vmem:[%s19165_s13 + $0x1f0] sm:$0xff]  }
 0x738   : > { %v2642_v52 = vadd.f32 %v2641_v23, %v15391_v20  ;;  %v2643_v35 = vpop.f32.mrb[77].mxu1  ;;  %v2755_v51 = vadd.f32 %v2754_v48, %v15403_v55  ;;  %v2756_v6 = vpop.f32.mrb[85].mxu0  ;;  %v13464_v49 = vld [vmem:[%s19165_s13 + $0x130] sm:$0xff]   ;;  %v13466_v23 = vld [vmem:[%s19165_s13 + $0x178] sm:$0xff]  }
 0x739   : > { %v2644_v59 = vadd.f32 %v2643_v35, %v15415_v13  ;;  %v2645_v42 = vpop.f32.mrb[78].mxu1  ;;  %v2757_v27 = vadd.f32 %v2756_v6, %v15425_v31  ;;  %v2758_v12 = vpop.f32.mrb[86].mxu0  ;;  %v13465_v3 = vld [vmem:[%s19165_s13 + $0x1b0] sm:$0xff]  }
 0x73a   : > { %v2646_v4 = vadd.f32 %v2645_v42, %v15391_v20  ;;  %v2647_v62 = vpop.f32.mrb[79].mxu1  ;;  %12108 = vmatpush3.bf16.msra.mxu1 %v13460_v10  ;;  %v2759_v61 = vadd.f32 %v2758_v12, %v15403_v55  ;;  %v2760_v17 = vpop.f32.mrb[87].mxu0  ;;  %12172 = vmatpush3.bf16.msra.mxu0 %v13461_v46  ;;  %v3289_v10 = vmax.f32 %v2642_v52, 0.0  ;;  %v13467_v46 = vld [vmem:[%s19165_s13 + $0x1f8] sm:$0xff]  }
 0x73b   : > { %v2648_v36 = vadd.f32 %v2647_v62, %v15415_v13  ;;  %12109 = vmatprep.subr.bf16.mxu1 %v13462_v29  ;;  %v2761_v35 = vadd.f32 %v2760_v17, %v15425_v31  ;;  %12173 = vmatprep.subr.bf16.mxu0 %v13463_v50  ;;  %v3291_v29 = vmax.f32 %v2755_v51, 0.0  ;;  %v3290_v6 = vmax.f32 %v2644_v59, 0.0 }
 0x73c   : > { %v3305_v48 = vmax.f32 %v2646_v4, 0.0  ;;  %4757 = vmatmul.mubr.bf16.gmra.mrb[184].mxu1 %v15257_v25  ;;  %v3307_v42 = vmax.f32 %v2759_v61, 0.0  ;;  %4854 = vmatmul.mubr.bf16.gmra.mrb[192].mxu0 %v15261_v5  ;;  %v3292_v62 = vmax.f32 %v2757_v27, 0.0  ;;  %v13468_v25 = vld [vmem:[%s19165_s13 + $0x138] sm:$0xff]  }
 0x73d   : > { %v3306_v12 = vmax.f32 %v2648_v36, 0.0  ;;  %4764 = vmatprep.mubr.bf16.mxu1 %v15281_v53  ;;  %v3308_v4 = vmax.f32 %v2761_v35, 0.0  ;;  %4861 = vmatprep.mubr.bf16.mxu0 %v15286_v45  ;;  %v13469_v5 = vld [vmem:[%s19165_s13 + $0x1b8] sm:$0xff]   ;;  %v13470_v53 = vld [vmem:[%s19165_s13 + $0x240] sm:$0xff]  }
 0x73e   : > { %v15470_v52 = vpack.c.bf16 %v3305_v48, %v3289_v10  ;;  %12110 = vmatpush3.bf16.msra.mxu1 %v13464_v49  ;;  %v15476_v50 = vpack.c.bf16 %v3307_v42, %v3291_v29  ;;  %12174 = vmatpush3.bf16.msra.mxu0 %v13465_v3  ;;  %v13472_v36 = vld [vmem:[%s19165_s13 + $0x2c0] sm:$0xff]  }
 0x73f   : > { %v2651_v51 = vpop.f32.mrb[80].mxu1  ;;  %v15478_v59 = vpack.c.bf16 %v3306_v12, %v3290_v6  ;;  %12111 = vmatprep.subr.bf16.mxu1 %v13466_v23  ;;  %v2764_v27 = vpop.f32.mrb[88].mxu0  ;;  %v15487_v61 = vpack.c.bf16 %v3308_v4, %v3292_v62  ;;  %12175 = vmatprep.subr.bf16.mxu0 %v13467_v46 }
 0x740   : > { %v2652_v45 = vadd.f32 %v2651_v51, %v15391_v20  ;;  %v2653_v49 = vpop.f32.mrb[81].mxu1  ;;  %v2765_v17 = vadd.f32 %v2764_v27, %v15403_v55  ;;  %v2766_v23 = vpop.f32.mrb[89].mxu0 }
 0x741   : > { %v2654_v3 = vadd.f32 %v2653_v49, %v15415_v13  ;;  %v2655_v10 = vpop.f32.mrb[82].mxu1  ;;  %v2767_v48 = vadd.f32 %v2766_v23, %v15425_v31  ;;  %v2768_v29 = vpop.f32.mrb[90].mxu0 }
 0x742   : > { %v2656_v35 = vadd.f32 %v2655_v10, %v15391_v20  ;;  %v2657_v6 = vpop.f32.mrb[83].mxu1  ;;  %12112 = vmatpush3.bf16.msra.mxu1 %v13468_v25  ;;  %v2769_v42 = vadd.f32 %v2768_v29, %v15403_v55  ;;  %v2770_v12 = vpop.f32.mrb[91].mxu0  ;;  %12176 = vmatpush3.bf16.msra.mxu0 %v13469_v5  ;;  %v3321_v62 = vmax.f32 %v2652_v45, 0.0  ;;  %v3323_v27 = vmax.f32 %v2765_v17, 0.0 }
 0x743   : > { %v2658_v46 = vadd.f32 %v2657_v6, %v15415_v13  ;;  %12225 = vmatprep.subr.bf16.mxu1 %v13470_v53  ;;  %v2771_v51 = vadd.f32 %v2770_v12, %v15425_v31  ;;  %12289 = vmatprep.subr.bf16.mxu0 %v13472_v36  ;;  %v3322_v49 = vmax.f32 %v2654_v3, 0.0  ;;  %v3324_v25 = vmax.f32 %v2767_v48, 0.0 }
 0x744   : > { %v3337_v4 = vmax.f32 %v2656_v35, 0.0  ;;  %4765 = vmatmul.mubr.bf16.gmra.mrb[188].mxu1 %v15279_v18  ;;  %v3339_v23 = vmax.f32 %v2769_v42, 0.0  ;;  %4862 = vmatmul.mubr.bf16.gmra.mrb[196].mxu0 %v15283_v43 }
 0x745   : > { %v3338_v10 = vmax.f32 %v2658_v46, 0.0  ;;  %4772 = vmatprep.mubr.bf16.mxu1 %v15322_v44  ;;  %v3340_v29 = vmax.f32 %v2771_v51, 0.0  ;;  %4869 = vmatprep.mubr.bf16.mxu0 %v15327_v63 }
 0x746   : > { %v15503_v5 = vpack.c.bf16 %v3337_v4, %v3321_v62  ;;  %v15507_v35 = vpack.c.bf16 %v3339_v23, %v3323_v27 }
 0x747   : > { %v2661_v53 = vpop.f32.mrb[84].mxu1  ;;  %v15505_v45 = vpack.c.bf16 %v3338_v10, %v3322_v49  ;;  %v2774_v36 = vpop.f32.mrb[92].mxu0  ;;  %v15510_v3 = vpack.c.bf16 %v3340_v29, %v3324_v25 }
 0x748   : > { %v2662_v18 = vadd.f32 %v2661_v53, %v15391_v20  ;;  %v2663_v17 = vpop.f32.mrb[85].mxu1  ;;  %v2775_v43 = vadd.f32 %v2774_v36, %v15403_v55  ;;  %v2776_v48 = vpop.f32.mrb[93].mxu0 }
 0x749   : > { %v2664_v44 = vadd.f32 %v2663_v17, %v15415_v13  ;;  %v2665_v6 = vpop.f32.mrb[86].mxu1  ;;  %v2777_v63 = vadd.f32 %v2776_v48, %v15425_v31  ;;  %v2778_v46 = vpop.f32.mrb[94].mxu0 }
 0x74a   : > { %v2666_v42 = vadd.f32 %v2665_v6, %v15391_v20  ;;  %v2667_v12 = vpop.f32.mrb[87].mxu1  ;;  %v2779_v62 = vadd.f32 %v2778_v46, %v15403_v55  ;;  %v2780_v51 = vpop.f32.mrb[95].mxu0  ;;  %v3353_v27 = vmax.f32 %v2662_v18, 0.0  ;;  %v3355_v10 = vmax.f32 %v2775_v43, 0.0 }
 0x74b   : > { %v2668_v4 = vadd.f32 %v2667_v12, %v15415_v13  ;;  %v2781_v23 = vadd.f32 %v2780_v51, %v15425_v31  ;;  %v3354_v25 = vmax.f32 %v2664_v44, 0.0  ;;  %v3356_v36 = vmax.f32 %v2777_v63, 0.0 }
 0x74c   : > { %v3369_v49 = vmax.f32 %v2666_v42, 0.0  ;;  %4773 = vmatmul.mubr.bf16.gmra.mrb[192].mxu1 %v15314_v24  ;;  %v3371_v29 = vmax.f32 %v2779_v62, 0.0  ;;  %4870 = vmatmul.mubr.bf16.gmra.mrb[200].mxu0 %v15324_v54 }
 0x74d   : > { %v3370_v53 = vmax.f32 %v2668_v4, 0.0  ;;  %4780 = vmatprep.mubr.bf16.mxu1 %v15366_v60  ;;  %v3372_v17 = vmax.f32 %v2781_v23, 0.0  ;;  %4877 = vmatprep.mubr.bf16.mxu0 %v15380_v30 }
 0x74e   : > { %v15523_v48 = vpack.c.bf16 %v3369_v49, %v3353_v27  ;;  %v15527_v42 = vpack.c.bf16 %v3371_v29, %v3355_v10 }
 0x74f   : > { %v2671_v18 = vpop.f32.mrb[88].mxu1  ;;  %v15525_v6 = vpack.c.bf16 %v3370_v53, %v3354_v25  ;;  %v2784_v43 = vpop.f32.mrb[96].mxu0  ;;  %v15530_v46 = vpack.c.bf16 %v3372_v17, %v3356_v36 }
 0x750   : > { %v2672_v24 = vadd.f32 %v2671_v18, %v15391_v20  ;;  %v2673_v44 = vpop.f32.mrb[89].mxu1  ;;  %v2785_v54 = vadd.f32 %v2784_v43, %v15403_v55  ;;  %v2786_v63 = vpop.f32.mrb[97].mxu0 }
 0x751   : > { %v2674_v60 = vadd.f32 %v2673_v44, %v15415_v13  ;;  %v2675_v12 = vpop.f32.mrb[90].mxu1  ;;  %v2787_v30 = vadd.f32 %v2786_v63, %v15425_v31  ;;  %v2788_v4 = vpop.f32.mrb[98].mxu0 }
 0x752   : > { %v2676_v62 = vadd.f32 %v2675_v12, %v15391_v20  ;;  %v2677_v51 = vpop.f32.mrb[91].mxu1  ;;  %v2789_v27 = vadd.f32 %v2788_v4, %v15403_v55  ;;  %v2790_v23 = vpop.f32.mrb[99].mxu0  ;;  %v3385_v10 = vmax.f32 %v2672_v24, 0.0  ;;  %v3387_v53 = vmax.f32 %v2785_v54, 0.0 }
 0x753   : > { %v2678_v49 = vadd.f32 %v2677_v51, %v15415_v13  ;;  %v2791_v29 = vadd.f32 %v2790_v23, %v15425_v31  ;;  %v3386_v36 = vmax.f32 %v2674_v60, 0.0  ;;  %v3388_v43 = vmax.f32 %v2787_v30, 0.0 }
 0x754   : > { %v3401_v25 = vmax.f32 %v2676_v62, 0.0  ;;  %4781 = vmatmul.mubr.bf16.gmra.mrb[196].mxu1 %v15361_v57  ;;  %v3403_v17 = vmax.f32 %v2789_v27, 0.0  ;;  %4878 = vmatmul.mubr.bf16.gmra.mrb[204].mxu0 %v15371_v7 }
 0x755   : > { %v3402_v18 = vmax.f32 %v2678_v49, 0.0  ;;  %4788 = vmatprep.mubr.bf16.mxu1 %v15432_v2  ;;  %v3404_v44 = vmax.f32 %v2791_v29, 0.0  ;;  %4885 = vmatprep.mubr.bf16.mxu0 %v15443_v16 }
 0x756   : > { %v15543_v63 = vpack.c.bf16 %v3401_v25, %v3385_v10  ;;  %v15547_v62 = vpack.c.bf16 %v3403_v17, %v3387_v53 }
 0x757   : > { %v2681_v24 = vpop.f32.mrb[92].mxu1  ;;  %v15545_v12 = vpack.c.bf16 %v3402_v18, %v3386_v36  ;;  %v2794_v54 = vpop.f32.mrb[100].mxu0  ;;  %v15550_v4 = vpack.c.bf16 %v3404_v44, %v3388_v43 }
 0x758   : > { %v2682_v57 = vadd.f32 %v2681_v24, %v15391_v20  ;;  %v2683_v60 = vpop.f32.mrb[93].mxu1  ;;  %v2795_v7 = vadd.f32 %v2794_v54, %v15403_v55  ;;  %v2796_v30 = vpop.f32.mrb[101].mxu0 }
 0x759   : > { %v2684_v2 = vadd.f32 %v2683_v60, %v15415_v13  ;;  %v2685_v51 = vpop.f32.mrb[94].mxu1  ;;  %v2797_v16 = vadd.f32 %v2796_v30, %v15425_v31  ;;  %v2798_v49 = vpop.f32.mrb[102].mxu0 }
 0x75a   : > { %v2686_v27 = vadd.f32 %v2685_v51, %v15391_v20  ;;  %v2687_v23 = vpop.f32.mrb[95].mxu1  ;;  %v2799_v10 = vadd.f32 %v2798_v49, %v15403_v55  ;;  %v2800_v29 = vpop.f32.mrb[103].mxu0  ;;  %v3417_v53 = vmax.f32 %v2682_v57, 0.0  ;;  %v3419_v18 = vmax.f32 %v2795_v7, 0.0 }
 0x75b   : > { %v2688_v25 = vadd.f32 %v2687_v23, %v15415_v13  ;;  %v2801_v17 = vadd.f32 %v2800_v29, %v15425_v31  ;;  %v3418_v43 = vmax.f32 %v2684_v2, 0.0  ;;  %v3420_v54 = vmax.f32 %v2797_v16, 0.0 }
 0x75c   : > { %v3433_v36 = vmax.f32 %v2686_v27, 0.0  ;;  %4789 = vmatmul.mubr.bf16.gmra.mrb[200].mxu1 %v15430_v37  ;;  %v3435_v44 = vmax.f32 %v2799_v10, 0.0  ;;  %4886 = vmatmul.mubr.bf16.gmra.mrb[208].mxu0 %v15437_v9 }
 0x75d   : > { %v3434_v24 = vmax.f32 %v2688_v25, 0.0  ;;  %4926 = vmatprep.mubr.bf16.mxu1 %v15478_v59  ;;  %v3436_v60 = vmax.f32 %v2801_v17, 0.0  ;;  %5023 = vmatprep.mubr.bf16.mxu0 %v15487_v61 }
 0x75e   : > { %v15563_v30 = vpack.c.bf16 %v3433_v36, %v3417_v53  ;;  %v15567_v27 = vpack.c.bf16 %v3435_v44, %v3419_v18  ;;  %v13471_v53 = vld [vmem:[%s19165_s13 + $0x200] sm:$0xff]   ;;  %v13474_v44 = vld [vmem:[%s19165_s13 + $0x248] sm:$0xff]  }
 0x75f   : > { %v2691_v57 = vpop.f32.mrb[96].mxu1  ;;  %v15565_v51 = vpack.c.bf16 %v3434_v24, %v3418_v43  ;;  %v2804_v7 = vpop.f32.mrb[104].mxu0  ;;  %v15570_v49 = vpack.c.bf16 %v3436_v60, %v3420_v54  ;;  %v13473_v43 = vld [vmem:[%s19165_s13 + $0x280] sm:$0xff]  }
 0x760   : > { %v2692_v37 = vadd.f32 %v2691_v57, %v15391_v20  ;;  %v2693_v2 = vpop.f32.mrb[97].mxu1  ;;  %v2805_v9 = vadd.f32 %v2804_v7, %v15403_v55  ;;  %v2806_v16 = vpop.f32.mrb[105].mxu0  ;;  %v13476_v57 = vld [vmem:[%s19165_s13 + $0x2c8] sm:$0xff]  }
 0x761   : > { %v2694_v59 = vadd.f32 %v2693_v2, %v15415_v13  ;;  %v2695_v23 = vpop.f32.mrb[98].mxu1  ;;  %v2807_v61 = vadd.f32 %v2806_v16, %v15425_v31  ;;  %v2808_v25 = vpop.f32.mrb[106].mxu0 }
 0x762   : > { %v2696_v10 = vadd.f32 %v2695_v23, %v15391_v20  ;;  %v2697_v29 = vpop.f32.mrb[99].mxu1  ;;  %v2809_v36 = vadd.f32 %v2808_v25, %v15403_v55  ;;  %v2810_v18 = vpop.f32.mrb[107].mxu0  ;;  %v3449_v24 = vmax.f32 %v2692_v37, 0.0  ;;  %v3451_v7 = vmax.f32 %v2805_v9, 0.0 }
 0x763   : > { %v2698_v17 = vadd.f32 %v2697_v29, %v15415_v13  ;;  %v2811_v60 = vadd.f32 %v2810_v18, %v15425_v31  ;;  %v3450_v2 = vmax.f32 %v2694_v59, 0.0  ;;  %v3452_v25 = vmax.f32 %v2807_v61, 0.0 }
 0x764   : > { %v3465_v54 = vmax.f32 %v2696_v10, 0.0  ;;  %4927 = vmatmul.mubr.bf16.vlgmr.msra.gmra.mrb[204].mxu1 %v15470_v52  ;;  %v3467_v16 = vmax.f32 %v2809_v36, 0.0  ;;  %5024 = vmatmul.mubr.bf16.vlgmr.msra.gmra.mrb[212].mxu0 %v15476_v50  ;;  %v13475_v52 = vld [vmem:[%s19165_s13 + $0x208] sm:$0xff]  }
 0x765   : > { %v3466_v23 = vmax.f32 %v2698_v17, 0.0  ;;  %4934 = vmatprep.mubr.bf16.mxu1 %v15505_v45  ;;  %v3468_v29 = vmax.f32 %v2811_v60, 0.0  ;;  %5031 = vmatprep.mubr.bf16.mxu0 %v15510_v3  ;;  %v13477_v50 = vld [vmem:[%s19165_s13 + $0x288] sm:$0xff]   ;;  %v13478_v45 = vld [vmem:[%s19165_s13 + $0x250] sm:$0xff]  }
 0x766   : > { %12226 = vmatpush3.bf16.msra.mxu1 %v13471_v53  ;;  %v15598_v37 = vpack.c.bf16 %v3465_v54, %v3449_v24  ;;  %12290 = vmatpush3.bf16.msra.mxu0 %v13473_v43  ;;  %v15608_v3 = vpack.c.bf16 %v3467_v16, %v3451_v7  ;;  %v13480_v17 = vld [vmem:[%s19165_s13 + $0x2d0] sm:$0xff]  }
 0x767   : > { %v2701_v10 = vpop.f32.mrb[100].mxu1  ;;  %12227 = vmatprep.subr.bf16.mxu1 %v13474_v44  ;;  %v15606_v9 = vpack.c.bf16 %v3466_v23, %v3450_v2  ;;  %v2814_v61 = vpop.f32.mrb[108].mxu0  ;;  %12291 = vmatprep.subr.bf16.mxu0 %v13476_v57  ;;  %v15611_v36 = vpack.c.bf16 %v3468_v29, %v3452_v25  ;;  %v13479_v57 = vld [vmem:[%s19165_s13 + $0x210] sm:$0xff]  }
 0x768   : > { %v2702_v59 = vadd.f32 %v2701_v10, %v15391_v20  ;;  %v2703_v53 = vpop.f32.mrb[101].mxu1  ;;  %v2815_v18 = vadd.f32 %v2814_v61, %v15403_v55  ;;  %v2816_v44 = vpop.f32.mrb[109].mxu0  ;;  %v13481_v29 = vld [vmem:[%s19165_s13 + $0x290] sm:$0xff]   ;;  %v13482_v10 = vld [vmem:[%s19165_s13 + $0x258] sm:$0xff]  }
 0x769   : > { %v2704_v43 = vadd.f32 %v2703_v53, %v15415_v13  ;;  %v2705_v24 = vpop.f32.mrb[102].mxu1  ;;  %v2817_v54 = vadd.f32 %v2816_v44, %v15425_v31  ;;  %v2818_v7 = vpop.f32.mrb[110].mxu0 }
 0x76a   : > { %v2706_v60 = vadd.f32 %v2705_v24, %v15391_v20  ;;  %v2707_v2 = vpop.f32.mrb[103].mxu1  ;;  %12228 = vmatpush3.bf16.msra.mxu1 %v13475_v52  ;;  %v2819_v16 = vadd.f32 %v2818_v7, %v15403_v55  ;;  %v2820_v25 = vpop.f32.mrb[111].mxu0  ;;  %12292 = vmatpush3.bf16.msra.mxu0 %v13477_v50  ;;  %v3481_v52 = vmax.f32 %v2702_v59, 0.0  ;;  %v13484_v50 = vld [vmem:[%s19165_s13 + $0x2d8] sm:$0xff]  }
 0x76b   : > { %v2708_v23 = vadd.f32 %v2707_v2, %v15415_v13  ;;  %12229 = vmatprep.subr.bf16.mxu1 %v13478_v45  ;;  %v2821_v53 = vadd.f32 %v2820_v25, %v15425_v31  ;;  %12293 = vmatprep.subr.bf16.mxu0 %v13480_v17  ;;  %v3483_v45 = vmax.f32 %v2815_v18, 0.0  ;;  %v3482_v44 = vmax.f32 %v2704_v43, 0.0  ;;  %v15647_v18 = vld [vmem:[%s19164_s12 + $0x8] sm:$0xff]  ;;  %v13486_v43 = vld [vmem:[%s19165_s13 + $0x260] sm:$0xff]  }
 0x76c   : > { %v3497_v61 = vmax.f32 %v2706_v60, 0.0  ;;  %4935 = vmatmul.mubr.bf16.gmra.mrb[208].mxu1 %v15503_v5  ;;  %v3499_v24 = vmax.f32 %v2819_v16, 0.0  ;;  %5032 = vmatmul.mubr.bf16.gmra.mrb[216].mxu0 %v15507_v35  ;;  %v3484_v2 = vmax.f32 %v2817_v54, 0.0  ;;  %v13483_v5 = vld [vmem:[%s19165_s13 + $0x218] sm:$0xff]   ;;  %v13487_v25 = vld [vmem:[%s19165_s13 + $0x2e0] sm:$0xff]  }
 0x76d   : > { %v3498_v7 = vmax.f32 %v2708_v23, 0.0  ;;  %4942 = vmatprep.mubr.bf16.mxu1 %v15525_v6  ;;  %v3500_v59 = vmax.f32 %v2821_v53, 0.0  ;;  %5039 = vmatprep.mubr.bf16.mxu0 %v15530_v46  ;;  %v13485_v6 = vld [vmem:[%s19165_s13 + $0x298] sm:$0xff]  }
 0x76e   : > { %12230 = vmatpush3.bf16.msra.mxu1 %v13479_v57  ;;  %v15642_v17 = vpack.c.bf16 %v3497_v61, %v3481_v52  ;;  %12294 = vmatpush3.bf16.msra.mxu0 %v13481_v29  ;;  %v15654_v46 = vpack.c.bf16 %v3499_v24, %v3483_v45 }
 0x76f   : > { %v2711_v60 = vpop.f32.mrb[104].mxu1  ;;  %12231 = vmatprep.subr.bf16.mxu1 %v13482_v10  ;;  %v15649_v35 = vpack.c.bf16 %v3498_v7, %v3482_v44  ;;  %v2824_v57 = vpop.f32.mrb[112].mxu0  ;;  %v15660_v23 = vpack.c.bf16 %v3500_v59, %v3484_v2  ;;  %12295 = vmatprep.subr.bf16.mxu0 %v13484_v50  ;;  %v15671_v7 = vrot.slane %v15647_v18, %v15088_v26  ;;  %v13488_v50 = vld [vmem:[%s19165_s13 + $0x220] sm:$0xff]  }
 0x770   : > { %v2712_v54 = vadd.f32 %v2711_v60, %v15391_v20  ;;  %v2713_v16 = vpop.f32.mrb[105].mxu1  ;;  %v2825_v29 = vadd.f32 %v2824_v57, %v15403_v55  ;;  %v2826_v52 = vpop.f32.mrb[113].mxu0  ;;  %v15680_v57 = vrot.slane %v15647_v18, %v15091_v58 }
 0x771   : > { %v2714_v10 = vadd.f32 %v2713_v16, %v15415_v13  ;;  %v2715_v61 = vpop.f32.mrb[106].mxu1  ;;  %v2827_v53 = vadd.f32 %v2826_v52, %v15425_v31  ;;  %v2828_v44 = vpop.f32.mrb[114].mxu0 }
 0x772   : > { %v2716_v45 = vadd.f32 %v2715_v61, %v15391_v20  ;;  %v2717_v24 = vpop.f32.mrb[107].mxu1  ;;  %12232 = vmatpush3.bf16.msra.mxu1 %v13483_v5  ;;  %v2829_v2 = vadd.f32 %v2828_v44, %v15403_v55  ;;  %v2830_v60 = vpop.f32.mrb[115].mxu0  ;;  %12296 = vmatpush3.bf16.msra.mxu0 %v13485_v6  ;;  %v13489_v20 = vld [vmem:[%s19165_s13 + $0x2a0] sm:$0xff]   ;;  %v13490_v5 = vld [vmem:[%s19165_s13 + $0x268] sm:$0xff]   ;;  %v3513_v16 = vmax.f32 %v2712_v54, 0.0 }
 0x773   : > { %v2718_v59 = vadd.f32 %v2717_v24, %v15415_v13  ;;  %12233 = vmatprep.subr.bf16.mxu1 %v13486_v43  ;;  %v2831_v55 = vadd.f32 %v2830_v60, %v15425_v31  ;;  %v15692_v13 = vrot.slane %v15647_v18, %v15102_v28  ;;  %12297 = vmatprep.subr.bf16.mxu0 %v13487_v25  ;;  %v13491_v6 = vld [vmem:[%s19165_s13 + $0x2e8] sm:$0xff]   ;;  %v3515_v43 = vmax.f32 %v2825_v29, 0.0  ;;  %v13495_v60 = vld [vmem:[%s19165_s13 + $0x2f0] sm:$0xff]  }
 0x774   : > { %v3529_v52 = vmax.f32 %v2716_v45, 0.0  ;;  %4943 = vmatmul.mubr.bf16.gmra.mrb[212].mxu1 %v15523_v48  ;;  %v3514_v61 = vmax.f32 %v2714_v10, 0.0  ;;  %v3531_v44 = vmax.f32 %v2829_v2, 0.0  ;;  %5040 = vmatmul.mubr.bf16.gmra.mrb[220].mxu0 %v15527_v42  ;;  %v3516_v31 = vmax.f32 %v2827_v53, 0.0  ;;  %v13492_v25 = vld [vmem:[%s19165_s13 + $0x228] sm:$0xff]  }
 0x775   : > { %v3530_v24 = vmax.f32 %v2718_v59, 0.0  ;;  %4950 = vmatprep.mubr.bf16.mxu1 %v15545_v12  ;;  %v3532_v54 = vmax.f32 %v2831_v55, 0.0  ;;  %5047 = vmatprep.mubr.bf16.mxu0 %v15550_v4  ;;  %v15702_v48 = vrot.slane %v15647_v18, %v15105_v11  ;;  %v13493_v42 = vld [vmem:[%s19165_s13 + $0x2a8] sm:$0xff]   ;;  %v13494_v4 = vld [vmem:[%s19165_s13 + $0x270] sm:$0xff]  }
 0x776   : > { %12234 = vmatpush3.bf16.msra.mxu1 %v13488_v50  ;;  %v15707_v29 = vpack.c.bf16 %v3529_v52, %v3513_v16  ;;  %12298 = vmatpush3.bf16.msra.mxu0 %v13489_v20  ;;  %v15714_v12 = vpack.c.bf16 %v3531_v44, %v3515_v43 }
 0x777   : > { %v2867_v10 = vpop.f32.mrb[108].mxu1  ;;  %v15709_v45 = vpack.c.bf16 %v3530_v24, %v3514_v61  ;;  %12235 = vmatprep.subr.bf16.mxu1 %v13490_v5  ;;  %v2980_v50 = vpop.f32.mrb[116].mxu0  ;;  %v15720_v59 = vpack.c.bf16 %v3532_v54, %v3516_v31  ;;  %12299 = vmatprep.subr.bf16.mxu0 %v13491_v6  ;;  %v13496_v6 = vld [vmem:[%s19165_s13 + $0x230] sm:$0xff]  }
 0x778   : > { %v2868_v53 = vadd.f32 %v2867_v10, %v15671_v7  ;;  %v2869_v2 = vpop.f32.mrb[109].mxu1  ;;  %v2981_v20 = vadd.f32 %v2980_v50, %v15680_v57  ;;  %v2982_v16 = vpop.f32.mrb[117].mxu0  ;;  %v13497_v10 = vld [vmem:[%s19165_s13 + $0x2b0] sm:$0xff]   ;;  %v13498_v50 = vld [vmem:[%s19165_s13 + $0x278] sm:$0xff]  }
 0x779   : > { %v2870_v5 = vadd.f32 %v2869_v2, %v15692_v13  ;;  %v2871_v52 = vpop.f32.mrb[110].mxu1  ;;  %v2983_v55 = vadd.f32 %v2982_v16, %v15702_v48  ;;  %v2984_v61 = vpop.f32.mrb[118].mxu0 }
 0x77a   : > { %v2872_v43 = vadd.f32 %v2871_v52, %v15671_v7  ;;  %v2873_v44 = vpop.f32.mrb[111].mxu1  ;;  %12236 = vmatpush3.bf16.msra.mxu1 %v13492_v25  ;;  %v2985_v24 = vadd.f32 %v2984_v61, %v15680_v57  ;;  %v2986_v54 = vpop.f32.mrb[119].mxu0  ;;  %12300 = vmatpush3.bf16.msra.mxu0 %v13493_v42  ;;  %v3293_v25 = vmax.f32 %v2868_v53, 0.0  ;;  %v13499_v42 = vld [vmem:[%s19165_s13 + $0x2f8] sm:$0xff]  }
 0x77b   : > { %v2874_v31 = vadd.f32 %v2873_v44, %v15692_v13  ;;  %12237 = vmatprep.subr.bf16.mxu1 %v13494_v4  ;;  %v2987_v16 = vadd.f32 %v2986_v54, %v15702_v48  ;;  %12301 = vmatprep.subr.bf16.mxu0 %v13495_v60  ;;  %v3295_v4 = vmax.f32 %v2981_v20, 0.0  ;;  %v3294_v52 = vmax.f32 %v2870_v5, 0.0 }
 0x77c   : > { %v3309_v2 = vmax.f32 %v2872_v43, 0.0  ;;  %4951 = vmatmul.mubr.bf16.gmra.mrb[216].mxu1 %v15543_v63  ;;  %v3311_v61 = vmax.f32 %v2985_v24, 0.0  ;;  %5048 = vmatmul.mubr.bf16.gmra.mrb[224].mxu0 %v15547_v62  ;;  %v3296_v11 = vmax.f32 %v2983_v55, 0.0  ;;  %v13500_v63 = vld [vmem:[%s19165_s13 + $0x238] sm:$0xff]  }
 0x77d   : > { %v3310_v44 = vmax.f32 %v2874_v31, 0.0  ;;  %4958 = vmatprep.mubr.bf16.mxu1 %v15565_v51  ;;  %v3312_v43 = vmax.f32 %v2987_v16, 0.0  ;;  %5055 = vmatprep.mubr.bf16.mxu0 %v15570_v49  ;;  %v13501_v62 = vld [vmem:[%s19165_s13 + $0x2b8] sm:$0xff]   ;;  %v13502_v51 = vld [vmem:[%s19165_s13 + $0x340] sm:$0xff]  }
 0x77e   : > { %v15747_v53 = vpack.c.bf16 %v3309_v2, %v3293_v25  ;;  %12238 = vmatpush3.bf16.msra.mxu1 %v13496_v6  ;;  %v15753_v60 = vpack.c.bf16 %v3311_v61, %v3295_v4  ;;  %12302 = vmatpush3.bf16.msra.mxu0 %v13497_v10  ;;  %v13504_v31 = vld [vmem:[%s19165_s13 + $0x3c0] sm:$0xff]  }
 0x77f   : > { %v2877_v20 = vpop.f32.mrb[112].mxu1  ;;  %v15755_v5 = vpack.c.bf16 %v3310_v44, %v3294_v52  ;;  %12239 = vmatprep.subr.bf16.mxu1 %v13498_v50  ;;  %v2990_v55 = vpop.f32.mrb[120].mxu0  ;;  %v15764_v24 = vpack.c.bf16 %v3312_v43, %v3296_v11  ;;  %12303 = vmatprep.subr.bf16.mxu0 %v13499_v42 }
 0x780   : > { %v2878_v49 = vadd.f32 %v2877_v20, %v15671_v7  ;;  %v2879_v6 = vpop.f32.mrb[113].mxu1  ;;  %v2991_v54 = vadd.f32 %v2990_v55, %v15680_v57  ;;  %v2992_v50 = vpop.f32.mrb[121].mxu0 }
 0x781   : > { %v2880_v10 = vadd.f32 %v2879_v6, %v15692_v13  ;;  %v2881_v25 = vpop.f32.mrb[114].mxu1  ;;  %v2993_v2 = vadd.f32 %v2992_v50, %v15702_v48  ;;  %v2994_v4 = vpop.f32.mrb[122].mxu0 }
 0x782   : > { %v2882_v16 = vadd.f32 %v2881_v25, %v15671_v7  ;;  %v2883_v52 = vpop.f32.mrb[115].mxu1  ;;  %12240 = vmatpush3.bf16.msra.mxu1 %v13500_v63  ;;  %v2995_v11 = vadd.f32 %v2994_v4, %v15680_v57  ;;  %v2996_v61 = vpop.f32.mrb[123].mxu0  ;;  %12304 = vmatpush3.bf16.msra.mxu0 %v13501_v62  ;;  %v3325_v44 = vmax.f32 %v2878_v49, 0.0  ;;  %v3327_v55 = vmax.f32 %v2991_v54, 0.0 }
 0x783   : > { %v2884_v42 = vadd.f32 %v2883_v52, %v15692_v13  ;;  %12353 = vmatprep.subr.bf16.mxu1 %v13502_v51  ;;  %v2997_v20 = vadd.f32 %v2996_v61, %v15702_v48  ;;  %12417 = vmatprep.subr.bf16.mxu0 %v13504_v31  ;;  %v3326_v6 = vmax.f32 %v2880_v10, 0.0  ;;  %v3328_v63 = vmax.f32 %v2993_v2, 0.0 }
 0x784   : > { %v3341_v43 = vmax.f32 %v2882_v16, 0.0  ;;  %4959 = vmatmul.mubr.bf16.gmra.mrb[220].mxu1 %v15563_v30  ;;  %v3343_v50 = vmax.f32 %v2995_v11, 0.0  ;;  %5056 = vmatmul.mubr.bf16.gmra.mrb[228].mxu0 %v15567_v27 }
 0x785   : > { %v3342_v25 = vmax.f32 %v2884_v42, 0.0  ;;  %4966 = vmatprep.mubr.bf16.mxu1 %v15606_v9  ;;  %v3344_v4 = vmax.f32 %v2997_v20, 0.0  ;;  %5063 = vmatprep.mubr.bf16.mxu0 %v15611_v36 }
 0x786   : > { %v15780_v62 = vpack.c.bf16 %v3341_v43, %v3325_v44  ;;  %v15784_v16 = vpack.c.bf16 %v3343_v50, %v3327_v55 }
 0x787   : > { %v2887_v51 = vpop.f32.mrb[116].mxu1  ;;  %v15782_v49 = vpack.c.bf16 %v3342_v25, %v3326_v6  ;;  %v3000_v31 = vpop.f32.mrb[124].mxu0  ;;  %v15787_v10 = vpack.c.bf16 %v3344_v4, %v3328_v63 }
 0x788   : > { %v2888_v30 = vadd.f32 %v2887_v51, %v15671_v7  ;;  %v2889_v54 = vpop.f32.mrb[117].mxu1  ;;  %v3001_v27 = vadd.f32 %v3000_v31, %v15680_v57  ;;  %v3002_v2 = vpop.f32.mrb[125].mxu0 }
 0x789   : > { %v2890_v9 = vadd.f32 %v2889_v54, %v15692_v13  ;;  %v2891_v52 = vpop.f32.mrb[118].mxu1  ;;  %v3003_v36 = vadd.f32 %v3002_v2, %v15702_v48  ;;  %v3004_v42 = vpop.f32.mrb[126].mxu0 }
 0x78a   : > { %v2892_v11 = vadd.f32 %v2891_v52, %v15671_v7  ;;  %v2893_v61 = vpop.f32.mrb[119].mxu1  ;;  %v3005_v44 = vadd.f32 %v3004_v42, %v15680_v57  ;;  %v3006_v20 = vpop.f32.mrb[127].mxu0  ;;  %v3357_v55 = vmax.f32 %v2888_v30, 0.0  ;;  %v3359_v25 = vmax.f32 %v3001_v27, 0.0 }
 0x78b   : > { %v2894_v43 = vadd.f32 %v2893_v61, %v15692_v13  ;;  %v3007_v50 = vadd.f32 %v3006_v20, %v15702_v48  ;;  %v3358_v63 = vmax.f32 %v2890_v9, 0.0  ;;  %v3360_v31 = vmax.f32 %v3003_v36, 0.0 }
 0x78c   : > { %v3373_v6 = vmax.f32 %v2892_v11, 0.0  ;;  %4967 = vmatmul.mubr.bf16.gmra.mrb[224].mxu1 %v15598_v37  ;;  %v3375_v4 = vmax.f32 %v3005_v44, 0.0  ;;  %5064 = vmatmul.mubr.bf16.gmra.mrb[232].mxu0 %v15608_v3 }
 0x78d   : > { %v3374_v51 = vmax.f32 %v2894_v43, 0.0  ;;  %4974 = vmatprep.mubr.bf16.mxu1 %v15649_v35  ;;  %v3376_v54 = vmax.f32 %v3007_v50, 0.0  ;;  %5071 = vmatprep.mubr.bf16.mxu0 %v15660_v23 }
 0x78e   : > { %v15800_v2 = vpack.c.bf16 %v3373_v6, %v3357_v55  ;;  %v15804_v11 = vpack.c.bf16 %v3375_v4, %v3359_v25 }
 0x78f   : > { %v2897_v30 = vpop.f32.mrb[120].mxu1  ;;  %v15802_v52 = vpack.c.bf16 %v3374_v51, %v3358_v63  ;;  %v3010_v27 = vpop.f32.mrb[128].mxu0  ;;  %v15807_v42 = vpack.c.bf16 %v3376_v54, %v3360_v31 }
 0x790   : > { %v2898_v37 = vadd.f32 %v2897_v30, %v15671_v7  ;;  %v2899_v9 = vpop.f32.mrb[121].mxu1  ;;  %v3011_v3 = vadd.f32 %v3010_v27, %v15680_v57  ;;  %v3012_v36 = vpop.f32.mrb[129].mxu0 }
 0x791   : > { %v2900_v35 = vadd.f32 %v2899_v9, %v15692_v13  ;;  %v2901_v61 = vpop.f32.mrb[122].mxu1  ;;  %v3013_v23 = vadd.f32 %v3012_v36, %v15702_v48  ;;  %v3014_v43 = vpop.f32.mrb[130].mxu0 }
 0x792   : > { %v2902_v44 = vadd.f32 %v2901_v61, %v15671_v7  ;;  %v2903_v20 = vpop.f32.mrb[123].mxu1  ;;  %v3015_v55 = vadd.f32 %v3014_v43, %v15680_v57  ;;  %v3016_v50 = vpop.f32.mrb[131].mxu0  ;;  %v3389_v25 = vmax.f32 %v2898_v37, 0.0  ;;  %v3391_v51 = vmax.f32 %v3011_v3, 0.0 }
 0x793   : > { %v2904_v6 = vadd.f32 %v2903_v20, %v15692_v13  ;;  %v3017_v4 = vadd.f32 %v3016_v50, %v15702_v48  ;;  %v3390_v31 = vmax.f32 %v2900_v35, 0.0  ;;  %v3392_v27 = vmax.f32 %v3013_v23, 0.0 }
 0x794   : > { %v3405_v63 = vmax.f32 %v2902_v44, 0.0  ;;  %4975 = vmatmul.mubr.bf16.gmra.mrb[228].mxu1 %v15642_v17  ;;  %v3407_v54 = vmax.f32 %v3015_v55, 0.0  ;;  %5072 = vmatmul.mubr.bf16.gmra.mrb[236].mxu0 %v15654_v46 }
 0x795   : > { %v3406_v30 = vmax.f32 %v2904_v6, 0.0  ;;  %4982 = vmatprep.mubr.bf16.mxu1 %v15709_v45  ;;  %v3408_v9 = vmax.f32 %v3017_v4, 0.0  ;;  %5079 = vmatprep.mubr.bf16.mxu0 %v15720_v59 }
 0x796   : > { %v15820_v36 = vpack.c.bf16 %v3405_v63, %v3389_v25  ;;  %v15822_v37 = vpack.c.bf16 %v3407_v54, %v3391_v51 }
 0x797   : > { %v2907_v61 = vpop.f32.mrb[124].mxu1  ;;  %v15824_v44 = vpack.c.bf16 %v3406_v30, %v3390_v31  ;;  %v3020_v3 = vpop.f32.mrb[132].mxu0  ;;  %v15827_v43 = vpack.c.bf16 %v3408_v9, %v3392_v27 }
 0x798   : > { %v2908_v17 = vadd.f32 %v2907_v61, %v15671_v7  ;;  %v2909_v35 = vpop.f32.mrb[125].mxu1  ;;  %v3021_v46 = vadd.f32 %v3020_v3, %v15680_v57  ;;  %v3022_v23 = vpop.f32.mrb[133].mxu0 }
 0x799   : > { %v2910_v45 = vadd.f32 %v2909_v35, %v15692_v13  ;;  %v2911_v20 = vpop.f32.mrb[126].mxu1  ;;  %v3023_v59 = vadd.f32 %v3022_v23, %v15702_v48  ;;  %v3024_v6 = vpop.f32.mrb[134].mxu0 }
 0x79a   : > { %v2912_v55 = vadd.f32 %v2911_v20, %v15671_v7  ;;  %v2913_v50 = vpop.f32.mrb[127].mxu1  ;;  %v3025_v25 = vadd.f32 %v3024_v6, %v15680_v57  ;;  %v3026_v4 = vpop.f32.mrb[135].mxu0  ;;  %v3421_v51 = vmax.f32 %v2908_v17, 0.0  ;;  %v3423_v30 = vmax.f32 %v3021_v46, 0.0 }
 0x79b   : > { %v2914_v63 = vadd.f32 %v2913_v50, %v15692_v13  ;;  %v3027_v54 = vadd.f32 %v3026_v4, %v15702_v48  ;;  %v3422_v27 = vmax.f32 %v2910_v45, 0.0  ;;  %v3424_v3 = vmax.f32 %v3023_v59, 0.0 }
 0x79c   : > { %v3437_v31 = vmax.f32 %v2912_v55, 0.0  ;;  %4983 = vmatmul.mubr.bf16.gmra.mrb[232].mxu1 %v15707_v29  ;;  %v3439_v9 = vmax.f32 %v3025_v25, 0.0  ;;  %5080 = vmatmul.mubr.bf16.gmra.mrb[240].mxu0 %v15714_v12 }
 0x79d   : > { %v3438_v61 = vmax.f32 %v2914_v63, 0.0  ;;  %5120 = vmatprep.mubr.bf16.mxu1 %v15755_v5  ;;  %v3440_v35 = vmax.f32 %v3027_v54, 0.0  ;;  %5217 = vmatprep.mubr.bf16.mxu0 %v15764_v24 }
 0x79e   : > { %v15840_v23 = vpack.c.bf16 %v3437_v31, %v3421_v51  ;;  %v15842_v17 = vpack.c.bf16 %v3439_v9, %v3423_v30  ;;  %v13503_v51 = vld [vmem:[%s19165_s13 + $0x300] sm:$0xff]   ;;  %v13506_v9 = vld [vmem:[%s19165_s13 + $0x348] sm:$0xff]  }
 0x79f   : > { %v2917_v20 = vpop.f32.mrb[128].mxu1  ;;  %v15844_v55 = vpack.c.bf16 %v3438_v61, %v3422_v27  ;;  %v3030_v46 = vpop.f32.mrb[136].mxu0  ;;  %v15847_v6 = vpack.c.bf16 %v3440_v35, %v3424_v3  ;;  %v13505_v27 = vld [vmem:[%s19165_s13 + $0x380] sm:$0xff]  }
 0x7a0   : > { %v2918_v29 = vadd.f32 %v2917_v20, %v15671_v7  ;;  %v2919_v45 = vpop.f32.mrb[129].mxu1  ;;  %v3031_v12 = vadd.f32 %v3030_v46, %v15680_v57  ;;  %v3032_v59 = vpop.f32.mrb[137].mxu0  ;;  %v13508_v20 = vld [vmem:[%s19165_s13 + $0x3c8] sm:$0xff]  }
 0x7a1   : > { %v2920_v5 = vadd.f32 %v2919_v45, %v15692_v13  ;;  %v2921_v50 = vpop.f32.mrb[130].mxu1  ;;  %v3033_v24 = vadd.f32 %v3032_v59, %v15702_v48  ;;  %v3034_v63 = vpop.f32.mrb[138].mxu0 }
 0x7a2   : > { %v2922_v25 = vadd.f32 %v2921_v50, %v15671_v7  ;;  %v2923_v4 = vpop.f32.mrb[131].mxu1  ;;  %v3035_v31 = vadd.f32 %v3034_v63, %v15680_v57  ;;  %v3036_v30 = vpop.f32.mrb[139].mxu0  ;;  %v3453_v61 = vmax.f32 %v2918_v29, 0.0  ;;  %v3455_v46 = vmax.f32 %v3031_v12, 0.0 }
 0x7a3   : > { %v2924_v54 = vadd.f32 %v2923_v4, %v15692_v13  ;;  %v3037_v35 = vadd.f32 %v3036_v30, %v15702_v48  ;;  %v3454_v45 = vmax.f32 %v2920_v5, 0.0  ;;  %v3456_v63 = vmax.f32 %v3033_v24, 0.0 }
 0x7a4   : > { %v3469_v3 = vmax.f32 %v2922_v25, 0.0  ;;  %5121 = vmatmul.mubr.bf16.vlgmr.msra.gmra.mrb[236].mxu1 %v15747_v53  ;;  %v3471_v59 = vmax.f32 %v3035_v31, 0.0  ;;  %5218 = vmatmul.mubr.bf16.vlgmr.msra.gmra.mrb[244].mxu0 %v15753_v60  ;;  %v13507_v53 = vld [vmem:[%s19165_s13 + $0x308] sm:$0xff]  }
 0x7a5   : > { %v3470_v50 = vmax.f32 %v2924_v54, 0.0  ;;  %5128 = vmatprep.mubr.bf16.mxu1 %v15782_v49  ;;  %v3472_v29 = vmax.f32 %v3037_v35, 0.0  ;;  %5225 = vmatprep.mubr.bf16.mxu0 %v15787_v10  ;;  %v13509_v60 = vld [vmem:[%s19165_s13 + $0x388] sm:$0xff]   ;;  %v13510_v49 = vld [vmem:[%s19165_s13 + $0x350] sm:$0xff]  }
 0x7a6   : > { %v15871_v4 = vpack.c.bf16 %v3469_v3, %v3453_v61  ;;  %12354 = vmatpush3.bf16.msra.mxu1 %v13503_v51  ;;  %v15877_v25 = vpack.c.bf16 %v3471_v59, %v3455_v46  ;;  %12418 = vmatpush3.bf16.msra.mxu0 %v13505_v27  ;;  %v13512_v54 = vld [vmem:[%s19165_s13 + $0x3d0] sm:$0xff]  }
 0x7a7   : > { %v2927_v12 = vpop.f32.mrb[132].mxu1  ;;  %12355 = vmatprep.subr.bf16.mxu1 %v13506_v9  ;;  %v15885_v5 = vpack.c.bf16 %v3470_v50, %v3454_v45  ;;  %v3040_v24 = vpop.f32.mrb[140].mxu0  ;;  %12419 = vmatprep.subr.bf16.mxu0 %v13508_v20  ;;  %v15888_v31 = vpack.c.bf16 %v3472_v29, %v3456_v63  ;;  %v13511_v20 = vld [vmem:[%s19165_s13 + $0x310] sm:$0xff]  }
 0x7a8   : > { %v2928_v10 = vadd.f32 %v2927_v12, %v15671_v7  ;;  %v2929_v51 = vpop.f32.mrb[133].mxu1  ;;  %v3041_v30 = vadd.f32 %v3040_v24, %v15680_v57  ;;  %v3042_v9 = vpop.f32.mrb[141].mxu0  ;;  %v13513_v29 = vld [vmem:[%s19165_s13 + $0x390] sm:$0xff]   ;;  %v13514_v12 = vld [vmem:[%s19165_s13 + $0x358] sm:$0xff]  }
 0x7a9   : > { %v2930_v27 = vadd.f32 %v2929_v51, %v15692_v13  ;;  %v2931_v61 = vpop.f32.mrb[134].mxu1  ;;  %v3043_v3 = vadd.f32 %v3042_v9, %v15702_v48  ;;  %v3044_v46 = vpop.f32.mrb[142].mxu0 }
 0x7aa   : > { %v2932_v35 = vadd.f32 %v2931_v61, %v15671_v7  ;;  %v2933_v45 = vpop.f32.mrb[135].mxu1  ;;  %12356 = vmatpush3.bf16.msra.mxu1 %v13507_v53  ;;  %v3045_v59 = vadd.f32 %v3044_v46, %v15680_v57  ;;  %v3046_v63 = vpop.f32.mrb[143].mxu0  ;;  %12420 = vmatpush3.bf16.msra.mxu0 %v13509_v60  ;;  %v3485_v53 = vmax.f32 %v2928_v10, 0.0  ;;  %v13516_v60 = vld [vmem:[%s19165_s13 + $0x3d8] sm:$0xff]  }
 0x7ab   : > { %v2934_v50 = vadd.f32 %v2933_v45, %v15692_v13  ;;  %12357 = vmatprep.subr.bf16.mxu1 %v13510_v49  ;;  %v3047_v51 = vadd.f32 %v3046_v63, %v15702_v48  ;;  %12421 = vmatprep.subr.bf16.mxu0 %v13512_v54  ;;  %v3487_v49 = vmax.f32 %v3041_v30, 0.0  ;;  %v3486_v9 = vmax.f32 %v2930_v27, 0.0 }
 0x7ac   : > { %v3501_v24 = vmax.f32 %v2932_v35, 0.0  ;;  %5129 = vmatmul.mubr.bf16.gmra.mrb[240].mxu1 %v15780_v62  ;;  %v3503_v61 = vmax.f32 %v3045_v59, 0.0  ;;  %5226 = vmatmul.mubr.bf16.gmra.mrb[248].mxu0 %v15784_v16  ;;  %v3488_v45 = vmax.f32 %v3043_v3, 0.0  ;;  %v13515_v62 = vld [vmem:[%s19165_s13 + $0x318] sm:$0xff]  }
 0x7ad   : > { %v3502_v46 = vmax.f32 %v2934_v50, 0.0  ;;  %5136 = vmatprep.mubr.bf16.mxu1 %v15802_v52  ;;  %v3504_v35 = vmax.f32 %v3047_v51, 0.0  ;;  %5233 = vmatprep.mubr.bf16.mxu0 %v15807_v42  ;;  %v13517_v16 = vld [vmem:[%s19165_s13 + $0x398] sm:$0xff]   ;;  %v13518_v52 = vld [vmem:[%s19165_s13 + $0x360] sm:$0xff]  }
 0x7ae   : > { %v15915_v10 = vpack.c.bf16 %v3501_v24, %v3485_v53  ;;  %12358 = vmatpush3.bf16.msra.mxu1 %v13511_v20  ;;  %v15921_v54 = vpack.c.bf16 %v3503_v61, %v3487_v49  ;;  %12422 = vmatpush3.bf16.msra.mxu0 %v13513_v29  ;;  %v13519_v50 = vld [vmem:[%s19165_s13 + $0x3e0] sm:$0xff]   ;;  %v15943_v61 = vrot.slane %v15647_v18, %v15356_v39 }
 0x7af   : > { %v2937_v30 = vpop.f32.mrb[136].mxu1  ;;  %12359 = vmatprep.subr.bf16.mxu1 %v13514_v12  ;;  %v15923_v27 = vpack.c.bf16 %v3502_v46, %v3486_v9  ;;  %v3050_v3 = vpop.f32.mrb[144].mxu0  ;;  %v15932_v59 = vpack.c.bf16 %v3504_v35, %v3488_v45  ;;  %12423 = vmatprep.subr.bf16.mxu0 %v13516_v60  ;;  %v13520_v60 = vld [vmem:[%s19165_s13 + $0x320] sm:$0xff]  }
 0x7b0   : > { %v2938_v42 = vadd.f32 %v2937_v30, %v15671_v7  ;;  %v2939_v20 = vpop.f32.mrb[137].mxu1  ;;  %v3051_v63 = vadd.f32 %v3050_v3, %v15680_v57  ;;  %v3052_v12 = vpop.f32.mrb[145].mxu0  ;;  %v15952_v30 = vrot.slane %v15647_v18, %v15364_v21 }
 0x7b1   : > { %v2940_v29 = vadd.f32 %v2939_v20, %v15692_v13  ;;  %v2941_v53 = vpop.f32.mrb[138].mxu1  ;;  %v3053_v24 = vadd.f32 %v3052_v12, %v15702_v48  ;;  %v3054_v49 = vpop.f32.mrb[146].mxu0 }
 0x7b2   : > { %v2942_v51 = vadd.f32 %v2941_v53, %v15671_v7  ;;  %v2943_v9 = vpop.f32.mrb[139].mxu1  ;;  %12360 = vmatpush3.bf16.msra.mxu1 %v13515_v62  ;;  %v3055_v46 = vadd.f32 %v3054_v49, %v15680_v57  ;;  %v3056_v35 = vpop.f32.mrb[147].mxu0  ;;  %12424 = vmatpush3.bf16.msra.mxu0 %v13517_v16  ;;  %v13521_v7 = vld [vmem:[%s19165_s13 + $0x3a0] sm:$0xff]   ;;  %v13522_v62 = vld [vmem:[%s19165_s13 + $0x368] sm:$0xff]   ;;  %v3517_v3 = vmax.f32 %v2938_v42, 0.0 }
 0x7b3   : > { %v2944_v45 = vadd.f32 %v2943_v9, %v15692_v13  ;;  %12361 = vmatprep.subr.bf16.mxu1 %v13518_v52  ;;  %v3057_v57 = vadd.f32 %v3056_v35, %v15702_v48  ;;  %v15964_v13 = vrot.slane %v15647_v18, %v15378_v15  ;;  %12425 = vmatprep.subr.bf16.mxu0 %v13519_v50  ;;  %v13523_v16 = vld [vmem:[%s19165_s13 + $0x3e8] sm:$0xff]   ;;  %v3519_v52 = vmax.f32 %v3051_v63, 0.0 }
 0x7b4   : > { %v3533_v20 = vmax.f32 %v2942_v51, 0.0  ;;  %5137 = vmatmul.mubr.bf16.gmra.mrb[244].mxu1 %v15800_v2  ;;  %v3518_v12 = vmax.f32 %v2940_v29, 0.0  ;;  %v3535_v53 = vmax.f32 %v3055_v46, 0.0  ;;  %5234 = vmatmul.mubr.bf16.gmra.mrb[252].mxu0 %v15804_v11  ;;  %v3520_v48 = vmax.f32 %v3053_v24, 0.0  ;;  %v13524_v63 = vld [vmem:[%s19165_s13 + $0x328] sm:$0xff]   ;;  %v13527_v46 = vld [vmem:[%s19165_s13 + $0x3f0] sm:$0xff]  }
 0x7b5   : > { %v3534_v49 = vmax.f32 %v2944_v45, 0.0  ;;  %5144 = vmatprep.mubr.bf16.mxu1 %v15824_v44  ;;  %v3536_v2 = vmax.f32 %v3057_v57, 0.0  ;;  %5241 = vmatprep.mubr.bf16.mxu0 %v15827_v43  ;;  %v15976_v50 = vrot.slane %v15647_v18, %v15394_v1  ;;  %v13525_v44 = vld [vmem:[%s19165_s13 + $0x3a8] sm:$0xff]   ;;  %v13526_v18 = vld [vmem:[%s19165_s13 + $0x370] sm:$0xff]  }
 0x7b6   : > { %v15971_v42 = vpack.c.bf16 %v3533_v20, %v3517_v3  ;;  %12362 = vmatpush3.bf16.msra.mxu1 %v13520_v60  ;;  %v15981_v29 = vpack.c.bf16 %v3535_v53, %v3519_v52  ;;  %12426 = vmatpush3.bf16.msra.mxu0 %v13521_v7 }
 0x7b7   : > { %v3093_v11 = vpop.f32.mrb[140].mxu1  ;;  %v15983_v51 = vpack.c.bf16 %v3534_v49, %v3518_v12  ;;  %12363 = vmatprep.subr.bf16.mxu1 %v13522_v62  ;;  %v3206_v24 = vpop.f32.mrb[148].mxu0  ;;  %v15992_v60 = vpack.c.bf16 %v3536_v2, %v3520_v48  ;;  %12427 = vmatprep.subr.bf16.mxu0 %v13523_v16  ;;  %v13528_v16 = vld [vmem:[%s19165_s13 + $0x330] sm:$0xff]   ;;  %v13530_v2 = vld [vmem:[%s19165_s13 + $0x378] sm:$0xff]  }
 0x7b8   : > { %v3094_v43 = vadd.f32 %v3093_v11, %v15943_v61  ;;  %v3095_v9 = vpop.f32.mrb[141].mxu1  ;;  %v3207_v45 = vadd.f32 %v3206_v24, %v15952_v30  ;;  %v3208_v7 = vpop.f32.mrb[149].mxu0  ;;  %v13529_v48 = vld [vmem:[%s19165_s13 + $0x3b0] sm:$0xff]  }
 0x7b9   : > { %v3096_v35 = vadd.f32 %v3095_v9, %v15964_v13  ;;  %v3097_v62 = vpop.f32.mrb[142].mxu1  ;;  %v3209_v3 = vadd.f32 %v3208_v7, %v15976_v50  ;;  %v3210_v57 = vpop.f32.mrb[150].mxu0 }
 0x7ba   : > { %v3098_v20 = vadd.f32 %v3097_v62, %v15943_v61  ;;  %v3099_v52 = vpop.f32.mrb[143].mxu1  ;;  %12364 = vmatpush3.bf16.msra.mxu1 %v13524_v63  ;;  %v3211_v12 = vadd.f32 %v3210_v57, %v15952_v30  ;;  %v3212_v49 = vpop.f32.mrb[151].mxu0  ;;  %12428 = vmatpush3.bf16.msra.mxu0 %v13525_v44  ;;  %v3297_v63 = vmax.f32 %v3094_v43, 0.0  ;;  %v13531_v44 = vld [vmem:[%s19165_s13 + $0x3f8] sm:$0xff]  }
 0x7bb   : > { %v3100_v53 = vadd.f32 %v3099_v52, %v15964_v13  ;;  %12365 = vmatprep.subr.bf16.mxu1 %v13526_v18  ;;  %v3213_v24 = vadd.f32 %v3212_v49, %v15976_v50  ;;  %12429 = vmatprep.subr.bf16.mxu0 %v13527_v46  ;;  %v3299_v18 = vmax.f32 %v3207_v45, 0.0  ;;  %v3298_v9 = vmax.f32 %v3096_v35, 0.0 }
 0x7bc   : > { %v3313_v11 = vmax.f32 %v3098_v20, 0.0  ;;  %5145 = vmatmul.mubr.bf16.gmra.mrb[248].mxu1 %v15820_v36  ;;  %v3315_v7 = vmax.f32 %v3211_v12, 0.0  ;;  %5242 = vmatmul.mubr.bf16.gmra.mrb[0].mxu0 %v15822_v37  ;;  %v3300_v57 = vmax.f32 %v3209_v3, 0.0  ;;  %v13532_v36 = vld [vmem:[%s19165_s13 + $0x338] sm:$0xff]  }
 0x7bd   : > { %v3314_v62 = vmax.f32 %v3100_v53, 0.0  ;;  %5152 = vmatprep.mubr.bf16.mxu1 %v15844_v55  ;;  %v3316_v20 = vmax.f32 %v3213_v24, 0.0  ;;  %5249 = vmatprep.mubr.bf16.mxu0 %v15847_v6  ;;  %v13533_v37 = vld [vmem:[%s19165_s13 + $0x3b8] sm:$0xff]  }
 0x7be   : > { %v16019_v43 = vpack.c.bf16 %v3313_v11, %v3297_v63  ;;  %12366 = vmatpush3.bf16.msra.mxu1 %v13528_v16  ;;  %v16025_v46 = vpack.c.bf16 %v3315_v7, %v3299_v18  ;;  %12430 = vmatpush3.bf16.msra.mxu0 %v13529_v48 }
 0x7bf   : > { %v3103_v45 = vpop.f32.mrb[144].mxu1  ;;  %v16027_v35 = vpack.c.bf16 %v3314_v62, %v3298_v9  ;;  %12367 = vmatprep.subr.bf16.mxu1 %v13530_v2  ;;  %v3216_v3 = vpop.f32.mrb[152].mxu0  ;;  %v16033_v52 = vpack.c.bf16 %v3316_v20, %v3300_v57  ;;  %12431 = vmatprep.subr.bf16.mxu0 %v13531_v44 }
 0x7c0   : > { %v3104_v55 = vadd.f32 %v3103_v45, %v15943_v61  ;;  %v3105_v6 = vpop.f32.mrb[145].mxu1  ;;  %v3217_v16 = vadd.f32 %v3216_v3, %v15952_v30  ;;  %v3218_v53 = vpop.f32.mrb[153].mxu0 }
 0x7c1   : > { %v3106_v12 = vadd.f32 %v3105_v6, %v15964_v13  ;;  %v3107_v49 = vpop.f32.mrb[146].mxu1  ;;  %v3219_v48 = vadd.f32 %v3218_v53, %v15976_v50  ;;  %v3220_v63 = vpop.f32.mrb[154].mxu0 }
 0x7c2   : > { %v3108_v2 = vadd.f32 %v3107_v49, %v15943_v61  ;;  %v3109_v11 = vpop.f32.mrb[147].mxu1  ;;  %12368 = vmatpush3.bf16.msra.mxu1 %v13532_v36  ;;  %v3221_v24 = vadd.f32 %v3220_v63, %v15952_v30  ;;  %v3222_v9 = vpop.f32.mrb[155].mxu0  ;;  %12432 = vmatpush3.bf16.msra.mxu0 %v13533_v37  ;;  %v3329_v44 = vmax.f32 %v3104_v55, 0.0  ;;  %v3331_v57 = vmax.f32 %v3217_v16, 0.0 }
 0x7c3   : > { %v3110_v18 = vadd.f32 %v3109_v11, %v15964_v13  ;;  %v3223_v62 = vadd.f32 %v3222_v9, %v15976_v50  ;;  %v3330_v20 = vmax.f32 %v3106_v12, 0.0  ;;  %v3332_v36 = vmax.f32 %v3219_v48, 0.0 }
 0x7c4   : > { %v3345_v7 = vmax.f32 %v3108_v2, 0.0  ;;  %5153 = vmatmul.mubr.bf16.gmra.mrb[252].mxu1 %v15840_v23  ;;  %v3347_v45 = vmax.f32 %v3221_v24, 0.0  ;;  %5250 = vmatmul.mubr.bf16.gmra.mrb[4].mxu0 %v15842_v17 }
 0x7c5   : > { %v3346_v3 = vmax.f32 %v3110_v18, 0.0  ;;  %5160 = vmatprep.mubr.bf16.mxu1 %v15885_v5  ;;  %v3348_v53 = vmax.f32 %v3223_v62, 0.0  ;;  %5257 = vmatprep.mubr.bf16.mxu0 %v15888_v31 }
 0x7c6   : > { %v16045_v6 = vpack.c.bf16 %v3345_v7, %v3329_v44  ;;  %v16048_v37 = vpack.c.bf16 %v3347_v45, %v3331_v57 }
 0x7c7   : > { %v3113_v55 = vpop.f32.mrb[148].mxu1  ;;  %v16050_v49 = vpack.c.bf16 %v3346_v3, %v3330_v20  ;;  %v3226_v16 = vpop.f32.mrb[156].mxu0  ;;  %v16053_v2 = vpack.c.bf16 %v3348_v53, %v3332_v36 }
 0x7c8   : > { %v3114_v23 = vadd.f32 %v3113_v55, %v15943_v61  ;;  %v3115_v12 = vpop.f32.mrb[149].mxu1  ;;  %v3227_v17 = vadd.f32 %v3226_v16, %v15952_v30  ;;  %v3228_v48 = vpop.f32.mrb[157].mxu0 }
 0x7c9   : > { %v3116_v5 = vadd.f32 %v3115_v12, %v15964_v13  ;;  %v3117_v63 = vpop.f32.mrb[150].mxu1  ;;  %v3229_v11 = vadd.f32 %v3228_v48, %v15976_v50  ;;  %v3230_v24 = vpop.f32.mrb[158].mxu0 }
 0x7ca   : > { %v3118_v31 = vadd.f32 %v3117_v63, %v15943_v61  ;;  %v3119_v18 = vpop.f32.mrb[151].mxu1  ;;  %v3231_v9 = vadd.f32 %v3230_v24, %v15952_v30  ;;  %v3232_v7 = vpop.f32.mrb[159].mxu0  ;;  %v3361_v62 = vmax.f32 %v3114_v23, 0.0  ;;  %v3363_v45 = vmax.f32 %v3227_v17, 0.0 }
 0x7cb   : > { %v3120_v44 = vadd.f32 %v3119_v18, %v15964_v13  ;;  %v3233_v20 = vadd.f32 %v3232_v7, %v15976_v50  ;;  %v3362_v3 = vmax.f32 %v3116_v5, 0.0  ;;  %v3364_v55 = vmax.f32 %v3229_v11, 0.0 }
 0x7cc   : > { %v3377_v57 = vmax.f32 %v3118_v31, 0.0  ;;  %5161 = vmatmul.mubr.bf16.gmra.mrb[0].mxu1 %v15871_v4  ;;  %v3379_v36 = vmax.f32 %v3231_v9, 0.0  ;;  %5258 = vmatmul.mubr.bf16.gmra.mrb[8].mxu0 %v15877_v25 }
 0x7cd   : > { %v3378_v53 = vmax.f32 %v3120_v44, 0.0  ;;  %5168 = vmatprep.mubr.bf16.mxu1 %v15923_v27  ;;  %v3380_v12 = vmax.f32 %v3233_v20, 0.0  ;;  %5265 = vmatprep.mubr.bf16.mxu0 %v15932_v59 }
 0x7ce   : > { %v16065_v16 = vpack.c.bf16 %v3377_v57, %v3361_v62  ;;  %v16068_v23 = vpack.c.bf16 %v3379_v36, %v3363_v45 }
 0x7cf   : > { %v3123_v48 = vpop.f32.mrb[152].mxu1  ;;  %v16070_v63 = vpack.c.bf16 %v3378_v53, %v3362_v3  ;;  %v3236_v17 = vpop.f32.mrb[160].mxu0  ;;  %v16073_v31 = vpack.c.bf16 %v3380_v12, %v3364_v55 }
 0x7d0   : > { %v3124_v4 = vadd.f32 %v3123_v48, %v15943_v61  ;;  %v3125_v5 = vpop.f32.mrb[153].mxu1  ;;  %v3237_v25 = vadd.f32 %v3236_v17, %v15952_v30  ;;  %v3238_v11 = vpop.f32.mrb[161].mxu0 }
 0x7d1   : > { %v3126_v27 = vadd.f32 %v3125_v5, %v15964_v13  ;;  %v3127_v24 = vpop.f32.mrb[154].mxu1  ;;  %v3239_v18 = vadd.f32 %v3238_v11, %v15976_v50  ;;  %v3240_v9 = vpop.f32.mrb[162].mxu0 }
 0x7d2   : > { %v3128_v59 = vadd.f32 %v3127_v24, %v15943_v61  ;;  %v3129_v44 = vpop.f32.mrb[155].mxu1  ;;  %v3241_v7 = vadd.f32 %v3240_v9, %v15952_v30  ;;  %v3242_v57 = vpop.f32.mrb[163].mxu0  ;;  %v3393_v20 = vmax.f32 %v3124_v4, 0.0  ;;  %v3395_v36 = vmax.f32 %v3237_v25, 0.0 }
 0x7d3   : > { %v3130_v62 = vadd.f32 %v3129_v44, %v15964_v13  ;;  %v3243_v3 = vadd.f32 %v3242_v57, %v15976_v50  ;;  %v3394_v53 = vmax.f32 %v3126_v27, 0.0  ;;  %v3396_v48 = vmax.f32 %v3239_v18, 0.0 }
 0x7d4   : > { %v3409_v45 = vmax.f32 %v3128_v59, 0.0  ;;  %5169 = vmatmul.mubr.bf16.gmra.mrb[4].mxu1 %v15915_v10  ;;  %v3411_v55 = vmax.f32 %v3241_v7, 0.0  ;;  %5266 = vmatmul.mubr.bf16.gmra.mrb[12].mxu0 %v15921_v54 }
 0x7d5   : > { %v3410_v12 = vmax.f32 %v3130_v62, 0.0  ;;  %5176 = vmatprep.mubr.bf16.mxu1 %v15983_v51  ;;  %v3412_v5 = vmax.f32 %v3243_v3, 0.0  ;;  %5273 = vmatprep.mubr.bf16.mxu0 %v15992_v60 }
 0x7d6   : > { %v16085_v17 = vpack.c.bf16 %v3409_v45, %v3393_v20  ;;  %v16088_v4 = vpack.c.bf16 %v3411_v55, %v3395_v36 }
 0x7d7   : > { %v3133_v11 = vpop.f32.mrb[156].mxu1  ;;  %v16090_v24 = vpack.c.bf16 %v3410_v12, %v3394_v53  ;;  %v3246_v25 = vpop.f32.mrb[164].mxu0  ;;  %v16093_v59 = vpack.c.bf16 %v3412_v5, %v3396_v48 }
 0x7d8   : > { %v3134_v10 = vadd.f32 %v3133_v11, %v15943_v61  ;;  %v3135_v27 = vpop.f32.mrb[157].mxu1  ;;  %v3247_v54 = vadd.f32 %v3246_v25, %v15952_v30  ;;  %v3248_v18 = vpop.f32.mrb[165].mxu0 }
 0x7d9   : > { %v3136_v51 = vadd.f32 %v3135_v27, %v15964_v13  ;;  %v3137_v9 = vpop.f32.mrb[158].mxu1  ;;  %v3249_v44 = vadd.f32 %v3248_v18, %v15976_v50  ;;  %v3250_v7 = vpop.f32.mrb[166].mxu0 }
 0x7da   : > { %v3138_v60 = vadd.f32 %v3137_v9, %v15943_v61  ;;  %v3139_v62 = vpop.f32.mrb[159].mxu1  ;;  %v3251_v57 = vadd.f32 %v3250_v7, %v15952_v30  ;;  %v3252_v45 = vpop.f32.mrb[167].mxu0  ;;  %v3425_v3 = vmax.f32 %v3134_v10, 0.0  ;;  %v3427_v55 = vmax.f32 %v3247_v54, 0.0 }
 0x7db   : > { %v3140_v20 = vadd.f32 %v3139_v62, %v15964_v13  ;;  %v3253_v53 = vadd.f32 %v3252_v45, %v15976_v50  ;;  %v3426_v12 = vmax.f32 %v3136_v51, 0.0  ;;  %v3428_v11 = vmax.f32 %v3249_v44, 0.0 }
 0x7dc   : > { %v3441_v36 = vmax.f32 %v3138_v60, 0.0  ;;  %5177 = vmatmul.mubr.bf16.gmra.mrb[8].mxu1 %v15971_v42  ;;  %v3443_v48 = vmax.f32 %v3251_v57, 0.0  ;;  %5274 = vmatmul.mubr.bf16.gmra.mrb[16].mxu0 %v15981_v29 }
 0x7dd   : > { %v3442_v5 = vmax.f32 %v3140_v20, 0.0  ;;  %5314 = vmatprep.mubr.bf16.mxu1 %v16027_v35  ;;  %v3444_v27 = vmax.f32 %v3253_v53, 0.0  ;;  %5411 = vmatprep.mubr.bf16.mxu0 %v16033_v52 }
 0x7de   : > { %v16105_v25 = vpack.c.bf16 %v3441_v36, %v3425_v3  ;;  %v16108_v10 = vpack.c.bf16 %v3443_v48, %v3427_v55 }
 0x7df   : > { %v3143_v18 = vpop.f32.mrb[160].mxu1  ;;  %v16110_v9 = vpack.c.bf16 %v3442_v5, %v3426_v12  ;;  %v3256_v54 = vpop.f32.mrb[168].mxu0  ;;  %v16113_v60 = vpack.c.bf16 %v3444_v27, %v3428_v11 }
 0x7e0   : > { %v3144_v42 = vadd.f32 %v3143_v18, %v15943_v61  ;;  %v3145_v51 = vpop.f32.mrb[161].mxu1  ;;  %v3257_v29 = vadd.f32 %v3256_v54, %v15952_v30  ;;  %v3258_v44 = vpop.f32.mrb[169].mxu0 }
 0x7e1   : > { %v3146_v35 = vadd.f32 %v3145_v51, %v15964_v13  ;;  %v3147_v7 = vpop.f32.mrb[162].mxu1  ;;  %v3259_v62 = vadd.f32 %v3258_v44, %v15976_v50  ;;  %v3260_v57 = vpop.f32.mrb[170].mxu0 }
 0x7e2   : > { %v3148_v52 = vadd.f32 %v3147_v7, %v15943_v61  ;;  %v3149_v20 = vpop.f32.mrb[163].mxu1  ;;  %v3261_v45 = vadd.f32 %v3260_v57, %v15952_v30  ;;  %v3262_v36 = vpop.f32.mrb[171].mxu0  ;;  %v3457_v53 = vmax.f32 %v3144_v42, 0.0  ;;  %v3459_v48 = vmax.f32 %v3257_v29, 0.0 }
 0x7e3   : > { %v3150_v3 = vadd.f32 %v3149_v20, %v15964_v13  ;;  %v3263_v12 = vadd.f32 %v3262_v36, %v15976_v50  ;;  %v3458_v5 = vmax.f32 %v3146_v35, 0.0  ;;  %v3460_v18 = vmax.f32 %v3259_v62, 0.0 }
 0x7e4   : > { %v3473_v55 = vmax.f32 %v3148_v52, 0.0  ;;  %5315 = vmatmul.mubr.bf16.vlgmr.msra.gmra.mrb[12].mxu1 %v16019_v43  ;;  %v3475_v11 = vmax.f32 %v3261_v45, 0.0  ;;  %5412 = vmatmul.mubr.bf16.vlgmr.msra.gmra.mrb[20].mxu0 %v16025_v46 }
 0x7e5   : > { %v3474_v27 = vmax.f32 %v3150_v3, 0.0  ;;  %5322 = vmatprep.mubr.bf16.mxu1 %v16050_v49  ;;  %v3476_v51 = vmax.f32 %v3263_v12, 0.0  ;;  %5419 = vmatprep.mubr.bf16.mxu0 %v16053_v2 }
 0x7e6   : > { %v16125_v54 = vpack.c.bf16 %v3473_v55, %v3457_v53  ;;  %v16128_v42 = vpack.c.bf16 %v3475_v11, %v3459_v48 }
 0x7e7   : > { %v3153_v44 = vpop.f32.mrb[164].mxu1  ;;  %v16130_v7 = vpack.c.bf16 %v3474_v27, %v3458_v5  ;;  %v3266_v29 = vpop.f32.mrb[172].mxu0  ;;  %v16133_v52 = vpack.c.bf16 %v3476_v51, %v3460_v18 }
 0x7e8   : > { %v3154_v43 = vadd.f32 %v3153_v44, %v15943_v61  ;;  %v3155_v35 = vpop.f32.mrb[165].mxu1  ;;  %v3267_v46 = vadd.f32 %v3266_v29, %v15952_v30  ;;  %v3268_v62 = vpop.f32.mrb[173].mxu0 }
 0x7e9   : > { %v3156_v49 = vadd.f32 %v3155_v35, %v15964_v13  ;;  %v3157_v57 = vpop.f32.mrb[166].mxu1  ;;  %v3269_v20 = vadd.f32 %v3268_v62, %v15976_v50  ;;  %v3270_v45 = vpop.f32.mrb[174].mxu0 }
 0x7ea   : > { %v3158_v2 = vadd.f32 %v3157_v57, %v15943_v61  ;;  %v3159_v3 = vpop.f32.mrb[167].mxu1  ;;  %v3271_v36 = vadd.f32 %v3270_v45, %v15952_v30  ;;  %v3272_v55 = vpop.f32.mrb[175].mxu0  ;;  %v3489_v12 = vmax.f32 %v3154_v43, 0.0  ;;  %v3491_v11 = vmax.f32 %v3267_v46, 0.0 }
 0x7eb   : > { %v3160_v53 = vadd.f32 %v3159_v3, %v15964_v13  ;;  %v3273_v5 = vadd.f32 %v3272_v55, %v15976_v50  ;;  %v3490_v27 = vmax.f32 %v3156_v49, 0.0  ;;  %v3492_v44 = vmax.f32 %v3269_v20, 0.0 }
 0x7ec   : > { %v3505_v48 = vmax.f32 %v3158_v2, 0.0  ;;  %5323 = vmatmul.mubr.bf16.gmra.mrb[16].mxu1 %v16045_v6  ;;  %v3507_v18 = vmax.f32 %v3271_v36, 0.0  ;;  %5420 = vmatmul.mubr.bf16.gmra.mrb[24].mxu0 %v16048_v37 }
 0x7ed   : > { %v3506_v51 = vmax.f32 %v3160_v53, 0.0  ;;  %5330 = vmatprep.mubr.bf16.mxu1 %v16070_v63  ;;  %v3508_v35 = vmax.f32 %v3273_v5, 0.0  ;;  %5427 = vmatprep.mubr.bf16.mxu0 %v16073_v31 }
 0x7ee   : > { %v16145_v29 = vpack.c.bf16 %v3505_v48, %v3489_v12  ;;  %v16148_v43 = vpack.c.bf16 %v3507_v18, %v3491_v11 }
 0x7ef   : > { %v3163_v62 = vpop.f32.mrb[168].mxu1  ;;  %v16150_v57 = vpack.c.bf16 %v3506_v51, %v3490_v27  ;;  %v3276_v46 = vpop.f32.mrb[176].mxu0  ;;  %v16153_v2 = vpack.c.bf16 %v3508_v35, %v3492_v44 }
 0x7f0   : > { %v3164_v6 = vadd.f32 %v3163_v62, %v15943_v61  ;;  %v3165_v49 = vpop.f32.mrb[169].mxu1  ;;  %v3277_v37 = vadd.f32 %v3276_v46, %v15952_v30  ;;  %v3278_v20 = vpop.f32.mrb[177].mxu0  ;;  %v16175_v46 = vld [vmem:[%s19166_s14] ss:$0 sm:$0xff] }
 0x7f1   : > { %v3166_v63 = vadd.f32 %v3165_v49, %v15964_v13  ;;  %v3167_v45 = vpop.f32.mrb[170].mxu1  ;;  %v3279_v3 = vadd.f32 %v3278_v20, %v15976_v50  ;;  %v3280_v36 = vpop.f32.mrb[178].mxu0 }
 0x7f2   : > { %v3168_v31 = vadd.f32 %v3167_v45, %v15943_v61  ;;  %v3169_v53 = vpop.f32.mrb[171].mxu1  ;;  %v3281_v55 = vadd.f32 %v3280_v36, %v15952_v30  ;;  %v3282_v48 = vpop.f32.mrb[179].mxu0  ;;  %v3521_v5 = vmax.f32 %v3164_v6, 0.0  ;;  %v3523_v18 = vmax.f32 %v3277_v37, 0.0 }
 0x7f3   : > { %v3170_v12 = vadd.f32 %v3169_v53, %v15964_v13  ;;  %v3283_v27 = vadd.f32 %v3282_v48, %v15976_v50  ;;  %v3522_v51 = vmax.f32 %v3166_v63, 0.0  ;;  %v3524_v61 = vmax.f32 %v3279_v3, 0.0 }
 0x7f4   : > { %v3537_v11 = vmax.f32 %v3168_v31, 0.0  ;;  %5331 = vmatmul.mubr.bf16.gmra.mrb[20].mxu1 %v16065_v16  ;;  %v3539_v44 = vmax.f32 %v3281_v55, 0.0  ;;  %5428 = vmatmul.mubr.bf16.gmra.mrb[28].mxu0 %v16068_v23 }
 0x7f5   : > { %v3538_v35 = vmax.f32 %v3170_v12, 0.0  ;;  %5338 = vmatprep.mubr.bf16.mxu1 %v16090_v24  ;;  %v3540_v30 = vmax.f32 %v3283_v27, 0.0  ;;  %5435 = vmatprep.mubr.bf16.mxu0 %v16093_v59 }
 0x7f6   : > { %v16165_v62 = vpack.c.bf16 %v3537_v11, %v3521_v5  ;;  %v16168_v13 = vpack.c.bf16 %v3539_v44, %v3523_v18 }
 0x7f7   : > { %v11985_v6 = vpop.f32.mrb[172].mxu1  ;;  %v16170_v50 = vpack.c.bf16 %v3538_v35, %v3522_v51  ;;  %v12049_v16 = vpop.f32.mrb[180].mxu0  ;;  %v16177_v49 = vpack.c.bf16 %v3540_v30, %v3524_v61 }
 0x7f8   : > { %v11986_v23 = vpop.f32.mrb[173].mxu1  ;;  %v12050_v37 = vpop.f32.mrb[181].mxu0 }
 0x7f9   : > { %v11987_v24 = vadd.f32 %v11986_v23, %v11985_v6  ;;  %v11988_v63 = vpop.f32.mrb[174].mxu1  ;;  %v12051_v20 = vadd.f32 %v12050_v37, %v12049_v16  ;;  %v12052_v45 = vpop.f32.mrb[182].mxu0 }
 0x7fa   : > { %v11989_v59 = vpop.f32.mrb[175].mxu1  ;;  %v12053_v36 = vpop.f32.mrb[183].mxu0 }
 0x7fb   : > { %v4735_v3 = vadd.f32 %v11987_v24, %v16175_v46  ;;  %v11990_v31 = vadd.f32 %v11989_v59, %v11988_v63  ;;  %v12054_v53 = vadd.f32 %v12053_v36, %v12052_v45 }
 0x7fc   : > { %5339 = vmatmul.mubr.bf16.gmra.mrb[24].mxu1 %v16085_v17  ;;  %5436 = vmatmul.mubr.bf16.gmra.mrb[32].mxu0 %v16088_v4 }
 0x7fd   : > { %v16181_v55 = vadd.f32 %v12051_v20, %v4735_v3  ;;  %v4738_v12 = vadd.f32 %v11990_v31, %v16175_v46  ;;  %5346 = vmatprep.mubr.bf16.mxu1 %v16110_v9  ;;  %5443 = vmatprep.mubr.bf16.mxu0 %v16113_v60 }
 0x7ff   : > { %v16187_v48 = vadd.f32 %v12054_v53, %v4738_v12  ;;  %v11991_v5 = vpop.f32.mrb[176].mxu1  ;;  %v12055_v11 = vpop.f32.mrb[184].mxu0 }
 0x800   : > { %v11992_v27 = vpop.f32.mrb[177].mxu1  ;;  %v12056_v51 = vpop.f32.mrb[185].mxu0 }
 0x801   : > { %v11993_v18 = vadd.f32 %v11992_v27, %v11991_v5  ;;  %v11994_v44 = vpop.f32.mrb[178].mxu1  ;;  %v12057_v35 = vadd.f32 %v12056_v51, %v12055_v11  ;;  %v12058_v17 = vpop.f32.mrb[186].mxu0 }
 0x802   : > { %v11995_v61 = vpop.f32.mrb[179].mxu1  ;;  %v12059_v16 = vpop.f32.mrb[187].mxu0 }
 0x803   : > { %v4743_v30 = vadd.f32 %v11993_v18, %v16175_v46  ;;  %v11996_v6 = vadd.f32 %v11995_v61, %v11994_v44  ;;  %v12060_v4 = vadd.f32 %v12059_v16, %v12058_v17 }
 0x804   : > { %5347 = vmatmul.mubr.bf16.gmra.mrb[28].mxu1 %v16105_v25  ;;  %5444 = vmatmul.mubr.bf16.gmra.mrb[36].mxu0 %v16108_v10 }
 0x805   : > { %v16191_v9 = vadd.f32 %v12057_v35, %v4743_v30  ;;  %v4746_v60 = vadd.f32 %v11996_v6, %v16175_v46  ;;  %5354 = vmatprep.mubr.bf16.mxu1 %v16130_v7  ;;  %5451 = vmatprep.mubr.bf16.mxu0 %v16133_v52 }
 0x807   : > { %v16197_v23 = vadd.f32 %v12060_v4, %v4746_v60  ;;  %v11997_v24 = vpop.f32.mrb[180].mxu1  ;;  %v12061_v37 = vpop.f32.mrb[188].mxu0 }
 0x808   : > { %v11998_v63 = vpop.f32.mrb[181].mxu1  ;;  %v12062_v45 = vpop.f32.mrb[189].mxu0 }
 0x809   : > { %v11999_v20 = vadd.f32 %v11998_v63, %v11997_v24  ;;  %v12000_v59 = vpop.f32.mrb[182].mxu1  ;;  %v12063_v3 = vadd.f32 %v12062_v45, %v12061_v37  ;;  %v12064_v25 = vpop.f32.mrb[190].mxu0 }
 0x80a   : > { %v12001_v31 = vpop.f32.mrb[183].mxu1  ;;  %v12065_v12 = vpop.f32.mrb[191].mxu0 }
 0x80b   : > { %v4751_v36 = vadd.f32 %v11999_v20, %v16175_v46  ;;  %v12002_v53 = vadd.f32 %v12001_v31, %v12000_v59  ;;  %v12066_v10 = vadd.f32 %v12065_v12, %v12064_v25 }
 0x80c   : > { %5355 = vmatmul.mubr.bf16.gmra.mrb[32].mxu1 %v16125_v54  ;;  %5452 = vmatmul.mubr.bf16.gmra.mrb[40].mxu0 %v16128_v42 }
 0x80d   : > { %v16201_v7 = vadd.f32 %v12063_v3, %v4751_v36  ;;  %v4754_v52 = vadd.f32 %v12002_v53, %v16175_v46  ;;  %5362 = vmatprep.mubr.bf16.mxu1 %v16150_v57  ;;  %5459 = vmatprep.mubr.bf16.mxu0 %v16153_v2 }
 0x80f   : > { %v16207_v5 = vadd.f32 %v12066_v10, %v4754_v52  ;;  %v12003_v11 = vpop.f32.mrb[184].mxu1  ;;  %v12067_v27 = vpop.f32.mrb[192].mxu0 }
 0x810   : > { %v12004_v18 = vpop.f32.mrb[185].mxu1  ;;  %v12068_v44 = vpop.f32.mrb[193].mxu0 }
 0x811   : > { %v12005_v51 = vadd.f32 %v12004_v18, %v12003_v11  ;;  %v12006_v35 = vpop.f32.mrb[186].mxu1  ;;  %v12069_v17 = vadd.f32 %v12068_v44, %v12067_v27  ;;  %v12070_v54 = vpop.f32.mrb[194].mxu0 }
 0x812   : > { %v12007_v61 = vpop.f32.mrb[187].mxu1  ;;  %v12071_v16 = vpop.f32.mrb[195].mxu0 }
 0x813   : > { %v4759_v30 = vadd.f32 %v12005_v51, %v16175_v46  ;;  %v12008_v6 = vadd.f32 %v12007_v61, %v12006_v35  ;;  %v12072_v42 = vadd.f32 %v12071_v16, %v12070_v54 }
 0x814   : > { %5363 = vmatmul.mubr.bf16.gmra.mrb[36].mxu1 %v16145_v29  ;;  %5460 = vmatmul.mubr.bf16.gmra.mrb[44].mxu0 %v16148_v43 }
 0x815   : > { %v16211_v57 = vadd.f32 %v12069_v17, %v4759_v30  ;;  %v4762_v2 = vadd.f32 %v12008_v6, %v16175_v46  ;;  %5370 = vmatprep.mubr.bf16.mxu1 %v16170_v50  ;;  %5467 = vmatprep.mubr.bf16.mxu0 %v16177_v49 }
 0x817   : > { %v16217_v4 = vadd.f32 %v12072_v42, %v4762_v2  ;;  %v12009_v60 = vpop.f32.mrb[188].mxu1  ;;  %v12073_v24 = vpop.f32.mrb[196].mxu0 }
 0x818   : > { %v12010_v37 = vpop.f32.mrb[189].mxu1  ;;  %v12074_v20 = vpop.f32.mrb[197].mxu0 }
 0x819   : > { %v12011_v63 = vadd.f32 %v12010_v37, %v12009_v60  ;;  %v12012_v45 = vpop.f32.mrb[190].mxu1  ;;  %v12075_v59 = vadd.f32 %v12074_v20, %v12073_v24  ;;  %v12076_v29 = vpop.f32.mrb[198].mxu0 }
 0x81a   : > { %v12013_v3 = vpop.f32.mrb[191].mxu1  ;;  %v12077_v36 = vpop.f32.mrb[199].mxu0 }
 0x81b   : > { %v4767_v25 = vadd.f32 %v12011_v63, %v16175_v46  ;;  %v12014_v31 = vadd.f32 %v12013_v3, %v12012_v45  ;;  %v12078_v43 = vadd.f32 %v12077_v36, %v12076_v29 }
 0x81c   : > { %5371 = vmatmul.mubr.bf16.gmra.mrb[40].mxu1 %v16165_v62  ;;  %5468 = vmatmul.mubr.bf16.gmra.mrb[48].mxu0 %v16168_v13 }
 0x81d   : > { %v16221_v50 = vadd.f32 %v12075_v59, %v4767_v25  ;;  %v4770_v49 = vadd.f32 %v12014_v31, %v16175_v46 }
 0x81f   : > { %v16225_v53 = vadd.f32 %v12078_v43, %v4770_v49  ;;  %v12015_v12 = vpop.f32.mrb[192].mxu1  ;;  %v12079_v10 = vpop.f32.mrb[200].mxu0 }
 0x820   : > { %v12016_v52 = vpop.f32.mrb[193].mxu1  ;;  %v12080_v27 = vpop.f32.mrb[201].mxu0 }
 0x821   : > { %v12017_v11 = vadd.f32 %v12016_v52, %v12015_v12  ;;  %v12018_v18 = vpop.f32.mrb[194].mxu1  ;;  %v12081_v51 = vadd.f32 %v12080_v27, %v12079_v10  ;;  %v12082_v44 = vpop.f32.mrb[202].mxu0 }
 0x822   : > { %v12019_v35 = vpop.f32.mrb[195].mxu1  ;;  %v12083_v54 = vpop.f32.mrb[203].mxu0 }
 0x823   : > { %v4775_v17 = vadd.f32 %v12017_v11, %v16175_v46  ;;  %v12020_v62 = vadd.f32 %v12019_v35, %v12018_v18  ;;  %v12084_v61 = vadd.f32 %v12083_v54, %v12082_v44 }
 0x825   : > { %v16228_v30 = vadd.f32 %v12081_v51, %v4775_v17  ;;  %v4778_v13 = vadd.f32 %v12020_v62, %v16175_v46 }
 0x827   : > { %v16231_v6 = vadd.f32 %v12084_v61, %v4778_v13  ;;  %v12021_v16 = vpop.f32.mrb[196].mxu1  ;;  %v12085_v42 = vpop.f32.mrb[204].mxu0 }
 0x828   : > { %v12022_v2 = vpop.f32.mrb[197].mxu1  ;;  %v12086_v24 = vpop.f32.mrb[205].mxu0 }
 0x829   : > { %v12023_v60 = vadd.f32 %v12022_v2, %v12021_v16  ;;  %v12024_v37 = vpop.f32.mrb[198].mxu1  ;;  %v12087_v63 = vadd.f32 %v12086_v24, %v12085_v42  ;;  %v12088_v20 = vpop.f32.mrb[206].mxu0 }
 0x82a   : > { %v12025_v45 = vpop.f32.mrb[199].mxu1  ;;  %v12089_v3 = vpop.f32.mrb[207].mxu0 }
 0x82b   : > { %v4783_v59 = vadd.f32 %v12023_v60, %v16175_v46  ;;  %v12026_v29 = vadd.f32 %v12025_v45, %v12024_v37  ;;  %v12090_v25 = vadd.f32 %v12089_v3, %v12088_v20 }
 0x82d   : > { %v16234_v31 = vadd.f32 %v12087_v63, %v4783_v59  ;;  %v4786_v36 = vadd.f32 %v12026_v29, %v16175_v46 }
 0x82f   : > { %v16237_v43 = vadd.f32 %v12090_v25, %v4786_v36  ;;  %v12027_v49 = vpop.f32.mrb[200].mxu1  ;;  %v12091_v12 = vpop.f32.mrb[208].mxu0 }
 0x830   : > { %v12028_v10 = vpop.f32.mrb[201].mxu1  ;;  %v12092_v11 = vpop.f32.mrb[209].mxu0 }
 0x831   : > { %v12029_v52 = vadd.f32 %v12028_v10, %v12027_v49  ;;  %v12030_v27 = vpop.f32.mrb[202].mxu1  ;;  %v12093_v18 = vadd.f32 %v12092_v11, %v12091_v12  ;;  %v12094_v51 = vpop.f32.mrb[210].mxu0 }
 0x832   : > { %v12031_v44 = vpop.f32.mrb[203].mxu1  ;;  %v12095_v62 = vpop.f32.mrb[211].mxu0 }
 0x833   : > { %v4791_v35 = vadd.f32 %v12029_v52, %v16175_v46  ;;  %v12032_v17 = vadd.f32 %v12031_v44, %v12030_v27  ;;  %v12096_v54 = vadd.f32 %v12095_v62, %v12094_v51 }
 0x835   : > { %v16240_v61 = vadd.f32 %v12093_v18, %v4791_v35  ;;  %v4794_v13 = vadd.f32 %v12032_v17, %v16175_v46 }
 0x837   : > { %v16243_v16 = vadd.f32 %v12096_v54, %v4794_v13  ;;  %v12113_v42 = vpop.f32.mrb[204].mxu1  ;;  %v12177_v2 = vpop.f32.mrb[212].mxu0 }
 0x838   : > { %v12114_v60 = vpop.f32.mrb[205].mxu1  ;;  %v12178_v37 = vpop.f32.mrb[213].mxu0 }
 0x839   : > { %v12115_v24 = vadd.f32 %v12114_v60, %v12113_v42  ;;  %v12116_v63 = vpop.f32.mrb[206].mxu1  ;;  %v12179_v20 = vadd.f32 %v12178_v37, %v12177_v2  ;;  %v12180_v45 = vpop.f32.mrb[214].mxu0 }
 0x83a   : > { %v12117_v59 = vpop.f32.mrb[207].mxu1  ;;  %v12181_v25 = vpop.f32.mrb[215].mxu0 }
 0x83b   : > { %v4929_v29 = vadd.f32 %v12115_v24, %v16181_v55  ;;  %v12118_v3 = vadd.f32 %v12117_v59, %v12116_v63  ;;  %v12182_v36 = vadd.f32 %v12181_v25, %v12180_v45 }
 0x83d   : > { %v16246_v49 = vadd.f32 %v12179_v20, %v4929_v29  ;;  %v4932_v46 = vadd.f32 %v12118_v3, %v16187_v48 }
 0x83f   : > { %v16249_v12 = vadd.f32 %v12182_v36, %v4932_v46  ;;  %v12119_v10 = vpop.f32.mrb[208].mxu1  ;;  %v12183_v52 = vpop.f32.mrb[216].mxu0 }
 0x840   : > { %v12120_v11 = vpop.f32.mrb[209].mxu1  ;;  %v12184_v18 = vpop.f32.mrb[217].mxu0 }
 0x841   : > { %v12121_v27 = vadd.f32 %v12120_v11, %v12119_v10  ;;  %v12122_v51 = vpop.f32.mrb[210].mxu1  ;;  %v12185_v44 = vadd.f32 %v12184_v18, %v12183_v52  ;;  %v12186_v35 = vpop.f32.mrb[218].mxu0 }
 0x842   : > { %v12123_v17 = vpop.f32.mrb[211].mxu1  ;;  %v12187_v54 = vpop.f32.mrb[219].mxu0 }
 0x843   : > { %v4937_v55 = vadd.f32 %v12121_v27, %v16191_v9  ;;  %v12124_v62 = vadd.f32 %v12123_v17, %v12122_v51  ;;  %v12188_v13 = vadd.f32 %v12187_v54, %v12186_v35 }
 0x845   : > { %v16252_v42 = vadd.f32 %v12185_v44, %v4937_v55  ;;  %v4940_v48 = vadd.f32 %v12124_v62, %v16197_v23 }
 0x847   : > { %v16255_v2 = vadd.f32 %v12188_v13, %v4940_v48  ;;  %v12125_v60 = vpop.f32.mrb[212].mxu1  ;;  %v12189_v24 = vpop.f32.mrb[220].mxu0 }
 0x848   : > { %v12126_v37 = vpop.f32.mrb[213].mxu1  ;;  %v12190_v20 = vpop.f32.mrb[221].mxu0 }
 0x849   : > { %v12127_v63 = vadd.f32 %v12126_v37, %v12125_v60  ;;  %v12128_v45 = vpop.f32.mrb[214].mxu1  ;;  %v12191_v59 = vadd.f32 %v12190_v20, %v12189_v24  ;;  %v12192_v29 = vpop.f32.mrb[222].mxu0 }
 0x84a   : > { %v12129_v3 = vpop.f32.mrb[215].mxu1  ;;  %v12193_v36 = vpop.f32.mrb[223].mxu0 }
 0x84b   : > { %v4945_v9 = vadd.f32 %v12127_v63, %v16201_v7  ;;  %v12130_v25 = vadd.f32 %v12129_v3, %v12128_v45  ;;  %v12194_v46 = vadd.f32 %v12193_v36, %v12192_v29 }
 0x84d   : > { %v16258_v10 = vadd.f32 %v12191_v59, %v4945_v9  ;;  %v4948_v23 = vadd.f32 %v12130_v25, %v16207_v5 }
 0x84f   : > { %v16261_v52 = vadd.f32 %v12194_v46, %v4948_v23  ;;  %v12131_v11 = vpop.f32.mrb[216].mxu1  ;;  %v12195_v27 = vpop.f32.mrb[224].mxu0 }
 0x850   : > { %v12132_v18 = vpop.f32.mrb[217].mxu1  ;;  %v12196_v44 = vpop.f32.mrb[225].mxu0 }
 0x851   : > { %v12133_v51 = vadd.f32 %v12132_v18, %v12131_v11  ;;  %v12134_v35 = vpop.f32.mrb[218].mxu1  ;;  %v12197_v17 = vadd.f32 %v12196_v44, %v12195_v27  ;;  %v12198_v55 = vpop.f32.mrb[226].mxu0 }
 0x852   : > { %v12135_v62 = vpop.f32.mrb[219].mxu1  ;;  %v12199_v13 = vpop.f32.mrb[227].mxu0 }
 0x853   : > { %v4953_v7 = vadd.f32 %v12133_v51, %v16211_v57  ;;  %v12136_v54 = vadd.f32 %v12135_v62, %v12134_v35  ;;  %v12200_v48 = vadd.f32 %v12199_v13, %v12198_v55 }
 0x855   : > { %v16264_v60 = vadd.f32 %v12197_v17, %v4953_v7  ;;  %v4956_v5 = vadd.f32 %v12136_v54, %v16217_v4 }
 0x857   : > { %v16267_v24 = vadd.f32 %v12200_v48, %v4956_v5  ;;  %v12137_v37 = vpop.f32.mrb[220].mxu1  ;;  %v12201_v63 = vpop.f32.mrb[228].mxu0 }
 0x858   : > { %v12138_v20 = vpop.f32.mrb[221].mxu1  ;;  %v12202_v59 = vpop.f32.mrb[229].mxu0 }
 0x859   : > { %v12139_v45 = vadd.f32 %v12138_v20, %v12137_v37  ;;  %v12140_v29 = vpop.f32.mrb[222].mxu1  ;;  %v12203_v3 = vadd.f32 %v12202_v59, %v12201_v63  ;;  %v12204_v9 = vpop.f32.mrb[230].mxu0 }
 0x85a   : > { %v12141_v25 = vpop.f32.mrb[223].mxu1  ;;  %v12205_v46 = vpop.f32.mrb[231].mxu0 }
 0x85b   : > { %v4961_v57 = vadd.f32 %v12139_v45, %v16221_v50  ;;  %v12142_v36 = vadd.f32 %v12141_v25, %v12140_v29  ;;  %v12206_v23 = vadd.f32 %v12205_v46, %v12204_v9 }
 0x85d   : > { %v16270_v11 = vadd.f32 %v12203_v3, %v4961_v57  ;;  %v4964_v4 = vadd.f32 %v12142_v36, %v16225_v53 }
 0x85f   : > { %v16273_v27 = vadd.f32 %v12206_v23, %v4964_v4  ;;  %v12143_v18 = vpop.f32.mrb[224].mxu1  ;;  %v12207_v51 = vpop.f32.mrb[232].mxu0 }
 0x860   : > { %v12144_v44 = vpop.f32.mrb[225].mxu1  ;;  %v12208_v17 = vpop.f32.mrb[233].mxu0 }
 0x861   : > { %v12145_v35 = vadd.f32 %v12144_v44, %v12143_v18  ;;  %v12146_v55 = vpop.f32.mrb[226].mxu1  ;;  %v12209_v62 = vadd.f32 %v12208_v17, %v12207_v51  ;;  %v12210_v7 = vpop.f32.mrb[234].mxu0 }
 0x862   : > { %v12147_v54 = vpop.f32.mrb[227].mxu1  ;;  %v12211_v48 = vpop.f32.mrb[235].mxu0 }
 0x863   : > { %v4969_v50 = vadd.f32 %v12145_v35, %v16228_v30  ;;  %v12148_v13 = vadd.f32 %v12147_v54, %v12146_v55  ;;  %v12212_v5 = vadd.f32 %v12211_v48, %v12210_v7 }
 0x865   : > { %v16276_v37 = vadd.f32 %v12209_v62, %v4969_v50  ;;  %v4972_v53 = vadd.f32 %v12148_v13, %v16231_v6 }
 0x867   : > { %v16279_v63 = vadd.f32 %v12212_v5, %v4972_v53  ;;  %v12149_v20 = vpop.f32.mrb[228].mxu1  ;;  %v12213_v45 = vpop.f32.mrb[236].mxu0 }
 0x868   : > { %v12150_v59 = vpop.f32.mrb[229].mxu1  ;;  %v12214_v3 = vpop.f32.mrb[237].mxu0 }
 0x869   : > { %v12151_v29 = vadd.f32 %v12150_v59, %v12149_v20  ;;  %v12152_v9 = vpop.f32.mrb[230].mxu1  ;;  %v12215_v25 = vadd.f32 %v12214_v3, %v12213_v45  ;;  %v12216_v57 = vpop.f32.mrb[238].mxu0 }
 0x86a   : > { %v12153_v36 = vpop.f32.mrb[231].mxu1  ;;  %v12217_v23 = vpop.f32.mrb[239].mxu0 }
 0x86b   : > { %v4977_v30 = vadd.f32 %v12151_v29, %v16234_v31  ;;  %v12154_v46 = vadd.f32 %v12153_v36, %v12152_v9  ;;  %v12218_v4 = vadd.f32 %v12217_v23, %v12216_v57 }
 0x86d   : > { %v16282_v18 = vadd.f32 %v12215_v25, %v4977_v30  ;;  %v4980_v6 = vadd.f32 %v12154_v46, %v16237_v43 }
 0x86f   : > { %v16285_v51 = vadd.f32 %v12218_v4, %v4980_v6  ;;  %v12155_v44 = vpop.f32.mrb[232].mxu1  ;;  %v12219_v35 = vpop.f32.mrb[240].mxu0 }
 0x870   : > { %v12156_v17 = vpop.f32.mrb[233].mxu1  ;;  %v12220_v62 = vpop.f32.mrb[241].mxu0 }
 0x871   : > { %v12157_v55 = vadd.f32 %v12156_v17, %v12155_v44  ;;  %v12158_v7 = vpop.f32.mrb[234].mxu1  ;;  %v12221_v54 = vadd.f32 %v12220_v62, %v12219_v35  ;;  %v12222_v50 = vpop.f32.mrb[242].mxu0 }
 0x872   : > { %v12159_v13 = vpop.f32.mrb[235].mxu1  ;;  %v12223_v5 = vpop.f32.mrb[243].mxu0 }
 0x873   : > { %v4985_v31 = vadd.f32 %v12157_v55, %v16240_v61  ;;  %v12160_v48 = vadd.f32 %v12159_v13, %v12158_v7  ;;  %v12224_v53 = vadd.f32 %v12223_v5, %v12222_v50 }
 0x875   : > { %v16288_v20 = vadd.f32 %v12221_v54, %v4985_v31  ;;  %v4988_v43 = vadd.f32 %v12160_v48, %v16243_v16 }
 0x877   : > { %v16291_v45 = vadd.f32 %v12224_v53, %v4988_v43  ;;  %v12241_v59 = vpop.f32.mrb[236].mxu1  ;;  %v12305_v29 = vpop.f32.mrb[244].mxu0 }
 0x878   : > { %v12242_v3 = vpop.f32.mrb[237].mxu1  ;;  %v12306_v25 = vpop.f32.mrb[245].mxu0 }
 0x879   : > { %v12243_v9 = vadd.f32 %v12242_v3, %v12241_v59  ;;  %v12244_v57 = vpop.f32.mrb[238].mxu1  ;;  %v12307_v36 = vadd.f32 %v12306_v25, %v12305_v29  ;;  %v12308_v30 = vpop.f32.mrb[246].mxu0 }
 0x87a   : > { %v12245_v46 = vpop.f32.mrb[239].mxu1  ;;  %v12309_v4 = vpop.f32.mrb[247].mxu0 }
 0x87b   : > { %v5123_v61 = vadd.f32 %v12243_v9, %v16246_v49  ;;  %v12246_v23 = vadd.f32 %v12245_v46, %v12244_v57  ;;  %v12310_v6 = vadd.f32 %v12309_v4, %v12308_v30 }
 0x87d   : > { %v16294_v44 = vadd.f32 %v12307_v36, %v5123_v61  ;;  %v5126_v16 = vadd.f32 %v12246_v23, %v16249_v12 }
 0x87f   : > { %v16297_v35 = vadd.f32 %v12310_v6, %v5126_v16  ;;  %v12247_v17 = vpop.f32.mrb[240].mxu1  ;;  %v12311_v55 = vpop.f32.mrb[248].mxu0 }
 0x880   : > { %v12248_v62 = vpop.f32.mrb[241].mxu1  ;;  %v12312_v54 = vpop.f32.mrb[249].mxu0 }
 0x881   : > { %v12249_v7 = vadd.f32 %v12248_v62, %v12247_v17  ;;  %v12250_v50 = vpop.f32.mrb[242].mxu1  ;;  %v12313_v13 = vadd.f32 %v12312_v54, %v12311_v55  ;;  %v12314_v31 = vpop.f32.mrb[250].mxu0 }
 0x882   : > { %v12251_v48 = vpop.f32.mrb[243].mxu1  ;;  %v12315_v53 = vpop.f32.mrb[251].mxu0 }
 0x883   : > { %v5131_v49 = vadd.f32 %v12249_v7, %v16252_v42  ;;  %v12252_v5 = vadd.f32 %v12251_v48, %v12250_v50  ;;  %v12316_v43 = vadd.f32 %v12315_v53, %v12314_v31 }
 0x885   : > { %v16300_v59 = vadd.f32 %v12313_v13, %v5131_v49  ;;  %v5134_v12 = vadd.f32 %v12252_v5, %v16255_v2 }
 0x887   : > { %v16303_v29 = vadd.f32 %v12316_v43, %v5134_v12  ;;  %v12253_v3 = vpop.f32.mrb[244].mxu1  ;;  %v12317_v9 = vpop.f32.mrb[252].mxu0 }
 0x888   : > { %v12254_v25 = vpop.f32.mrb[245].mxu1  ;;  %v12318_v36 = vpop.f32.mrb[253].mxu0 }
 0x889   : > { %v12255_v57 = vadd.f32 %v12254_v25, %v12253_v3  ;;  %v12256_v30 = vpop.f32.mrb[246].mxu1  ;;  %v12319_v46 = vadd.f32 %v12318_v36, %v12317_v9  ;;  %v12320_v61 = vpop.f32.mrb[254].mxu0 }
 0x88a   : > { %v12257_v23 = vpop.f32.mrb[247].mxu1  ;;  %v12321_v6 = vpop.f32.mrb[255].mxu0 }
 0x88b   : > { %v5139_v42 = vadd.f32 %v12255_v57, %v16258_v10  ;;  %v12258_v4 = vadd.f32 %v12257_v23, %v12256_v30  ;;  %v12322_v16 = vadd.f32 %v12321_v6, %v12320_v61 }
 0x88d   : > { %v16306_v17 = vadd.f32 %v12319_v46, %v5139_v42  ;;  %v5142_v2 = vadd.f32 %v12258_v4, %v16261_v52 }
 0x88f   : > { %v16309_v55 = vadd.f32 %v12322_v16, %v5142_v2  ;;  %v12259_v62 = vpop.f32.mrb[248].mxu1  ;;  %v12323_v7 = vpop.f32.mrb[0].mxu0 }
 0x890   : > { %v12260_v54 = vpop.f32.mrb[249].mxu1  ;;  %v12324_v13 = vpop.f32.mrb[1].mxu0 }
 0x891   : > { %v12261_v50 = vadd.f32 %v12260_v54, %v12259_v62  ;;  %v12262_v31 = vpop.f32.mrb[250].mxu1  ;;  %v12325_v48 = vadd.f32 %v12324_v13, %v12323_v7  ;;  %v12326_v49 = vpop.f32.mrb[2].mxu0 }
 0x892   : > { %v12263_v5 = vpop.f32.mrb[251].mxu1  ;;  %v12327_v43 = vpop.f32.mrb[3].mxu0 }
 0x893   : > { %v5147_v10 = vadd.f32 %v12261_v50, %v16264_v60  ;;  %v12264_v53 = vadd.f32 %v12263_v5, %v12262_v31  ;;  %v12328_v12 = vadd.f32 %v12327_v43, %v12326_v49 }
 0x895   : > { %v16312_v3 = vadd.f32 %v12325_v48, %v5147_v10  ;;  %v5150_v52 = vadd.f32 %v12264_v53, %v16267_v24 }
 0x897   : > { %v16315_v9 = vadd.f32 %v12328_v12, %v5150_v52  ;;  %v12265_v25 = vpop.f32.mrb[252].mxu1  ;;  %v12329_v57 = vpop.f32.mrb[4].mxu0 }
 0x898   : > { %v12266_v36 = vpop.f32.mrb[253].mxu1  ;;  %v12330_v46 = vpop.f32.mrb[5].mxu0 }
 0x899   : > { %v12267_v30 = vadd.f32 %v12266_v36, %v12265_v25  ;;  %v12268_v61 = vpop.f32.mrb[254].mxu1  ;;  %v12331_v23 = vadd.f32 %v12330_v46, %v12329_v57  ;;  %v12332_v42 = vpop.f32.mrb[6].mxu0 }
 0x89a   : > { %v12269_v4 = vpop.f32.mrb[255].mxu1  ;;  %v12333_v16 = vpop.f32.mrb[7].mxu0 }
 0x89b   : > { %v5155_v60 = vadd.f32 %v12267_v30, %v16270_v11  ;;  %v12270_v6 = vadd.f32 %v12269_v4, %v12268_v61  ;;  %v12334_v2 = vadd.f32 %v12333_v16, %v12332_v42 }
 0x89d   : > { %v16318_v62 = vadd.f32 %v12331_v23, %v5155_v60  ;;  %v5158_v24 = vadd.f32 %v12270_v6, %v16273_v27 }
 0x89f   : > { %v16321_v7 = vadd.f32 %v12334_v2, %v5158_v24  ;;  %v12271_v54 = vpop.f32.mrb[0].mxu1  ;;  %v12335_v50 = vpop.f32.mrb[8].mxu0 }
 0x8a0   : > { %v12272_v13 = vpop.f32.mrb[1].mxu1  ;;  %v12336_v48 = vpop.f32.mrb[9].mxu0 }
 0x8a1   : > { %v12273_v31 = vadd.f32 %v12272_v13, %v12271_v54  ;;  %v12274_v49 = vpop.f32.mrb[2].mxu1  ;;  %v12337_v5 = vadd.f32 %v12336_v48, %v12335_v50  ;;  %v12338_v10 = vpop.f32.mrb[10].mxu0 }
 0x8a2   : > { %v12275_v53 = vpop.f32.mrb[3].mxu1  ;;  %v12339_v12 = vpop.f32.mrb[11].mxu0 }
 0x8a3   : > { %v5163_v11 = vadd.f32 %v12273_v31, %v16276_v37  ;;  %v12276_v43 = vadd.f32 %v12275_v53, %v12274_v49  ;;  %v12340_v52 = vadd.f32 %v12339_v12, %v12338_v10 }
 0x8a5   : > { %v16324_v25 = vadd.f32 %v12337_v5, %v5163_v11  ;;  %v5166_v27 = vadd.f32 %v12276_v43, %v16279_v63 }
 0x8a7   : > { %v16327_v57 = vadd.f32 %v12340_v52, %v5166_v27  ;;  %v12277_v36 = vpop.f32.mrb[4].mxu1  ;;  %v12341_v30 = vpop.f32.mrb[12].mxu0 }
 0x8a8   : > { %v12278_v46 = vpop.f32.mrb[5].mxu1  ;;  %v12342_v23 = vpop.f32.mrb[13].mxu0 }
 0x8a9   : > { %v12279_v61 = vadd.f32 %v12278_v46, %v12277_v36  ;;  %v12280_v42 = vpop.f32.mrb[6].mxu1  ;;  %v12343_v4 = vadd.f32 %v12342_v23, %v12341_v30  ;;  %v12344_v60 = vpop.f32.mrb[14].mxu0 }
 0x8aa   : > { %v12281_v6 = vpop.f32.mrb[7].mxu1  ;;  %v12345_v2 = vpop.f32.mrb[15].mxu0 }
 0x8ab   : > { %v5171_v37 = vadd.f32 %v12279_v61, %v16282_v18  ;;  %v12282_v16 = vadd.f32 %v12281_v6, %v12280_v42  ;;  %v12346_v24 = vadd.f32 %v12345_v2, %v12344_v60 }
 0x8ad   : > { %v16330_v54 = vadd.f32 %v12343_v4, %v5171_v37  ;;  %v5174_v63 = vadd.f32 %v12282_v16, %v16285_v51 }
 0x8af   : > { %v16333_v50 = vadd.f32 %v12346_v24, %v5174_v63  ;;  %v12283_v13 = vpop.f32.mrb[8].mxu1  ;;  %v12347_v31 = vpop.f32.mrb[16].mxu0 }
 0x8b0   : > { %v12284_v48 = vpop.f32.mrb[9].mxu1  ;;  %v12348_v5 = vpop.f32.mrb[17].mxu0 }
 0x8b1   : > { %v12285_v49 = vadd.f32 %v12284_v48, %v12283_v13  ;;  %v12286_v10 = vpop.f32.mrb[10].mxu1  ;;  %v12349_v53 = vadd.f32 %v12348_v5, %v12347_v31  ;;  %v12350_v11 = vpop.f32.mrb[18].mxu0 }
 0x8b2   : > { %v12287_v43 = vpop.f32.mrb[11].mxu1  ;;  %v12351_v52 = vpop.f32.mrb[19].mxu0 }
 0x8b3   : > { %v5179_v18 = vadd.f32 %v12285_v49, %v16288_v20  ;;  %v12288_v12 = vadd.f32 %v12287_v43, %v12286_v10  ;;  %v12352_v27 = vadd.f32 %v12351_v52, %v12350_v11 }
 0x8b5   : > { %v16336_v36 = vadd.f32 %v12349_v53, %v5179_v18  ;;  %v5182_v51 = vadd.f32 %v12288_v12, %v16291_v45 }
 0x8b7   : > { %v16339_v30 = vadd.f32 %v12352_v27, %v5182_v51  ;;  %v12369_v46 = vpop.f32.mrb[12].mxu1  ;;  %v12433_v61 = vpop.f32.mrb[20].mxu0 }
 0x8b8   : > { %v12370_v23 = vpop.f32.mrb[13].mxu1  ;;  %v12434_v4 = vpop.f32.mrb[21].mxu0 }
 0x8b9   : > { %v12371_v42 = vadd.f32 %v12370_v23, %v12369_v46  ;;  %v12372_v60 = vpop.f32.mrb[14].mxu1  ;;  %v12435_v6 = vadd.f32 %v12434_v4, %v12433_v61  ;;  %v12436_v37 = vpop.f32.mrb[22].mxu0 }
 0x8ba   : > { %v12373_v16 = vpop.f32.mrb[15].mxu1  ;;  %v12437_v24 = vpop.f32.mrb[23].mxu0 }
 0x8bb   : > { %v5317_v20 = vadd.f32 %v12371_v42, %v16294_v44  ;;  %v12374_v2 = vadd.f32 %v12373_v16, %v12372_v60  ;;  %v12438_v63 = vadd.f32 %v12437_v24, %v12436_v37 }
 0x8bd   : > { %v5320_v13 = vadd.f32 %v12374_v2, %v16297_v35  ;;  %v5414_v31 = vadd.f32 %v12435_v6, %v5317_v20 }
 0x8bf   : > { %v12375_v45 = vpop.f32.mrb[16].mxu1  ;;  %v16344_v48 = vadd.f32 %v5414_v31, %v14701_v8  ;;  %v5417_v49 = vadd.f32 %v12438_v63, %v5320_v13  ;;  %v12439_v5 = vpop.f32.mrb[24].mxu0 }
 0x8c0   : > { %v12376_v10 = vpop.f32.mrb[17].mxu1  ;;  %v12440_v11 = vpop.f32.mrb[25].mxu0 }
 0x8c1   : > { %v12377_v53 = vadd.f32 %v12376_v10, %v12375_v45  ;;  %v12378_v43 = vpop.f32.mrb[18].mxu1  ;;  %v5494_v18 = vsel %vm596_vm1, %v16344_v48, 0.0  ;;  %v16349_v44 = vadd.f32 %v5417_v49, %v14704_v34  ;;  %v12441_v12 = vadd.f32 %v12440_v11, %v12439_v5  ;;  %v12442_v52 = vpop.f32.mrb[26].mxu0 }
 0x8c2   : > { %v12379_v35 = vpop.f32.mrb[19].mxu1  ;;  %5495 = vadd.xlane.f32.xlu0 %v5494_v18  ;;  %v12443_v51 = vpop.f32.mrb[27].mxu0 }
 0x8c3   : > { %v5325_v27 = vadd.f32 %v12377_v53, %v16300_v59  ;;  %v12380_v8 = vadd.f32 %v12379_v35, %v12378_v43  ;;  %v5497_v46 = vsel %vm596_vm1, %v16349_v44, 0.0  ;;  %v12444_v61 = vadd.f32 %v12443_v51, %v12442_v52 }
 0x8c4   : > { %5498 = vadd.xlane.f32.xlu1 %v5497_v46 }
 0x8c5   : > { %v5328_v23 = vadd.f32 %v12380_v8, %v16303_v29  ;;  %v5422_v42 = vadd.f32 %v12441_v12, %v5325_v27 }
 0x8c7   : > { %v12381_v4 = vpop.f32.mrb[20].mxu1  ;;  %v16356_v34 = vadd.f32 %v5422_v42, %v14758_v56  ;;  %v5425_v60 = vadd.f32 %v12444_v61, %v5328_v23  ;;  %v12445_v6 = vpop.f32.mrb[28].mxu0 }
 0x8c8   : > { %v12382_v37 = vpop.f32.mrb[21].mxu1  ;;  %v12446_v20 = vpop.f32.mrb[29].mxu0 }
 0x8c9   : > { %v12383_v16 = vadd.f32 %v12382_v37, %v12381_v4  ;;  %v12384_v59 = vpop.f32.mrb[22].mxu1  ;;  %v5500_v2 = vsel %vm596_vm1, %v16356_v34, 0.0  ;;  %v16361_v24 = vadd.f32 %v5425_v60, %v14743_v32  ;;  %v12447_v63 = vadd.f32 %v12446_v20, %v12445_v6  ;;  %v12448_v13 = vpop.f32.mrb[30].mxu0 }
 0x8ca   : > { %v12385_v29 = vpop.f32.mrb[23].mxu1  ;;  %5501 = vadd.xlane.f32.xlu0 %v5500_v2  ;;  %v12449_v45 = vpop.f32.mrb[31].mxu0 }
 0x8cb   : > { %v5333_v31 = vadd.f32 %v12383_v16, %v16306_v17  ;;  %v12386_v56 = vadd.f32 %v12385_v29, %v12384_v59  ;;  %v5503_v49 = vsel %vm596_vm1, %v16361_v24, 0.0  ;;  %v12450_v5 = vadd.f32 %v12449_v45, %v12448_v13 }
 0x8cc   : > { %5504 = vadd.xlane.f32.xlu1 %v5503_v49 }
 0x8cd   : > { %v5336_v10 = vadd.f32 %v12386_v56, %v16309_v55  ;;  %v5430_v53 = vadd.f32 %v12447_v63, %v5333_v31 }
 0x8cf   : > { %v12387_v11 = vpop.f32.mrb[24].mxu1  ;;  %v16368_v32 = vadd.f32 %v5430_v53, %v14779_v0  ;;  %v5433_v43 = vadd.f32 %v12450_v5, %v5336_v10  ;;  %v12451_v18 = vpop.f32.mrb[32].mxu0 }
 0x8d0   : > { %v12388_v12 = vpop.f32.mrb[25].mxu1  ;;  %v12452_v35 = vpop.f32.mrb[33].mxu0 }
 0x8d1   : > { %v12389_v52 = vadd.f32 %v12388_v12, %v12387_v11  ;;  %v12390_v17 = vpop.f32.mrb[26].mxu1  ;;  %v5506_v27 = vsel %vm596_vm1, %v16368_v32, 0.0  ;;  %v16373_v8 = vadd.f32 %v5433_v43, %v14775_v40  ;;  %v12453_v51 = vadd.f32 %v12452_v35, %v12451_v18  ;;  %v12454_v46 = vpop.f32.mrb[34].mxu0 }
 0x8d2   : > { %v12391_v55 = vpop.f32.mrb[27].mxu1  ;;  %5507 = vadd.xlane.f32.xlu0 %v5506_v27  ;;  %v12455_v23 = vpop.f32.mrb[35].mxu0 }
 0x8d3   : > { %v5341_v61 = vadd.f32 %v12389_v52, %v16312_v3  ;;  %v12392_v0 = vadd.f32 %v12391_v55, %v12390_v17  ;;  %v5509_v42 = vsel %vm596_vm1, %v16373_v8, 0.0  ;;  %v12456_v4 = vadd.f32 %v12455_v23, %v12454_v46 }
 0x8d4   : > { %5510 = vadd.xlane.f32.xlu1 %v5509_v42 }
 0x8d5   : > { %v5344_v60 = vadd.f32 %v12392_v0, %v16315_v9  ;;  %v5438_v6 = vadd.f32 %v12453_v51, %v5341_v61 }
 0x8d7   : > { %v12393_v37 = vpop.f32.mrb[28].mxu1  ;;  %v16380_v40 = vadd.f32 %v5438_v6, %v14799_v47  ;;  %v5441_v16 = vadd.f32 %v12456_v4, %v5344_v60  ;;  %v12457_v20 = vpop.f32.mrb[36].mxu0 }
 0x8d8   : > { %v12394_v59 = vpop.f32.mrb[29].mxu1  ;;  %v12458_v63 = vpop.f32.mrb[37].mxu0 }
 0x8d9   : > { %v12395_v2 = vadd.f32 %v12394_v59, %v12393_v37  ;;  %v12396_v3 = vpop.f32.mrb[30].mxu1  ;;  %v5512_v13 = vsel %vm596_vm1, %v16380_v40, 0.0  ;;  %v16385_v29 = vadd.f32 %v5441_v16, %v14794_v14  ;;  %v12459_v31 = vadd.f32 %v12458_v63, %v12457_v20  ;;  %v12460_v56 = vpop.f32.mrb[38].mxu0 }
 0x8da   : > { %v12397_v9 = vpop.f32.mrb[31].mxu1  ;;  %5513 = vadd.xlane.f32.xlu0 %v5512_v13  ;;  %v12461_v49 = vpop.f32.mrb[39].mxu0 }
 0x8db   : > { %v5349_v45 = vadd.f32 %v12395_v2, %v16318_v62  ;;  %v12398_v47 = vadd.f32 %v12397_v9, %v12396_v3  ;;  %v5515_v5 = vsel %vm596_vm1, %v16385_v29, 0.0  ;;  %v12462_v10 = vadd.f32 %v12461_v49, %v12460_v56 }
 0x8dc   : > { %5516 = vadd.xlane.f32.xlu1 %v5515_v5 }
 0x8dd   : > { %v5352_v53 = vadd.f32 %v12398_v47, %v16321_v7  ;;  %v5446_v11 = vadd.f32 %v12459_v31, %v5349_v45 }
 0x8df   : > { %v12399_v43 = vpop.f32.mrb[32].mxu1  ;;  %v16392_v14 = vadd.f32 %v5446_v11, %v14819_v19  ;;  %v5449_v18 = vadd.f32 %v12462_v10, %v5352_v53  ;;  %v12463_v12 = vpop.f32.mrb[40].mxu0 }
 0x8e0   : > { %v12400_v52 = vpop.f32.mrb[33].mxu1  ;;  %v12464_v17 = vpop.f32.mrb[41].mxu0 }
 0x8e1   : > { %v12401_v35 = vadd.f32 %v12400_v52, %v12399_v43  ;;  %v12402_v62 = vpop.f32.mrb[34].mxu1  ;;  %v5518_v27 = vsel %vm596_vm1, %v16392_v14, 0.0  ;;  %v16397_v51 = vadd.f32 %v5449_v18, %v14814_v22  ;;  %v12465_v46 = vadd.f32 %v12464_v17, %v12463_v12  ;;  %v12466_v55 = vpop.f32.mrb[42].mxu0 }
 0x8e2   : > { %v12403_v7 = vpop.f32.mrb[35].mxu1  ;;  %5519 = vadd.xlane.f32.xlu0 %v5518_v27  ;;  %v12467_v0 = vpop.f32.mrb[43].mxu0 }
 0x8e3   : > { %v5357_v61 = vadd.f32 %v12401_v35, %v16324_v25  ;;  %v12404_v19 = vadd.f32 %v12403_v7, %v12402_v62  ;;  %v5521_v23 = vsel %vm596_vm1, %v16397_v51, 0.0  ;;  %v12468_v42 = vadd.f32 %v12467_v0, %v12466_v55  ;;  %v19194_v35 = vld [vmem:[#allocation3_spill] sm:$0xff] }
 0x8e4   : > { %5522 = vadd.xlane.f32.xlu1 %v5521_v23  ;;  %v19195_v23 = vld [vmem:[#allocation5_spill] sm:$0xff] }
 0x8e5   : > { %v5360_v4 = vadd.f32 %v12404_v19, %v16327_v57  ;;  %v5454_v60 = vadd.f32 %v12465_v46, %v5357_v61 }
 0x8e7   : > { %v12405_v6 = vpop.f32.mrb[36].mxu1  ;;  %v16404_v22 = vadd.f32 %v5454_v60, %v14839_v38  ;;  %v5457_v37 = vadd.f32 %v12468_v42, %v5360_v4  ;;  %v12469_v16 = vpop.f32.mrb[44].mxu0 }
 0x8e8   : > { %v12406_v20 = vpop.f32.mrb[37].mxu1  ;;  %v12470_v2 = vpop.f32.mrb[45].mxu0 }
 0x8e9   : > { %v12407_v59 = vadd.f32 %v12406_v20, %v12405_v6  ;;  %v12408_v25 = vpop.f32.mrb[38].mxu1  ;;  %v5524_v63 = vsel %vm596_vm1, %v16404_v22, 0.0  ;;  %v16409_v3 = vadd.f32 %v5457_v37, %v14834_v33  ;;  %v12471_v13 = vadd.f32 %v12470_v2, %v12469_v16  ;;  %v12472_v31 = vpop.f32.mrb[46].mxu0  ;;  %v19196_v6 = vld [vmem:[#allocation4_spill] sm:$0xff] }
 0x8ea   : > { %v12409_v57 = vpop.f32.mrb[39].mxu1  ;;  %5525 = vadd.xlane.f32.xlu0 %v5524_v63  ;;  %v12473_v9 = vpop.f32.mrb[47].mxu0 }
 0x8eb   : > { %v5365_v56 = vadd.f32 %v12407_v59, %v16330_v54  ;;  %v12410_v38 = vadd.f32 %v12409_v57, %v12408_v25  ;;  %v5527_v45 = vsel %vm596_vm1, %v16409_v3, 0.0  ;;  %v12474_v47 = vadd.f32 %v12473_v9, %v12472_v31 }
 0x8ec   : > { %5528 = vadd.xlane.f32.xlu1 %v5527_v45 }
 0x8ed   : > { %v5368_v49 = vadd.f32 %v12410_v38, %v16333_v50  ;;  %v5462_v5 = vadd.f32 %v12471_v13, %v5365_v56 }
 0x8ef   : > { %v12411_v10 = vpop.f32.mrb[40].mxu1  ;;  %v16416_v33 = vadd.f32 %v5462_v5, %v14859_v41  ;;  %v5465_v53 = vadd.f32 %v12474_v47, %v5368_v49  ;;  %v12475_v11 = vpop.f32.mrb[48].mxu0 }
 0x8f0   : > { %v12412_v43 = vpop.f32.mrb[41].mxu1  ;;  %v12476_v12 = vpop.f32.mrb[49].mxu0 }
 0x8f1   : > { %v12413_v18 = vadd.f32 %v12412_v43, %v12411_v10  ;;  %v12414_v54 = vpop.f32.mrb[42].mxu1  ;;  %v5530_v52 = vsel %vm596_vm1, %v16416_v33, 0.0  ;;  %v16421_v17 = vadd.f32 %v5465_v53, %v19194_v35  ;;  %v12477_v62 = vadd.f32 %v12476_v12, %v12475_v11  ;;  %v12478_v27 = vpop.f32.mrb[50].mxu0 }
 0x8f2   : > { %v12415_v50 = vpop.f32.mrb[43].mxu1  ;;  %5531 = vadd.xlane.f32.xlu0 %v5530_v52  ;;  %v12479_v55 = vpop.f32.mrb[51].mxu0 }
 0x8f3   : > { %v5373_v46 = vadd.f32 %v12413_v18, %v16336_v36  ;;  %v12416_v41 = vadd.f32 %v12415_v50, %v12414_v54  ;;  %v5533_v7 = vsel %vm596_vm1, %v16421_v17, 0.0  ;;  %v12480_v61 = vadd.f32 %v12479_v55, %v12478_v27 }
 0x8f4   : > { %5534 = vadd.xlane.f32.xlu1 %v5533_v7 }
 0x8f5   : > { %v5376_v19 = vadd.f32 %v12416_v41, %v16339_v30  ;;  %v5470_v0 = vadd.f32 %v12477_v62, %v5373_v46  ;;  %v13534_v30 = vld [vmem:[%s19155_s3 + $0xc] sm:$0xff]  }
 0x8f6   : > { %13229 = vmatprep.subr.bf16.mxu0 %v13534_v30 }
 0x8f7   : > { %v16428_v42 = vadd.f32 %v5470_v0, %v19195_v23  ;;  %v5473_v4 = vadd.f32 %v12480_v61, %v5376_v19  ;;  %13230 = vmatpush3.bf16.msra.mxu0 %v13534_v30 }
 0x8f9   : > { %v5536_v60 = vsel %vm596_vm1, %v16428_v42, 0.0  ;;  %v16433_v37 = vadd.f32 %v5473_v4, %v19196_v6 }
 0x8fa   : > { %5537 = vadd.xlane.f32.xlu0 %v5536_v60 }
 0x8fb   : > { %v5539_v36 = vsel %vm596_vm1, %v16433_v37, 0.0 }
 0x8fc   : > { %5540 = vadd.xlane.f32.xlu1 %v5539_v36 }
 0x94f   : > { %v5496_v16 = vpop.xlane.xlu0 %5495 }
 0x950   : > { %v5542_v20 = vmul.f32 0.05882353, %v5496_v16 }
 0x951   : > { %v5499_v59 = vpop.xlane.xlu1 %5498 }
 0x952   : > { %v16441_v2 = vsub.f32 %v16344_v48, %v5542_v20  ;;  %v5543_v25 = vmul.f32 0.05882353, %v5499_v59 }
 0x954   : > { %v16444_v63 = vsub.f32 %v16349_v44, %v5543_v25  ;;  %v5574_v13 = vmul.f32 %v16441_v2, %v16441_v2 }
 0x956   : > { %v5590_v31 = vsel %vm596_vm1, %v5574_v13, 0.0  ;;  %v5575_v57 = vmul.f32 %v16444_v63, %v16444_v63 }
 0x957   : > { %v5502_v56 = vpop.xlane.xlu0 %5501  ;;  %5591 = vadd.xlane.f32.xlu0 %v5590_v31 }
 0x958   : > { %v5544_v38 = vmul.f32 0.05882353, %v5502_v56  ;;  %v5593_v9 = vsel %vm596_vm1, %v5575_v57, 0.0 }
 0x959   : > { %v5505_v45 = vpop.xlane.xlu1 %5504  ;;  %5594 = vadd.xlane.f32.xlu1 %v5593_v9 }
 0x95a   : > { %v16453_v48 = vsub.f32 %v16356_v34, %v5544_v38  ;;  %v5545_v44 = vmul.f32 0.05882353, %v5505_v45 }
 0x95c   : > { %v16456_v47 = vsub.f32 %v16361_v24, %v5545_v44  ;;  %v5576_v49 = vmul.f32 %v16453_v48, %v16453_v48 }
 0x95e   : > { %v5596_v5 = vsel %vm596_vm1, %v5576_v49, 0.0  ;;  %v5577_v10 = vmul.f32 %v16456_v47, %v16456_v47 }
 0x95f   : > { %v5508_v53 = vpop.xlane.xlu0 %5507  ;;  %5597 = vadd.xlane.f32.xlu0 %v5596_v5 }
 0x960   : > { %v5546_v11 = vmul.f32 0.05882353, %v5508_v53  ;;  %v5599_v43 = vsel %vm596_vm1, %v5577_v10, 0.0  ;;  %v19197_v53 = vld [vmem:[#allocation2_spill] sm:$0xff] }
 0x961   : > { %v5511_v18 = vpop.xlane.xlu1 %5510  ;;  %5600 = vadd.xlane.f32.xlu1 %v5599_v43 }
 0x962   : > { %v16465_v34 = vsub.f32 %v16368_v32, %v5546_v11  ;;  %v5547_v24 = vmul.f32 0.05882353, %v5511_v18  ;;  %v13535_v32 = vld [vmem:[%s19187_s28 + $0xc] sm:$0xff]  }
 0x963   : > { %13209 = vmatprep.subr.bf16.mxu1 %v13535_v32 }
 0x964   : > { %v16468_v12 = vsub.f32 %v16373_v8, %v5547_v24  ;;  %v5578_v54 = vmul.f32 %v16465_v34, %v16465_v34  ;;  %13210 = vmatpush3.bf16.msra.mxu1 %v13535_v32 }
 0x966   : > { %v5602_v52 = vsel %vm596_vm1, %v5578_v54, 0.0  ;;  %v5579_v35 = vmul.f32 %v16468_v12, %v16468_v12 }
 0x967   : > { %v5514_v62 = vpop.xlane.xlu0 %5513  ;;  %5603 = vadd.xlane.f32.xlu0 %v5602_v52 }
 0x968   : > { %v5548_v27 = vmul.f32 0.05882353, %v5514_v62  ;;  %v5605_v50 = vsel %vm596_vm1, %v5579_v35, 0.0 }
 0x969   : > { %v5517_v46 = vpop.xlane.xlu1 %5516  ;;  %5606 = vadd.xlane.f32.xlu1 %v5605_v50 }
 0x96a   : > { %v16480_v8 = vsub.f32 %v16380_v40, %v5548_v27  ;;  %v5549_v41 = vmul.f32 0.05882353, %v5517_v46 }
 0x96c   : > { %v16483_v55 = vsub.f32 %v16385_v29, %v5549_v41  ;;  %v5580_v7 = vmul.f32 %v16480_v8, %v16480_v8 }
 0x96e   : > { %v5608_v61 = vsel %vm596_vm1, %v5580_v7, 0.0  ;;  %v5581_v19 = vmul.f32 %v16483_v55, %v16483_v55 }
 0x96f   : > { %v5520_v0 = vpop.xlane.xlu0 %5519  ;;  %5609 = vadd.xlane.f32.xlu0 %v5608_v61 }
 0x970   : > { %v5550_v23 = vmul.f32 0.05882353, %v5520_v0  ;;  %v5611_v40 = vsel %vm596_vm1, %v5581_v19, 0.0 }
 0x971   : > { %v5523_v4 = vpop.xlane.xlu1 %5522  ;;  %5612 = vadd.xlane.f32.xlu1 %v5611_v40 }
 0x972   : > { %v16492_v60 = vsub.f32 %v16392_v14, %v5550_v23  ;;  %v5551_v29 = vmul.f32 0.05882353, %v5523_v4 }
 0x974   : > { %v16495_v6 = vsub.f32 %v16397_v51, %v5551_v29  ;;  %v5582_v36 = vmul.f32 %v16492_v60, %v16492_v60 }
 0x976   : > { %v5614_v30 = vsel %vm596_vm1, %v5582_v36, 0.0  ;;  %v5583_v16 = vmul.f32 %v16495_v6, %v16495_v6 }
 0x977   : > { %v5526_v20 = vpop.xlane.xlu0 %5525  ;;  %5615 = vadd.xlane.f32.xlu0 %v5614_v30 }
 0x978   : > { %v5552_v59 = vmul.f32 0.05882353, %v5526_v20  ;;  %v5617_v25 = vsel %vm596_vm1, %v5583_v16, 0.0 }
 0x979   : > { %v5529_v13 = vpop.xlane.xlu1 %5528  ;;  %5618 = vadd.xlane.f32.xlu1 %v5617_v25 }
 0x97a   : > { %v16504_v14 = vsub.f32 %v16404_v22, %v5552_v59  ;;  %v5553_v51 = vmul.f32 0.05882353, %v5529_v13  ;;  %v13536_v22 = vld [vmem:[%s19155_s3 + $0x14] ss:$0 sps:$4 sm:$0x11]  }
 0x97b   : > { %v5921_v11 = vand.u32 %v13536_v22, %v19197_v53  ;;  %v16556_v13 = vld [vmem:[%s19167_s15] ss:$0 sm:$0xff] }
 0x97c   : > { %v16507_v31 = vsub.f32 %v16409_v3, %v5553_v51  ;;  %v5584_v57 = vmul.f32 %v16504_v14, %v16504_v14  ;;  %v13537_v3 = vld [vmem:[%s19187_s28 + $0x14] ss:$0 sps:$4 sm:$0x11]   ;;  %v16564_v22 = vld [vmem:[%s19168_s16] ss:$0 sm:$0xff] }
 0x97d   : > { %v5800_v43 = vand.u32 %v13537_v3, %v19197_v53  ;;  %13231 = vmatprep.subr.bf16.mxu0 %v5921_v11 }
 0x97e   : > { %v5620_v56 = vsel %vm596_vm1, %v5584_v57, 0.0  ;;  %v5585_v38 = vmul.f32 %v16507_v31, %v16507_v31  ;;  %13232 = vmatpush3.bf16.msra.mxu0 %v5921_v11 }
 0x97f   : > { %v5532_v9 = vpop.xlane.xlu0 %5531  ;;  %5621 = vadd.xlane.f32.xlu0 %v5620_v56  ;;  %13211 = vmatprep.subr.bf16.mxu1 %v5800_v43 }
 0x980   : > { %v5554_v45 = vmul.f32 0.05882353, %v5532_v9  ;;  %v5623_v44 = vsel %vm596_vm1, %v5585_v38, 0.0  ;;  %13212 = vmatpush3.bf16.msra.mxu1 %v5800_v43 }
 0x981   : > { %v5535_v49 = vpop.xlane.xlu1 %5534  ;;  %5624 = vadd.xlane.f32.xlu1 %v5623_v44 }
 0x982   : > { %v16522_v5 = vsub.f32 %v16416_v33, %v5554_v45  ;;  %v5555_v10 = vmul.f32 0.05882353, %v5535_v49 }
 0x984   : > { %v16527_v18 = vsub.f32 %v16421_v17, %v5555_v10  ;;  %v5586_v24 = vmul.f32 %v16522_v5, %v16522_v5 }
 0x986   : > { %v5626_v54 = vsel %vm596_vm1, %v5586_v24, 0.0  ;;  %v5587_v33 = vmul.f32 %v16527_v18, %v16527_v18 }
 0x987   : > { %5627 = vadd.xlane.f32.xlu0 %v5626_v54  ;;  %v5538_v52 = vpop.xlane.xlu0 %5537 }
 0x988   : > { %v5556_v35 = vmul.f32 0.05882353, %v5538_v52  ;;  %v5629_v62 = vsel %vm596_vm1, %v5587_v33, 0.0 }
 0x989   : > { %5630 = vadd.xlane.f32.xlu1 %v5629_v62  ;;  %v5541_v17 = vpop.xlane.xlu1 %5540 }
 0x98a   : > { %v16536_v27 = vsub.f32 %v16428_v42, %v5556_v35  ;;  %v5557_v50 = vmul.f32 0.05882353, %v5541_v17  ;;  %v16550_v42 = vld [vmem:[%s19157_s5 + $0xc] sm:$0xff]  }
 0x98b   : > { %13249 = vmatprep.subr.bf16.mxu1 %v16550_v42 }
 0x98c   : > { %v16539_v46 = vsub.f32 %v16433_v37, %v5557_v50  ;;  %v5588_v32 = vmul.f32 %v16536_v27, %v16536_v27 }
 0x98e   : > { %v5632_v41 = vsel %vm596_vm1, %v5588_v32, 0.0  ;;  %v5589_v7 = vmul.f32 %v16539_v46, %v16539_v46 }
 0x98f   : > { %5633 = vadd.xlane.f32.xlu0 %v5632_v41 }
 0x990   : > { %v5635_v61 = vsel %vm596_vm1, %v5589_v7, 0.0  ;;  %v13539_v7 = vld [vmem:[%s19157_s5 + $0x14] ss:$0 sps:$4 sm:$0x11]  }
 0x991   : > { %5636 = vadd.xlane.f32.xlu1 %v5635_v61 }
 0x9e4   : > { %v5592_v37 = vpop.xlane.xlu0 %5591 }
 0x9e5   : > { %v5638_v19 = vmul.f32 0.05882353, %v5592_v37 }
 0x9e6   : > { %v5595_v0 = vpop.xlane.xlu1 %5594 }
 0x9e7   : > { %v5654_v23 = vadd.f32 1e-05, %v5638_v19  ;;  %v5639_v40 = vmul.f32 0.05882353, %v5595_v0 }
 0x9e9   : > { %13782 = vrsqrt.f32 %v5654_v23  ;;  %v5655_v4 = vadd.f32 1e-05, %v5639_v40 }
 0x9eb   : > { %13784 = vrsqrt.f32 %v5655_v4  ;;  %v6042_v4 = vand.u32 %v13539_v7, %v19197_v53 }
 0x9ec   : > { %v5598_v29 = vpop.xlane.xlu0 %5597 }
 0x9ed   : > { %v5640_v36 = vmul.f32 0.05882353, %v5598_v29 }
 0x9ee   : > { %v5601_v30 = vpop.xlane.xlu1 %5600 }
 0x9ef   : > { %v5656_v16 = vadd.f32 1e-05, %v5640_v36  ;;  %v5641_v20 = vmul.f32 0.05882353, %v5601_v30 }
 0x9f1   : > { %13786 = vrsqrt.f32 %v5656_v16  ;;  %v5657_v59 = vadd.f32 1e-05, %v5641_v20 }
 0x9f3   : > { %v13783_v25 = vpop.eup %13782  ;;  %13788 = vrsqrt.f32 %v5657_v59 }
 0x9f4   : > { %v5604_v51 = vpop.xlane.xlu0 %5603  ;;  %v5686_v57 = vmul.f32 %v13783_v25, %v16441_v2 }
 0x9f5   : > { %v13785_v56 = vpop.eup %13784  ;;  %v5642_v38 = vmul.f32 0.05882353, %v5604_v51 }
 0x9f6   : > { %v5607_v9 = vpop.xlane.xlu1 %5606  ;;  %v5687_v45 = vmul.f32 %v13785_v56, %v16444_v63  ;;  %v5708_v44 = vmul.f32 %v16556_v13, %v5686_v57 }
 0x9f7   : > { %v5658_v49 = vadd.f32 1e-05, %v5642_v38  ;;  %v5643_v3 = vmul.f32 0.05882353, %v5607_v9 }
 0x9f8   : > { %v5709_v10 = vmul.f32 %v16556_v13, %v5687_v45  ;;  %v16568_v2 = vadd.f32 %v16564_v22, %v5708_v44 }
 0x9f9   : > { %13790 = vrsqrt.f32 %v5658_v49  ;;  %v5659_v11 = vadd.f32 1e-05, %v5643_v3 }
 0x9fa   : > { %v16571_v43 = vadd.f32 %v16564_v22, %v5709_v10 }
 0x9fb   : > { %v13787_v63 = vpop.eup %13786  ;;  %13792 = vrsqrt.f32 %v5659_v11 }
 0x9fc   : > { %v5688_v24 = vmul.f32 %v13787_v63, %v16453_v48  ;;  %v5610_v54 = vpop.xlane.xlu0 %5609  ;;  %v16576_v33 = vpack.c.bf16 %v16571_v43, %v16568_v2 }
 0x9fd   : > { %v13789_v52 = vpop.eup %13788  ;;  %v5644_v35 = vmul.f32 0.05882353, %v5610_v54 }
 0x9fe   : > { %v5710_v62 = vmul.f32 %v16556_v13, %v5688_v24  ;;  %v5689_v17 = vmul.f32 %v13789_v52, %v16456_v47  ;;  %v5613_v50 = vpop.xlane.xlu1 %5612  ;;  %13213 = vmatprep.mubr.msk.bf16.mxu1 %vm596_vm1, %v16576_v33  ;;  %13233 = vmatprep.mubr.msk.bf16.mxu0 %vm596_vm1, %v16576_v33 }
 0x9ff   : > { %v5660_v32 = vadd.f32 1e-05, %v5644_v35  ;;  %v5645_v48 = vmul.f32 0.05882353, %v5613_v50 }
 0xa00   : > { %v5711_v41 = vmul.f32 %v16556_v13, %v5689_v17  ;;  %v16589_v37 = vadd.f32 %v16564_v22, %v5710_v62 }
 0xa01   : > { %13794 = vrsqrt.f32 %v5660_v32  ;;  %v5661_v61 = vadd.f32 1e-05, %v5645_v48 }
 0xa02   : > { %v16592_v47 = vadd.f32 %v16564_v22, %v5711_v41 }
 0xa03   : > { %v13791_v19 = vpop.eup %13790  ;;  %13796 = vrsqrt.f32 %v5661_v61 }
 0xa04   : > { %v16596_v0 = vpack.c.bf16 %v16592_v47, %v16589_v37  ;;  %v5616_v23 = vpop.xlane.xlu0 %5615  ;;  %v5690_v40 = vmul.f32 %v13791_v19, %v16465_v34 }
 0xa05   : > { %v13793_v29 = vpop.eup %13792  ;;  %v5646_v36 = vmul.f32 0.05882353, %v5616_v23 }
 0xa06   : > { %v5619_v30 = vpop.xlane.xlu1 %5618  ;;  %13214 = vmatmul.mubr.msk.bf16.vlgmr.msra.gmra.mrb[44].mxu1 %vm596_vm1, %v16596_v0  ;;  %13234 = vmatmul.mubr.msk.bf16.vlgmr.msra.gmra.mrb[52].mxu0 %vm596_vm1, %v16596_v0  ;;  %v5691_v16 = vmul.f32 %v13793_v29, %v16468_v12  ;;  %v5712_v20 = vmul.f32 %v16556_v13, %v5690_v40 }
 0xa07   : > { %v5662_v59 = vadd.f32 1e-05, %v5646_v36  ;;  %v5647_v25 = vmul.f32 0.05882353, %v5619_v30  ;;  %13250 = vmatpush3.bf16.msra.mxu1 %v16550_v42 }
 0xa08   : > { %v5713_v34 = vmul.f32 %v16556_v13, %v5691_v16  ;;  %13251 = vmatprep.subr.bf16.mxu1 %v6042_v4  ;;  %v16609_v57 = vadd.f32 %v16564_v22, %v5712_v20 }
 0xa09   : > { %13798 = vrsqrt.f32 %v5662_v59  ;;  %v5663_v51 = vadd.f32 1e-05, %v5647_v25 }
 0xa0a   : > { %v16612_v56 = vadd.f32 %v16564_v22, %v5713_v34 }
 0xa0b   : > { %v13795_v38 = vpop.eup %13794  ;;  %13800 = vrsqrt.f32 %v5663_v51  ;;  %13252 = vmatpush3.bf16.msra.mxu1 %v6042_v4 }
 0xa0c   : > { %v5692_v12 = vmul.f32 %v13795_v38, %v16480_v8  ;;  %v5622_v9 = vpop.xlane.xlu0 %5621  ;;  %v16617_v42 = vpack.c.bf16 %v16612_v56, %v16609_v57 }
 0xa0d   : > { %v13797_v45 = vpop.eup %13796  ;;  %v5648_v44 = vmul.f32 0.05882353, %v5622_v9 }
 0xa0e   : > { %v5714_v49 = vmul.f32 %v16556_v13, %v5692_v12  ;;  %v5693_v3 = vmul.f32 %v13797_v45, %v16483_v55  ;;  %v5625_v10 = vpop.xlane.xlu1 %5624  ;;  %13217 = vmatprep.mubr.msk.bf16.mxu1 %vm596_vm1, %v16617_v42  ;;  %13237 = vmatprep.mubr.msk.bf16.mxu0 %vm596_vm1, %v16617_v42 }
 0xa0f   : > { %v5664_v11 = vadd.f32 1e-05, %v5648_v44  ;;  %v5649_v8 = vmul.f32 0.05882353, %v5625_v10 }
 0xa10   : > { %v5715_v63 = vmul.f32 %v16556_v13, %v5693_v3  ;;  %v16627_v54 = vadd.f32 %v16564_v22, %v5714_v49 }
 0xa11   : > { %13802 = vrsqrt.f32 %v5664_v11  ;;  %v5665_v24 = vadd.f32 1e-05, %v5649_v8 }
 0xa12   : > { %v16630_v52 = vadd.f32 %v16564_v22, %v5715_v63 }
 0xa13   : > { %v13799_v55 = vpop.eup %13798  ;;  %13804 = vrsqrt.f32 %v5665_v24 }
 0xa14   : > { %v16634_v35 = vpack.c.bf16 %v16630_v52, %v16627_v54  ;;  %v5628_v62 = vpop.xlane.xlu0 %5627  ;;  %v5694_v17 = vmul.f32 %v13799_v55, %v16492_v60 }
 0xa15   : > { %v13801_v50 = vpop.eup %13800  ;;  %v5650_v32 = vmul.f32 0.05882353, %v5628_v62 }
 0xa16   : > { %v5631_v48 = vpop.xlane.xlu1 %5630  ;;  %13218 = vmatmul.mubr.msk.bf16.gmra.mrb[48].mxu1 %vm596_vm1, %v16634_v35  ;;  %13238 = vmatmul.mubr.msk.bf16.gmra.mrb[56].mxu0 %vm596_vm1, %v16634_v35  ;;  %v5695_v41 = vmul.f32 %v13801_v50, %v16495_v6  ;;  %v5716_v7 = vmul.f32 %v16556_v13, %v5694_v17 }
 0xa17   : > { %v5666_v61 = vadd.f32 1e-05, %v5650_v32  ;;  %v5651_v19 = vmul.f32 0.05882353, %v5631_v48 }
 0xa18   : > { %v5717_v23 = vmul.f32 %v16556_v13, %v5695_v41  ;;  %v16645_v60 = vadd.f32 %v16564_v22, %v5716_v7 }
 0xa19   : > { %13806 = vrsqrt.f32 %v5666_v61  ;;  %v5667_v40 = vadd.f32 1e-05, %v5651_v19 }
 0xa1a   : > { %v16648_v4 = vadd.f32 %v16564_v22, %v5717_v23 }
 0xa1b   : > { %v13803_v29 = vpop.eup %13802  ;;  %13808 = vrsqrt.f32 %v5667_v40 }
 0xa1c   : > { %v5696_v36 = vmul.f32 %v13803_v29, %v16504_v14  ;;  %v5634_v30 = vpop.xlane.xlu0 %5633  ;;  %v5750_v6 = vpack.c.bf16 %v16648_v4, %v16645_v60 }
 0xa1d   : > { %v13805_v16 = vpop.eup %13804  ;;  %v5652_v20 = vmul.f32 0.05882353, %v5634_v30 }
 0xa1e   : > { %v5718_v59 = vmul.f32 %v16556_v13, %v5696_v36  ;;  %v5697_v25 = vmul.f32 %v13805_v16, %v16507_v31  ;;  %v5637_v34 = vpop.xlane.xlu1 %5636  ;;  %13221 = vmatprep.mubr.msk.bf16.mxu1 %vm596_vm1, %v5750_v6  ;;  %13241 = vmatprep.mubr.msk.bf16.mxu0 %vm596_vm1, %v5750_v6 }
 0xa1f   : > { %v5668_v51 = vadd.f32 1e-05, %v5652_v20  ;;  %v5653_v38 = vmul.f32 0.05882353, %v5637_v34 }
 0xa20   : > { %v5719_v12 = vmul.f32 %v16556_v13, %v5697_v25  ;;  %v16659_v9 = vadd.f32 %v16564_v22, %v5718_v59 }
 0xa21   : > { %13810 = vrsqrt.f32 %v5668_v51  ;;  %v5669_v14 = vadd.f32 1e-05, %v5653_v38 }
 0xa22   : > { %v16662_v45 = vadd.f32 %v16564_v22, %v5719_v12 }
 0xa23   : > { %v13807_v44 = vpop.eup %13806  ;;  %13812 = vrsqrt.f32 %v5669_v14 }
 0xa24   : > { %v5751_v31 = vpack.c.bf16 %v16662_v45, %v16659_v9  ;;  %v5698_v49 = vmul.f32 %v13807_v44, %v16522_v5 }
 0xa25   : > { %v13809_v3 = vpop.eup %13808 }
 0xa26   : > { %13222 = vmatmul.mubr.msk.bf16.gmra.mrb[52].mxu1 %vm596_vm1, %v5751_v31  ;;  %13242 = vmatmul.mubr.msk.bf16.gmra.mrb[60].mxu0 %vm596_vm1, %v5751_v31  ;;  %v5699_v10 = vmul.f32 %v13809_v3, %v16527_v18  ;;  %v5720_v11 = vmul.f32 %v16556_v13, %v5698_v49 }
 0xa28   : > { %v5721_v8 = vmul.f32 %v16556_v13, %v5699_v10  ;;  %v16673_v63 = vadd.f32 %v16564_v22, %v5720_v11 }
 0xa2a   : > { %v16676_v24 = vadd.f32 %v16564_v22, %v5721_v8 }
 0xa2b   : > { %v13811_v55 = vpop.eup %13810 }
 0xa2c   : > { %v5700_v5 = vmul.f32 %v13811_v55, %v16536_v27  ;;  %v5752_v62 = vpack.c.bf16 %v16676_v24, %v16673_v63 }
 0xa2d   : > { %v13813_v17 = vpop.eup %13812 }
 0xa2e   : > { %v5722_v50 = vmul.f32 %v16556_v13, %v5700_v5  ;;  %v5701_v18 = vmul.f32 %v13813_v17, %v16539_v46  ;;  %13225 = vmatprep.mubr.msk.bf16.mxu1 %vm596_vm1, %v5752_v62  ;;  %13245 = vmatprep.mubr.msk.bf16.mxu0 %vm596_vm1, %v5752_v62 }
 0xa30   : > { %v5723_v32 = vmul.f32 %v16556_v13, %v5701_v18  ;;  %v16687_v48 = vadd.f32 %v16564_v22, %v5722_v50  ;;  %v16711_v13 = vld [vmem:[%s19154_s2 + $0x1] ss:$0 sm:$0xff] }
 0xa32   : > { %v16690_v41 = vadd.f32 %v16564_v22, %v5723_v32 }
 0xa34   : > { %v5753_v27 = vpack.c.bf16 %v16690_v41, %v16687_v48 }
 0xa36   : > { %13226 = vmatmul.mubr.msk.bf16.gmra.mrb[56].mxu1 %vm596_vm1, %v5753_v27  ;;  %13246 = vmatmul.mubr.msk.bf16.gmra.mrb[64].mxu0 %vm596_vm1, %v5753_v27 }
 0xa37   : > { %13253 = vmatprep.mubr.msk.bf16.mxu1 %vm596_vm1, %v16576_v33  ;;  %v16716_v33 = vld [vmem:[%s19156_s4 + $0x1] ss:$0 sm:$0xff] }
 0xa3e   : > { %13254 = vmatmul.mubr.msk.bf16.vlgmr.msra.gmra.mrb[60].mxu1 %vm596_vm1, %v16596_v0 }
 0xa3f   : > { %13257 = vmatprep.mubr.msk.bf16.mxu1 %vm596_vm1, %v16617_v42 }
 0xa46   : > { %13258 = vmatmul.mubr.msk.bf16.gmra.mrb[64].mxu1 %vm596_vm1, %v16634_v35 }
 0xa47   : > { %13261 = vmatprep.mubr.msk.bf16.mxu1 %vm596_vm1, %v5750_v6 }
 0xa4e   : > { %13262 = vmatmul.mubr.msk.bf16.gmra.mrb[68].mxu1 %vm596_vm1, %v5751_v31 }
 0xa4f   : > { %13265 = vmatprep.mubr.msk.bf16.mxu1 %vm596_vm1, %v5752_v62 }
 0xa56   : > { %13266 = vmatmul.mubr.msk.bf16.gmra.mrb[72].mxu1 %vm596_vm1, %v5753_v27 }
 0xad9   : > { %v13215_v46 = vpop.f32.mrb[44].mxu1  ;;  %v13235_v22 = vpop.f32.mrb[52].mxu0 }
 0xada   : > { %v5836_v0 = vpop.f32.mrb[45].mxu1  ;;  %v5957_v42 = vpop.f32.mrb[53].mxu0  ;;  %v5845_v61 = vadd.f32 %v13215_v46, %v16711_v13  ;;  %v5966_v19 = vadd.f32 %v13235_v22, %v16716_v33 }
 0xadb   : > { %v13216_v35 = vpop.f32.mrb[46].mxu1  ;;  %v13236_v7 = vpop.f32.mrb[54].mxu0  ;;  %v5837_v30 = vadd.f32 %v16711_v13, %v5836_v0  ;;  %v5958_v6 = vadd.f32 %v16716_v33, %v5957_v42 }
 0xadc   : > { %v5848_v23 = vadd.f32 %v13216_v35, %v16711_v13  ;;  %v5969_v40 = vadd.f32 %v13236_v7, %v16716_v33  ;;  %v5839_v29 = vpop.f32.mrb[47].mxu1  ;;  %v5960_v36 = vpop.f32.mrb[55].mxu0 }
 0xadd   : > { %v5840_v16 = vadd.f32 %v16711_v13, %v5839_v29  ;;  %v5961_v20 = vadd.f32 %v16716_v33, %v5960_v36 }
 0xade   : > { %v6142_v59 = vpack.c.bf16 %v5848_v23, %v5845_v61  ;;  %v6150_v25 = vpack.c.bf16 %v5969_v40, %v5966_v19 }
 0xadf   : > { %v6141_v34 = vpack.c.bf16 %v5840_v16, %v5837_v30  ;;  %v6149_v51 = vpack.c.bf16 %v5961_v20, %v5958_v6 }
 0xae0   : > { %v6175_v44 = vsel %vm596_vm1, %v6150_v25, 0 }
 0xae1   : > { %13365 = vmatprep.subr.msk.bf16.mxu0 %vm596_vm1, %v6149_v51  ;;  %13273 = vmatprep.mubr.msk.bf16.mxu0 %vm596_vm1, %v6141_v34  ;;  %v6172_v38 = vsel %vm596_vm1, %v6149_v51, 0 }
 0xae2   : > { %13270 = vmatpush3.bf16.xpose.msra.mxu0 %v6172_v38 }
 0xae3   : > { %13366 = vmatprep.subr.msk.bf16.mxu0 %vm596_vm1, %v6150_v25 }
 0xae9   : > { %v13219_v12 = vpop.f32.mrb[48].mxu1  ;;  %v13239_v14 = vpop.f32.mrb[56].mxu0 }
 0xaea   : > { %v5852_v31 = vpop.f32.mrb[49].mxu1  ;;  %v5973_v49 = vpop.f32.mrb[57].mxu0  ;;  %13272 = vmatpush3.bf16.xpose.msra.mxu0 %v6175_v44  ;;  %v5861_v11 = vadd.f32 %v13219_v12, %v16711_v13  ;;  %v5982_v8 = vadd.f32 %v13239_v14, %v16716_v33 }
 0xaeb   : > { %v13220_v3 = vpop.f32.mrb[50].mxu1  ;;  %v13240_v10 = vpop.f32.mrb[58].mxu0  ;;  %v5853_v50 = vadd.f32 %v16711_v13, %v5852_v31  ;;  %v5974_v18 = vadd.f32 %v16716_v33, %v5973_v49 }
 0xaec   : > { %v5864_v55 = vadd.f32 %v13220_v3, %v16711_v13  ;;  %v5985_v5 = vadd.f32 %v13240_v10, %v16716_v33  ;;  %v5855_v62 = vpop.f32.mrb[51].mxu1  ;;  %v5976_v17 = vpop.f32.mrb[59].mxu0 }
 0xaed   : > { %v5856_v32 = vadd.f32 %v16711_v13, %v5855_v62  ;;  %v5977_v27 = vadd.f32 %v16716_v33, %v5976_v17 }
 0xaee   : > { %v6144_v46 = vpack.c.bf16 %v5864_v55, %v5861_v11  ;;  %v6152_v22 = vpack.c.bf16 %v5985_v5, %v5982_v8 }
 0xaef   : > { %v6143_v0 = vpack.c.bf16 %v5856_v32, %v5853_v50  ;;  %v6151_v42 = vpack.c.bf16 %v5977_v27, %v5974_v18 }
 0xaf0   : > { %v6236_v19 = vsel %vm596_vm1, %v6152_v22, 0 }
 0xaf1   : > { %13274 = vmatmul.mubr.msk.bf16.vlgmr.msra.gmra.mrb[68].mxu0 %vm596_vm1, %v6142_v59  ;;  %13367 = vmatprep.subr.msk.bf16.mxu1 %vm596_vm1, %v6151_v42  ;;  %v6233_v35 = vsel %vm596_vm1, %v6151_v42, 0 }
 0xaf2   : > { %13281 = vmatprep.mubr.msk.bf16.mxu1 %vm596_vm1, %v6143_v0  ;;  %13278 = vmatpush3.bf16.xpose.msra.mxu1 %v6233_v35 }
 0xaf3   : > { %13368 = vmatprep.subr.msk.bf16.mxu1 %vm596_vm1, %v6152_v22 }
 0xaf9   : > { %v13223_v7 = vpop.f32.mrb[52].mxu1  ;;  %v13243_v61 = vpop.f32.mrb[60].mxu0 }
 0xafa   : > { %v5868_v23 = vpop.f32.mrb[53].mxu1  ;;  %v5989_v40 = vpop.f32.mrb[61].mxu0  ;;  %13280 = vmatpush3.bf16.xpose.msra.mxu1 %v6236_v19  ;;  %v5877_v30 = vadd.f32 %v13223_v7, %v16711_v13  ;;  %v5998_v6 = vadd.f32 %v13243_v61, %v16716_v33 }
 0xafb   : > { %v13224_v29 = vpop.f32.mrb[54].mxu1  ;;  %v13244_v36 = vpop.f32.mrb[62].mxu0  ;;  %v5869_v34 = vadd.f32 %v16711_v13, %v5868_v23  ;;  %v5990_v51 = vadd.f32 %v16716_v33, %v5989_v40 }
 0xafc   : > { %v5880_v16 = vadd.f32 %v13224_v29, %v16711_v13  ;;  %v6001_v20 = vadd.f32 %v13244_v36, %v16716_v33  ;;  %v5871_v59 = vpop.f32.mrb[55].mxu1  ;;  %v5992_v25 = vpop.f32.mrb[63].mxu0  ;;  %v11337_v36 = vld [vmem:[%s19158_s6 + $0x1] ss:$0 sm:$0xff] }
 0xafd   : > { %v5872_v38 = vadd.f32 %v16711_v13, %v5871_v59  ;;  %v5993_v12 = vadd.f32 %v16716_v33, %v5992_v25 }
 0xafe   : > { %v6146_v14 = vpack.c.bf16 %v5880_v16, %v5877_v30  ;;  %v6154_v44 = vpack.c.bf16 %v6001_v20, %v5998_v6 }
 0xaff   : > { %v6145_v31 = vpack.c.bf16 %v5872_v38, %v5869_v34  ;;  %v6153_v49 = vpack.c.bf16 %v5993_v12, %v5990_v51 }
 0xb00   : > { %v6297_v8 = vsel %vm596_vm1, %v6154_v44, 0 }
 0xb01   : > { %13282 = vmatmul.mubr.msk.bf16.vlgmr.msra.gmra.mrb[76].mxu1 %vm596_vm1, %v6144_v46  ;;  %13369 = vmatprep.subr.msk.bf16.mxu0 %vm596_vm1, %v6153_v49  ;;  %v6294_v3 = vsel %vm596_vm1, %v6153_v49, 0 }
 0xb02   : > { %13289 = vmatprep.mubr.msk.bf16.mxu0 %vm596_vm1, %v6145_v31  ;;  %13286 = vmatpush3.bf16.xpose.msra.mxu0 %v6294_v3 }
 0xb03   : > { %13370 = vmatprep.subr.msk.bf16.mxu0 %vm596_vm1, %v6154_v44 }
 0xb09   : > { %v13227_v10 = vpop.f32.mrb[56].mxu1  ;;  %v13247_v11 = vpop.f32.mrb[64].mxu0 }
 0xb0a   : > { %v5893_v55 = vadd.f32 %v13227_v10, %v16711_v13  ;;  %v5884_v5 = vpop.f32.mrb[57].mxu1  ;;  %v6005_v62 = vpop.f32.mrb[65].mxu0  ;;  %13288 = vmatpush3.bf16.xpose.msra.mxu0 %v6297_v8  ;;  %v6014_v18 = vadd.f32 %v13247_v11, %v16716_v33 }
 0xb0b   : > { %v13228_v17 = vpop.f32.mrb[58].mxu1  ;;  %v13248_v50 = vpop.f32.mrb[66].mxu0  ;;  %v5885_v0 = vadd.f32 %v16711_v13, %v5884_v5  ;;  %v6006_v42 = vadd.f32 %v16716_v33, %v6005_v62 }
 0xb0c   : > { %v5896_v32 = vadd.f32 %v13228_v17, %v16711_v13  ;;  %v6017_v27 = vadd.f32 %v13248_v50, %v16716_v33  ;;  %v5887_v46 = vpop.f32.mrb[59].mxu1  ;;  %v6008_v22 = vpop.f32.mrb[67].mxu0 }
 0xb0d   : > { %v5888_v35 = vadd.f32 %v16711_v13, %v5887_v46  ;;  %v6009_v7 = vadd.f32 %v16716_v33, %v6008_v22 }
 0xb0e   : > { %v6148_v61 = vpack.c.bf16 %v5896_v32, %v5893_v55  ;;  %v6156_v19 = vpack.c.bf16 %v6017_v27, %v6014_v18 }
 0xb0f   : > { %v6147_v23 = vpack.c.bf16 %v5888_v35, %v5885_v0  ;;  %v6155_v40 = vpack.c.bf16 %v6009_v7, %v6006_v42 }
 0xb10   : > { %v6358_v12 = vsel %vm596_vm1, %v6156_v19, 0 }
 0xb11   : > { %v13255_v29 = vpop.f32.mrb[60].mxu1  ;;  %13290 = vmatmul.mubr.msk.bf16.vlgmr.msra.gmra.mrb[72].mxu0 %vm596_vm1, %v6146_v14  ;;  %13371 = vmatprep.subr.msk.bf16.mxu1 %vm596_vm1, %v6155_v40  ;;  %v6355_v30 = vsel %vm596_vm1, %v6155_v40, 0 }
 0xb12   : > { %13297 = vmatprep.mubr.msk.bf16.mxu1 %vm596_vm1, %v6147_v23  ;;  %v6078_v13 = vpop.f32.mrb[61].mxu1  ;;  %13294 = vmatpush3.bf16.xpose.msra.mxu1 %v6355_v30  ;;  %v6087_v6 = vadd.f32 %v13255_v29, %v11337_v36 }
 0xb13   : > { %v13256_v33 = vpop.f32.mrb[62].mxu1  ;;  %13372 = vmatprep.subr.msk.bf16.mxu1 %vm596_vm1, %v6156_v19  ;;  %v6079_v59 = vadd.f32 %v11337_v36, %v6078_v13 }
 0xb14   : > { %v6090_v16 = vadd.f32 %v13256_v33, %v11337_v36  ;;  %v6081_v20 = vpop.f32.mrb[63].mxu1 }
 0xb15   : > { %v6082_v25 = vadd.f32 %v11337_v36, %v6081_v20 }
 0xb16   : > { %v6158_v34 = vpack.c.bf16 %v6090_v16, %v6087_v6 }
 0xb17   : > { %v6157_v51 = vpack.c.bf16 %v6082_v25, %v6079_v59 }
 0xb19   : > { %v13259_v38 = vpop.f32.mrb[64].mxu1  ;;  %13301 = vmatprep.subr.bf16.mxu0 %v6157_v51 }
 0xb1a   : > { %v6094_v14 = vpop.f32.mrb[65].mxu1  ;;  %13296 = vmatpush3.bf16.xpose.msra.mxu1 %v6358_v12  ;;  %13302 = vmatpush3.bf16.msra.mxu0 %v6157_v51  ;;  %v6103_v31 = vadd.f32 %v13259_v38, %v11337_v36 }
 0xb1b   : > { %v13260_v44 = vpop.f32.mrb[66].mxu1  ;;  %13303 = vmatprep.subr.bf16.mxu0 %v6158_v34  ;;  %v6095_v10 = vadd.f32 %v11337_v36, %v6094_v14 }
 0xb1c   : > { %v6106_v49 = vadd.f32 %v13260_v44, %v11337_v36  ;;  %v6097_v3 = vpop.f32.mrb[67].mxu1 }
 0xb1d   : > { %v6098_v11 = vadd.f32 %v11337_v36, %v6097_v3 }
 0xb1e   : > { %13304 = vmatpush3.bf16.msra.mxu0 %v6158_v34  ;;  %v6160_v8 = vpack.c.bf16 %v6106_v49, %v6103_v31 }
 0xb1f   : > { %v6159_v55 = vpack.c.bf16 %v6098_v11, %v6095_v10 }
 0xb21   : > { %v13263_v5 = vpop.f32.mrb[68].mxu1  ;;  %13298 = vmatmul.mubr.msk.bf16.vlgmr.msra.gmra.mrb[80].mxu1 %vm596_vm1, %v6148_v61  ;;  %13309 = vmatprep.subr.bf16.mxu1 %v6159_v55 }
 0xb22   : > { %v6119_v62 = vadd.f32 %v13263_v5, %v11337_v36  ;;  %v6110_v17 = vpop.f32.mrb[69].mxu1  ;;  %13310 = vmatpush3.bf16.msra.mxu1 %v6159_v55 }
 0xb23   : > { %v13264_v50 = vpop.f32.mrb[70].mxu1  ;;  %13311 = vmatprep.subr.bf16.mxu1 %v6160_v8  ;;  %v6111_v27 = vadd.f32 %v11337_v36, %v6110_v17 }
 0xb24   : > { %v6122_v18 = vadd.f32 %v13264_v50, %v11337_v36  ;;  %v6113_v32 = vpop.f32.mrb[71].mxu1 }
 0xb25   : > { %v6114_v46 = vadd.f32 %v11337_v36, %v6113_v32 }
 0xb26   : > { %13312 = vmatpush3.bf16.msra.mxu1 %v6160_v8  ;;  %v16777_v22 = vpack.c.bf16 %v6122_v18, %v6119_v62 }
 0xb27   : > { %v16779_v0 = vpack.c.bf16 %v6114_v46, %v6111_v27 }
 0xb29   : > { %v13267_v42 = vpop.f32.mrb[72].mxu1  ;;  %13317 = vmatprep.subr.bf16.mxu0 %v16779_v0 }
 0xb2a   : > { %v6135_v35 = vadd.f32 %v13267_v42, %v11337_v36  ;;  %v6126_v7 = vpop.f32.mrb[73].mxu1 }
 0xb2b   : > { %v13268_v61 = vpop.f32.mrb[74].mxu1  ;;  %v6127_v40 = vadd.f32 %v11337_v36, %v6126_v7 }
 0xb2c   : > { %v6138_v19 = vadd.f32 %v13268_v61, %v11337_v36  ;;  %v6129_v23 = vpop.f32.mrb[75].mxu1 }
 0xb2d   : > { %v6130_v29 = vadd.f32 %v11337_v36, %v6129_v23 }
 0xb2e   : > { %v16782_v30 = vpack.c.bf16 %v6138_v19, %v6135_v35 }
 0xb2f   : > { %v16784_v13 = vpack.c.bf16 %v6130_v29, %v6127_v40 }
 0xb31   : > { %13325 = vmatprep.subr.bf16.mxu1 %v16784_v13 }
 0xbc4   : > { %v13275_v33 = vpop.f32.mrb[68].mxu0 }
 0xbc5   : > { %v6211_v6 = vpop.f32.mrb[69].mxu0  ;;  %v16789_v25 = vmul.f32 0.24253562, %v13275_v33 }
 0xbc6   : > { %v13276_v16 = vpop.f32.mrb[70].mxu0  ;;  %v16787_v20 = vmul.f32 0.24253562, %v6211_v6 }
 0xbc7   : > { %v6214_v59 = vpop.f32.mrb[71].mxu0  ;;  %v16795_v36 = vmul.f32 0.24253562, %v13276_v16  ;;  %v6431_v12 = vsel %vm1246_vm2, %v16789_v25, -inf }
 0xbc8   : > { %v6425_v34 = vsel %vm1246_vm2, %v16787_v20, -inf  ;;  %v16793_v51 = vmul.f32 0.24253562, %v6214_v59 }
 0xbc9   : > { %6426 = vmax.xlane.f32.xlu0 %v6425_v34  ;;  %v6434_v14 = vsel %vm1246_vm2, %v16795_v36, -inf }
 0xbca   : > { %v6428_v38 = vsel %vm1246_vm2, %v16793_v51, -inf }
 0xbcb   : > { %6429 = vmax.xlane.f32.xlu1 %v6428_v38 }
 0xbcd   : > { %6432 = vmax.xlane.f32.xlu0 %v6431_v12 }
 0xbcf   : > { %6435 = vmax.xlane.f32.xlu1 %v6434_v14 }
 0xbd4   : > { %v13283_v44 = vpop.f32.mrb[76].mxu1 }
 0xbd5   : > { %v6272_v31 = vpop.f32.mrb[77].mxu1  ;;  %v16805_v11 = vmul.f32 0.24253562, %v13283_v44 }
 0xbd6   : > { %v16803_v49 = vmul.f32 0.24253562, %v6272_v31  ;;  %v13284_v3 = vpop.f32.mrb[78].mxu1 }
 0xbd7   : > { %v6275_v10 = vpop.f32.mrb[79].mxu1  ;;  %v16811_v5 = vmul.f32 0.24253562, %v13284_v3  ;;  %v6443_v17 = vsel %vm1246_vm2, %v16805_v11, -inf }
 0xbd8   : > { %v16807_v8 = vmul.f32 0.24253562, %v6275_v10  ;;  %v6437_v55 = vsel %vm1246_vm2, %v16803_v49, -inf }
 0xbd9   : > { %6438 = vmax.xlane.f32.xlu0 %v6437_v55  ;;  %v6446_v50 = vsel %vm1246_vm2, %v16811_v5, -inf }
 0xbda   : > { %v6440_v62 = vsel %vm1246_vm2, %v16807_v8, -inf }
 0xbdb   : > { %6441 = vmax.xlane.f32.xlu1 %v6440_v62 }
 0xbdd   : > { %6444 = vmax.xlane.f32.xlu0 %v6443_v17 }
 0xbdf   : > { %6447 = vmax.xlane.f32.xlu1 %v6446_v50 }
 0xbe4   : > { %v13291_v18 = vpop.f32.mrb[72].mxu0 }
 0xbe5   : > { %v6333_v32 = vpop.f32.mrb[73].mxu0  ;;  %v16821_v35 = vmul.f32 0.24253562, %v13291_v18 }
 0xbe6   : > { %v16819_v27 = vmul.f32 0.24253562, %v6333_v32  ;;  %v13292_v46 = vpop.f32.mrb[74].mxu0 }
 0xbe7   : > { %v6336_v42 = vpop.f32.mrb[75].mxu0  ;;  %v16827_v19 = vmul.f32 0.24253562, %v13292_v46  ;;  %v6455_v40 = vsel %vm1246_vm2, %v16821_v35, -inf }
 0xbe8   : > { %v16823_v7 = vmul.f32 0.24253562, %v6336_v42  ;;  %v6449_v61 = vsel %vm1246_vm2, %v16819_v27, -inf }
 0xbe9   : > { %6450 = vmax.xlane.f32.xlu0 %v6449_v61  ;;  %v6458_v29 = vsel %vm1246_vm2, %v16827_v19, -inf }
 0xbea   : > { %v6452_v23 = vsel %vm1246_vm2, %v16823_v7, -inf }
 0xbeb   : > { %6453 = vmax.xlane.f32.xlu1 %v6452_v23 }
 0xbed   : > { %6456 = vmax.xlane.f32.xlu0 %v6455_v40 }
 0xbef   : > { %6459 = vmax.xlane.f32.xlu1 %v6458_v29 }
 0xbf4   : > { %v13299_v33 = vpop.f32.mrb[80].mxu1 }
 0xbf5   : > { %v6394_v6 = vpop.f32.mrb[81].mxu1  ;;  %v16837_v38 = vmul.f32 0.24253562, %v13299_v33 }
 0xbf6   : > { %v16835_v16 = vmul.f32 0.24253562, %v6394_v6  ;;  %v13300_v59 = vpop.f32.mrb[82].mxu1 }
 0xbf7   : > { %v6397_v34 = vpop.f32.mrb[83].mxu1  ;;  %v16843_v44 = vmul.f32 0.24253562, %v13300_v59  ;;  %v6467_v3 = vsel %vm1246_vm2, %v16837_v38, -inf }
 0xbf8   : > { %v16839_v12 = vmul.f32 0.24253562, %v6397_v34  ;;  %v6461_v14 = vsel %vm1246_vm2, %v16835_v16, -inf }
 0xbf9   : > { %6462 = vmax.xlane.f32.xlu0 %v6461_v14  ;;  %v6470_v10 = vsel %vm1246_vm2, %v16843_v44, -inf }
 0xbfa   : > { %v6464_v31 = vsel %vm1246_vm2, %v16839_v12, -inf }
 0xbfb   : > { %6465 = vmax.xlane.f32.xlu1 %v6464_v31 }
 0xbfd   : > { %6468 = vmax.xlane.f32.xlu0 %v6467_v3 }
 0xbff   : > { %6471 = vmax.xlane.f32.xlu1 %v6470_v10 }
 0xc56   : > { %v6427_v55 = vpop.xlane.xlu0 %6426 }
 0xc57   : > { %v6473_v62 = vsub.f32 %v16787_v20, %v6427_v55 }
 0xc58   : > { %v6430_v17 = vpop.xlane.xlu1 %6429 }
 0xc59   : > { %v6489_v50 = vmul.f32 1.442695, %v6473_v62  ;;  %v6474_v18 = vsub.f32 %v16793_v51, %v6430_v17 }
 0xc5a   : > { %v6433_v32 = vpop.xlane.xlu0 %6432 }
 0xc5b   : > { %13814 = vpow2.f32 %v6489_v50  ;;  %v6491_v46 = vmul.f32 1.442695, %v6474_v18  ;;  %v6475_v42 = vsub.f32 %v16789_v25, %v6433_v32 }
 0xc5c   : > { %v6436_v61 = vpop.xlane.xlu1 %6435 }
 0xc5d   : > { %13816 = vpow2.f32 %v6491_v46  ;;  %v6493_v23 = vmul.f32 1.442695, %v6475_v42  ;;  %v6476_v40 = vsub.f32 %v16795_v36, %v6436_v61 }
 0xc5f   : > { %13818 = vpow2.f32 %v6493_v23  ;;  %v6495_v29 = vmul.f32 1.442695, %v6476_v40 }
 0xc61   : > { %13820 = vpow2.f32 %v6495_v29 }
 0xc65   : > { %v16855_v33 = vpop.eup %13814 }
 0xc66   : > { %v6439_v20 = vpop.xlane.xlu0 %6438  ;;  %v6521_v6 = vsel %vm1246_vm2, %v16855_v33, 0.0 }
 0xc67   : > { %v16859_v51 = vpop.eup %13816  ;;  %v6477_v59 = vsub.f32 %v16803_v49, %v6439_v20  ;;  %6522 = vadd.xlane.f32.xlu0 %v6521_v6 }
 0xc68   : > { %v6442_v25 = vpop.xlane.xlu1 %6441  ;;  %v6524_v34 = vsel %vm1246_vm2, %v16859_v51, 0.0 }
 0xc69   : > { %v16864_v14 = vpop.eup %13818  ;;  %v6497_v36 = vmul.f32 1.442695, %v6477_v59  ;;  %v6478_v31 = vsub.f32 %v16807_v8, %v6442_v25  ;;  %6525 = vadd.xlane.f32.xlu1 %v6524_v34 }
 0xc6a   : > { %v6445_v3 = vpop.xlane.xlu0 %6444  ;;  %v6527_v10 = vsel %vm1246_vm2, %v16864_v14, 0.0 }
 0xc6b   : > { %v16869_v55 = vpop.eup %13820  ;;  %13822 = vpow2.f32 %v6497_v36  ;;  %v6499_v62 = vmul.f32 1.442695, %v6478_v31  ;;  %v6479_v49 = vsub.f32 %v16805_v11, %v6445_v3  ;;  %6528 = vadd.xlane.f32.xlu0 %v6527_v10 }
 0xc6c   : > { %v6448_v17 = vpop.xlane.xlu1 %6447  ;;  %v6530_v50 = vsel %vm1246_vm2, %v16869_v55, 0.0 }
 0xc6d   : > { %13824 = vpow2.f32 %v6499_v62  ;;  %v6501_v18 = vmul.f32 1.442695, %v6479_v49  ;;  %v6480_v8 = vsub.f32 %v16811_v5, %v6448_v17  ;;  %6531 = vadd.xlane.f32.xlu1 %v6530_v50 }
 0xc6f   : > { %13826 = vpow2.f32 %v6501_v18  ;;  %v6503_v32 = vmul.f32 1.442695, %v6480_v8 }
 0xc71   : > { %13828 = vpow2.f32 %v6503_v32 }
 0xc75   : > { %v16875_v46 = vpop.eup %13822 }
 0xc76   : > { %v6451_v42 = vpop.xlane.xlu0 %6450  ;;  %v6533_v61 = vsel %vm1246_vm2, %v16875_v46, 0.0 }
 0xc77   : > { %v16879_v11 = vpop.eup %13824  ;;  %v6481_v23 = vsub.f32 %v16819_v27, %v6451_v42  ;;  %6534 = vadd.xlane.f32.xlu0 %v6533_v61 }
 0xc78   : > { %v6454_v40 = vpop.xlane.xlu1 %6453  ;;  %v6536_v29 = vsel %vm1246_vm2, %v16879_v11, 0.0 }
 0xc79   : > { %v16884_v5 = vpop.eup %13826  ;;  %v6505_v20 = vmul.f32 1.442695, %v6481_v23  ;;  %v6482_v6 = vsub.f32 %v16823_v7, %v6454_v40  ;;  %6537 = vadd.xlane.f32.xlu1 %v6536_v29 }
 0xc7a   : > { %v6457_v59 = vpop.xlane.xlu0 %6456  ;;  %v6539_v25 = vsel %vm1246_vm2, %v16884_v5, 0.0 }
 0xc7b   : > { %v16889_v34 = vpop.eup %13828  ;;  %13830 = vpow2.f32 %v6505_v20  ;;  %v6507_v36 = vmul.f32 1.442695, %v6482_v6  ;;  %v6483_v27 = vsub.f32 %v16821_v35, %v6457_v59  ;;  %6540 = vadd.xlane.f32.xlu0 %v6539_v25 }
 0xc7c   : > { %v6460_v31 = vpop.xlane.xlu1 %6459  ;;  %v6542_v3 = vsel %vm1246_vm2, %v16889_v34, 0.0 }
 0xc7d   : > { %13832 = vpow2.f32 %v6507_v36  ;;  %v6509_v10 = vmul.f32 1.442695, %v6483_v27  ;;  %v6484_v7 = vsub.f32 %v16827_v19, %v6460_v31  ;;  %6543 = vadd.xlane.f32.xlu1 %v6542_v3 }
 0xc7f   : > { %13834 = vpow2.f32 %v6509_v10  ;;  %v6511_v62 = vmul.f32 1.442695, %v6484_v7 }
 0xc81   : > { %13836 = vpow2.f32 %v6511_v62 }
 0xc85   : > { %v16895_v49 = vpop.eup %13830 }
 0xc86   : > { %v6463_v17 = vpop.xlane.xlu0 %6462  ;;  %v6545_v50 = vsel %vm1246_vm2, %v16895_v49, 0.0 }
 0xc87   : > { %v16899_v35 = vpop.eup %13832  ;;  %v6485_v18 = vsub.f32 %v16835_v16, %v6463_v17  ;;  %6546 = vadd.xlane.f32.xlu0 %v6545_v50 }
 0xc88   : > { %v6466_v8 = vpop.xlane.xlu1 %6465  ;;  %v6548_v32 = vsel %vm1246_vm2, %v16899_v35, 0.0 }
 0xc89   : > { %v16904_v19 = vpop.eup %13834  ;;  %v6513_v42 = vmul.f32 1.442695, %v6485_v18  ;;  %v6486_v61 = vsub.f32 %v16839_v12, %v6466_v8  ;;  %6549 = vadd.xlane.f32.xlu1 %v6548_v32 }
 0xc8a   : > { %v6469_v23 = vpop.xlane.xlu0 %6468  ;;  %v6551_v40 = vsel %vm1246_vm2, %v16904_v19, 0.0 }
 0xc8b   : > { %v16909_v29 = vpop.eup %13836  ;;  %13838 = vpow2.f32 %v6513_v42  ;;  %v6515_v20 = vmul.f32 1.442695, %v6486_v61  ;;  %v6487_v16 = vsub.f32 %v16837_v38, %v6469_v23  ;;  %6552 = vadd.xlane.f32.xlu0 %v6551_v40 }
 0xc8c   : > { %v6472_v6 = vpop.xlane.xlu1 %6471  ;;  %v6554_v59 = vsel %vm1246_vm2, %v16909_v29, 0.0 }
 0xc8d   : > { %13840 = vpow2.f32 %v6515_v20  ;;  %v6517_v25 = vmul.f32 1.442695, %v6487_v16  ;;  %v6488_v12 = vsub.f32 %v16843_v44, %v6472_v6  ;;  %6555 = vadd.xlane.f32.xlu1 %v6554_v59 }
 0xc8f   : > { %13842 = vpow2.f32 %v6517_v25  ;;  %v6519_v36 = vmul.f32 1.442695, %v6488_v12 }
 0xc91   : > { %13844 = vpow2.f32 %v6519_v36 }
 0xc95   : > { %v16915_v27 = vpop.eup %13838 }
 0xc96   : > { %v6557_v31 = vsel %vm1246_vm2, %v16915_v27, 0.0 }
 0xc97   : > { %v16919_v3 = vpop.eup %13840  ;;  %6558 = vadd.xlane.f32.xlu0 %v6557_v31 }
 0xc98   : > { %v6560_v38 = vsel %vm1246_vm2, %v16919_v3, 0.0 }
 0xc99   : > { %v16923_v10 = vpop.eup %13842  ;;  %6561 = vadd.xlane.f32.xlu1 %v6560_v38 }
 0xc9a   : > { %v6563_v44 = vsel %vm1246_vm2, %v16923_v10, 0.0 }
 0xc9b   : > { %v16927_v7 = vpop.eup %13844  ;;  %6564 = vadd.xlane.f32.xlu0 %v6563_v44 }
 0xc9c   : > { %v6566_v62 = vsel %vm1246_vm2, %v16927_v7, 0.0 }
 0xc9d   : > { %6567 = vadd.xlane.f32.xlu1 %v6566_v62 }
 0xcf4   : > { %v6523_v17 = vpop.xlane.xlu0 %6522 }
 0xcf5   : > { %13846 = vrcp.f32 %v6523_v17 }
 0xcf6   : > { %v6526_v50 = vpop.xlane.xlu1 %6525 }
 0xcf7   : > { %13848 = vrcp.f32 %v6526_v50 }
 0xcf8   : > { %v6529_v18 = vpop.xlane.xlu0 %6528 }
 0xcf9   : > { %13850 = vrcp.f32 %v6529_v18 }
 0xcfa   : > { %v6532_v8 = vpop.xlane.xlu1 %6531 }
 0xcfb   : > { %13852 = vrcp.f32 %v6532_v8 }
 0xcff   : > { %v13847_v32 = vpop.eup %13846 }
 0xd00   : > { %v6585_v61 = vmul.f32 %v13847_v32, %v16855_v33 }
 0xd01   : > { %v13849_v42 = vpop.eup %13848 }
 0xd02   : > { %v6586_v23 = vmul.f32 %v13849_v42, %v16859_v51  ;;  %v13540_v51 = vld [vmem:[%s19159_s7 + $0xc] sm:$0xff]  }
 0xd03   : > { %v13851_v40 = vpop.eup %13850 }
 0xd04   : > { %v6535_v20 = vpop.xlane.xlu0 %6534  ;;  %v6601_v16 = vpack.c.bf16 %v6586_v23, %v6585_v61  ;;  %v6587_v59 = vmul.f32 %v13851_v40, %v16864_v14 }
 0xd05   : > { %v13853_v6 = vpop.eup %13852  ;;  %13854 = vrcp.f32 %v6535_v20 }
 0xd06   : > { %v6588_v25 = vmul.f32 %v13853_v6, %v16869_v55  ;;  %13305 = vmatprep.mubr.msk.bf16.mxu0 %vm1246_vm2, %v6601_v16  ;;  %v6538_v12 = vpop.xlane.xlu1 %6537 }
 0xd07   : > { %13856 = vrcp.f32 %v6538_v12 }
 0xd08   : > { %v6602_v36 = vpack.c.bf16 %v6588_v25, %v6587_v59  ;;  %v6541_v31 = vpop.xlane.xlu0 %6540 }
 0xd09   : > { %13858 = vrcp.f32 %v6541_v31 }
 0xd0a   : > { %13306 = vmatmul.mubr.msk.bf16.vlgmr.msra.gmra.mrb[76].mxu0 %vm1246_vm2, %v6602_v36  ;;  %v6544_v33 = vpop.xlane.xlu1 %6543 }
 0xd0b   : > { %13318 = vmatpush3.bf16.msra.mxu0 %v16779_v0  ;;  %13860 = vrcp.f32 %v6544_v33 }
 0xd0c   : > { %13319 = vmatprep.subr.bf16.mxu0 %v16777_v22 }
 0xd0f   : > { %v13855_v14 = vpop.eup %13854  ;;  %13320 = vmatpush3.bf16.msra.mxu0 %v16777_v22 }
 0xd10   : > { %13333 = vmatprep.subr.bf16.mxu0 %v13540_v51  ;;  %v6589_v38 = vmul.f32 %v13855_v14, %v16875_v46 }
 0xd11   : > { %v13857_v55 = vpop.eup %13856 }
 0xd12   : > { %v6590_v44 = vmul.f32 %v13857_v55, %v16879_v11 }
 0xd13   : > { %v13859_v62 = vpop.eup %13858 }
 0xd14   : > { %v6547_v17 = vpop.xlane.xlu0 %6546  ;;  %v6603_v50 = vpack.c.bf16 %v6590_v44, %v6589_v38  ;;  %v6591_v18 = vmul.f32 %v13859_v62, %v16884_v5  ;;  %v19198_v44 = vmov 0  }
 0xd15   : > { %v13861_v0 = vpop.eup %13860  ;;  %13862 = vrcp.f32 %v6547_v17 }
 0xd16   : > { %v6592_v8 = vmul.f32 %v13861_v0, %v16889_v34  ;;  %13313 = vmatprep.mubr.msk.bf16.mxu1 %vm1246_vm2, %v6603_v50  ;;  %v6550_v32 = vpop.xlane.xlu1 %6549 }
 0xd17   : > { %13864 = vrcp.f32 %v6550_v32 }
 0xd18   : > { %v6604_v22 = vpack.c.bf16 %v6592_v8, %v6591_v18  ;;  %v6553_v42 = vpop.xlane.xlu0 %6552 }
 0xd19   : > { %13866 = vrcp.f32 %v6553_v42 }
 0xd1a   : > { %13314 = vmatmul.mubr.msk.bf16.vlgmr.msra.gmra.mrb[84].mxu1 %vm1246_vm2, %v6604_v22  ;;  %v6556_v46 = vpop.xlane.xlu1 %6555 }
 0xd1b   : > { %13326 = vmatpush3.bf16.msra.mxu1 %v16784_v13  ;;  %13868 = vrcp.f32 %v6556_v46 }
 0xd1c   : > { %13327 = vmatprep.subr.bf16.mxu1 %v16782_v30 }
 0xd1f   : > { %v13863_v11 = vpop.eup %13862  ;;  %13328 = vmatpush3.bf16.msra.mxu1 %v16782_v30 }
 0xd20   : > { %v6593_v34 = vmul.f32 %v13863_v11, %v16895_v49 }
 0xd21   : > { %v13865_v5 = vpop.eup %13864 }
 0xd22   : > { %v6594_v61 = vmul.f32 %v13865_v5, %v16899_v35 }
 0xd23   : > { %v13867_v23 = vpop.eup %13866 }
 0xd24   : > { %v6559_v40 = vpop.xlane.xlu0 %6558  ;;  %v6605_v20 = vpack.c.bf16 %v6594_v61, %v6593_v34  ;;  %v6595_v6 = vmul.f32 %v13867_v23, %v16904_v19 }
 0xd25   : > { %v13869_v16 = vpop.eup %13868  ;;  %13870 = vrcp.f32 %v6559_v40 }
 0xd26   : > { %v6596_v13 = vmul.f32 %v13869_v16, %v16909_v29  ;;  %13321 = vmatprep.mubr.msk.bf16.mxu0 %vm1246_vm2, %v6605_v20  ;;  %v6562_v59 = vpop.xlane.xlu1 %6561 }
 0xd27   : > { %13872 = vrcp.f32 %v6562_v59 }
 0xd28   : > { %v6606_v25 = vpack.c.bf16 %v6596_v13, %v6595_v6  ;;  %v6565_v30 = vpop.xlane.xlu0 %6564 }
 0xd29   : > { %13874 = vrcp.f32 %v6565_v30 }
 0xd2a   : > { %13322 = vmatmul.mubr.msk.bf16.vlgmr.msra.gmra.mrb[80].mxu0 %vm1246_vm2, %v6606_v25  ;;  %v6568_v49 = vpop.xlane.xlu1 %6567  ;;  %v16981_v25 = vld [vmem:[%s19160_s8 + $0x1] ss:$0 sm:$0xff] }
 0xd2b   : > { %13876 = vrcp.f32 %v6568_v49  ;;  %13334 = vmatpush3.bf16.msra.mxu0 %v13540_v51 }
 0xd2f   : > { %v13871_v35 = vpop.eup %13870 }
 0xd30   : > { %v6597_v36 = vmul.f32 %v13871_v35, %v16915_v27  ;;  %v13541_v27 = vld [vmem:[%s19159_s7 + $0x14] ss:$0 sps:$4 sm:$0x11]  }
 0xd31   : > { %v13873_v12 = vpop.eup %13872 }
 0xd32   : > { %v6598_v19 = vmul.f32 %v13873_v12, %v16919_v3  ;;  %v6883_v3 = vand.u32 %v13541_v27, %v19197_v53 }
 0xd33   : > { %v13875_v31 = vpop.eup %13874 }
 0xd34   : > { %v6607_v29 = vpack.c.bf16 %v6598_v19, %v6597_v36  ;;  %v6599_v14 = vmul.f32 %v13875_v31, %v16923_v10  ;;  %13335 = vmatprep.subr.bf16.mxu0 %v6883_v3 }
 0xd35   : > { %v13877_v33 = vpop.eup %13876  ;;  %13336 = vmatpush3.bf16.msra.mxu0 %v6883_v3 }
 0xd36   : > { %v6600_v55 = vmul.f32 %v13877_v33, %v16927_v7  ;;  %13329 = vmatprep.mubr.msk.bf16.mxu1 %vm1246_vm2, %v6607_v29 }
 0xd38   : > { %v6608_v38 = vpack.c.bf16 %v6600_v55, %v6599_v14 }
 0xd3a   : > { %13330 = vmatmul.mubr.msk.bf16.vlgmr.msra.gmra.mrb[88].mxu1 %vm1246_vm2, %v6608_v38 }
 0xd3b   : > { %7596 = vmatprep.mubr.bf16.mxu1 %v19198_v44 }
 0xddd   : > { %v13307_v51 = vpop.f32.mrb[76].mxu0 }
 0xdde   : > { %v6649_v62 = vpop.f32.mrb[77].mxu0 }
 0xddf   : > { %v13308_v10 = vpop.f32.mrb[78].mxu0 }
 0xde0   : > { %v6830_v17 = vpack.c.bf16 %v13308_v10, %v13307_v51  ;;  %v6652_v7 = vpop.f32.mrb[79].mxu0 }
 0xde1   : > { %v6829_v50 = vpack.c.bf16 %v6652_v7, %v6649_v62 }
 0xde3   : > { %13337 = vmatprep.mubr.msk.bf16.mxu0 %vm596_vm1, %v6829_v50 }
 0xde4   : > { %13338 = vmatmul.mubr.msk.bf16.vlgmr.msra.gmra.mrb[84].mxu0 %vm596_vm1, %v6830_v17 }
 0xded   : > { %v13315_v0 = vpop.f32.mrb[84].mxu1 }
 0xdee   : > { %v6704_v18 = vpop.f32.mrb[85].mxu1 }
 0xdef   : > { %v13316_v8 = vpop.f32.mrb[86].mxu1 }
 0xdf0   : > { %v6832_v32 = vpack.c.bf16 %v13316_v8, %v13315_v0  ;;  %v6707_v22 = vpop.f32.mrb[87].mxu1 }
 0xdf1   : > { %v6831_v42 = vpack.c.bf16 %v6707_v22, %v6704_v18 }
 0xdf3   : > { %13341 = vmatprep.mubr.msk.bf16.mxu0 %vm596_vm1, %v6831_v42 }
 0xdf4   : > { %13342 = vmatmul.mubr.msk.bf16.gmra.mrb[88].mxu0 %vm596_vm1, %v6832_v32 }
 0xdfd   : > { %v13323_v46 = vpop.f32.mrb[80].mxu0 }
 0xdfe   : > { %v6759_v11 = vpop.f32.mrb[81].mxu0 }
 0xdff   : > { %v13324_v5 = vpop.f32.mrb[82].mxu0 }
 0xe00   : > { %v6834_v34 = vpack.c.bf16 %v13324_v5, %v13323_v46  ;;  %v6762_v61 = vpop.f32.mrb[83].mxu0 }
 0xe01   : > { %v6833_v23 = vpack.c.bf16 %v6762_v61, %v6759_v11 }
 0xe03   : > { %13345 = vmatprep.mubr.msk.bf16.mxu0 %vm596_vm1, %v6833_v23 }
 0xe04   : > { %13346 = vmatmul.mubr.msk.bf16.gmra.mrb[92].mxu0 %vm596_vm1, %v6834_v34 }
 0xe0d   : > { %v13331_v40 = vpop.f32.mrb[88].mxu1 }
 0xe0e   : > { %v6814_v20 = vpop.f32.mrb[89].mxu1 }
 0xe0f   : > { %v13332_v16 = vpop.f32.mrb[90].mxu1 }
 0xe10   : > { %v6836_v6 = vpack.c.bf16 %v13332_v16, %v13331_v40  ;;  %v6817_v13 = vpop.f32.mrb[91].mxu1 }
 0xe11   : > { %v6835_v59 = vpack.c.bf16 %v6817_v13, %v6814_v20 }
 0xe13   : > { %13349 = vmatprep.mubr.msk.bf16.mxu0 %vm596_vm1, %v6835_v59 }
 0xe14   : > { %13350 = vmatmul.mubr.msk.bf16.gmra.mrb[96].mxu0 %vm596_vm1, %v6836_v6 }
 0xe15   : > { %7709 = vmatprep.mubr.bf16.mxu0 %v19198_v44 }
 0xeb7   : > { %v13339_v30 = vpop.f32.mrb[84].mxu0 }
 0xeb8   : > { %v6919_v49 = vpop.f32.mrb[85].mxu0  ;;  %v6928_v35 = vadd.f32 %v13339_v30, %v16981_v25 }
 0xeb9   : > { %v6920_v12 = vadd.f32 %v16981_v25, %v6919_v49  ;;  %v13340_v36 = vpop.f32.mrb[86].mxu0 }
 0xeba   : > { %v6922_v19 = vpop.f32.mrb[87].mxu0  ;;  %v6931_v31 = vadd.f32 %v13340_v36, %v16981_v25  ;;  %v16996_v38 = vadd.f32 %v6928_v35, %v16589_v37 }
 0xebb   : > { %v6923_v29 = vadd.f32 %v16981_v25, %v6922_v19  ;;  %v16988_v33 = vadd.f32 %v6920_v12, %v16568_v2 }
 0xebc   : > { %v17001_v3 = vadd.f32 %v6931_v31, %v16592_v47  ;;  %v7008_v2 = vsel %vm596_vm1, %v16996_v38, 0.0 }
 0xebd   : > { %v7002_v14 = vsel %vm596_vm1, %v16988_v33, 0.0  ;;  %v16993_v55 = vadd.f32 %v6923_v29, %v16571_v43 }
 0xebe   : > { %7003 = vadd.xlane.f32.xlu0 %v7002_v14  ;;  %v7011_v51 = vsel %vm596_vm1, %v17001_v3, 0.0 }
 0xebf   : > { %v7005_v27 = vsel %vm596_vm1, %v16993_v55, 0.0 }
 0xec0   : > { %7006 = vadd.xlane.f32.xlu1 %v7005_v27 }
 0xec2   : > { %7009 = vadd.xlane.f32.xlu0 %v7008_v2 }
 0xec4   : > { %7012 = vadd.xlane.f32.xlu1 %v7011_v51 }
 0xec7   : > { %v13343_v43 = vpop.f32.mrb[88].mxu0 }
 0xec8   : > { %v6935_v62 = vpop.f32.mrb[89].mxu0  ;;  %v6944_v37 = vadd.f32 %v13343_v43, %v16981_v25 }
 0xec9   : > { %v6936_v10 = vadd.f32 %v16981_v25, %v6935_v62  ;;  %v13344_v17 = vpop.f32.mrb[90].mxu0 }
 0xeca   : > { %v6938_v7 = vpop.f32.mrb[91].mxu0  ;;  %v6947_v47 = vadd.f32 %v13344_v17, %v16981_v25  ;;  %v17020_v32 = vadd.f32 %v6944_v37, %v16627_v54 }
 0xecb   : > { %v6939_v50 = vadd.f32 %v16981_v25, %v6938_v7  ;;  %v17012_v0 = vadd.f32 %v6936_v10, %v16609_v57 }
 0xecc   : > { %v17025_v42 = vadd.f32 %v6947_v47, %v16630_v52  ;;  %v7020_v57 = vsel %vm596_vm1, %v17020_v32, 0.0 }
 0xecd   : > { %v7014_v18 = vsel %vm596_vm1, %v17012_v0, 0.0  ;;  %v17017_v8 = vadd.f32 %v6939_v50, %v16612_v56 }
 0xece   : > { %7015 = vadd.xlane.f32.xlu0 %v7014_v18  ;;  %v7023_v46 = vsel %vm596_vm1, %v17025_v42, 0.0 }
 0xecf   : > { %v7017_v22 = vsel %vm596_vm1, %v17017_v8, 0.0 }
 0xed0   : > { %7018 = vadd.xlane.f32.xlu1 %v7017_v22 }
 0xed2   : > { %7021 = vadd.xlane.f32.xlu0 %v7020_v57 }
 0xed4   : > { %7024 = vadd.xlane.f32.xlu1 %v7023_v46 }
 0xed7   : > { %v13347_v56 = vpop.f32.mrb[92].mxu0 }
 0xed8   : > { %v6951_v11 = vpop.f32.mrb[93].mxu0  ;;  %v6960_v54 = vadd.f32 %v13347_v56, %v16981_v25 }
 0xed9   : > { %v6952_v5 = vadd.f32 %v16981_v25, %v6951_v11  ;;  %v13348_v34 = vpop.f32.mrb[94].mxu0 }
 0xeda   : > { %v6954_v61 = vpop.f32.mrb[95].mxu0  ;;  %v6963_v52 = vadd.f32 %v13348_v34, %v16981_v25  ;;  %v17044_v6 = vadd.f32 %v6960_v54, %v16659_v9 }
 0xedb   : > { %v6955_v23 = vadd.f32 %v16981_v25, %v6954_v61  ;;  %v17036_v40 = vadd.f32 %v6952_v5, %v16645_v60 }
 0xedc   : > { %v17049_v59 = vadd.f32 %v6963_v52, %v16662_v45  ;;  %v7032_v60 = vsel %vm596_vm1, %v17044_v6, 0.0 }
 0xedd   : > { %v7026_v20 = vsel %vm596_vm1, %v17036_v40, 0.0  ;;  %v17041_v16 = vadd.f32 %v6955_v23, %v16648_v4 }
 0xede   : > { %7027 = vadd.xlane.f32.xlu0 %v7026_v20  ;;  %v7035_v30 = vsel %vm596_vm1, %v17049_v59, 0.0 }
 0xedf   : > { %v7029_v13 = vsel %vm596_vm1, %v17041_v16, 0.0 }
 0xee0   : > { %7030 = vadd.xlane.f32.xlu1 %v7029_v13 }
 0xee2   : > { %7033 = vadd.xlane.f32.xlu0 %v7032_v60 }
 0xee4   : > { %7036 = vadd.xlane.f32.xlu1 %v7035_v30 }
 0xee7   : > { %v13351_v4 = vpop.f32.mrb[96].mxu0 }
 0xee8   : > { %v6967_v49 = vpop.f32.mrb[97].mxu0  ;;  %v6976_v9 = vadd.f32 %v13351_v4, %v16981_v25 }
 0xee9   : > { %v6968_v35 = vadd.f32 %v16981_v25, %v6967_v49  ;;  %v13352_v12 = vpop.f32.mrb[98].mxu0 }
 0xeea   : > { %v6970_v36 = vpop.f32.mrb[99].mxu0  ;;  %v6979_v45 = vadd.f32 %v13352_v12, %v16981_v25  ;;  %v17068_v27 = vadd.f32 %v6976_v9, %v16687_v48 }
 0xeeb   : > { %v6971_v19 = vadd.f32 %v16981_v25, %v6970_v36  ;;  %v17060_v31 = vadd.f32 %v6968_v35, %v16673_v63 }
 0xeec   : > { %v17073_v51 = vadd.f32 %v6979_v45, %v16690_v41  ;;  %v7044_v63 = vsel %vm596_vm1, %v17068_v27, 0.0 }
 0xeed   : > { %v7038_v29 = vsel %vm596_vm1, %v17060_v31, 0.0  ;;  %v17065_v14 = vadd.f32 %v6971_v19, %v16676_v24 }
 0xeee   : > { %7039 = vadd.xlane.f32.xlu0 %v7038_v29  ;;  %v7047_v25 = vsel %vm596_vm1, %v17073_v51, 0.0 }
 0xeef   : > { %v7041_v2 = vsel %vm596_vm1, %v17065_v14, 0.0 }
 0xef0   : > { %7042 = vadd.xlane.f32.xlu1 %v7041_v2 }
 0xef2   : > { %7045 = vadd.xlane.f32.xlu0 %v7044_v63 }
 0xef4   : > { %7048 = vadd.xlane.f32.xlu1 %v7047_v25 }
 0xf4b   : > { %v7004_v24 = vpop.xlane.xlu0 %7003 }
 0xf4c   : > { %v7050_v43 = vmul.f32 0.05882353, %v7004_v24 }
 0xf4d   : > { %v7007_v48 = vpop.xlane.xlu1 %7006 }
 0xf4e   : > { %v17080_v62 = vsub.f32 %v16988_v33, %v7050_v43  ;;  %v7051_v37 = vmul.f32 0.05882353, %v7007_v48 }
 0xf4f   : > { %v7010_v10 = vpop.xlane.xlu0 %7009 }
 0xf50   : > { %v17083_v41 = vsub.f32 %v16993_v55, %v7051_v37  ;;  %v7052_v17 = vmul.f32 0.05882353, %v7010_v10  ;;  %v7082_v7 = vmul.f32 %v17080_v62, %v17080_v62  ;;  %v11384_v37 = vld [vmem:[%s19163_s11 + $0xc8] sm:$0xff] }
 0xf51   : > { %v7013_v47 = vpop.xlane.xlu1 %7012  ;;  %v11392_v10 = vld [vmem:[%s19163_s11 + $0x108] sm:$0xff] }
 0xf52   : > { %v17088_v50 = vsub.f32 %v16996_v38, %v7052_v17  ;;  %v7053_v18 = vmul.f32 0.05882353, %v7013_v47  ;;  %v7098_v22 = vsel %vm596_vm1, %v7082_v7, 0.0  ;;  %v7083_v33 = vmul.f32 %v17083_v41, %v17083_v41 }
 0xf53   : > { %7099 = vadd.xlane.f32.xlu0 %v7098_v22  ;;  %v11411_v22 = vcombine.low %v11384_v37, %v11392_v10 }
 0xf54   : > { %v17094_v57 = vsub.f32 %v17001_v3, %v7053_v18  ;;  %v7101_v55 = vsel %vm596_vm1, %v7083_v33, 0.0  ;;  %v7084_v46 = vmul.f32 %v17088_v50, %v17088_v50  ;;  %v11391_v18 = vld [vmem:[%s19163_s11 + $0x100] sm:$0xff]  ;;  %v11412_v33 = vcombine.high %v11384_v37, %v11392_v10 }
 0xf55   : > { %7102 = vadd.xlane.f32.xlu1 %v7101_v55 }
 0xf56   : > { %v7104_v56 = vsel %vm596_vm1, %v7084_v46, 0.0  ;;  %v7085_v38 = vmul.f32 %v17094_v57, %v17094_v57  ;;  %7677 = vmatprep.subr.bf16.mxu0 %v11412_v33  ;;  %v17219_v33 = vld [vmem:[%s19163_s11 + $0x118] sm:$0xff] }
 0xf57   : > { %7105 = vadd.xlane.f32.xlu0 %v7104_v56  ;;  %v11400_v56 = vld [vmem:[%s19163_s11 + $0x148] sm:$0x11]  ;;  %7678 = vmatpush1.bf16.msra.mxu0 %v11411_v22 }
 0xf58   : > { %v7107_v11 = vsel %vm596_vm1, %v7085_v38, 0.0 }
 0xf59   : > { %7108 = vadd.xlane.f32.xlu1 %v7107_v11 }
 0xf5b   : > { %v7016_v54 = vpop.xlane.xlu0 %7015 }
 0xf5c   : > { %v7054_v5 = vmul.f32 0.05882353, %v7016_v54 }
 0xf5d   : > { %v7019_v34 = vpop.xlane.xlu1 %7018 }
 0xf5e   : > { %v17104_v3 = vsub.f32 %v17012_v0, %v7054_v5  ;;  %v7055_v61 = vmul.f32 0.05882353, %v7019_v34 }
 0xf5f   : > { %v7022_v52 = vpop.xlane.xlu0 %7021 }
 0xf60   : > { %v17107_v23 = vsub.f32 %v17017_v8, %v7055_v61  ;;  %v7056_v20 = vmul.f32 0.05882353, %v7022_v52  ;;  %v7086_v13 = vmul.f32 %v17104_v3, %v17104_v3  ;;  %v11427_v61 = vcombine.low %v11400_v56, %v11400_v56 }
 0xf61   : > { %v7025_v60 = vpop.xlane.xlu1 %7024  ;;  %v11428_v52 = vcombine.high %v11400_v56, %v11400_v56 }
 0xf62   : > { %v17112_v30 = vsub.f32 %v17020_v32, %v7056_v20  ;;  %v7057_v4 = vmul.f32 0.05882353, %v7025_v60  ;;  %v7110_v49 = vsel %vm596_vm1, %v7086_v13, 0.0  ;;  %v7087_v0 = vmul.f32 %v17107_v23, %v17107_v23 }
 0xf63   : > { %7111 = vadd.xlane.f32.xlu0 %v7110_v49  ;;  %v7526_v60 = vand.u32 %v11428_v52, %v19197_v53  ;;  %v7523_v49 = vand.u32 %v11427_v61, %v19197_v53 }
 0xf64   : > { %v17118_v9 = vsub.f32 %v17025_v42, %v7057_v4  ;;  %v7113_v8 = vsel %vm596_vm1, %v7087_v0, 0.0  ;;  %v7088_v35 = vmul.f32 %v17112_v30, %v17112_v30 }
 0xf65   : > { %7114 = vadd.xlane.f32.xlu1 %v7113_v8  ;;  %7679 = vmatprep.subr.bf16.mxu0 %v7526_v60 }
 0xf66   : > { %v7116_v12 = vsel %vm596_vm1, %v7088_v35, 0.0  ;;  %v7089_v32 = vmul.f32 %v17118_v9, %v17118_v9  ;;  %7680 = vmatpush1.bf16.msra.mxu0 %v7523_v49  ;;  %v17228_v49 = vld [vmem:[%s19161_s9 + $0x1] ss:$0 sm:$0xff] }
 0xf67   : > { %7117 = vadd.xlane.f32.xlu0 %v7116_v12 }
 0xf68   : > { %v7119_v36 = vsel %vm596_vm1, %v7089_v32, 0.0 }
 0xf69   : > { %7120 = vadd.xlane.f32.xlu1 %v7119_v36 }
 0xf6b   : > { %v7028_v45 = vpop.xlane.xlu0 %7027 }
 0xf6c   : > { %v7058_v19 = vmul.f32 0.05882353, %v7028_v45 }
 0xf6d   : > { %v7031_v29 = vpop.xlane.xlu1 %7030 }
 0xf6e   : > { %v17128_v42 = vsub.f32 %v17036_v40, %v7058_v19  ;;  %v7059_v2 = vmul.f32 0.05882353, %v7031_v29  ;;  %v11383_v40 = vld [vmem:[%s19163_s11 + $0xc0] sm:$0xff] }
 0xf6f   : > { %v7034_v63 = vpop.xlane.xlu0 %7033  ;;  %v11409_v55 = vcombine.low %v11383_v40, %v11391_v18  ;;  %v11410_v46 = vcombine.high %v11383_v40, %v11391_v18 }
 0xf70   : > { %v17131_v25 = vsub.f32 %v17041_v16, %v7059_v2  ;;  %v7060_v24 = vmul.f32 0.05882353, %v7034_v63  ;;  %v7090_v43 = vmul.f32 %v17128_v42, %v17128_v42 }
 0xf71   : > { %v7037_v48 = vpop.xlane.xlu1 %7036  ;;  %7564 = vmatprep.subr.bf16.mxu1 %v11410_v46 }
 0xf72   : > { %v17145_v16 = vsub.f32 %v17044_v6, %v7060_v24  ;;  %v7061_v17 = vmul.f32 0.05882353, %v7037_v48  ;;  %v7122_v7 = vsel %vm596_vm1, %v7090_v43, 0.0  ;;  %v7091_v47 = vmul.f32 %v17131_v25, %v17131_v25  ;;  %v11399_v6 = vld [vmem:[%s19163_s11 + $0x140] sm:$0x11]  ;;  %7565 = vmatpush1.bf16.msra.mxu1 %v11409_v55 }
 0xf73   : > { %7123 = vadd.xlane.f32.xlu0 %v7122_v7  ;;  %v11426_v5 = vcombine.high %v11399_v6, %v11399_v6  ;;  %v11425_v34 = vcombine.low %v11399_v6, %v11399_v6  ;;  %v17205_v7 = vld [vmem:[%s19163_s11 + $0x110] sm:$0xff] }
 0xf74   : > { %v17160_v38 = vsub.f32 %v17049_v59, %v7061_v17  ;;  %v7125_v11 = vsel %vm596_vm1, %v7091_v47, 0.0  ;;  %v7092_v54 = vmul.f32 %v17145_v16, %v17145_v16  ;;  %v17210_v47 = vld [vmem:[%s19163_s11 + $0xd8] sm:$0xff] }
 0xf75   : > { %7126 = vadd.xlane.f32.xlu1 %v7125_v11  ;;  %v7520_v59 = vand.u32 %v11426_v5, %v19197_v53  ;;  %v7517_v4 = vand.u32 %v11425_v34, %v19197_v53  ;;  %v11415_v55 = vcombine.low %v17210_v47, %v17219_v33  ;;  %v11416_v46 = vcombine.high %v17210_v47, %v17219_v33 }
 0xf76   : > { %v7128_v20 = vsel %vm596_vm1, %v7092_v54, 0.0  ;;  %v7093_v13 = vmul.f32 %v17160_v38, %v17160_v38 }
 0xf77   : > { %7129 = vadd.xlane.f32.xlu0 %v7128_v20  ;;  %7566 = vmatprep.subr.bf16.mxu1 %v7520_v59 }
 0xf78   : > { %v7131_v0 = vsel %vm596_vm1, %v7093_v13, 0.0  ;;  %7567 = vmatpush1.bf16.msra.mxu1 %v7517_v4  ;;  %7903 = vmatprep.subr.bf16.mxu0 %v11416_v46 }
 0xf79   : > { %7132 = vadd.xlane.f32.xlu1 %v7131_v0 }
 0xf7b   : > { %v7040_v8 = vpop.xlane.xlu0 %7039 }
 0xf7c   : > { %v7062_v35 = vmul.f32 0.05882353, %v7040_v8 }
 0xf7d   : > { %v7043_v12 = vpop.xlane.xlu1 %7042 }
 0xf7e   : > { %v17174_v32 = vsub.f32 %v17060_v31, %v7062_v35  ;;  %v7063_v36 = vmul.f32 0.05882353, %v7043_v12 }
 0xf7f   : > { %v7046_v45 = vpop.xlane.xlu0 %7045 }
 0xf80   : > { %v17177_v19 = vsub.f32 %v17065_v14, %v7063_v36  ;;  %v7064_v29 = vmul.f32 0.05882353, %v7046_v45  ;;  %v7094_v2 = vmul.f32 %v17174_v32, %v17174_v32  ;;  %v11401_v36 = vld [vmem:[%s19163_s11 + $0x150] sm:$0x11] }
 0xf81   : > { %v7049_v63 = vpop.xlane.xlu1 %7048 }
 0xf82   : > { %v17182_v24 = vsub.f32 %v17068_v27, %v7064_v29  ;;  %v7065_v43 = vmul.f32 0.05882353, %v7049_v63  ;;  %v7134_v48 = vsel %vm596_vm1, %v7094_v2, 0.0  ;;  %v7095_v31 = vmul.f32 %v17177_v19, %v17177_v19  ;;  %v11402_v63 = vld [vmem:[%s19163_s11 + $0x158] sm:$0x11] }
 0xf83   : > { %7135 = vadd.xlane.f32.xlu0 %v7134_v48 }
 0xf84   : > { %v17188_v37 = vsub.f32 %v17073_v51, %v7065_v43  ;;  %v7137_v14 = vsel %vm596_vm1, %v7095_v31, 0.0  ;;  %v7096_v10 = vmul.f32 %v17182_v24, %v17182_v24  ;;  %v17200_v51 = vld [vmem:[%s19163_s11 + $0xd0] sm:$0xff] }
 0xf85   : > { %7138 = vadd.xlane.f32.xlu1 %v7137_v14  ;;  %v11413_v18 = vcombine.low %v17200_v51, %v17205_v7  ;;  %v11414_v22 = vcombine.high %v17200_v51, %v17205_v7 }
 0xf86   : > { %v7140_v40 = vsel %vm596_vm1, %v7096_v10, 0.0  ;;  %v7097_v27 = vmul.f32 %v17188_v37, %v17188_v37 }
 0xf87   : > { %7141 = vadd.xlane.f32.xlu0 %v7140_v40  ;;  %7790 = vmatprep.subr.bf16.mxu1 %v11414_v22  ;;  %v11430_v40 = vcombine.high %v11401_v36, %v11401_v36  ;;  %v11432_v22 = vcombine.high %v11402_v63, %v11402_v63 }
 0xf88   : > { %v7143_v17 = vsel %vm596_vm1, %v7097_v27, 0.0 }
 0xf89   : > { %7144 = vadd.xlane.f32.xlu1 %v7143_v17 }
 0xfe0   : > { %v7100_v6 = vpop.xlane.xlu0 %7099 }
 0xfe1   : > { %v7146_v56 = vmul.f32 0.05882353, %v7100_v6 }
 0xfe2   : > { %v7103_v11 = vpop.xlane.xlu1 %7102 }
 0xfe3   : > { %v7162_v54 = vadd.f32 1e-05, %v7146_v56  ;;  %v7147_v5 = vmul.f32 0.05882353, %v7103_v11 }
 0xfe4   : > { %v7106_v34 = vpop.xlane.xlu0 %7105 }
 0xfe5   : > { %13878 = vrsqrt.f32 %v7162_v54  ;;  %v7163_v61 = vadd.f32 1e-05, %v7147_v5  ;;  %v7148_v52 = vmul.f32 0.05882353, %v7106_v34 }
 0xfe6   : > { %v7109_v20 = vpop.xlane.xlu1 %7108 }
 0xfe7   : > { %13880 = vrsqrt.f32 %v7163_v61  ;;  %v7164_v13 = vadd.f32 1e-05, %v7148_v52  ;;  %v7149_v59 = vmul.f32 0.05882353, %v7109_v20  ;;  %v11429_v20 = vcombine.low %v11401_v36, %v11401_v36 }
 0xfe9   : > { %13882 = vrsqrt.f32 %v7164_v13  ;;  %v7165_v60 = vadd.f32 1e-05, %v7149_v59  ;;  %v11431_v13 = vcombine.low %v11402_v63, %v11402_v63  ;;  %v7529_v36 = vand.u32 %v11429_v20, %v19197_v53 }
 0xfeb   : > { %13884 = vrsqrt.f32 %v7165_v60  ;;  %v7532_v60 = vand.u32 %v11430_v40, %v19197_v53 }
 0xfef   : > { %v13879_v4 = vpop.eup %13878 }
 0xff0   : > { %v7194_v0 = vmul.f32 %v13879_v4, %v17080_v62  ;;  %v7112_v8 = vpop.xlane.xlu0 %7111  ;;  %v17242_v62 = vld [vmem:[%s19162_s10 + $0x1] ss:$0 sm:$0xff] }
 0xff1   : > { %v13881_v35 = vpop.eup %13880  ;;  %v7150_v12 = vmul.f32 0.05882353, %v7112_v8  ;;  %v17278_v8 = vld [vmem:[%s19163_s11 + $0xe8] sm:$0xff] }
 0xff2   : > { %v7216_v45 = vmul.f32 %v17228_v49, %v7194_v0  ;;  %v7195_v29 = vmul.f32 %v13881_v35, %v17083_v41  ;;  %v7115_v2 = vpop.xlane.xlu1 %7114  ;;  %v17273_v0 = vld [vmem:[%s19163_s11 + $0x120] sm:$0xff]  ;;  %v17283_v35 = vld [vmem:[%s19163_s11 + $0x128] sm:$0xff] }
 0xff3   : > { %v13883_v43 = vpop.eup %13882  ;;  %v7166_v48 = vadd.f32 1e-05, %v7150_v12  ;;  %v7151_v31 = vmul.f32 0.05882353, %v7115_v2  ;;  %v11420_v2 = vcombine.high %v17278_v8, %v17283_v35 }
 0xff4   : > { %v7217_v14 = vmul.f32 %v17228_v49, %v7195_v29  ;;  %v7118_v10 = vpop.xlane.xlu0 %7117  ;;  %v17246_v46 = vadd.f32 %v17242_v62, %v7216_v45  ;;  %v7196_v56 = vmul.f32 %v13883_v43, %v17088_v50  ;;  %v7538_v50 = vand.u32 %v11432_v22, %v19197_v53 }
 0xff5   : > { %v13885_v27 = vpop.eup %13884  ;;  %13886 = vrsqrt.f32 %v7166_v48  ;;  %v7167_v41 = vadd.f32 1e-05, %v7151_v31  ;;  %v7152_v17 = vmul.f32 0.05882353, %v7118_v10  ;;  %v7535_v45 = vand.u32 %v11431_v13, %v19197_v53 }
 0xff6   : > { %v17249_v6 = vadd.f32 %v17242_v62, %v7217_v14  ;;  %v7197_v11 = vmul.f32 %v13885_v27, %v17094_v57  ;;  %v7121_v54 = vpop.xlane.xlu1 %7120  ;;  %v17263_v57 = vld [vmem:[%s19163_s11 + $0xe0] sm:$0xff]  ;;  %v7218_v4 = vmul.f32 %v17228_v49, %v7196_v56 }
 0xff7   : > { %13888 = vrsqrt.f32 %v7167_v41  ;;  %v7168_v5 = vadd.f32 1e-05, %v7152_v17  ;;  %v7153_v34 = vmul.f32 0.05882353, %v7121_v54  ;;  %v11418_v29 = vcombine.high %v17263_v57, %v17273_v0 }
 0xff8   : > { %v17255_v61 = vpack.c.bf16 %v17249_v6, %v17246_v46  ;;  %v7219_v52 = vmul.f32 %v17228_v49, %v7197_v11  ;;  %v17303_v63 = vadd.f32 %v17242_v62, %v7218_v4 }
 0xff9   : > { %13890 = vrsqrt.f32 %v7168_v5  ;;  %v7169_v59 = vadd.f32 1e-05, %v7153_v34 }
 0xffa   : > { %11441 = vmatmul.mubr.msk.bf16.vlgmr.msra.gmra.mrb[92].mxu1 %vm596_vm1, %v17255_v61  ;;  %11449 = vmatmul.mubr.msk.bf16.vlgmr.msra.gmra.mrb[100].mxu0 %vm596_vm1, %v17255_v61  ;;  %v17288_v12 = vadd.f32 %v17242_v62, %v7219_v52 }
 0xffb   : > { %13892 = vrsqrt.f32 %v7169_v59  ;;  %7606 = vmatprep.mubr.bf16.mxu1 %v19198_v44  ;;  %7719 = vmatprep.mubr.bf16.mxu0 %v19198_v44 }
 0xffc   : > { %7791 = vmatpush1.bf16.msra.mxu1 %v11413_v18  ;;  %7904 = vmatpush1.bf16.msra.mxu0 %v11415_v55  ;;  %v17307_v7 = vpack.c.bf16 %v17288_v12, %v17303_v63 }
 0xffd   : > { %7792 = vmatprep.subr.bf16.mxu1 %v7532_v60  ;;  %7905 = vmatprep.subr.bf16.mxu0 %v7538_v50 }
 0xfff   : > { %v13887_v51 = vpop.eup %13886 }
0x1000   : > { %v7198_v47 = vmul.f32 %v13887_v51, %v17104_v3  ;;  %v7124_v18 = vpop.xlane.xlu0 %7123  ;;  %7793 = vmatpush1.bf16.msra.mxu1 %v7529_v36  ;;  %7906 = vmatpush1.bf16.msra.mxu0 %v7535_v45 }
0x1001   : > { %v13889_v33 = vpop.eup %13888  ;;  %v7154_v55 = vmul.f32 0.05882353, %v7124_v18  ;;  %8016 = vmatprep.subr.bf16.mxu1 %v11418_v29  ;;  %8129 = vmatprep.subr.bf16.mxu0 %v11420_v2 }
0x1002   : > { %v7220_v43 = vmul.f32 %v17228_v49, %v7198_v47  ;;  %v7199_v48 = vmul.f32 %v13889_v33, %v17107_v23  ;;  %11442 = vmatmul.mubr.msk.bf16.gmra.mrb[96].mxu1 %vm596_vm1, %v17307_v7  ;;  %11450 = vmatmul.mubr.msk.bf16.gmra.mrb[104].mxu0 %vm596_vm1, %v17307_v7  ;;  %v7127_v31 = vpop.xlane.xlu1 %7126 }
0x1003   : > { %v13891_v14 = vpop.eup %13890  ;;  %v7170_v3 = vadd.f32 1e-05, %v7154_v55  ;;  %v7155_v10 = vmul.f32 0.05882353, %v7127_v31  ;;  %7616 = vmatprep.mubr.bf16.mxu1 %v19198_v44  ;;  %7729 = vmatprep.mubr.bf16.mxu0 %v19198_v44 }
0x1004   : > { %v7221_v40 = vmul.f32 %v17228_v49, %v7199_v48  ;;  %v7130_v27 = vpop.xlane.xlu0 %7129  ;;  %v17320_v22 = vadd.f32 %v17242_v62, %v7220_v43  ;;  %v7200_v11 = vmul.f32 %v13891_v14, %v17112_v30 }
0x1005   : > { %v13893_v41 = vpop.eup %13892  ;;  %13894 = vrsqrt.f32 %v7170_v3  ;;  %v7171_v23 = vadd.f32 1e-05, %v7155_v10  ;;  %v7156_v17 = vmul.f32 0.05882353, %v7130_v27 }
0x1006   : > { %v17323_v56 = vadd.f32 %v17242_v62, %v7221_v40  ;;  %v7201_v54 = vmul.f32 %v13893_v41, %v17118_v9  ;;  %v7133_v5 = vpop.xlane.xlu1 %7132  ;;  %v7222_v60 = vmul.f32 %v17228_v49, %v7200_v11 }
0x1007   : > { %13896 = vrsqrt.f32 %v7171_v23  ;;  %v7172_v34 = vadd.f32 1e-05, %v7156_v17  ;;  %v7157_v52 = vmul.f32 0.05882353, %v7133_v5 }
0x1008   : > { %v17329_v20 = vpack.c.bf16 %v17323_v56, %v17320_v22  ;;  %v7223_v13 = vmul.f32 %v17228_v49, %v7201_v54  ;;  %v17343_v9 = vadd.f32 %v17242_v62, %v7222_v60 }
0x1009   : > { %13898 = vrsqrt.f32 %v7172_v34  ;;  %v7173_v59 = vadd.f32 1e-05, %v7157_v52 }
0x100a   : > { %11443 = vmatmul.mubr.msk.bf16.gmra.mrb[100].mxu1 %vm596_vm1, %v17329_v20  ;;  %11451 = vmatmul.mubr.msk.bf16.gmra.mrb[108].mxu0 %vm596_vm1, %v17329_v20  ;;  %v17340_v30 = vadd.f32 %v17242_v62, %v7223_v13 }
0x100b   : > { %13900 = vrsqrt.f32 %v7173_v59  ;;  %7626 = vmatprep.mubr.bf16.mxu1 %v19198_v44  ;;  %7739 = vmatprep.mubr.bf16.mxu0 %v19198_v44 }
0x100c   : > { %v17347_v4 = vpack.c.bf16 %v17340_v30, %v17343_v9 }
0x100f   : > { %v13895_v50 = vpop.eup %13894 }
0x1010   : > { %v7202_v36 = vmul.f32 %v13895_v50, %v17128_v42  ;;  %v7136_v45 = vpop.xlane.xlu0 %7135 }
0x1011   : > { %v13897_v29 = vpop.eup %13896  ;;  %v7158_v2 = vmul.f32 0.05882353, %v7136_v45 }
0x1012   : > { %v7224_v51 = vmul.f32 %v17228_v49, %v7202_v36  ;;  %v7203_v47 = vmul.f32 %v13897_v29, %v17131_v25  ;;  %11444 = vmatmul.mubr.msk.bf16.gmra.mrb[104].mxu1 %vm596_vm1, %v17347_v4  ;;  %11452 = vmatmul.mubr.msk.bf16.gmra.mrb[112].mxu0 %vm596_vm1, %v17347_v4  ;;  %v7139_v18 = vpop.xlane.xlu1 %7138 }
0x1013   : > { %v13899_v33 = vpop.eup %13898  ;;  %v7174_v55 = vadd.f32 1e-05, %v7158_v2  ;;  %v7159_v43 = vmul.f32 0.05882353, %v7139_v18  ;;  %7636 = vmatprep.mubr.bf16.mxu1 %v19198_v44  ;;  %7749 = vmatprep.mubr.bf16.mxu0 %v19198_v44 }
0x1014   : > { %v7225_v42 = vmul.f32 %v17228_v49, %v7203_v47  ;;  %v7142_v48 = vpop.xlane.xlu0 %7141  ;;  %v17360_v3 = vadd.f32 %v17242_v62, %v7224_v51  ;;  %v7204_v40 = vmul.f32 %v13899_v33, %v17145_v16 }
0x1015   : > { %v13901_v31 = vpop.eup %13900  ;;  %13902 = vrsqrt.f32 %v7174_v55  ;;  %v7175_v25 = vadd.f32 1e-05, %v7159_v43  ;;  %v7160_v14 = vmul.f32 0.05882353, %v7142_v48 }
0x1016   : > { %v17363_v10 = vadd.f32 %v17242_v62, %v7225_v42  ;;  %v7205_v27 = vmul.f32 %v13901_v31, %v17160_v38  ;;  %v7145_v41 = vpop.xlane.xlu1 %7144  ;;  %v7226_v34 = vmul.f32 %v17228_v49, %v7204_v40  ;;  %v11404_v42 = vld [vmem:[%s19163_s11 + $0x168] sm:$0x11]  ;;  %v11417_v31 = vcombine.low %v17263_v57, %v17273_v0  ;;  %v11397_v57 = vld [vmem:[%s19163_s11 + $0x130] sm:$0xff]  ;;  %v11390_v0 = vld [vmem:[%s19163_s11 + $0xf8] sm:$0xff] }
0x1017   : > { %13904 = vrsqrt.f32 %v7175_v25  ;;  %v7176_v23 = vadd.f32 1e-05, %v7160_v14  ;;  %v7161_v17 = vmul.f32 0.05882353, %v7145_v41  ;;  %v11436_v48 = vcombine.high %v11404_v42, %v11404_v42 }
0x1018   : > { %v17369_v11 = vpack.c.bf16 %v17363_v10, %v17360_v3  ;;  %v7227_v54 = vmul.f32 %v17228_v49, %v7205_v27  ;;  %v17383_v38 = vadd.f32 %v17242_v62, %v7226_v34  ;;  %v11419_v25 = vcombine.low %v17278_v8, %v17283_v35  ;;  %v11398_v8 = vld [vmem:[%s19163_s11 + $0x138] sm:$0xff]  ;;  %v11405_v34 = vld [vmem:[%s19163_s11 + $0x170] sm:$0x11] }
0x1019   : > { %13906 = vrsqrt.f32 %v7176_v23  ;;  %v7177_v5 = vadd.f32 1e-05, %v7161_v17  ;;  %v11435_v40 = vcombine.low %v11404_v42, %v11404_v42  ;;  %v7550_v41 = vand.u32 %v11436_v48, %v19197_v53  ;;  %v11389_v23 = vld [vmem:[%s19163_s11 + $0xf0] sm:$0xff]  ;;  %v13561_v42 = vld [vmem:[%s19165_s13 + $0x480] sm:$0xff]   ;;  %v13564_v48 = vld [vmem:[%s19165_s13 + $0x4c8] sm:$0xff]  }
0x101a   : > { %11445 = vmatmul.mubr.msk.bf16.gmra.mrb[108].mxu1 %vm596_vm1, %v17369_v11  ;;  %11453 = vmatmul.mubr.msk.bf16.gmra.mrb[116].mxu0 %vm596_vm1, %v17369_v11  ;;  %v17380_v16 = vadd.f32 %v17242_v62, %v7227_v54  ;;  %v11422_v54 = vcombine.high %v11389_v23, %v11397_v57 }
0x101b   : > { %13908 = vrsqrt.f32 %v7177_v5  ;;  %7646 = vmatprep.mubr.bf16.mxu1 %v19198_v44  ;;  %7759 = vmatprep.mubr.bf16.mxu0 %v19198_v44  ;;  %v7547_v17 = vand.u32 %v11435_v40, %v19197_v53  ;;  %v11424_v5 = vcombine.high %v11390_v0, %v11398_v8  ;;  %v13567_v40 = vld [vmem:[%s19165_s13 + $0x410] sm:$0xff]  }
0x101c   : > { %19199 = vst [vmem:[#allocation3_spill] sm:$0xff] %v17380_v16  ;;  %v17387_v13 = vpack.c.bf16 %v17380_v16, %v17383_v38 }
0x101f   : > { %v13903_v52 = vpop.eup %13902 }
0x1020   : > { %v7206_v59 = vmul.f32 %v13903_v52, %v17174_v32  ;;  %v11406_v52 = vld [vmem:[%s19163_s11 + $0x178] sm:$0x11] }
0x1021   : > { %v13905_v60 = vpop.eup %13904 }
0x1022   : > { %v7228_v50 = vmul.f32 %v17228_v49, %v7206_v59  ;;  %v7207_v36 = vmul.f32 %v13905_v60, %v17177_v19  ;;  %11446 = vmatmul.mubr.msk.bf16.gmra.mrb[112].mxu1 %vm596_vm1, %v17387_v13  ;;  %11454 = vmatmul.mubr.msk.bf16.gmra.mrb[120].mxu0 %vm596_vm1, %v17387_v13  ;;  %v11438_v59 = vcombine.high %v11405_v34, %v11405_v34 }
0x1023   : > { %v13907_v45 = vpop.eup %13906  ;;  %7656 = vmatprep.mubr.bf16.mxu1 %v19198_v44  ;;  %7769 = vmatprep.mubr.bf16.mxu0 %v19198_v44  ;;  %v11440_v60 = vcombine.high %v11406_v52, %v11406_v52 }
0x1024   : > { %v7229_v29 = vmul.f32 %v17228_v49, %v7207_v36  ;;  %v17400_v32 = vadd.f32 %v17242_v62, %v7228_v50  ;;  %v7208_v19 = vmul.f32 %v13907_v45, %v17182_v24  ;;  %v11421_v50 = vcombine.low %v11389_v23, %v11397_v57  ;;  %v13572_v23 = vld [vmem:[%s19165_s13 + $0x4d8] sm:$0xff]  }
0x1025   : > { %v13909_v2 = vpop.eup %13908  ;;  %v11423_v36 = vcombine.low %v11390_v0, %v11398_v8  ;;  %v11437_v45 = vcombine.low %v11405_v34, %v11405_v34  ;;  %v13571_v57 = vld [vmem:[%s19165_s13 + $0x418] sm:$0xff]   ;;  %v13575_v8 = vld [vmem:[%s19165_s13 + $0x4e0] sm:$0xff]   ;;  %v13579_v34 = vld [vmem:[%s19165_s13 + $0x4e8] sm:$0xff]  }
0x1026   : > { %19200 = vst [vmem:[#allocation5_spill] sm:$0xff] %v17400_v32  ;;  %v17403_v51 = vadd.f32 %v17242_v62, %v7229_v29  ;;  %v7209_v47 = vmul.f32 %v13909_v2, %v17188_v37  ;;  %v7230_v55 = vmul.f32 %v17228_v49, %v7208_v19  ;;  %v11439_v29 = vcombine.low %v11406_v52, %v11406_v52  ;;  %v13573_v0 = vld [vmem:[%s19165_s13 + $0x498] sm:$0xff]  }
0x1027   : > { %v7556_v2 = vand.u32 %v11438_v59, %v19197_v53  ;;  %v7562_v19 = vand.u32 %v11440_v60, %v19197_v53 }
0x1028   : > { %19201 = vst [vmem:[#allocation4_spill] sm:$0xff] %v17403_v51  ;;  %v17409_v18 = vpack.c.bf16 %v17403_v51, %v17400_v32  ;;  %v7231_v33 = vmul.f32 %v17228_v49, %v7209_v47  ;;  %v17423_v37 = vadd.f32 %v17242_v62, %v7230_v55  ;;  %v11403_v49 = vld [vmem:[%s19163_s11 + $0x160] sm:$0x11]  ;;  %v7553_v47 = vand.u32 %v11437_v45, %v19197_v53  ;;  %v13581_v45 = vld [vmem:[%s19165_s13 + $0x4a8] sm:$0xff]  }
0x1029   : > { %v11433_v14 = vcombine.low %v11403_v49, %v11403_v49  ;;  %v13558_v55 = vld [vmem:[%s19165_s13 + $0x440] sm:$0xff]  }
0x102a   : > { %11447 = vmatmul.mubr.msk.bf16.gmra.mrb[116].mxu1 %vm596_vm1, %v17409_v18  ;;  %11455 = vmatmul.mubr.msk.bf16.gmra.mrb[124].mxu0 %vm596_vm1, %v17409_v18  ;;  %v17420_v24 = vadd.f32 %v17242_v62, %v7231_v33  ;;  %19203 = vst [vmem:[#allocation7_spill] sm:$0xff] %v17423_v37  ;;  %v11434_v62 = vcombine.high %v11403_v49, %v11403_v49  ;;  %v13560_v49 = vld [vmem:[%s19165_s13 + $0x4c0] sm:$0xff]  }
0x102b   : > { %7666 = vmatprep.mubr.bf16.mxu1 %v19198_v44  ;;  %7779 = vmatprep.mubr.bf16.mxu0 %v19198_v44  ;;  %v7541_v35 = vand.u32 %v11433_v14, %v19197_v53  ;;  %v7559_v33 = vand.u32 %v11439_v29, %v19197_v53  ;;  %v13568_v14 = vld [vmem:[%s19165_s13 + $0x4d0] sm:$0xff]  }
0x102c   : > { %19202 = vst [vmem:[#allocation2_spill] sm:$0xff] %v17420_v24  ;;  %v17427_v43 = vpack.c.bf16 %v17420_v24, %v17423_v37  ;;  %v7544_v27 = vand.u32 %v11434_v62, %v19197_v53  ;;  %v13559_v53 = vld [vmem:[%s19165_s13 + $0x400] sm:$0xff]   ;;  %v13562_v62 = vld [vmem:[%s19165_s13 + $0x448] sm:$0xff]  }
0x1032   : > { %11448 = vmatmul.mubr.msk.bf16.gmra.mrb[120].mxu1 %vm596_vm1, %v17427_v43  ;;  %11456 = vmatmul.mubr.msk.bf16.gmra.mrb[128].mxu0 %vm596_vm1, %v17427_v43 }
0x1033   : > { %7822 = vmatprep.mubr.bf16.mxu1 %v19198_v44  ;;  %7935 = vmatprep.mubr.bf16.mxu0 %v19198_v44 }
0x103a   : > { %11457 = vmatmul.mubr.msk.bf16.vlgmr.msra.gmra.mrb[124].mxu1 %vm596_vm1, %v17255_v61  ;;  %11465 = vmatmul.mubr.msk.bf16.vlgmr.msra.gmra.mrb[132].mxu0 %vm596_vm1, %v17255_v61 }
0x103b   : > { %7832 = vmatprep.mubr.bf16.mxu1 %v19198_v44  ;;  %7945 = vmatprep.mubr.bf16.mxu0 %v19198_v44 }
0x103c   : > { %8017 = vmatpush1.bf16.msra.mxu1 %v11417_v31  ;;  %8130 = vmatpush1.bf16.msra.mxu0 %v11419_v25  ;;  %v13563_v31 = vld [vmem:[%s19165_s13 + $0x408] sm:$0xff]  }
0x103d   : > { %8018 = vmatprep.subr.bf16.mxu1 %v7544_v27  ;;  %8131 = vmatprep.subr.bf16.mxu0 %v7550_v41  ;;  %v13565_v25 = vld [vmem:[%s19165_s13 + $0x488] sm:$0xff]   ;;  %v13569_v27 = vld [vmem:[%s19165_s13 + $0x490] sm:$0xff]   ;;  %v13570_v41 = vld [vmem:[%s19165_s13 + $0x458] sm:$0xff]  }
0x1040   : > { %8019 = vmatpush1.bf16.msra.mxu1 %v7541_v35  ;;  %8132 = vmatpush1.bf16.msra.mxu0 %v7547_v17  ;;  %v17636_v35 = vld [vmem:[%s19164_s12 + $0x10] sm:$0xff]  ;;  %v13576_v17 = vld [vmem:[%s19165_s13 + $0x420] sm:$0xff]  }
0x1041   : > { %8242 = vmatprep.subr.bf16.mxu1 %v11422_v54  ;;  %8355 = vmatprep.subr.bf16.mxu0 %v11424_v5  ;;  %v13577_v54 = vld [vmem:[%s19165_s13 + $0x4a0] sm:$0xff]   ;;  %v13578_v5 = vld [vmem:[%s19165_s13 + $0x468] sm:$0xff]   ;;  %v17656_v52 = vrot.slane %v17636_v35, %v15088_v26  ;;  %v17660_v59 = vrot.slane %v17636_v35, %v15091_v58  ;;  %v17664_v60 = vrot.slane %v17636_v35, %v15102_v28 }
0x1042   : > { %11458 = vmatmul.mubr.msk.bf16.gmra.mrb[128].mxu1 %vm596_vm1, %v17307_v7  ;;  %11466 = vmatmul.mubr.msk.bf16.gmra.mrb[136].mxu0 %vm596_vm1, %v17307_v7 }
0x1043   : > { %7842 = vmatprep.mubr.bf16.mxu1 %v19198_v44  ;;  %7955 = vmatprep.mubr.bf16.mxu0 %v19198_v44 }
0x104a   : > { %11459 = vmatmul.mubr.msk.bf16.gmra.mrb[132].mxu1 %vm596_vm1, %v17329_v20  ;;  %11467 = vmatmul.mubr.msk.bf16.gmra.mrb[140].mxu0 %vm596_vm1, %v17329_v20 }
0x104b   : > { %7852 = vmatprep.mubr.bf16.mxu1 %v19198_v44  ;;  %7965 = vmatprep.mubr.bf16.mxu0 %v19198_v44 }
0x1052   : > { %11460 = vmatmul.mubr.msk.bf16.gmra.mrb[136].mxu1 %vm596_vm1, %v17347_v4  ;;  %11468 = vmatmul.mubr.msk.bf16.gmra.mrb[144].mxu0 %vm596_vm1, %v17347_v4 }
0x1053   : > { %7862 = vmatprep.mubr.bf16.mxu1 %v19198_v44  ;;  %7975 = vmatprep.mubr.bf16.mxu0 %v19198_v44 }
0x105a   : > { %11461 = vmatmul.mubr.msk.bf16.gmra.mrb[140].mxu1 %vm596_vm1, %v17369_v11  ;;  %11469 = vmatmul.mubr.msk.bf16.gmra.mrb[148].mxu0 %vm596_vm1, %v17369_v11 }
0x105b   : > { %7872 = vmatprep.mubr.bf16.mxu1 %v19198_v44  ;;  %7985 = vmatprep.mubr.bf16.mxu0 %v19198_v44 }
0x1062   : > { %11462 = vmatmul.mubr.msk.bf16.gmra.mrb[144].mxu1 %vm596_vm1, %v17387_v13  ;;  %11470 = vmatmul.mubr.msk.bf16.gmra.mrb[152].mxu0 %vm596_vm1, %v17387_v13 }
0x1063   : > { %7882 = vmatprep.mubr.bf16.mxu1 %v19198_v44  ;;  %7995 = vmatprep.mubr.bf16.mxu0 %v19198_v44 }
0x106a   : > { %11463 = vmatmul.mubr.msk.bf16.gmra.mrb[148].mxu1 %vm596_vm1, %v17409_v18  ;;  %11471 = vmatmul.mubr.msk.bf16.gmra.mrb[156].mxu0 %vm596_vm1, %v17409_v18 }
0x106b   : > { %7892 = vmatprep.mubr.bf16.mxu1 %v19198_v44  ;;  %8005 = vmatprep.mubr.bf16.mxu0 %v19198_v44 }
0x1072   : > { %11464 = vmatmul.mubr.msk.bf16.gmra.mrb[152].mxu1 %vm596_vm1, %v17427_v43  ;;  %11472 = vmatmul.mubr.msk.bf16.gmra.mrb[160].mxu0 %vm596_vm1, %v17427_v43 }
0x1073   : > { %8048 = vmatprep.mubr.bf16.mxu1 %v19198_v44  ;;  %8161 = vmatprep.mubr.bf16.mxu0 %v19198_v44 }
0x107a   : > { %11473 = vmatmul.mubr.msk.bf16.vlgmr.msra.gmra.mrb[156].mxu1 %vm596_vm1, %v17255_v61  ;;  %11481 = vmatmul.mubr.msk.bf16.vlgmr.msra.gmra.mrb[164].mxu0 %vm596_vm1, %v17255_v61 }
0x107b   : > { %8058 = vmatprep.mubr.bf16.mxu1 %v19198_v44  ;;  %8171 = vmatprep.mubr.bf16.mxu0 %v19198_v44 }
0x107c   : > { %8243 = vmatpush1.bf16.msra.mxu1 %v11421_v50  ;;  %8356 = vmatpush1.bf16.msra.mxu0 %v11423_v36  ;;  %v19204_v50 = vld [vmem:[#allocation6_spill] sm:$0xff] }
0x107d   : > { %8244 = vmatprep.subr.bf16.mxu1 %v7556_v2  ;;  %8357 = vmatprep.subr.bf16.mxu0 %v7562_v19  ;;  %v17668_v36 = vrot.slane %v17636_v35, %v19204_v50  ;;  %v13582_v19 = vld [vmem:[%s19165_s13 + $0x470] sm:$0xff]  }
0x1080   : > { %8245 = vmatpush1.bf16.msra.mxu1 %v7553_v47  ;;  %8358 = vmatpush1.bf16.msra.mxu0 %v7559_v33  ;;  %v13583_v47 = vld [vmem:[%s19165_s13 + $0x4f0] sm:$0xff]  }
0x1081   : > { %12553 = vmatprep.subr.bf16.mxu1 %v13558_v55  ;;  %12617 = vmatprep.subr.bf16.mxu0 %v13560_v49 }
0x1082   : > { %11474 = vmatmul.mubr.msk.bf16.gmra.mrb[160].mxu1 %vm596_vm1, %v17307_v7  ;;  %11482 = vmatmul.mubr.msk.bf16.gmra.mrb[168].mxu0 %vm596_vm1, %v17307_v7 }
0x1083   : > { %8068 = vmatprep.mubr.bf16.mxu1 %v19198_v44  ;;  %8181 = vmatprep.mubr.bf16.mxu0 %v19198_v44 }
0x108a   : > { %11475 = vmatmul.mubr.msk.bf16.gmra.mrb[164].mxu1 %vm596_vm1, %v17329_v20  ;;  %11483 = vmatmul.mubr.msk.bf16.gmra.mrb[172].mxu0 %vm596_vm1, %v17329_v20 }
0x108b   : > { %8078 = vmatprep.mubr.bf16.mxu1 %v19198_v44  ;;  %8191 = vmatprep.mubr.bf16.mxu0 %v19198_v44 }
0x1092   : > { %11476 = vmatmul.mubr.msk.bf16.gmra.mrb[168].mxu1 %vm596_vm1, %v17347_v4  ;;  %11484 = vmatmul.mubr.msk.bf16.gmra.mrb[176].mxu0 %vm596_vm1, %v17347_v4 }
0x1093   : > { %8088 = vmatprep.mubr.bf16.mxu1 %v19198_v44  ;;  %8201 = vmatprep.mubr.bf16.mxu0 %v19198_v44 }
0x109a   : > { %11477 = vmatmul.mubr.msk.bf16.gmra.mrb[172].mxu1 %vm596_vm1, %v17369_v11  ;;  %11485 = vmatmul.mubr.msk.bf16.gmra.mrb[180].mxu0 %vm596_vm1, %v17369_v11 }
0x109b   : > { %8098 = vmatprep.mubr.bf16.mxu1 %v19198_v44  ;;  %8211 = vmatprep.mubr.bf16.mxu0 %v19198_v44 }
0x10a2   : > { %11478 = vmatmul.mubr.msk.bf16.gmra.mrb[176].mxu1 %vm596_vm1, %v17387_v13  ;;  %11486 = vmatmul.mubr.msk.bf16.gmra.mrb[184].mxu0 %vm596_vm1, %v17387_v13 }
0x10a3   : > { %8108 = vmatprep.mubr.bf16.mxu1 %v19198_v44  ;;  %8221 = vmatprep.mubr.bf16.mxu0 %v19198_v44 }
0x10aa   : > { %11479 = vmatmul.mubr.msk.bf16.gmra.mrb[180].mxu1 %vm596_vm1, %v17409_v18  ;;  %11487 = vmatmul.mubr.msk.bf16.gmra.mrb[188].mxu0 %vm596_vm1, %v17409_v18 }
0x10ab   : > { %8118 = vmatprep.mubr.bf16.mxu1 %v19198_v44  ;;  %8231 = vmatprep.mubr.bf16.mxu0 %v19198_v44 }
0x10b2   : > { %11480 = vmatmul.mubr.msk.bf16.gmra.mrb[184].mxu1 %vm596_vm1, %v17427_v43  ;;  %11488 = vmatmul.mubr.msk.bf16.gmra.mrb[192].mxu0 %vm596_vm1, %v17427_v43 }
0x10b3   : > { %8274 = vmatprep.mubr.bf16.mxu1 %v19198_v44  ;;  %8387 = vmatprep.mubr.bf16.mxu0 %v19198_v44 }
0x10ba   : > { %11489 = vmatmul.mubr.msk.bf16.vlgmr.msra.gmra.mrb[188].mxu1 %vm596_vm1, %v17255_v61  ;;  %11497 = vmatmul.mubr.msk.bf16.vlgmr.msra.gmra.mrb[196].mxu0 %vm596_vm1, %v17255_v61  ;;  %v13566_v61 = vld [vmem:[%s19165_s13 + $0x450] sm:$0xff]  }
0x10bb   : > { %8284 = vmatprep.mubr.bf16.mxu1 %v19198_v44  ;;  %8397 = vmatprep.mubr.bf16.mxu0 %v19198_v44 }
0x10bc   : > { %12554 = vmatpush3.bf16.msra.mxu1 %v13559_v53  ;;  %12618 = vmatpush3.bf16.msra.mxu0 %v13561_v42 }
0x10bd   : > { %12555 = vmatprep.subr.bf16.mxu1 %v13562_v62  ;;  %12619 = vmatprep.subr.bf16.mxu0 %v13564_v48 }
0x10c0   : > { %12556 = vmatpush3.bf16.msra.mxu1 %v13563_v31  ;;  %12620 = vmatpush3.bf16.msra.mxu0 %v13565_v25 }
0x10c1   : > { %12557 = vmatprep.subr.bf16.mxu1 %v13566_v61  ;;  %12621 = vmatprep.subr.bf16.mxu0 %v13568_v14 }
0x10c2   : > { %11490 = vmatmul.mubr.msk.bf16.gmra.mrb[192].mxu1 %vm596_vm1, %v17307_v7  ;;  %11498 = vmatmul.mubr.msk.bf16.gmra.mrb[200].mxu0 %vm596_vm1, %v17307_v7  ;;  %v13574_v7 = vld [vmem:[%s19165_s13 + $0x460] sm:$0xff]  }
0x10c3   : > { %8294 = vmatprep.mubr.bf16.mxu1 %v19198_v44  ;;  %8407 = vmatprep.mubr.bf16.mxu0 %v19198_v44 }
0x10c4   : > { %12558 = vmatpush3.bf16.msra.mxu1 %v13567_v40  ;;  %12622 = vmatpush3.bf16.msra.mxu0 %v13569_v27  ;;  %v13584_v27 = vld [vmem:[%s19165_s13 + $0x430] sm:$0xff]  }
0x10c5   : > { %12559 = vmatprep.subr.bf16.mxu1 %v13570_v41  ;;  %12623 = vmatprep.subr.bf16.mxu0 %v13572_v23  ;;  %v13585_v41 = vld [vmem:[%s19165_s13 + $0x4b0] sm:$0xff]  }
0x10c8   : > { %12560 = vmatpush3.bf16.msra.mxu1 %v13571_v57  ;;  %12624 = vmatpush3.bf16.msra.mxu0 %v13573_v0  ;;  %v13586_v0 = vld [vmem:[%s19165_s13 + $0x478] sm:$0xff]  }
0x10c9   : > { %12561 = vmatprep.subr.bf16.mxu1 %v13574_v7  ;;  %12625 = vmatprep.subr.bf16.mxu0 %v13575_v8  ;;  %v13587_v7 = vld [vmem:[%s19165_s13 + $0x4f8] sm:$0xff]  }
0x10ca   : > { %11491 = vmatmul.mubr.msk.bf16.gmra.mrb[196].mxu1 %vm596_vm1, %v17329_v20  ;;  %11499 = vmatmul.mubr.msk.bf16.gmra.mrb[204].mxu0 %vm596_vm1, %v17329_v20  ;;  %v13580_v20 = vld [vmem:[%s19165_s13 + $0x428] sm:$0xff]  }
0x10cb   : > { %8304 = vmatprep.mubr.bf16.mxu1 %v19198_v44  ;;  %8417 = vmatprep.mubr.bf16.mxu0 %v19198_v44 }
0x10cc   : > { %12562 = vmatpush3.bf16.msra.mxu1 %v13576_v17  ;;  %12626 = vmatpush3.bf16.msra.mxu0 %v13577_v54 }
0x10cd   : > { %v7598_v29 = vpop.f32.mrb[92].mxu1  ;;  %v7711_v2 = vpop.f32.mrb[100].mxu0  ;;  %12563 = vmatprep.subr.bf16.mxu1 %v13578_v5  ;;  %12627 = vmatprep.subr.bf16.mxu0 %v13579_v34 }
0x10ce   : > { %v7599_v33 = vadd.f32 %v7598_v29, %v17656_v52  ;;  %v7712_v55 = vadd.f32 %v7711_v2, %v17660_v59  ;;  %v7600_v49 = vpop.f32.mrb[93].mxu1  ;;  %v7713_v53 = vpop.f32.mrb[101].mxu0 }
0x10cf   : > { %v7601_v42 = vadd.f32 %v7600_v49, %v17664_v60  ;;  %v7714_v62 = vadd.f32 %v7713_v53, %v17668_v36  ;;  %v7602_v48 = vpop.f32.mrb[94].mxu1  ;;  %v7715_v31 = vpop.f32.mrb[102].mxu0 }
0x10d0   : > { %v7603_v25 = vadd.f32 %v7602_v48, %v17656_v52  ;;  %v7716_v61 = vadd.f32 %v7715_v31, %v17660_v59  ;;  %v7604_v14 = vpop.f32.mrb[95].mxu1  ;;  %v7717_v40 = vpop.f32.mrb[103].mxu0  ;;  %12564 = vmatpush3.bf16.msra.mxu1 %v13580_v20  ;;  %12628 = vmatpush3.bf16.msra.mxu0 %v13581_v45  ;;  %v8468_v8 = vmax.f32 %v7599_v33, 0.0  ;;  %v8470_v17 = vmax.f32 %v7712_v55, 0.0 }
0x10d1   : > { %v7605_v23 = vadd.f32 %v7604_v14, %v17664_v60  ;;  %v7718_v57 = vadd.f32 %v7717_v40, %v17668_v36  ;;  %12565 = vmatprep.subr.bf16.mxu1 %v13582_v19  ;;  %12629 = vmatprep.subr.bf16.mxu0 %v13583_v47  ;;  %v8469_v34 = vmax.f32 %v7601_v42, 0.0  ;;  %v8471_v20 = vmax.f32 %v7714_v62, 0.0  ;;  %v13588_v47 = vld [vmem:[%s19165_s13 + $0x438] sm:$0xff]   ;;  %v13590_v42 = vld [vmem:[%s19165_s13 + $0x540] sm:$0xff]  }
0x10d2   : > { %v8484_v54 = vmax.f32 %v7603_v25, 0.0  ;;  %v8486_v5 = vmax.f32 %v7716_v61, 0.0  ;;  %11492 = vmatmul.mubr.msk.bf16.gmra.mrb[200].mxu1 %vm596_vm1, %v17347_v4  ;;  %11500 = vmatmul.mubr.msk.bf16.gmra.mrb[208].mxu0 %vm596_vm1, %v17347_v4  ;;  %v13589_v4 = vld [vmem:[%s19165_s13 + $0x4b8] sm:$0xff]   ;;  %v13592_v62 = vld [vmem:[%s19165_s13 + $0x5c0] sm:$0xff]  }
0x10d3   : > { %v8485_v45 = vmax.f32 %v7605_v23, 0.0  ;;  %v8487_v29 = vmax.f32 %v7718_v57, 0.0  ;;  %8314 = vmatprep.mubr.bf16.mxu1 %v19198_v44  ;;  %8427 = vmatprep.mubr.bf16.mxu0 %v19198_v44 }
0x10d4   : > { %v17710_v2 = vpack.c.bf16 %v8484_v54, %v8468_v8  ;;  %v17712_v19 = vpack.c.bf16 %v8486_v5, %v8470_v17  ;;  %12566 = vmatpush3.bf16.msra.mxu1 %v13584_v27  ;;  %12630 = vmatpush3.bf16.msra.mxu0 %v13585_v41 }
0x10d5   : > { %v17720_v33 = vpack.c.bf16 %v8485_v45, %v8469_v34  ;;  %v17722_v55 = vpack.c.bf16 %v8487_v29, %v8471_v20  ;;  %v7608_v49 = vpop.f32.mrb[96].mxu1  ;;  %v7721_v53 = vpop.f32.mrb[104].mxu0  ;;  %12567 = vmatprep.subr.bf16.mxu1 %v13586_v0  ;;  %12631 = vmatprep.subr.bf16.mxu0 %v13587_v7 }
0x10d6   : > { %v7609_v48 = vadd.f32 %v7608_v49, %v17656_v52  ;;  %v7722_v31 = vadd.f32 %v7721_v53, %v17660_v59  ;;  %v7610_v25 = vpop.f32.mrb[97].mxu1  ;;  %v7723_v61 = vpop.f32.mrb[105].mxu0 }
0x10d7   : > { %v7611_v14 = vadd.f32 %v7610_v25, %v17664_v60  ;;  %v7724_v40 = vadd.f32 %v7723_v61, %v17668_v36  ;;  %v7612_v27 = vpop.f32.mrb[98].mxu1  ;;  %v7725_v41 = vpop.f32.mrb[106].mxu0 }
0x10d8   : > { %v7613_v23 = vadd.f32 %v7612_v27, %v17656_v52  ;;  %v7726_v57 = vadd.f32 %v7725_v41, %v17660_v59  ;;  %v7614_v0 = vpop.f32.mrb[99].mxu1  ;;  %v7727_v7 = vpop.f32.mrb[107].mxu0  ;;  %12568 = vmatpush3.bf16.msra.mxu1 %v13588_v47  ;;  %12632 = vmatpush3.bf16.msra.mxu0 %v13589_v4  ;;  %v8500_v54 = vmax.f32 %v7609_v48, 0.0  ;;  %v8502_v5 = vmax.f32 %v7722_v31, 0.0 }
0x10d9   : > { %v7615_v8 = vadd.f32 %v7614_v0, %v17664_v60  ;;  %v7728_v17 = vadd.f32 %v7727_v7, %v17668_v36  ;;  %12681 = vmatprep.subr.bf16.mxu1 %v13590_v42  ;;  %12745 = vmatprep.subr.bf16.mxu0 %v13592_v62  ;;  %v8501_v45 = vmax.f32 %v7611_v14, 0.0  ;;  %v8503_v29 = vmax.f32 %v7724_v40, 0.0 }
0x10da   : > { %v8516_v34 = vmax.f32 %v7613_v23, 0.0  ;;  %v8518_v20 = vmax.f32 %v7726_v57, 0.0  ;;  %11493 = vmatmul.mubr.msk.bf16.gmra.mrb[204].mxu1 %vm596_vm1, %v17369_v11  ;;  %11501 = vmatmul.mubr.msk.bf16.gmra.mrb[212].mxu0 %vm596_vm1, %v17369_v11 }
0x10db   : > { %v8517_v47 = vmax.f32 %v7615_v8, 0.0  ;;  %v8519_v4 = vmax.f32 %v7728_v17, 0.0  ;;  %8324 = vmatprep.mubr.bf16.mxu1 %v19198_v44  ;;  %8437 = vmatprep.mubr.bf16.mxu0 %v19198_v44 }
0x10dc   : > { %v17744_v49 = vpack.c.bf16 %v8516_v34, %v8500_v54  ;;  %v17746_v53 = vpack.c.bf16 %v8518_v20, %v8502_v5 }
0x10dd   : > { %v17748_v42 = vpack.c.bf16 %v8517_v47, %v8501_v45  ;;  %v17750_v62 = vpack.c.bf16 %v8519_v4, %v8503_v29  ;;  %v7618_v48 = vpop.f32.mrb[100].mxu1  ;;  %v7731_v31 = vpop.f32.mrb[108].mxu0 }
0x10de   : > { %v7619_v11 = vadd.f32 %v7618_v48, %v17656_v52  ;;  %v7732_v25 = vadd.f32 %v7731_v31, %v17660_v59  ;;  %v7620_v61 = vpop.f32.mrb[101].mxu1  ;;  %v7733_v14 = vpop.f32.mrb[109].mxu0 }
0x10df   : > { %v7621_v40 = vadd.f32 %v7620_v61, %v17664_v60  ;;  %v7734_v27 = vadd.f32 %v7733_v14, %v17668_v36  ;;  %v7622_v41 = vpop.f32.mrb[102].mxu1  ;;  %v7735_v23 = vpop.f32.mrb[110].mxu0 }
0x10e0   : > { %v7623_v57 = vadd.f32 %v7622_v41, %v17656_v52  ;;  %v7736_v0 = vadd.f32 %v7735_v23, %v17660_v59  ;;  %v7624_v7 = vpop.f32.mrb[103].mxu1  ;;  %v7737_v8 = vpop.f32.mrb[111].mxu0  ;;  %v8532_v5 = vmax.f32 %v7619_v11, 0.0  ;;  %v8534_v34 = vmax.f32 %v7732_v25, 0.0 }
0x10e1   : > { %v7625_v17 = vadd.f32 %v7624_v7, %v17664_v60  ;;  %v7738_v54 = vadd.f32 %v7737_v8, %v17668_v36  ;;  %v8533_v29 = vmax.f32 %v7621_v40, 0.0  ;;  %v8535_v47 = vmax.f32 %v7734_v27, 0.0 }
0x10e2   : > { %v8548_v20 = vmax.f32 %v7623_v57, 0.0  ;;  %v8550_v45 = vmax.f32 %v7736_v0, 0.0  ;;  %11494 = vmatmul.mubr.msk.bf16.gmra.mrb[208].mxu1 %vm596_vm1, %v17387_v13  ;;  %11502 = vmatmul.mubr.msk.bf16.gmra.mrb[216].mxu0 %vm596_vm1, %v17387_v13 }
0x10e3   : > { %v8549_v4 = vmax.f32 %v7625_v17, 0.0  ;;  %v8551_v48 = vmax.f32 %v7738_v54, 0.0  ;;  %8334 = vmatprep.mubr.bf16.mxu1 %v19198_v44  ;;  %8447 = vmatprep.mubr.bf16.mxu0 %v19198_v44 }
0x10e4   : > { %v17766_v31 = vpack.c.bf16 %v8548_v20, %v8532_v5  ;;  %v17768_v11 = vpack.c.bf16 %v8550_v45, %v8534_v34 }
0x10e5   : > { %v17770_v25 = vpack.c.bf16 %v8549_v4, %v8533_v29  ;;  %v17772_v61 = vpack.c.bf16 %v8551_v48, %v8535_v47  ;;  %v7628_v14 = vpop.f32.mrb[104].mxu1  ;;  %v7741_v41 = vpop.f32.mrb[112].mxu0 }
0x10e6   : > { %v7629_v13 = vadd.f32 %v7628_v14, %v17656_v52  ;;  %v7742_v40 = vadd.f32 %v7741_v41, %v17660_v59  ;;  %v7630_v27 = vpop.f32.mrb[105].mxu1  ;;  %v7743_v23 = vpop.f32.mrb[113].mxu0 }
0x10e7   : > { %v7631_v57 = vadd.f32 %v7630_v27, %v17664_v60  ;;  %v7744_v0 = vadd.f32 %v7743_v23, %v17668_v36  ;;  %v7632_v7 = vpop.f32.mrb[106].mxu1  ;;  %v7745_v8 = vpop.f32.mrb[114].mxu0 }
0x10e8   : > { %v7633_v17 = vadd.f32 %v7632_v7, %v17656_v52  ;;  %v7746_v54 = vadd.f32 %v7745_v8, %v17660_v59  ;;  %v7634_v5 = vpop.f32.mrb[107].mxu1  ;;  %v7747_v34 = vpop.f32.mrb[115].mxu0  ;;  %v8564_v29 = vmax.f32 %v7629_v13, 0.0  ;;  %v8566_v47 = vmax.f32 %v7742_v40, 0.0 }
0x10e9   : > { %v7635_v20 = vadd.f32 %v7634_v5, %v17664_v60  ;;  %v7748_v45 = vadd.f32 %v7747_v34, %v17668_v36  ;;  %v8565_v14 = vmax.f32 %v7631_v57, 0.0  ;;  %v8567_v41 = vmax.f32 %v7744_v0, 0.0 }
0x10ea   : > { %v8580_v4 = vmax.f32 %v7633_v17, 0.0  ;;  %v8582_v48 = vmax.f32 %v7746_v54, 0.0  ;;  %11495 = vmatmul.mubr.msk.bf16.gmra.mrb[212].mxu1 %vm596_vm1, %v17409_v18  ;;  %11503 = vmatmul.mubr.msk.bf16.gmra.mrb[220].mxu0 %vm596_vm1, %v17409_v18 }
0x10eb   : > { %v8581_v27 = vmax.f32 %v7635_v20, 0.0  ;;  %v8583_v23 = vmax.f32 %v7748_v45, 0.0  ;;  %8344 = vmatprep.mubr.bf16.mxu1 %v19198_v44  ;;  %8457 = vmatprep.mubr.bf16.mxu0 %v19198_v44 }
0x10ec   : > { %v17788_v7 = vpack.c.bf16 %v8580_v4, %v8564_v29  ;;  %v17790_v13 = vpack.c.bf16 %v8582_v48, %v8566_v47 }
0x10ed   : > { %v17792_v40 = vpack.c.bf16 %v8581_v27, %v8565_v14  ;;  %v17794_v8 = vpack.c.bf16 %v8583_v23, %v8567_v41  ;;  %v7638_v17 = vpop.f32.mrb[108].mxu1  ;;  %v7751_v54 = vpop.f32.mrb[116].mxu0 }
0x10ee   : > { %v7639_v18 = vadd.f32 %v7638_v17, %v17656_v52  ;;  %v7752_v57 = vadd.f32 %v7751_v54, %v17660_v59  ;;  %v7640_v0 = vpop.f32.mrb[109].mxu1  ;;  %v7753_v5 = vpop.f32.mrb[117].mxu0 }
0x10ef   : > { %v7641_v34 = vadd.f32 %v7640_v0, %v17664_v60  ;;  %v7754_v44 = vadd.f32 %v7753_v5, %v17668_v36  ;;  %v7642_v20 = vpop.f32.mrb[110].mxu1  ;;  %v7755_v45 = vpop.f32.mrb[118].mxu0 }
0x10f0   : > { %v7643_v29 = vadd.f32 %v7642_v20, %v17656_v52  ;;  %v7756_v47 = vadd.f32 %v7755_v45, %v17660_v59  ;;  %v7644_v4 = vpop.f32.mrb[111].mxu1  ;;  %v7757_v48 = vpop.f32.mrb[119].mxu0  ;;  %v8596_v27 = vmax.f32 %v7639_v18, 0.0  ;;  %v8598_v23 = vmax.f32 %v7752_v57, 0.0 }
0x10f1   : > { %v7645_v14 = vadd.f32 %v7644_v4, %v17664_v60  ;;  %v7758_v41 = vadd.f32 %v7757_v48, %v17668_v36  ;;  %v8597_v0 = vmax.f32 %v7641_v34, 0.0  ;;  %v8599_v5 = vmax.f32 %v7754_v44, 0.0 }
0x10f2   : > { %v8612_v17 = vmax.f32 %v7643_v29, 0.0  ;;  %v8614_v54 = vmax.f32 %v7756_v47, 0.0  ;;  %11496 = vmatmul.mubr.msk.bf16.gmra.mrb[216].mxu1 %vm596_vm1, %v17427_v43  ;;  %11504 = vmatmul.mubr.msk.bf16.gmra.mrb[224].mxu0 %vm596_vm1, %v17427_v43 }
0x10f3   : > { %v8613_v20 = vmax.f32 %v7645_v14, 0.0  ;;  %v8615_v45 = vmax.f32 %v7758_v41, 0.0  ;;  %9917 = vmatprep.mubr.bf16.mxu1 %v17720_v33  ;;  %10014 = vmatprep.mubr.bf16.mxu0 %v17722_v55 }
0x10f4   : > { %v17810_v4 = vpack.c.bf16 %v8612_v17, %v8596_v27  ;;  %v17812_v18 = vpack.c.bf16 %v8614_v54, %v8598_v23 }
0x10f5   : > { %v17814_v57 = vpack.c.bf16 %v8613_v20, %v8597_v0  ;;  %v17816_v29 = vpack.c.bf16 %v8615_v45, %v8599_v5  ;;  %v7648_v47 = vpop.f32.mrb[112].mxu1  ;;  %v7761_v48 = vpop.f32.mrb[120].mxu0  ;;  %v13591_v5 = vld [vmem:[%s19165_s13 + $0x500] sm:$0xff]  }
0x10f6   : > { %v7649_v43 = vadd.f32 %v7648_v47, %v17656_v52  ;;  %v7762_v34 = vadd.f32 %v7761_v48, %v17660_v59  ;;  %v7650_v44 = vpop.f32.mrb[113].mxu1  ;;  %v7763_v14 = vpop.f32.mrb[121].mxu0  ;;  %v13593_v20 = vld [vmem:[%s19165_s13 + $0x580] sm:$0xff]   ;;  %v13594_v48 = vld [vmem:[%s19165_s13 + $0x548] sm:$0xff]  }
0x10f7   : > { %v7651_v33 = vadd.f32 %v7650_v44, %v17664_v60  ;;  %v7764_v55 = vadd.f32 %v7763_v14, %v17668_v36  ;;  %v7652_v41 = vpop.f32.mrb[114].mxu1  ;;  %v7765_v27 = vpop.f32.mrb[122].mxu0  ;;  %v13596_v44 = vld [vmem:[%s19165_s13 + $0x5c8] sm:$0xff]  }
0x10f8   : > { %v7653_v23 = vadd.f32 %v7652_v41, %v17656_v52  ;;  %v7766_v17 = vadd.f32 %v7765_v27, %v17660_v59  ;;  %v7654_v54 = vpop.f32.mrb[115].mxu1  ;;  %v7767_v0 = vpop.f32.mrb[123].mxu0  ;;  %v8628_v14 = vmax.f32 %v7649_v43, 0.0  ;;  %v8630_v41 = vmax.f32 %v7762_v34, 0.0 }
0x10f9   : > { %v7655_v45 = vadd.f32 %v7654_v54, %v17664_v60  ;;  %v7768_v47 = vadd.f32 %v7767_v0, %v17668_v36  ;;  %v8629_v37 = vmax.f32 %v7651_v33, 0.0  ;;  %v8631_v54 = vmax.f32 %v7764_v55, 0.0  ;;  %v13600_v33 = vld [vmem:[%s19165_s13 + $0x5d0] sm:$0xff]  }
0x10fa   : > { %v8644_v27 = vmax.f32 %v7653_v23, 0.0  ;;  %v8646_v24 = vmax.f32 %v7766_v17, 0.0  ;;  %9918 = vmatmul.mubr.bf16.vlgmr.msra.gmra.mrb[220].mxu1 %v17710_v2  ;;  %10015 = vmatmul.mubr.bf16.vlgmr.msra.gmra.mrb[228].mxu0 %v17712_v19  ;;  %v13595_v2 = vld [vmem:[%s19165_s13 + $0x508] sm:$0xff]  }
0x10fb   : > { %v8645_v51 = vmax.f32 %v7655_v45, 0.0  ;;  %v8647_v0 = vmax.f32 %v7768_v47, 0.0  ;;  %9925 = vmatprep.mubr.bf16.mxu1 %v17748_v42  ;;  %10022 = vmatprep.mubr.bf16.mxu0 %v17750_v62  ;;  %v13597_v19 = vld [vmem:[%s19165_s13 + $0x588] sm:$0xff]  }
0x10fc   : > { %v17842_v32 = vpack.c.bf16 %v8644_v27, %v8628_v14  ;;  %v17844_v16 = vpack.c.bf16 %v8646_v24, %v8630_v41  ;;  %12682 = vmatpush3.bf16.msra.mxu1 %v13591_v5  ;;  %12746 = vmatpush3.bf16.msra.mxu0 %v13593_v20  ;;  %v13598_v24 = vld [vmem:[%s19165_s13 + $0x550] sm:$0xff]  }
0x10fd   : > { %v17852_v43 = vpack.c.bf16 %v8645_v51, %v8629_v37  ;;  %v17854_v34 = vpack.c.bf16 %v8647_v0, %v8631_v54  ;;  %v7658_v42 = vpop.f32.mrb[116].mxu1  ;;  %v7771_v62 = vpop.f32.mrb[124].mxu0  ;;  %12683 = vmatprep.subr.bf16.mxu1 %v13594_v48  ;;  %12747 = vmatprep.subr.bf16.mxu0 %v13596_v44  ;;  %v13599_v41 = vld [vmem:[%s19165_s13 + $0x510] sm:$0xff]  }
0x10fe   : > { %v7659_v55 = vadd.f32 %v7658_v42, %v17656_v52  ;;  %v7772_v23 = vadd.f32 %v7771_v62, %v17660_v59  ;;  %v7660_v51 = vpop.f32.mrb[117].mxu1  ;;  %v7773_v37 = vpop.f32.mrb[125].mxu0  ;;  %v13601_v27 = vld [vmem:[%s19165_s13 + $0x590] sm:$0xff]   ;;  %v13602_v42 = vld [vmem:[%s19165_s13 + $0x558] sm:$0xff]  }
0x10ff   : > { %v7661_v17 = vadd.f32 %v7660_v51, %v17664_v60  ;;  %v7774_v5 = vadd.f32 %v7773_v37, %v17668_v36  ;;  %v7662_v20 = vpop.f32.mrb[118].mxu1  ;;  %v7775_v45 = vpop.f32.mrb[126].mxu0 }
0x1100   : > { %v7663_v47 = vadd.f32 %v7662_v20, %v17656_v52  ;;  %v7776_v48 = vadd.f32 %v7775_v45, %v17660_v59  ;;  %v7664_v44 = vpop.f32.mrb[119].mxu1  ;;  %v7777_v14 = vpop.f32.mrb[127].mxu0  ;;  %12684 = vmatpush3.bf16.msra.mxu1 %v13595_v2  ;;  %12748 = vmatpush3.bf16.msra.mxu0 %v13597_v19  ;;  %v13604_v2 = vld [vmem:[%s19165_s13 + $0x5d8] sm:$0xff]   ;;  %v8660_v19 = vmax.f32 %v7659_v55, 0.0  ;;  %v8662_v62 = vmax.f32 %v7772_v23, 0.0 }
0x1101   : > { %v7665_v54 = vadd.f32 %v7664_v44, %v17664_v60  ;;  %v7778_v0 = vadd.f32 %v7777_v14, %v17668_v36  ;;  %12685 = vmatprep.subr.bf16.mxu1 %v13598_v24  ;;  %12749 = vmatprep.subr.bf16.mxu0 %v13600_v33  ;;  %v8661_v20 = vmax.f32 %v7661_v17, 0.0  ;;  %v8663_v45 = vmax.f32 %v7774_v5, 0.0  ;;  %v13606_v17 = vld [vmem:[%s19165_s13 + $0x560] sm:$0xff]  }
0x1102   : > { %v8676_v51 = vmax.f32 %v7663_v47, 0.0  ;;  %v8678_v37 = vmax.f32 %v7776_v48, 0.0  ;;  %9926 = vmatmul.mubr.bf16.gmra.mrb[224].mxu1 %v17744_v49  ;;  %10023 = vmatmul.mubr.bf16.gmra.mrb[232].mxu0 %v17746_v53  ;;  %v13603_v49 = vld [vmem:[%s19165_s13 + $0x518] sm:$0xff]   ;;  %v13607_v5 = vld [vmem:[%s19165_s13 + $0x5e0] sm:$0xff]  }
0x1103   : > { %v8677_v24 = vmax.f32 %v7665_v54, 0.0  ;;  %v8679_v33 = vmax.f32 %v7778_v0, 0.0  ;;  %9933 = vmatprep.mubr.bf16.mxu1 %v17770_v25  ;;  %10030 = vmatprep.mubr.bf16.mxu0 %v17772_v61  ;;  %v13605_v53 = vld [vmem:[%s19165_s13 + $0x598] sm:$0xff]  }
0x1104   : > { %v17886_v44 = vpack.c.bf16 %v8676_v51, %v8660_v19  ;;  %v17888_v14 = vpack.c.bf16 %v8678_v37, %v8662_v62  ;;  %12686 = vmatpush3.bf16.msra.mxu1 %v13599_v41  ;;  %12750 = vmatpush3.bf16.msra.mxu0 %v13601_v27  ;;  %v17912_v19 = vrot.slane %v17636_v35, %v15356_v39 }
0x1105   : > { %v17896_v55 = vpack.c.bf16 %v8677_v24, %v8661_v20  ;;  %v17898_v23 = vpack.c.bf16 %v8679_v33, %v8663_v45  ;;  %v7668_v25 = vpop.f32.mrb[120].mxu1  ;;  %v7781_v61 = vpop.f32.mrb[128].mxu0  ;;  %12687 = vmatprep.subr.bf16.mxu1 %v13602_v42  ;;  %12751 = vmatprep.subr.bf16.mxu0 %v13604_v2  ;;  %v17916_v62 = vrot.slane %v17636_v35, %v15364_v21  ;;  %v13608_v33 = vld [vmem:[%s19165_s13 + $0x520] sm:$0xff]  }
0x1106   : > { %v7669_v47 = vadd.f32 %v7668_v25, %v17656_v52  ;;  %v7782_v48 = vadd.f32 %v7781_v61, %v17660_v59  ;;  %v7670_v41 = vpop.f32.mrb[121].mxu1  ;;  %v7783_v27 = vpop.f32.mrb[129].mxu0  ;;  %v17922_v24 = vrot.slane %v17636_v35, %v15378_v15  ;;  %v13609_v25 = vld [vmem:[%s19165_s13 + $0x5a0] sm:$0xff]   ;;  %v17934_v61 = vrot.slane %v17636_v35, %v15394_v1 }
0x1107   : > { %v7671_v54 = vadd.f32 %v7670_v41, %v17664_v60  ;;  %v7784_v0 = vadd.f32 %v7783_v27, %v17668_v36  ;;  %v7672_v42 = vpop.f32.mrb[122].mxu1  ;;  %v7785_v2 = vpop.f32.mrb[130].mxu0 }
0x1108   : > { %v7673_v51 = vadd.f32 %v7672_v42, %v17656_v52  ;;  %v7786_v37 = vadd.f32 %v7785_v2, %v17660_v59  ;;  %v7674_v20 = vpop.f32.mrb[123].mxu1  ;;  %v7787_v45 = vpop.f32.mrb[131].mxu0  ;;  %12688 = vmatpush3.bf16.msra.mxu1 %v13603_v49  ;;  %12752 = vmatpush3.bf16.msra.mxu0 %v13605_v53  ;;  %v13610_v49 = vld [vmem:[%s19165_s13 + $0x568] sm:$0xff]   ;;  %v8692_v41 = vmax.f32 %v7669_v47, 0.0  ;;  %v8694_v27 = vmax.f32 %v7782_v48, 0.0 }
0x1109   : > { %v7675_v52 = vadd.f32 %v7674_v20, %v17664_v60  ;;  %v7788_v59 = vadd.f32 %v7787_v45, %v17668_v36  ;;  %12689 = vmatprep.subr.bf16.mxu1 %v13606_v17  ;;  %12753 = vmatprep.subr.bf16.mxu0 %v13607_v5  ;;  %v13611_v53 = vld [vmem:[%s19165_s13 + $0x5e8] sm:$0xff]   ;;  %v8693_v35 = vmax.f32 %v7671_v54, 0.0  ;;  %v8695_v36 = vmax.f32 %v7784_v0, 0.0  ;;  %v13614_v54 = vld [vmem:[%s19165_s13 + $0x570] sm:$0xff]  }
0x110a   : > { %v8708_v42 = vmax.f32 %v7673_v51, 0.0  ;;  %v8710_v60 = vmax.f32 %v7786_v37, 0.0  ;;  %9934 = vmatmul.mubr.bf16.gmra.mrb[228].mxu1 %v17766_v31  ;;  %10031 = vmatmul.mubr.bf16.gmra.mrb[236].mxu0 %v17768_v11  ;;  %v13612_v31 = vld [vmem:[%s19165_s13 + $0x528] sm:$0xff]   ;;  %v13615_v0 = vld [vmem:[%s19165_s13 + $0x5f0] sm:$0xff]  }
0x110b   : > { %v8709_v17 = vmax.f32 %v7675_v52, 0.0  ;;  %v8711_v5 = vmax.f32 %v7788_v59, 0.0  ;;  %9941 = vmatprep.mubr.bf16.mxu1 %v17792_v40  ;;  %10038 = vmatprep.mubr.bf16.mxu0 %v17794_v8  ;;  %v13613_v11 = vld [vmem:[%s19165_s13 + $0x5a8] sm:$0xff]  }
0x110c   : > { %v17946_v2 = vpack.c.bf16 %v8708_v42, %v8692_v41  ;;  %v17948_v20 = vpack.c.bf16 %v8710_v60, %v8694_v27  ;;  %12690 = vmatpush3.bf16.msra.mxu1 %v13608_v33  ;;  %12754 = vmatpush3.bf16.msra.mxu0 %v13609_v25  ;;  %v13616_v60 = vld [vmem:[%s19165_s13 + $0x530] sm:$0xff]  }
0x110d   : > { %v17956_v47 = vpack.c.bf16 %v8709_v17, %v8693_v35  ;;  %v17958_v48 = vpack.c.bf16 %v8711_v5, %v8695_v36  ;;  %v7824_v40 = vpop.f32.mrb[124].mxu1  ;;  %v7937_v8 = vpop.f32.mrb[132].mxu0  ;;  %12691 = vmatprep.subr.bf16.mxu1 %v13610_v49  ;;  %12755 = vmatprep.subr.bf16.mxu0 %v13611_v53  ;;  %v13617_v35 = vld [vmem:[%s19165_s13 + $0x5b0] sm:$0xff]   ;;  %v13618_v5 = vld [vmem:[%s19165_s13 + $0x578] sm:$0xff]  }
0x110e   : > { %v7825_v51 = vadd.f32 %v7824_v40, %v17912_v19  ;;  %v7938_v37 = vadd.f32 %v7937_v8, %v17916_v62  ;;  %v7826_v45 = vpop.f32.mrb[125].mxu1  ;;  %v7939_v33 = vpop.f32.mrb[133].mxu0 }
0x110f   : > { %v7827_v25 = vadd.f32 %v7826_v45, %v17922_v24  ;;  %v7940_v52 = vadd.f32 %v7939_v33, %v17934_v61  ;;  %v7828_v59 = vpop.f32.mrb[126].mxu1  ;;  %v7941_v49 = vpop.f32.mrb[134].mxu0 }
0x1110   : > { %v7829_v53 = vadd.f32 %v7828_v59, %v17912_v19  ;;  %v7942_v41 = vadd.f32 %v7941_v49, %v17916_v62  ;;  %v7830_v27 = vpop.f32.mrb[127].mxu1  ;;  %v7943_v42 = vpop.f32.mrb[135].mxu0  ;;  %12692 = vmatpush3.bf16.msra.mxu1 %v13612_v31  ;;  %12756 = vmatpush3.bf16.msra.mxu0 %v13613_v11  ;;  %v13619_v31 = vld [vmem:[%s19165_s13 + $0x5f8] sm:$0xff]   ;;  %v8472_v11 = vmax.f32 %v7825_v51, 0.0  ;;  %v8474_v40 = vmax.f32 %v7938_v37, 0.0 }
0x1111   : > { %v7831_v36 = vadd.f32 %v7830_v27, %v17922_v24  ;;  %v7944_v17 = vadd.f32 %v7943_v42, %v17934_v61  ;;  %12693 = vmatprep.subr.bf16.mxu1 %v13614_v54  ;;  %12757 = vmatprep.subr.bf16.mxu0 %v13615_v0  ;;  %v8473_v33 = vmax.f32 %v7827_v25, 0.0  ;;  %v8475_v59 = vmax.f32 %v7940_v52, 0.0  ;;  %v13622_v25 = vld [vmem:[%s19165_s13 + $0x640] sm:$0xff]  }
0x1112   : > { %v8488_v8 = vmax.f32 %v7829_v53, 0.0  ;;  %v8490_v45 = vmax.f32 %v7942_v41, 0.0  ;;  %9942 = vmatmul.mubr.bf16.gmra.mrb[232].mxu1 %v17788_v7  ;;  %10039 = vmatmul.mubr.bf16.gmra.mrb[240].mxu0 %v17790_v13  ;;  %v13620_v7 = vld [vmem:[%s19165_s13 + $0x538] sm:$0xff]   ;;  %v13624_v52 = vld [vmem:[%s19165_s13 + $0x6c0] sm:$0xff]  }
0x1113   : > { %v8489_v54 = vmax.f32 %v7831_v36, 0.0  ;;  %v8491_v0 = vmax.f32 %v7944_v17, 0.0  ;;  %9949 = vmatprep.mubr.bf16.mxu1 %v17814_v57  ;;  %10046 = vmatprep.mubr.bf16.mxu0 %v17816_v29  ;;  %v13621_v13 = vld [vmem:[%s19165_s13 + $0x5b8] sm:$0xff]  }
0x1114   : > { %v17990_v49 = vpack.c.bf16 %v8488_v8, %v8472_v11  ;;  %v17992_v27 = vpack.c.bf16 %v8490_v45, %v8474_v40  ;;  %12694 = vmatpush3.bf16.msra.mxu1 %v13616_v60  ;;  %12758 = vmatpush3.bf16.msra.mxu0 %v13617_v35 }
0x1115   : > { %v18000_v51 = vpack.c.bf16 %v8489_v54, %v8473_v33  ;;  %v18002_v37 = vpack.c.bf16 %v8491_v0, %v8475_v59  ;;  %v7834_v57 = vpop.f32.mrb[128].mxu1  ;;  %v7947_v29 = vpop.f32.mrb[136].mxu0  ;;  %12695 = vmatprep.subr.bf16.mxu1 %v13618_v5  ;;  %12759 = vmatprep.subr.bf16.mxu0 %v13619_v31 }
0x1116   : > { %v7835_v53 = vadd.f32 %v7834_v57, %v17912_v19  ;;  %v7948_v41 = vadd.f32 %v7947_v29, %v17916_v62  ;;  %v7836_v42 = vpop.f32.mrb[129].mxu1  ;;  %v7949_v60 = vpop.f32.mrb[137].mxu0 }
0x1117   : > { %v7837_v35 = vadd.f32 %v7836_v42, %v17922_v24  ;;  %v7950_v36 = vadd.f32 %v7949_v60, %v17934_v61  ;;  %v7838_v17 = vpop.f32.mrb[130].mxu1  ;;  %v7951_v5 = vpop.f32.mrb[138].mxu0 }
0x1118   : > { %v7839_v31 = vadd.f32 %v7838_v17, %v17912_v19  ;;  %v7952_v11 = vadd.f32 %v7951_v5, %v17916_v62  ;;  %v7840_v40 = vpop.f32.mrb[131].mxu1  ;;  %v7953_v8 = vpop.f32.mrb[139].mxu0  ;;  %12696 = vmatpush3.bf16.msra.mxu1 %v13620_v7  ;;  %12760 = vmatpush3.bf16.msra.mxu0 %v13621_v13  ;;  %v8504_v59 = vmax.f32 %v7835_v53, 0.0  ;;  %v8506_v54 = vmax.f32 %v7948_v41, 0.0 }
0x1119   : > { %v7841_v45 = vadd.f32 %v7840_v40, %v17922_v24  ;;  %v7954_v33 = vadd.f32 %v7953_v8, %v17934_v61  ;;  %12809 = vmatprep.subr.bf16.mxu1 %v13622_v25  ;;  %12873 = vmatprep.subr.bf16.mxu0 %v13624_v52  ;;  %v8505_v29 = vmax.f32 %v7837_v35, 0.0  ;;  %v8507_v42 = vmax.f32 %v7950_v36, 0.0 }
0x111a   : > { %v8520_v0 = vmax.f32 %v7839_v31, 0.0  ;;  %v8522_v57 = vmax.f32 %v7952_v11, 0.0  ;;  %9950 = vmatmul.mubr.bf16.gmra.mrb[236].mxu1 %v17810_v4  ;;  %10047 = vmatmul.mubr.bf16.gmra.mrb[244].mxu0 %v17812_v18 }
0x111b   : > { %v8521_v60 = vmax.f32 %v7841_v45, 0.0  ;;  %v8523_v17 = vmax.f32 %v7954_v33, 0.0  ;;  %9957 = vmatprep.mubr.bf16.mxu1 %v17852_v43  ;;  %10054 = vmatprep.mubr.bf16.mxu0 %v17854_v34 }
0x111c   : > { %v18022_v7 = vpack.c.bf16 %v8520_v0, %v8504_v59  ;;  %v18024_v13 = vpack.c.bf16 %v8522_v57, %v8506_v54 }
0x111d   : > { %v18026_v25 = vpack.c.bf16 %v8521_v60, %v8505_v29  ;;  %v18028_v52 = vpack.c.bf16 %v8523_v17, %v8507_v42  ;;  %v7844_v53 = vpop.f32.mrb[132].mxu1  ;;  %v7957_v4 = vpop.f32.mrb[140].mxu0 }
0x111e   : > { %v7845_v18 = vadd.f32 %v7844_v53, %v17912_v19  ;;  %v7958_v41 = vadd.f32 %v7957_v4, %v17916_v62  ;;  %v7846_v35 = vpop.f32.mrb[133].mxu1  ;;  %v7959_v36 = vpop.f32.mrb[141].mxu0 }
0x111f   : > { %v7847_v43 = vadd.f32 %v7846_v35, %v17922_v24  ;;  %v7960_v34 = vadd.f32 %v7959_v36, %v17934_v61  ;;  %v7848_v5 = vpop.f32.mrb[134].mxu1  ;;  %v7961_v31 = vpop.f32.mrb[142].mxu0 }
0x1120   : > { %v7849_v11 = vadd.f32 %v7848_v5, %v17912_v19  ;;  %v7962_v40 = vadd.f32 %v7961_v31, %v17916_v62  ;;  %v7850_v8 = vpop.f32.mrb[135].mxu1  ;;  %v7963_v45 = vpop.f32.mrb[143].mxu0  ;;  %v8536_v54 = vmax.f32 %v7845_v18, 0.0  ;;  %v8538_v0 = vmax.f32 %v7958_v41, 0.0 }
0x1121   : > { %v7851_v33 = vadd.f32 %v7850_v8, %v17922_v24  ;;  %v7964_v59 = vadd.f32 %v7963_v45, %v17934_v61  ;;  %v8537_v42 = vmax.f32 %v7847_v43, 0.0  ;;  %v8539_v60 = vmax.f32 %v7960_v34, 0.0 }
0x1122   : > { %v8552_v57 = vmax.f32 %v7849_v11, 0.0  ;;  %v8554_v29 = vmax.f32 %v7962_v40, 0.0  ;;  %9958 = vmatmul.mubr.bf16.gmra.mrb[240].mxu1 %v17842_v32  ;;  %10055 = vmatmul.mubr.bf16.gmra.mrb[248].mxu0 %v17844_v16 }
0x1123   : > { %v8553_v17 = vmax.f32 %v7851_v33, 0.0  ;;  %v8555_v53 = vmax.f32 %v7964_v59, 0.0  ;;  %9965 = vmatprep.mubr.bf16.mxu1 %v17896_v55  ;;  %10062 = vmatprep.mubr.bf16.mxu0 %v17898_v23 }
0x1124   : > { %v18042_v4 = vpack.c.bf16 %v8552_v57, %v8536_v54  ;;  %v18044_v35 = vpack.c.bf16 %v8554_v29, %v8538_v0 }
0x1125   : > { %v18046_v18 = vpack.c.bf16 %v8553_v17, %v8537_v42  ;;  %v18048_v41 = vpack.c.bf16 %v8555_v53, %v8539_v60  ;;  %v7854_v36 = vpop.f32.mrb[136].mxu1  ;;  %v7967_v32 = vpop.f32.mrb[144].mxu0 }
0x1126   : > { %v7855_v16 = vadd.f32 %v7854_v36, %v17912_v19  ;;  %v7968_v43 = vadd.f32 %v7967_v32, %v17916_v62  ;;  %v7856_v34 = vpop.f32.mrb[137].mxu1  ;;  %v7969_v5 = vpop.f32.mrb[145].mxu0 }
0x1127   : > { %v7857_v55 = vadd.f32 %v7856_v34, %v17922_v24  ;;  %v7970_v23 = vadd.f32 %v7969_v5, %v17934_v61  ;;  %v7858_v31 = vpop.f32.mrb[138].mxu1  ;;  %v7971_v11 = vpop.f32.mrb[146].mxu0 }
0x1128   : > { %v7859_v40 = vadd.f32 %v7858_v31, %v17912_v19  ;;  %v7972_v8 = vadd.f32 %v7971_v11, %v17916_v62  ;;  %v7860_v45 = vpop.f32.mrb[139].mxu1  ;;  %v7973_v33 = vpop.f32.mrb[147].mxu0  ;;  %v8568_v0 = vmax.f32 %v7855_v16, 0.0  ;;  %v8570_v57 = vmax.f32 %v7968_v43, 0.0 }
0x1129   : > { %v7861_v59 = vadd.f32 %v7860_v45, %v17922_v24  ;;  %v7974_v54 = vadd.f32 %v7973_v33, %v17934_v61  ;;  %v8569_v60 = vmax.f32 %v7857_v55, 0.0  ;;  %v8571_v17 = vmax.f32 %v7970_v23, 0.0 }
0x112a   : > { %v8584_v29 = vmax.f32 %v7859_v40, 0.0  ;;  %v8586_v42 = vmax.f32 %v7972_v8, 0.0  ;;  %9966 = vmatmul.mubr.bf16.gmra.mrb[244].mxu1 %v17886_v44  ;;  %10063 = vmatmul.mubr.bf16.gmra.mrb[252].mxu0 %v17888_v14 }
0x112b   : > { %v8585_v53 = vmax.f32 %v7861_v59, 0.0  ;;  %v8587_v36 = vmax.f32 %v7974_v54, 0.0  ;;  %9973 = vmatprep.mubr.bf16.mxu1 %v17956_v47  ;;  %10070 = vmatprep.mubr.bf16.mxu0 %v17958_v48 }
0x112c   : > { %v18062_v32 = vpack.c.bf16 %v8584_v29, %v8568_v0  ;;  %v18064_v34 = vpack.c.bf16 %v8586_v42, %v8570_v57 }
0x112d   : > { %v18066_v16 = vpack.c.bf16 %v8585_v53, %v8569_v60  ;;  %v18068_v43 = vpack.c.bf16 %v8587_v36, %v8571_v17  ;;  %v7864_v5 = vpop.f32.mrb[140].mxu1  ;;  %v7977_v44 = vpop.f32.mrb[148].mxu0 }
0x112e   : > { %v7865_v14 = vadd.f32 %v7864_v5, %v17912_v19  ;;  %v7978_v55 = vadd.f32 %v7977_v44, %v17916_v62  ;;  %v7866_v23 = vpop.f32.mrb[141].mxu1  ;;  %v7979_v31 = vpop.f32.mrb[149].mxu0 }
0x112f   : > { %v7867_v47 = vadd.f32 %v7866_v23, %v17922_v24  ;;  %v7980_v48 = vadd.f32 %v7979_v31, %v17934_v61  ;;  %v7868_v11 = vpop.f32.mrb[142].mxu1  ;;  %v7981_v40 = vpop.f32.mrb[150].mxu0 }
0x1130   : > { %v7869_v8 = vadd.f32 %v7868_v11, %v17912_v19  ;;  %v7982_v45 = vadd.f32 %v7981_v40, %v17916_v62  ;;  %v7870_v33 = vpop.f32.mrb[143].mxu1  ;;  %v7983_v59 = vpop.f32.mrb[151].mxu0  ;;  %v8600_v57 = vmax.f32 %v7865_v14, 0.0  ;;  %v8602_v29 = vmax.f32 %v7978_v55, 0.0 }
0x1131   : > { %v7871_v54 = vadd.f32 %v7870_v33, %v17922_v24  ;;  %v7984_v0 = vadd.f32 %v7983_v59, %v17934_v61  ;;  %v8601_v17 = vmax.f32 %v7867_v47, 0.0  ;;  %v8603_v53 = vmax.f32 %v7980_v48, 0.0 }
0x1132   : > { %v8616_v42 = vmax.f32 %v7869_v8, 0.0  ;;  %v8618_v60 = vmax.f32 %v7982_v45, 0.0  ;;  %9974 = vmatmul.mubr.bf16.gmra.mrb[248].mxu1 %v17946_v2  ;;  %10071 = vmatmul.mubr.bf16.gmra.mrb[0].mxu0 %v17948_v20 }
0x1133   : > { %v8617_v36 = vmax.f32 %v7871_v54, 0.0  ;;  %v8619_v5 = vmax.f32 %v7984_v0, 0.0  ;;  %10111 = vmatprep.mubr.bf16.mxu1 %v18000_v51  ;;  %10208 = vmatprep.mubr.bf16.mxu0 %v18002_v37  ;;  %v13623_v0 = vld [vmem:[%s19165_s13 + $0x600] sm:$0xff]  }
0x1134   : > { %v18082_v44 = vpack.c.bf16 %v8616_v42, %v8600_v57  ;;  %v18084_v23 = vpack.c.bf16 %v8618_v60, %v8602_v29  ;;  %v13625_v57 = vld [vmem:[%s19165_s13 + $0x680] sm:$0xff]   ;;  %v13626_v60 = vld [vmem:[%s19165_s13 + $0x648] sm:$0xff]  }
0x1135   : > { %v18086_v14 = vpack.c.bf16 %v8617_v36, %v8601_v17  ;;  %v18088_v55 = vpack.c.bf16 %v8619_v5, %v8603_v53  ;;  %v7874_v31 = vpop.f32.mrb[144].mxu1  ;;  %v7987_v2 = vpop.f32.mrb[152].mxu0  ;;  %v13628_v17 = vld [vmem:[%s19165_s13 + $0x6c8] sm:$0xff]  }
0x1136   : > { %v7875_v20 = vadd.f32 %v7874_v31, %v17912_v19  ;;  %v7988_v47 = vadd.f32 %v7987_v2, %v17916_v62  ;;  %v7876_v48 = vpop.f32.mrb[145].mxu1  ;;  %v7989_v11 = vpop.f32.mrb[153].mxu0 }
0x1137   : > { %v7877_v51 = vadd.f32 %v7876_v48, %v17922_v24  ;;  %v7990_v37 = vadd.f32 %v7989_v11, %v17934_v61  ;;  %v7878_v40 = vpop.f32.mrb[146].mxu1  ;;  %v7991_v8 = vpop.f32.mrb[154].mxu0 }
0x1138   : > { %v7879_v45 = vadd.f32 %v7878_v40, %v17912_v19  ;;  %v7992_v33 = vadd.f32 %v7991_v8, %v17916_v62  ;;  %v7880_v59 = vpop.f32.mrb[147].mxu1  ;;  %v7993_v54 = vpop.f32.mrb[155].mxu0  ;;  %v8632_v53 = vmax.f32 %v7875_v20, 0.0  ;;  %v8634_v36 = vmax.f32 %v7988_v47, 0.0 }
0x1139   : > { %v7881_v29 = vadd.f32 %v7880_v59, %v17922_v24  ;;  %v7994_v42 = vadd.f32 %v7993_v54, %v17934_v61  ;;  %v8633_v2 = vmax.f32 %v7877_v51, 0.0  ;;  %v8635_v48 = vmax.f32 %v7990_v37, 0.0  ;;  %v13630_v51 = vld [vmem:[%s19165_s13 + $0x650] sm:$0xff]  }
0x113a   : > { %v8648_v5 = vmax.f32 %v7879_v45, 0.0  ;;  %v8650_v31 = vmax.f32 %v7992_v33, 0.0  ;;  %10112 = vmatmul.mubr.bf16.vlgmr.msra.gmra.mrb[252].mxu1 %v17990_v49  ;;  %10209 = vmatmul.mubr.bf16.vlgmr.msra.gmra.mrb[4].mxu0 %v17992_v27  ;;  %v13627_v49 = vld [vmem:[%s19165_s13 + $0x608] sm:$0xff]   ;;  %v13632_v37 = vld [vmem:[%s19165_s13 + $0x6d0] sm:$0xff]  }
0x113b   : > { %v8649_v11 = vmax.f32 %v7881_v29, 0.0  ;;  %v8651_v40 = vmax.f32 %v7994_v42, 0.0  ;;  %10119 = vmatprep.mubr.bf16.mxu1 %v18026_v25  ;;  %10216 = vmatprep.mubr.bf16.mxu0 %v18028_v52  ;;  %v13629_v27 = vld [vmem:[%s19165_s13 + $0x688] sm:$0xff]  }
0x113c   : > { %v18114_v8 = vpack.c.bf16 %v8648_v5, %v8632_v53  ;;  %v18116_v59 = vpack.c.bf16 %v8650_v31, %v8634_v36  ;;  %12810 = vmatpush3.bf16.msra.mxu1 %v13623_v0  ;;  %12874 = vmatpush3.bf16.msra.mxu0 %v13625_v57  ;;  %v13631_v31 = vld [vmem:[%s19165_s13 + $0x610] sm:$0xff]  }
0x113d   : > { %v18124_v20 = vpack.c.bf16 %v8649_v11, %v8633_v2  ;;  %v18126_v47 = vpack.c.bf16 %v8651_v40, %v8635_v48  ;;  %v7884_v25 = vpop.f32.mrb[148].mxu1  ;;  %v7997_v52 = vpop.f32.mrb[156].mxu0  ;;  %12811 = vmatprep.subr.bf16.mxu1 %v13626_v60  ;;  %12875 = vmatprep.subr.bf16.mxu0 %v13628_v17  ;;  %v13633_v2 = vld [vmem:[%s19165_s13 + $0x690] sm:$0xff]   ;;  %v13634_v40 = vld [vmem:[%s19165_s13 + $0x658] sm:$0xff]  }
0x113e   : > { %v7885_v45 = vadd.f32 %v7884_v25, %v17912_v19  ;;  %v7998_v33 = vadd.f32 %v7997_v52, %v17916_v62  ;;  %v7886_v54 = vpop.f32.mrb[149].mxu1  ;;  %v7999_v0 = vpop.f32.mrb[157].mxu0 }
0x113f   : > { %v7887_v57 = vadd.f32 %v7886_v54, %v17922_v24  ;;  %v8000_v29 = vadd.f32 %v7999_v0, %v17934_v61  ;;  %v7888_v42 = vpop.f32.mrb[150].mxu1  ;;  %v8001_v60 = vpop.f32.mrb[158].mxu0 }
0x1140   : > { %v7889_v17 = vadd.f32 %v7888_v42, %v17912_v19  ;;  %v8002_v53 = vadd.f32 %v8001_v60, %v17916_v62  ;;  %v7890_v36 = vpop.f32.mrb[151].mxu1  ;;  %v8003_v5 = vpop.f32.mrb[159].mxu0  ;;  %12812 = vmatpush3.bf16.msra.mxu1 %v13627_v49  ;;  %12876 = vmatpush3.bf16.msra.mxu0 %v13629_v27  ;;  %v13636_v49 = vld [vmem:[%s19165_s13 + $0x6d8] sm:$0xff]   ;;  %v8664_v27 = vmax.f32 %v7885_v45, 0.0  ;;  %v8666_v25 = vmax.f32 %v7998_v33, 0.0 }
0x1141   : > { %v7891_v48 = vadd.f32 %v7890_v36, %v17922_v24  ;;  %v8004_v11 = vadd.f32 %v8003_v5, %v17934_v61  ;;  %12813 = vmatprep.subr.bf16.mxu1 %v13630_v51  ;;  %12877 = vmatprep.subr.bf16.mxu0 %v13632_v37  ;;  %v8665_v0 = vmax.f32 %v7887_v57, 0.0  ;;  %v8667_v42 = vmax.f32 %v8000_v29, 0.0  ;;  %v18165_v45 = vld [vmem:[%s19164_s12 + $0x18] sm:$0xff]  ;;  %v13638_v29 = vld [vmem:[%s19165_s13 + $0x660] sm:$0xff]  }
0x1142   : > { %v8680_v52 = vmax.f32 %v7889_v17, 0.0  ;;  %v8682_v54 = vmax.f32 %v8002_v53, 0.0  ;;  %10120 = vmatmul.mubr.bf16.gmra.mrb[0].mxu1 %v18022_v7  ;;  %10217 = vmatmul.mubr.bf16.gmra.mrb[8].mxu0 %v18024_v13  ;;  %v13635_v7 = vld [vmem:[%s19165_s13 + $0x618] sm:$0xff]   ;;  %v13639_v17 = vld [vmem:[%s19165_s13 + $0x6e0] sm:$0xff]  }
0x1143   : > { %v8681_v51 = vmax.f32 %v7891_v48, 0.0  ;;  %v8683_v37 = vmax.f32 %v8004_v11, 0.0  ;;  %10127 = vmatprep.mubr.bf16.mxu1 %v18046_v18  ;;  %10224 = vmatprep.mubr.bf16.mxu0 %v18048_v41  ;;  %v13637_v13 = vld [vmem:[%s19165_s13 + $0x698] sm:$0xff]  }
0x1144   : > { %v18158_v60 = vpack.c.bf16 %v8680_v52, %v8664_v27  ;;  %v18160_v36 = vpack.c.bf16 %v8682_v54, %v8666_v25  ;;  %12814 = vmatpush3.bf16.msra.mxu1 %v13631_v31  ;;  %12878 = vmatpush3.bf16.msra.mxu0 %v13633_v2  ;;  %v18189_v27 = vrot.slane %v18165_v45, %v15088_v26  ;;  %v13640_v26 = vld [vmem:[%s19165_s13 + $0x620] sm:$0xff]  }
0x1145   : > { %v18173_v18 = vpack.c.bf16 %v8681_v51, %v8665_v0  ;;  %v18175_v41 = vpack.c.bf16 %v8683_v37, %v8667_v42  ;;  %v7894_v33 = vpop.f32.mrb[152].mxu1  ;;  %v8007_v57 = vpop.f32.mrb[160].mxu0  ;;  %12815 = vmatprep.subr.bf16.mxu1 %v13634_v40  ;;  %12879 = vmatprep.subr.bf16.mxu0 %v13636_v49  ;;  %v18193_v25 = vrot.slane %v18165_v45, %v15091_v58  ;;  %v13641_v58 = vld [vmem:[%s19165_s13 + $0x6a0] sm:$0xff]  }
0x1146   : > { %v7895_v53 = vadd.f32 %v7894_v33, %v17912_v19  ;;  %v8008_v5 = vadd.f32 %v8007_v57, %v17916_v62  ;;  %v7896_v31 = vpop.f32.mrb[153].mxu1  ;;  %v8009_v2 = vpop.f32.mrb[161].mxu0  ;;  %v18199_v51 = vrot.slane %v18165_v45, %v15102_v28  ;;  %v18211_v37 = vrot.slane %v18165_v45, %v19204_v50  ;;  %v13642_v28 = vld [vmem:[%s19165_s13 + $0x668] sm:$0xff]  }
0x1147   : > { %v7897_v48 = vadd.f32 %v7896_v31, %v17922_v24  ;;  %v8010_v11 = vadd.f32 %v8009_v2, %v17934_v61  ;;  %v7898_v40 = vpop.f32.mrb[154].mxu1  ;;  %v8011_v49 = vpop.f32.mrb[162].mxu0 }
0x1148   : > { %v7899_v52 = vadd.f32 %v7898_v40, %v17912_v19  ;;  %v8012_v54 = vadd.f32 %v8011_v49, %v17916_v62  ;;  %v7900_v0 = vpop.f32.mrb[155].mxu1  ;;  %v8013_v42 = vpop.f32.mrb[163].mxu0  ;;  %12816 = vmatpush3.bf16.msra.mxu1 %v13635_v7  ;;  %12880 = vmatpush3.bf16.msra.mxu0 %v13637_v13  ;;  %v13643_v7 = vld [vmem:[%s19165_s13 + $0x6e8] sm:$0xff]   ;;  %v8696_v13 = vmax.f32 %v7895_v53, 0.0  ;;  %v8698_v33 = vmax.f32 %v8008_v5, 0.0 }
0x1149   : > { %v7901_v19 = vadd.f32 %v7900_v0, %v17922_v24  ;;  %v8014_v62 = vadd.f32 %v8013_v42, %v17934_v61  ;;  %12817 = vmatprep.subr.bf16.mxu1 %v13638_v29  ;;  %12881 = vmatprep.subr.bf16.mxu0 %v13639_v17  ;;  %v8697_v50 = vmax.f32 %v7897_v48, 0.0  ;;  %v8699_v61 = vmax.f32 %v8010_v11, 0.0  ;;  %v13646_v48 = vld [vmem:[%s19165_s13 + $0x670] sm:$0xff]  }
0x114a   : > { %v8712_v57 = vmax.f32 %v7899_v52, 0.0  ;;  %v8714_v24 = vmax.f32 %v8012_v54, 0.0  ;;  %10128 = vmatmul.mubr.bf16.gmra.mrb[4].mxu1 %v18042_v4  ;;  %10225 = vmatmul.mubr.bf16.gmra.mrb[12].mxu0 %v18044_v35  ;;  %v13644_v4 = vld [vmem:[%s19165_s13 + $0x628] sm:$0xff]   ;;  %v13647_v11 = vld [vmem:[%s19165_s13 + $0x6f0] sm:$0xff]  }
0x114b   : > { %v8713_v29 = vmax.f32 %v7901_v19, 0.0  ;;  %v8715_v17 = vmax.f32 %v8014_v62, 0.0  ;;  %10135 = vmatprep.mubr.bf16.mxu1 %v18066_v16  ;;  %10232 = vmatprep.mubr.bf16.mxu0 %v18068_v43  ;;  %v13645_v35 = vld [vmem:[%s19165_s13 + $0x6a8] sm:$0xff]  }
0x114c   : > { %v18223_v31 = vpack.c.bf16 %v8712_v57, %v8696_v13  ;;  %v18225_v2 = vpack.c.bf16 %v8714_v24, %v8698_v33  ;;  %12818 = vmatpush3.bf16.msra.mxu1 %v13640_v26  ;;  %12882 = vmatpush3.bf16.msra.mxu0 %v13641_v58  ;;  %v13648_v13 = vld [vmem:[%s19165_s13 + $0x630] sm:$0xff]  }
0x114d   : > { %v18233_v53 = vpack.c.bf16 %v8713_v29, %v8697_v50  ;;  %v18235_v5 = vpack.c.bf16 %v8715_v17, %v8699_v61  ;;  %v8050_v16 = vpop.f32.mrb[156].mxu1  ;;  %v8163_v43 = vpop.f32.mrb[164].mxu0  ;;  %12819 = vmatprep.subr.bf16.mxu1 %v13642_v28  ;;  %12883 = vmatprep.subr.bf16.mxu0 %v13643_v7  ;;  %v13649_v33 = vld [vmem:[%s19165_s13 + $0x6b0] sm:$0xff]   ;;  %v13650_v50 = vld [vmem:[%s19165_s13 + $0x678] sm:$0xff]  }
0x114e   : > { %v8051_v40 = vadd.f32 %v8050_v16, %v18189_v27  ;;  %v8164_v49 = vadd.f32 %v8163_v43, %v18193_v25  ;;  %v8052_v52 = vpop.f32.mrb[157].mxu1  ;;  %v8165_v54 = vpop.f32.mrb[165].mxu0  ;;  %v13651_v61 = vld [vmem:[%s19165_s13 + $0x6f8] sm:$0xff]  }
0x114f   : > { %v8053_v0 = vadd.f32 %v8052_v52, %v18199_v51  ;;  %v8166_v42 = vadd.f32 %v8165_v54, %v18211_v37  ;;  %v8054_v26 = vpop.f32.mrb[158].mxu1  ;;  %v8167_v58 = vpop.f32.mrb[166].mxu0 }
0x1150   : > { %v8055_v19 = vadd.f32 %v8054_v26, %v18189_v27  ;;  %v8168_v62 = vadd.f32 %v8167_v58, %v18193_v25  ;;  %v8056_v28 = vpop.f32.mrb[159].mxu1  ;;  %v8169_v7 = vpop.f32.mrb[167].mxu0  ;;  %12820 = vmatpush3.bf16.msra.mxu1 %v13644_v4  ;;  %12884 = vmatpush3.bf16.msra.mxu0 %v13645_v35  ;;  %v8476_v29 = vmax.f32 %v8051_v40, 0.0  ;;  %v8478_v17 = vmax.f32 %v8164_v49, 0.0 }
0x1151   : > { %v8057_v57 = vadd.f32 %v8056_v28, %v18199_v51  ;;  %v8170_v24 = vadd.f32 %v8169_v7, %v18211_v37  ;;  %12821 = vmatprep.subr.bf16.mxu1 %v13646_v48  ;;  %12885 = vmatprep.subr.bf16.mxu0 %v13647_v11  ;;  %v8477_v16 = vmax.f32 %v8053_v0, 0.0  ;;  %v8479_v43 = vmax.f32 %v8166_v42, 0.0  ;;  %v13654_v0 = vld [vmem:[%s19165_s13 + $0x740] sm:$0xff]  }
0x1152   : > { %v8492_v4 = vmax.f32 %v8055_v19, 0.0  ;;  %v8494_v35 = vmax.f32 %v8168_v62, 0.0  ;;  %10136 = vmatmul.mubr.bf16.gmra.mrb[8].mxu1 %v18062_v32  ;;  %10233 = vmatmul.mubr.bf16.gmra.mrb[16].mxu0 %v18064_v34  ;;  %v13652_v32 = vld [vmem:[%s19165_s13 + $0x638] sm:$0xff]   ;;  %v13656_v42 = vld [vmem:[%s19165_s13 + $0x7c0] sm:$0xff]  }
0x1153   : > { %v8493_v48 = vmax.f32 %v8057_v57, 0.0  ;;  %v8495_v11 = vmax.f32 %v8170_v24, 0.0  ;;  %10143 = vmatprep.mubr.bf16.mxu1 %v18086_v14  ;;  %10240 = vmatprep.mubr.bf16.mxu0 %v18088_v55  ;;  %v13653_v34 = vld [vmem:[%s19165_s13 + $0x6b8] sm:$0xff]  }
0x1154   : > { %v18267_v52 = vpack.c.bf16 %v8492_v4, %v8476_v29  ;;  %v18269_v54 = vpack.c.bf16 %v8494_v35, %v8478_v17  ;;  %12822 = vmatpush3.bf16.msra.mxu1 %v13648_v13  ;;  %12886 = vmatpush3.bf16.msra.mxu0 %v13649_v33 }
0x1155   : > { %v18277_v40 = vpack.c.bf16 %v8493_v48, %v8477_v16  ;;  %v18279_v49 = vpack.c.bf16 %v8495_v11, %v8479_v43  ;;  %v8060_v14 = vpop.f32.mrb[160].mxu1  ;;  %v8173_v55 = vpop.f32.mrb[168].mxu0  ;;  %12823 = vmatprep.subr.bf16.mxu1 %v13650_v50  ;;  %12887 = vmatprep.subr.bf16.mxu0 %v13651_v61 }
0x1156   : > { %v8061_v26 = vadd.f32 %v8060_v14, %v18189_v27  ;;  %v8174_v58 = vadd.f32 %v8173_v55, %v18193_v25  ;;  %v8062_v19 = vpop.f32.mrb[161].mxu1  ;;  %v8175_v62 = vpop.f32.mrb[169].mxu0 }
0x1157   : > { %v8063_v28 = vadd.f32 %v8062_v19, %v18199_v51  ;;  %v8176_v7 = vadd.f32 %v8175_v62, %v18211_v37  ;;  %v8064_v13 = vpop.f32.mrb[162].mxu1  ;;  %v8177_v33 = vpop.f32.mrb[170].mxu0 }
0x1158   : > { %v8065_v57 = vadd.f32 %v8064_v13, %v18189_v27  ;;  %v8178_v24 = vadd.f32 %v8177_v33, %v18193_v25  ;;  %v8066_v50 = vpop.f32.mrb[163].mxu1  ;;  %v8179_v61 = vpop.f32.mrb[171].mxu0  ;;  %12824 = vmatpush3.bf16.msra.mxu1 %v13652_v32  ;;  %12888 = vmatpush3.bf16.msra.mxu0 %v13653_v34  ;;  %v8508_v4 = vmax.f32 %v8061_v26, 0.0  ;;  %v8510_v35 = vmax.f32 %v8174_v58, 0.0 }
0x1159   : > { %v8067_v29 = vadd.f32 %v8066_v50, %v18199_v51  ;;  %v8180_v17 = vadd.f32 %v8179_v61, %v18211_v37  ;;  %12937 = vmatprep.subr.bf16.mxu1 %v13654_v0  ;;  %13001 = vmatprep.subr.bf16.mxu0 %v13656_v42  ;;  %v8509_v48 = vmax.f32 %v8063_v28, 0.0  ;;  %v8511_v11 = vmax.f32 %v8176_v7, 0.0 }
0x115a   : > { %v8524_v16 = vmax.f32 %v8065_v57, 0.0  ;;  %v8526_v43 = vmax.f32 %v8178_v24, 0.0  ;;  %10144 = vmatmul.mubr.bf16.gmra.mrb[12].mxu1 %v18082_v44  ;;  %10241 = vmatmul.mubr.bf16.gmra.mrb[20].mxu0 %v18084_v23 }
0x115b   : > { %v8525_v14 = vmax.f32 %v8067_v29, 0.0  ;;  %v8527_v55 = vmax.f32 %v8180_v17, 0.0  ;;  %10151 = vmatprep.mubr.bf16.mxu1 %v18124_v20  ;;  %10248 = vmatprep.mubr.bf16.mxu0 %v18126_v47 }
0x115c   : > { %v18299_v32 = vpack.c.bf16 %v8524_v16, %v8508_v4  ;;  %v18301_v34 = vpack.c.bf16 %v8526_v43, %v8510_v35 }
0x115d   : > { %v18303_v0 = vpack.c.bf16 %v8525_v14, %v8509_v48  ;;  %v18305_v42 = vpack.c.bf16 %v8527_v55, %v8511_v11  ;;  %v8070_v26 = vpop.f32.mrb[164].mxu1  ;;  %v8183_v44 = vpop.f32.mrb[172].mxu0 }
0x115e   : > { %v8071_v23 = vadd.f32 %v8070_v26, %v18189_v27  ;;  %v8184_v58 = vadd.f32 %v8183_v44, %v18193_v25  ;;  %v8072_v19 = vpop.f32.mrb[165].mxu1  ;;  %v8185_v62 = vpop.f32.mrb[173].mxu0 }
0x115f   : > { %v8073_v20 = vadd.f32 %v8072_v19, %v18199_v51  ;;  %v8186_v47 = vadd.f32 %v8185_v62, %v18211_v37  ;;  %v8074_v28 = vpop.f32.mrb[166].mxu1  ;;  %v8187_v7 = vpop.f32.mrb[174].mxu0 }
0x1160   : > { %v8075_v13 = vadd.f32 %v8074_v28, %v18189_v27  ;;  %v8188_v33 = vadd.f32 %v8187_v7, %v18193_v25  ;;  %v8076_v57 = vpop.f32.mrb[167].mxu1  ;;  %v8189_v24 = vpop.f32.mrb[175].mxu0  ;;  %v8540_v29 = vmax.f32 %v8071_v23, 0.0  ;;  %v8542_v17 = vmax.f32 %v8184_v58, 0.0 }
0x1161   : > { %v8077_v50 = vadd.f32 %v8076_v57, %v18199_v51  ;;  %v8190_v61 = vadd.f32 %v8189_v24, %v18211_v37  ;;  %v8541_v16 = vmax.f32 %v8073_v20, 0.0  ;;  %v8543_v43 = vmax.f32 %v8186_v47, 0.0 }
0x1162   : > { %v8556_v4 = vmax.f32 %v8075_v13, 0.0  ;;  %v8558_v35 = vmax.f32 %v8188_v33, 0.0  ;;  %10152 = vmatmul.mubr.bf16.gmra.mrb[16].mxu1 %v18114_v8  ;;  %10249 = vmatmul.mubr.bf16.gmra.mrb[24].mxu0 %v18116_v59 }
0x1163   : > { %v8557_v48 = vmax.f32 %v8077_v50, 0.0  ;;  %v8559_v11 = vmax.f32 %v8190_v61, 0.0  ;;  %10159 = vmatprep.mubr.bf16.mxu1 %v18173_v18  ;;  %10256 = vmatprep.mubr.bf16.mxu0 %v18175_v41 }
0x1164   : > { %v18319_v14 = vpack.c.bf16 %v8556_v4, %v8540_v29  ;;  %v18321_v55 = vpack.c.bf16 %v8558_v35, %v8542_v17 }
0x1165   : > { %v18323_v26 = vpack.c.bf16 %v8557_v48, %v8541_v16  ;;  %v18325_v44 = vpack.c.bf16 %v8559_v11, %v8543_v43  ;;  %v8080_v23 = vpop.f32.mrb[168].mxu1  ;;  %v8193_v8 = vpop.f32.mrb[176].mxu0 }
0x1166   : > { %v8081_v59 = vadd.f32 %v8080_v23, %v18189_v27  ;;  %v8194_v58 = vadd.f32 %v8193_v8, %v18193_v25  ;;  %v8082_v19 = vpop.f32.mrb[169].mxu1  ;;  %v8195_v62 = vpop.f32.mrb[177].mxu0 }
0x1167   : > { %v8083_v18 = vadd.f32 %v8082_v19, %v18199_v51  ;;  %v8196_v41 = vadd.f32 %v8195_v62, %v18211_v37  ;;  %v8084_v20 = vpop.f32.mrb[170].mxu1  ;;  %v8197_v47 = vpop.f32.mrb[178].mxu0 }
0x1168   : > { %v8085_v28 = vadd.f32 %v8084_v20, %v18189_v27  ;;  %v8198_v7 = vadd.f32 %v8197_v47, %v18193_v25  ;;  %v8086_v13 = vpop.f32.mrb[171].mxu1  ;;  %v8199_v33 = vpop.f32.mrb[179].mxu0  ;;  %v8572_v50 = vmax.f32 %v8081_v59, 0.0  ;;  %v8574_v61 = vmax.f32 %v8194_v58, 0.0 }
0x1169   : > { %v8087_v57 = vadd.f32 %v8086_v13, %v18199_v51  ;;  %v8200_v24 = vadd.f32 %v8199_v33, %v18211_v37  ;;  %v8573_v4 = vmax.f32 %v8083_v18, 0.0  ;;  %v8575_v35 = vmax.f32 %v8196_v41, 0.0 }
0x116a   : > { %v8588_v29 = vmax.f32 %v8085_v28, 0.0  ;;  %v8590_v17 = vmax.f32 %v8198_v7, 0.0  ;;  %10160 = vmatmul.mubr.bf16.gmra.mrb[20].mxu1 %v18158_v60  ;;  %10257 = vmatmul.mubr.bf16.gmra.mrb[28].mxu0 %v18160_v36 }
0x116b   : > { %v8589_v16 = vmax.f32 %v8087_v57, 0.0  ;;  %v8591_v43 = vmax.f32 %v8200_v24, 0.0  ;;  %10167 = vmatprep.mubr.bf16.mxu1 %v18233_v53  ;;  %10264 = vmatprep.mubr.bf16.mxu0 %v18235_v5 }
0x116c   : > { %v18339_v48 = vpack.c.bf16 %v8588_v29, %v8572_v50  ;;  %v18341_v11 = vpack.c.bf16 %v8590_v17, %v8574_v61 }
0x116d   : > { %v18343_v23 = vpack.c.bf16 %v8589_v16, %v8573_v4  ;;  %v18345_v8 = vpack.c.bf16 %v8591_v43, %v8575_v35  ;;  %v8090_v59 = vpop.f32.mrb[172].mxu1  ;;  %v8203_v60 = vpop.f32.mrb[180].mxu0 }
0x116e   : > { %v8091_v36 = vadd.f32 %v8090_v59, %v18189_v27  ;;  %v8204_v58 = vadd.f32 %v8203_v60, %v18193_v25  ;;  %v8092_v19 = vpop.f32.mrb[173].mxu1  ;;  %v8205_v62 = vpop.f32.mrb[181].mxu0 }
0x116f   : > { %v8093_v53 = vadd.f32 %v8092_v19, %v18199_v51  ;;  %v8206_v5 = vadd.f32 %v8205_v62, %v18211_v37  ;;  %v8094_v18 = vpop.f32.mrb[174].mxu1  ;;  %v8207_v41 = vpop.f32.mrb[182].mxu0 }
0x1170   : > { %v8095_v20 = vadd.f32 %v8094_v18, %v18189_v27  ;;  %v8208_v47 = vadd.f32 %v8207_v41, %v18193_v25  ;;  %v8096_v28 = vpop.f32.mrb[175].mxu1  ;;  %v8209_v7 = vpop.f32.mrb[183].mxu0  ;;  %v8604_v57 = vmax.f32 %v8091_v36, 0.0  ;;  %v8606_v24 = vmax.f32 %v8204_v58, 0.0 }
0x1171   : > { %v8097_v13 = vadd.f32 %v8096_v28, %v18199_v51  ;;  %v8210_v33 = vadd.f32 %v8209_v7, %v18211_v37  ;;  %v8605_v29 = vmax.f32 %v8093_v53, 0.0  ;;  %v8607_v17 = vmax.f32 %v8206_v5, 0.0  ;;  %v13655_v28 = vld [vmem:[%s19165_s13 + $0x700] sm:$0xff]  }
0x1172   : > { %v8620_v50 = vmax.f32 %v8095_v20, 0.0  ;;  %v8622_v61 = vmax.f32 %v8208_v47, 0.0  ;;  %10168 = vmatmul.mubr.bf16.gmra.mrb[24].mxu1 %v18223_v31  ;;  %10265 = vmatmul.mubr.bf16.gmra.mrb[32].mxu0 %v18225_v2  ;;  %v13657_v7 = vld [vmem:[%s19165_s13 + $0x780] sm:$0xff]  }
0x1173   : > { %v8621_v4 = vmax.f32 %v8097_v13, 0.0  ;;  %v8623_v35 = vmax.f32 %v8210_v33, 0.0  ;;  %10305 = vmatprep.mubr.bf16.mxu1 %v18277_v40  ;;  %10402 = vmatprep.mubr.bf16.mxu0 %v18279_v49 }
0x1174   : > { %v18359_v16 = vpack.c.bf16 %v8620_v50, %v8604_v57  ;;  %v18361_v43 = vpack.c.bf16 %v8622_v61, %v8606_v24  ;;  %v13658_v57 = vld [vmem:[%s19165_s13 + $0x748] sm:$0xff]  }
0x1175   : > { %v18363_v59 = vpack.c.bf16 %v8621_v4, %v8605_v29  ;;  %v18365_v60 = vpack.c.bf16 %v8623_v35, %v8607_v17  ;;  %v8100_v36 = vpop.f32.mrb[176].mxu1  ;;  %v8213_v31 = vpop.f32.mrb[184].mxu0  ;;  %v13660_v24 = vld [vmem:[%s19165_s13 + $0x7c8] sm:$0xff]  }
0x1176   : > { %v8101_v2 = vadd.f32 %v8100_v36, %v18189_v27  ;;  %v8214_v58 = vadd.f32 %v8213_v31, %v18193_v25  ;;  %v8102_v19 = vpop.f32.mrb[177].mxu1  ;;  %v8215_v62 = vpop.f32.mrb[185].mxu0 }
0x1177   : > { %v8103_v40 = vadd.f32 %v8102_v19, %v18199_v51  ;;  %v8216_v49 = vadd.f32 %v8215_v62, %v18211_v37  ;;  %v8104_v53 = vpop.f32.mrb[178].mxu1  ;;  %v8217_v5 = vpop.f32.mrb[186].mxu0 }
0x1178   : > { %v8105_v18 = vadd.f32 %v8104_v53, %v18189_v27  ;;  %v8218_v41 = vadd.f32 %v8217_v5, %v18193_v25  ;;  %v8106_v20 = vpop.f32.mrb[179].mxu1  ;;  %v8219_v47 = vpop.f32.mrb[187].mxu0  ;;  %v8636_v50 = vmax.f32 %v8101_v2, 0.0  ;;  %v8638_v61 = vmax.f32 %v8214_v58, 0.0 }
0x1179   : > { %v8107_v13 = vadd.f32 %v8106_v20, %v18199_v51  ;;  %v8220_v33 = vadd.f32 %v8219_v47, %v18211_v37  ;;  %v8637_v4 = vmax.f32 %v8103_v40, 0.0  ;;  %v8639_v35 = vmax.f32 %v8216_v49, 0.0  ;;  %v13662_v40 = vld [vmem:[%s19165_s13 + $0x750] sm:$0xff]  }
0x117a   : > { %v8652_v29 = vmax.f32 %v8105_v18, 0.0  ;;  %v8654_v17 = vmax.f32 %v8218_v41, 0.0  ;;  %10306 = vmatmul.mubr.bf16.vlgmr.msra.gmra.mrb[28].mxu1 %v18267_v52  ;;  %10403 = vmatmul.mubr.bf16.vlgmr.msra.gmra.mrb[36].mxu0 %v18269_v54  ;;  %v13659_v52 = vld [vmem:[%s19165_s13 + $0x708] sm:$0xff]   ;;  %v13664_v49 = vld [vmem:[%s19165_s13 + $0x7d0] sm:$0xff]  }
0x117b   : > { %v8653_v36 = vmax.f32 %v8107_v13, 0.0  ;;  %v8655_v31 = vmax.f32 %v8220_v33, 0.0  ;;  %10313 = vmatprep.mubr.bf16.mxu1 %v18303_v0  ;;  %10410 = vmatprep.mubr.bf16.mxu0 %v18305_v42  ;;  %v13661_v54 = vld [vmem:[%s19165_s13 + $0x788] sm:$0xff]  }
0x117c   : > { %v18391_v19 = vpack.c.bf16 %v8652_v29, %v8636_v50  ;;  %v18393_v62 = vpack.c.bf16 %v8654_v17, %v8638_v61  ;;  %12938 = vmatpush3.bf16.msra.mxu1 %v13655_v28  ;;  %13002 = vmatpush3.bf16.msra.mxu0 %v13657_v7  ;;  %v13663_v50 = vld [vmem:[%s19165_s13 + $0x710] sm:$0xff]  }
0x117d   : > { %v18401_v2 = vpack.c.bf16 %v8653_v36, %v8637_v4  ;;  %v18403_v58 = vpack.c.bf16 %v8655_v31, %v8639_v35  ;;  %v8110_v0 = vpop.f32.mrb[180].mxu1  ;;  %v8223_v42 = vpop.f32.mrb[188].mxu0  ;;  %12939 = vmatprep.subr.bf16.mxu1 %v13658_v57  ;;  %13003 = vmatprep.subr.bf16.mxu0 %v13660_v24  ;;  %v13665_v61 = vld [vmem:[%s19165_s13 + $0x790] sm:$0xff]   ;;  %v13666_v4 = vld [vmem:[%s19165_s13 + $0x758] sm:$0xff]  }
0x117e   : > { %v8111_v53 = vadd.f32 %v8110_v0, %v18189_v27  ;;  %v8224_v5 = vadd.f32 %v8223_v42, %v18193_v25  ;;  %v8112_v18 = vpop.f32.mrb[181].mxu1  ;;  %v8225_v41 = vpop.f32.mrb[189].mxu0  ;;  %v13668_v35 = vld [vmem:[%s19165_s13 + $0x7d8] sm:$0xff]  }
0x117f   : > { %v8113_v20 = vadd.f32 %v8112_v18, %v18199_v51  ;;  %v8226_v47 = vadd.f32 %v8225_v41, %v18211_v37  ;;  %v8114_v28 = vpop.f32.mrb[182].mxu1  ;;  %v8227_v7 = vpop.f32.mrb[190].mxu0 }
0x1180   : > { %v8115_v13 = vadd.f32 %v8114_v28, %v18189_v27  ;;  %v8228_v33 = vadd.f32 %v8227_v7, %v18193_v25  ;;  %v8116_v57 = vpop.f32.mrb[183].mxu1  ;;  %v8229_v24 = vpop.f32.mrb[191].mxu0  ;;  %12940 = vmatpush3.bf16.msra.mxu1 %v13659_v52  ;;  %13004 = vmatpush3.bf16.msra.mxu0 %v13661_v54  ;;  %v8668_v36 = vmax.f32 %v8111_v53, 0.0  ;;  %v8670_v31 = vmax.f32 %v8224_v5, 0.0 }
0x1181   : > { %v8117_v29 = vadd.f32 %v8116_v57, %v18199_v51  ;;  %v8230_v17 = vadd.f32 %v8229_v24, %v18211_v37  ;;  %12941 = vmatprep.subr.bf16.mxu1 %v13662_v40  ;;  %13005 = vmatprep.subr.bf16.mxu0 %v13664_v49  ;;  %v8669_v0 = vmax.f32 %v8113_v20, 0.0  ;;  %v8671_v42 = vmax.f32 %v8226_v47, 0.0  ;;  %v13670_v20 = vld [vmem:[%s19165_s13 + $0x760] sm:$0xff]  }
0x1182   : > { %v8684_v52 = vmax.f32 %v8115_v13, 0.0  ;;  %v8686_v54 = vmax.f32 %v8228_v33, 0.0  ;;  %10314 = vmatmul.mubr.bf16.gmra.mrb[32].mxu1 %v18299_v32  ;;  %10411 = vmatmul.mubr.bf16.gmra.mrb[40].mxu0 %v18301_v34  ;;  %v13667_v32 = vld [vmem:[%s19165_s13 + $0x718] sm:$0xff]   ;;  %v13671_v47 = vld [vmem:[%s19165_s13 + $0x7e0] sm:$0xff]  }
0x1183   : > { %v8685_v40 = vmax.f32 %v8117_v29, 0.0  ;;  %v8687_v49 = vmax.f32 %v8230_v17, 0.0  ;;  %10321 = vmatprep.mubr.bf16.mxu1 %v18323_v26  ;;  %10418 = vmatprep.mubr.bf16.mxu0 %v18325_v44  ;;  %v13669_v34 = vld [vmem:[%s19165_s13 + $0x798] sm:$0xff]   ;;  %v18461_v29 = vrot.slane %v18165_v45, %v15356_v39  ;;  %v18465_v17 = vrot.slane %v18165_v45, %v15364_v21  ;;  %v13672_v39 = vld [vmem:[%s19165_s13 + $0x720] sm:$0xff]  }
0x1184   : > { %v18435_v18 = vpack.c.bf16 %v8684_v52, %v8668_v36  ;;  %v18437_v41 = vpack.c.bf16 %v8686_v54, %v8670_v31  ;;  %12942 = vmatpush3.bf16.msra.mxu1 %v13663_v50  ;;  %13006 = vmatpush3.bf16.msra.mxu0 %v13665_v61  ;;  %v18471_v52 = vrot.slane %v18165_v45, %v15378_v15  ;;  %v13673_v21 = vld [vmem:[%s19165_s13 + $0x7a0] sm:$0xff]   ;;  %v13674_v15 = vld [vmem:[%s19165_s13 + $0x768] sm:$0xff]  }
0x1185   : > { %v18445_v53 = vpack.c.bf16 %v8685_v40, %v8669_v0  ;;  %v18447_v5 = vpack.c.bf16 %v8687_v49, %v8671_v42  ;;  %v8120_v26 = vpop.f32.mrb[184].mxu1  ;;  %v8233_v44 = vpop.f32.mrb[192].mxu0  ;;  %12943 = vmatprep.subr.bf16.mxu1 %v13666_v4  ;;  %13007 = vmatprep.subr.bf16.mxu0 %v13668_v35  ;;  %v18483_v54 = vrot.slane %v18165_v45, %v15394_v1  ;;  %v13675_v0 = vld [vmem:[%s19165_s13 + $0x7e8] sm:$0xff]  }
0x1186   : > { %v8121_v28 = vadd.f32 %v8120_v26, %v18189_v27  ;;  %v8234_v7 = vadd.f32 %v8233_v44, %v18193_v25  ;;  %v8122_v13 = vpop.f32.mrb[185].mxu1  ;;  %v8235_v33 = vpop.f32.mrb[193].mxu0 }
0x1187   : > { %v8123_v57 = vadd.f32 %v8122_v13, %v18199_v51  ;;  %v8236_v24 = vadd.f32 %v8235_v33, %v18211_v37  ;;  %v8124_v50 = vpop.f32.mrb[186].mxu1  ;;  %v8237_v61 = vpop.f32.mrb[194].mxu0 }
0x1188   : > { %v8125_v4 = vadd.f32 %v8124_v50, %v18189_v27  ;;  %v8238_v35 = vadd.f32 %v8237_v61, %v18193_v25  ;;  %v8126_v36 = vpop.f32.mrb[187].mxu1  ;;  %v8239_v31 = vpop.f32.mrb[195].mxu0  ;;  %12944 = vmatpush3.bf16.msra.mxu1 %v13667_v32  ;;  %13008 = vmatpush3.bf16.msra.mxu0 %v13669_v34  ;;  %v8700_v42 = vmax.f32 %v8121_v28, 0.0  ;;  %v8702_v40 = vmax.f32 %v8234_v7, 0.0  ;;  %v13679_v28 = vld [vmem:[%s19165_s13 + $0x7f0] sm:$0xff]  }
0x1189   : > { %v8127_v27 = vadd.f32 %v8126_v36, %v18199_v51  ;;  %v8240_v25 = vadd.f32 %v8239_v31, %v18211_v37  ;;  %12945 = vmatprep.subr.bf16.mxu1 %v13670_v20  ;;  %13009 = vmatprep.subr.bf16.mxu0 %v13671_v47  ;;  %v8701_v1 = vmax.f32 %v8123_v57, 0.0  ;;  %v8703_v45 = vmax.f32 %v8236_v24, 0.0  ;;  %v13678_v47 = vld [vmem:[%s19165_s13 + $0x770] sm:$0xff]  }
0x118a   : > { %v8716_v49 = vmax.f32 %v8125_v4, 0.0  ;;  %v8718_v51 = vmax.f32 %v8238_v35, 0.0  ;;  %10322 = vmatmul.mubr.bf16.gmra.mrb[36].mxu1 %v18319_v14  ;;  %10419 = vmatmul.mubr.bf16.gmra.mrb[44].mxu0 %v18321_v55  ;;  %v13676_v14 = vld [vmem:[%s19165_s13 + $0x728] sm:$0xff]  }
0x118b   : > { %v8717_v37 = vmax.f32 %v8127_v27, 0.0  ;;  %v8719_v32 = vmax.f32 %v8240_v25, 0.0  ;;  %10329 = vmatprep.mubr.bf16.mxu1 %v18343_v23  ;;  %10426 = vmatprep.mubr.bf16.mxu0 %v18345_v8  ;;  %v13677_v55 = vld [vmem:[%s19165_s13 + $0x7a8] sm:$0xff]   ;;  %v13681_v27 = vld [vmem:[%s19165_s13 + $0x7b0] sm:$0xff]  }
0x118c   : > { %v18495_v34 = vpack.c.bf16 %v8716_v49, %v8700_v42  ;;  %v18497_v26 = vpack.c.bf16 %v8718_v51, %v8702_v40  ;;  %12946 = vmatpush3.bf16.msra.mxu1 %v13672_v39  ;;  %13010 = vmatpush3.bf16.msra.mxu0 %v13673_v21  ;;  %v13680_v21 = vld [vmem:[%s19165_s13 + $0x730] sm:$0xff]   ;;  %v13683_v42 = vld [vmem:[%s19165_s13 + $0x7f8] sm:$0xff]  }
0x118d   : > { %v18505_v44 = vpack.c.bf16 %v8717_v37, %v8701_v1  ;;  %v18507_v20 = vpack.c.bf16 %v8719_v32, %v8703_v45  ;;  %v8276_v23 = vpop.f32.mrb[188].mxu1  ;;  %v8389_v8 = vpop.f32.mrb[196].mxu0  ;;  %12947 = vmatprep.subr.bf16.mxu1 %v13674_v15  ;;  %13011 = vmatprep.subr.bf16.mxu0 %v13675_v0  ;;  %v13682_v0 = vld [vmem:[%s19165_s13 + $0x778] sm:$0xff]  }
0x118e   : > { %v8277_v7 = vadd.f32 %v8276_v23, %v18461_v29  ;;  %v8390_v13 = vadd.f32 %v8389_v8, %v18465_v17  ;;  %v8278_v33 = vpop.f32.mrb[189].mxu1  ;;  %v8391_v57 = vpop.f32.mrb[197].mxu0 }
0x118f   : > { %v8279_v24 = vadd.f32 %v8278_v33, %v18471_v52  ;;  %v8392_v50 = vadd.f32 %v8391_v57, %v18483_v54  ;;  %v8280_v61 = vpop.f32.mrb[190].mxu1  ;;  %v8393_v4 = vpop.f32.mrb[198].mxu0 }
0x1190   : > { %v8281_v35 = vadd.f32 %v8280_v61, %v18461_v29  ;;  %v8394_v36 = vadd.f32 %v8393_v4, %v18465_v17  ;;  %v8282_v31 = vpop.f32.mrb[191].mxu1  ;;  %v8395_v39 = vpop.f32.mrb[199].mxu0  ;;  %12948 = vmatpush3.bf16.msra.mxu1 %v13676_v14  ;;  %13012 = vmatpush3.bf16.msra.mxu0 %v13677_v55  ;;  %v8480_v40 = vmax.f32 %v8277_v7, 0.0  ;;  %v8482_v49 = vmax.f32 %v8390_v13, 0.0 }
0x1191   : > { %v8283_v25 = vadd.f32 %v8282_v31, %v18471_v52  ;;  %v8396_v15 = vadd.f32 %v8395_v39, %v18483_v54  ;;  %12949 = vmatprep.subr.bf16.mxu1 %v13678_v47  ;;  %13013 = vmatprep.subr.bf16.mxu0 %v13679_v28  ;;  %v8481_v45 = vmax.f32 %v8279_v24, 0.0  ;;  %v8483_v37 = vmax.f32 %v8392_v50, 0.0 }
0x1192   : > { %v8496_v51 = vmax.f32 %v8281_v35, 0.0  ;;  %v8498_v1 = vmax.f32 %v8394_v36, 0.0  ;;  %10330 = vmatmul.mubr.bf16.gmra.mrb[40].mxu1 %v18339_v48  ;;  %10427 = vmatmul.mubr.bf16.gmra.mrb[48].mxu0 %v18341_v11  ;;  %v13684_v48 = vld [vmem:[%s19165_s13 + $0x738] sm:$0xff]  }
0x1193   : > { %v8497_v32 = vmax.f32 %v8283_v25, 0.0  ;;  %v8499_v14 = vmax.f32 %v8396_v15, 0.0  ;;  %10337 = vmatprep.mubr.bf16.mxu1 %v18363_v59  ;;  %10434 = vmatprep.mubr.bf16.mxu0 %v18365_v60  ;;  %v13685_v11 = vld [vmem:[%s19165_s13 + $0x7b8] sm:$0xff]  }
0x1194   : > { %v18539_v55 = vpack.c.bf16 %v8496_v51, %v8480_v40  ;;  %v18541_v23 = vpack.c.bf16 %v8498_v1, %v8482_v49  ;;  %12950 = vmatpush3.bf16.msra.mxu1 %v13680_v21  ;;  %13014 = vmatpush3.bf16.msra.mxu0 %v13681_v27 }
0x1195   : > { %v18549_v8 = vpack.c.bf16 %v8497_v32, %v8481_v45  ;;  %v18551_v47 = vpack.c.bf16 %v8499_v14, %v8483_v37  ;;  %v8286_v59 = vpop.f32.mrb[192].mxu1  ;;  %v8399_v60 = vpop.f32.mrb[200].mxu0  ;;  %12951 = vmatprep.subr.bf16.mxu1 %v13682_v0  ;;  %13015 = vmatprep.subr.bf16.mxu0 %v13683_v42 }
0x1196   : > { %v8287_v28 = vadd.f32 %v8286_v59, %v18461_v29  ;;  %v8400_v7 = vadd.f32 %v8399_v60, %v18465_v17  ;;  %v8288_v13 = vpop.f32.mrb[193].mxu1  ;;  %v8401_v33 = vpop.f32.mrb[201].mxu0 }
0x1197   : > { %v8289_v57 = vadd.f32 %v8288_v13, %v18471_v52  ;;  %v8402_v24 = vadd.f32 %v8401_v33, %v18483_v54  ;;  %v8290_v50 = vpop.f32.mrb[194].mxu1  ;;  %v8403_v61 = vpop.f32.mrb[202].mxu0 }
0x1198   : > { %v8291_v4 = vadd.f32 %v8290_v50, %v18461_v29  ;;  %v8404_v35 = vadd.f32 %v8403_v61, %v18465_v17  ;;  %v8292_v36 = vpop.f32.mrb[195].mxu1  ;;  %v8405_v31 = vpop.f32.mrb[203].mxu0  ;;  %12952 = vmatpush3.bf16.msra.mxu1 %v13684_v48  ;;  %13016 = vmatpush3.bf16.msra.mxu0 %v13685_v11  ;;  %v8512_v27 = vmax.f32 %v8287_v28, 0.0  ;;  %v8514_v25 = vmax.f32 %v8400_v7, 0.0 }
0x1199   : > { %v8293_v39 = vadd.f32 %v8292_v36, %v18471_v52  ;;  %v8406_v21 = vadd.f32 %v8405_v31, %v18483_v54  ;;  %v8513_v42 = vmax.f32 %v8289_v57, 0.0  ;;  %v8515_v40 = vmax.f32 %v8402_v24, 0.0 }
0x119a   : > { %v8528_v15 = vmax.f32 %v8291_v4, 0.0  ;;  %v8530_v0 = vmax.f32 %v8404_v35, 0.0  ;;  %10338 = vmatmul.mubr.bf16.gmra.mrb[44].mxu1 %v18359_v16  ;;  %10435 = vmatmul.mubr.bf16.gmra.mrb[52].mxu0 %v18361_v43 }
0x119b   : > { %v8529_v49 = vmax.f32 %v8293_v39, 0.0  ;;  %v8531_v51 = vmax.f32 %v8406_v21, 0.0  ;;  %10345 = vmatprep.mubr.bf16.mxu1 %v18401_v2  ;;  %10442 = vmatprep.mubr.bf16.mxu0 %v18403_v58 }
0x119c   : > { %v18565_v1 = vpack.c.bf16 %v8528_v15, %v8512_v27  ;;  %v18567_v45 = vpack.c.bf16 %v8530_v0, %v8514_v25 }
0x119d   : > { %v18569_v37 = vpack.c.bf16 %v8529_v49, %v8513_v42  ;;  %v18571_v32 = vpack.c.bf16 %v8531_v51, %v8515_v40  ;;  %v8296_v14 = vpop.f32.mrb[196].mxu1  ;;  %v8409_v16 = vpop.f32.mrb[204].mxu0 }
0x119e   : > { %v8297_v43 = vadd.f32 %v8296_v14, %v18461_v29  ;;  %v8410_v48 = vadd.f32 %v8409_v16, %v18465_v17  ;;  %v8298_v11 = vpop.f32.mrb[197].mxu1  ;;  %v8411_v59 = vpop.f32.mrb[205].mxu0 }
0x119f   : > { %v8299_v2 = vadd.f32 %v8298_v11, %v18471_v52  ;;  %v8412_v58 = vadd.f32 %v8411_v59, %v18483_v54  ;;  %v8300_v60 = vpop.f32.mrb[198].mxu1  ;;  %v8413_v28 = vpop.f32.mrb[206].mxu0 }
0x11a0   : > { %v8301_v7 = vadd.f32 %v8300_v60, %v18461_v29  ;;  %v8414_v13 = vadd.f32 %v8413_v28, %v18465_v17  ;;  %v8302_v33 = vpop.f32.mrb[199].mxu1  ;;  %v8415_v57 = vpop.f32.mrb[207].mxu0  ;;  %v8544_v61 = vmax.f32 %v8297_v43, 0.0  ;;  %v8546_v4 = vmax.f32 %v8410_v48, 0.0 }
0x11a1   : > { %v8303_v24 = vadd.f32 %v8302_v33, %v18471_v52  ;;  %v8416_v50 = vadd.f32 %v8415_v57, %v18483_v54  ;;  %v8545_v31 = vmax.f32 %v8299_v2, 0.0  ;;  %v8547_v39 = vmax.f32 %v8412_v58, 0.0 }
0x11a2   : > { %v8560_v35 = vmax.f32 %v8301_v7, 0.0  ;;  %v8562_v36 = vmax.f32 %v8414_v13, 0.0  ;;  %10346 = vmatmul.mubr.bf16.gmra.mrb[48].mxu1 %v18391_v19  ;;  %10443 = vmatmul.mubr.bf16.gmra.mrb[56].mxu0 %v18393_v62 }
0x11a3   : > { %v8561_v21 = vmax.f32 %v8303_v24, 0.0  ;;  %v8563_v27 = vmax.f32 %v8416_v50, 0.0  ;;  %10353 = vmatprep.mubr.bf16.mxu1 %v18445_v53  ;;  %10450 = vmatprep.mubr.bf16.mxu0 %v18447_v5 }
0x11a4   : > { %v18585_v25 = vpack.c.bf16 %v8560_v35, %v8544_v61  ;;  %v18587_v15 = vpack.c.bf16 %v8562_v36, %v8546_v4 }
0x11a5   : > { %v18589_v0 = vpack.c.bf16 %v8561_v21, %v8545_v31  ;;  %v18591_v42 = vpack.c.bf16 %v8563_v27, %v8547_v39  ;;  %v8306_v40 = vpop.f32.mrb[200].mxu1  ;;  %v8419_v19 = vpop.f32.mrb[208].mxu0 }
0x11a6   : > { %v8307_v62 = vadd.f32 %v8306_v40, %v18461_v29  ;;  %v8420_v49 = vadd.f32 %v8419_v19, %v18465_v17  ;;  %v8308_v51 = vpop.f32.mrb[201].mxu1  ;;  %v8421_v14 = vpop.f32.mrb[209].mxu0 }
0x11a7   : > { %v8309_v53 = vadd.f32 %v8308_v51, %v18471_v52  ;;  %v8422_v5 = vadd.f32 %v8421_v14, %v18483_v54  ;;  %v8310_v16 = vpop.f32.mrb[202].mxu1  ;;  %v8423_v43 = vpop.f32.mrb[210].mxu0 }
0x11a8   : > { %v8311_v48 = vadd.f32 %v8310_v16, %v18461_v29  ;;  %v8424_v11 = vadd.f32 %v8423_v43, %v18465_v17  ;;  %v8312_v59 = vpop.f32.mrb[203].mxu1  ;;  %v8425_v2 = vpop.f32.mrb[211].mxu0  ;;  %v8576_v28 = vmax.f32 %v8307_v62, 0.0  ;;  %v8578_v7 = vmax.f32 %v8420_v49, 0.0 }
0x11a9   : > { %v8313_v58 = vadd.f32 %v8312_v59, %v18471_v52  ;;  %v8426_v60 = vadd.f32 %v8425_v2, %v18483_v54  ;;  %v8577_v57 = vmax.f32 %v8309_v53, 0.0  ;;  %v8579_v24 = vmax.f32 %v8422_v5, 0.0 }
0x11aa   : > { %v8592_v13 = vmax.f32 %v8311_v48, 0.0  ;;  %v8594_v33 = vmax.f32 %v8424_v11, 0.0  ;;  %10354 = vmatmul.mubr.bf16.gmra.mrb[52].mxu1 %v18435_v18  ;;  %10451 = vmatmul.mubr.bf16.gmra.mrb[60].mxu0 %v18437_v41 }
0x11ab   : > { %v8593_v50 = vmax.f32 %v8313_v58, 0.0  ;;  %v8595_v61 = vmax.f32 %v8426_v60, 0.0  ;;  %10361 = vmatprep.mubr.bf16.mxu1 %v18505_v44  ;;  %10458 = vmatprep.mubr.bf16.mxu0 %v18507_v20 }
0x11ac   : > { %v18605_v4 = vpack.c.bf16 %v8592_v13, %v8576_v28  ;;  %v18607_v35 = vpack.c.bf16 %v8594_v33, %v8578_v7 }
0x11ad   : > { %v18609_v36 = vpack.c.bf16 %v8593_v50, %v8577_v57  ;;  %v18611_v31 = vpack.c.bf16 %v8595_v61, %v8579_v24  ;;  %v8316_v39 = vpop.f32.mrb[204].mxu1  ;;  %v8429_v18 = vpop.f32.mrb[212].mxu0 }
0x11ae   : > { %v8317_v41 = vadd.f32 %v8316_v39, %v18461_v29  ;;  %v8430_v21 = vadd.f32 %v8429_v18, %v18465_v17  ;;  %v8318_v27 = vpop.f32.mrb[205].mxu1  ;;  %v8431_v40 = vpop.f32.mrb[213].mxu0 }
0x11af   : > { %v8319_v44 = vadd.f32 %v8318_v27, %v18471_v52  ;;  %v8432_v20 = vadd.f32 %v8431_v40, %v18483_v54  ;;  %v8320_v19 = vpop.f32.mrb[206].mxu1  ;;  %v8433_v62 = vpop.f32.mrb[214].mxu0 }
0x11b0   : > { %v8321_v49 = vadd.f32 %v8320_v19, %v18461_v29  ;;  %v8434_v51 = vadd.f32 %v8433_v62, %v18465_v17  ;;  %v8322_v14 = vpop.f32.mrb[207].mxu1  ;;  %v8435_v53 = vpop.f32.mrb[215].mxu0  ;;  %v8608_v43 = vmax.f32 %v8317_v41, 0.0  ;;  %v8610_v48 = vmax.f32 %v8430_v21, 0.0 }
0x11b1   : > { %v8323_v5 = vadd.f32 %v8322_v14, %v18471_v52  ;;  %v8436_v16 = vadd.f32 %v8435_v53, %v18483_v54  ;;  %v8609_v2 = vmax.f32 %v8319_v44, 0.0  ;;  %v8611_v58 = vmax.f32 %v8432_v20, 0.0 }
0x11b2   : > { %v8624_v11 = vmax.f32 %v8321_v49, 0.0  ;;  %v8626_v59 = vmax.f32 %v8434_v51, 0.0  ;;  %10362 = vmatmul.mubr.bf16.gmra.mrb[56].mxu1 %v18495_v34  ;;  %10459 = vmatmul.mubr.bf16.gmra.mrb[64].mxu0 %v18497_v26 }
0x11b3   : > { %v8625_v60 = vmax.f32 %v8323_v5, 0.0  ;;  %v8627_v28 = vmax.f32 %v8436_v16, 0.0  ;;  %10499 = vmatprep.mubr.bf16.mxu1 %v18549_v8  ;;  %10596 = vmatprep.mubr.bf16.mxu0 %v18551_v47 }
0x11b4   : > { %v18625_v7 = vpack.c.bf16 %v8624_v11, %v8608_v43  ;;  %v18627_v13 = vpack.c.bf16 %v8626_v59, %v8610_v48 }
0x11b5   : > { %v18629_v33 = vpack.c.bf16 %v8625_v60, %v8609_v2  ;;  %v18631_v57 = vpack.c.bf16 %v8627_v28, %v8611_v58  ;;  %v8326_v24 = vpop.f32.mrb[208].mxu1  ;;  %v8439_v34 = vpop.f32.mrb[216].mxu0 }
0x11b6   : > { %v8327_v26 = vadd.f32 %v8326_v24, %v18461_v29  ;;  %v8440_v50 = vadd.f32 %v8439_v34, %v18465_v17  ;;  %v8328_v61 = vpop.f32.mrb[209].mxu1  ;;  %v8441_v39 = vpop.f32.mrb[217].mxu0 }
0x11b7   : > { %v8329_v8 = vadd.f32 %v8328_v61, %v18471_v52  ;;  %v8442_v47 = vadd.f32 %v8441_v39, %v18483_v54  ;;  %v8330_v18 = vpop.f32.mrb[210].mxu1  ;;  %v8443_v41 = vpop.f32.mrb[218].mxu0 }
0x11b8   : > { %v8331_v21 = vadd.f32 %v8330_v18, %v18461_v29  ;;  %v8444_v27 = vadd.f32 %v8443_v41, %v18465_v17  ;;  %v8332_v40 = vpop.f32.mrb[211].mxu1  ;;  %v8445_v44 = vpop.f32.mrb[219].mxu0  ;;  %v8640_v62 = vmax.f32 %v8327_v26, 0.0  ;;  %v8642_v49 = vmax.f32 %v8440_v50, 0.0 }
0x11b9   : > { %v8333_v20 = vadd.f32 %v8332_v40, %v18471_v52  ;;  %v8446_v19 = vadd.f32 %v8445_v44, %v18483_v54  ;;  %v8641_v53 = vmax.f32 %v8329_v8, 0.0  ;;  %v8643_v5 = vmax.f32 %v8442_v47, 0.0 }
0x11ba   : > { %v8656_v51 = vmax.f32 %v8331_v21, 0.0  ;;  %v8658_v14 = vmax.f32 %v8444_v27, 0.0  ;;  %10500 = vmatmul.mubr.bf16.vlgmr.msra.gmra.mrb[60].mxu1 %v18539_v55  ;;  %10597 = vmatmul.mubr.bf16.vlgmr.msra.gmra.mrb[68].mxu0 %v18541_v23 }
0x11bb   : > { %v8657_v16 = vmax.f32 %v8333_v20, 0.0  ;;  %v8659_v43 = vmax.f32 %v8446_v19, 0.0  ;;  %10507 = vmatprep.mubr.bf16.mxu1 %v18569_v37  ;;  %10604 = vmatprep.mubr.bf16.mxu0 %v18571_v32 }
0x11bc   : > { %v18645_v48 = vpack.c.bf16 %v8656_v51, %v8640_v62  ;;  %v18647_v11 = vpack.c.bf16 %v8658_v14, %v8642_v49 }
0x11bd   : > { %v18649_v59 = vpack.c.bf16 %v8657_v16, %v8641_v53  ;;  %v18651_v2 = vpack.c.bf16 %v8659_v43, %v8643_v5  ;;  %v8336_v58 = vpop.f32.mrb[212].mxu1  ;;  %v8449_v55 = vpop.f32.mrb[220].mxu0 }
0x11be   : > { %v8337_v23 = vadd.f32 %v8336_v58, %v18461_v29  ;;  %v8450_v60 = vadd.f32 %v8449_v55, %v18465_v17  ;;  %v8338_v28 = vpop.f32.mrb[213].mxu1  ;;  %v8451_v24 = vpop.f32.mrb[221].mxu0 }
0x11bf   : > { %v8339_v37 = vadd.f32 %v8338_v28, %v18471_v52  ;;  %v8452_v32 = vadd.f32 %v8451_v24, %v18483_v54  ;;  %v8340_v34 = vpop.f32.mrb[214].mxu1  ;;  %v8453_v26 = vpop.f32.mrb[222].mxu0 }
0x11c0   : > { %v8341_v50 = vadd.f32 %v8340_v34, %v18461_v29  ;;  %v8454_v61 = vadd.f32 %v8453_v26, %v18465_v17  ;;  %v8342_v39 = vpop.f32.mrb[215].mxu1  ;;  %v8455_v8 = vpop.f32.mrb[223].mxu0  ;;  %v8672_v41 = vmax.f32 %v8337_v23, 0.0  ;;  %v8674_v21 = vmax.f32 %v8450_v60, 0.0 }
0x11c1   : > { %v8343_v47 = vadd.f32 %v8342_v39, %v18471_v52  ;;  %v8456_v18 = vadd.f32 %v8455_v8, %v18483_v54  ;;  %v8673_v44 = vmax.f32 %v8339_v37, 0.0  ;;  %v8675_v20 = vmax.f32 %v8452_v32, 0.0 }
0x11c2   : > { %v8688_v27 = vmax.f32 %v8341_v50, 0.0  ;;  %v8690_v40 = vmax.f32 %v8454_v61, 0.0  ;;  %10508 = vmatmul.mubr.bf16.gmra.mrb[64].mxu1 %v18565_v1  ;;  %10605 = vmatmul.mubr.bf16.gmra.mrb[72].mxu0 %v18567_v45 }
0x11c3   : > { %v8689_v19 = vmax.f32 %v8343_v47, 0.0  ;;  %v8691_v62 = vmax.f32 %v8456_v18, 0.0  ;;  %10515 = vmatprep.mubr.bf16.mxu1 %v18589_v0  ;;  %10612 = vmatprep.mubr.bf16.mxu0 %v18591_v42 }
0x11c4   : > { %v18665_v49 = vpack.c.bf16 %v8688_v27, %v8672_v41  ;;  %v18667_v51 = vpack.c.bf16 %v8690_v40, %v8674_v21 }
0x11c5   : > { %v18669_v14 = vpack.c.bf16 %v8689_v19, %v8673_v44  ;;  %v18671_v53 = vpack.c.bf16 %v8691_v62, %v8675_v20  ;;  %v8346_v5 = vpop.f32.mrb[216].mxu1  ;;  %v8459_v1 = vpop.f32.mrb[224].mxu0 }
0x11c6   : > { %v8347_v45 = vadd.f32 %v8346_v5, %v18461_v29  ;;  %v8460_v16 = vadd.f32 %v8459_v1, %v18465_v17  ;;  %v8348_v43 = vpop.f32.mrb[217].mxu1  ;;  %v8461_v58 = vpop.f32.mrb[225].mxu0 }
0x11c7   : > { %v8349_v0 = vadd.f32 %v8348_v43, %v18471_v52  ;;  %v8462_v42 = vadd.f32 %v8461_v58, %v18483_v54  ;;  %v8350_v55 = vpop.f32.mrb[218].mxu1  ;;  %v8463_v23 = vpop.f32.mrb[226].mxu0 }
0x11c8   : > { %v8351_v60 = vadd.f32 %v8350_v55, %v18461_v29  ;;  %v8464_v28 = vadd.f32 %v8463_v23, %v18465_v17  ;;  %v8352_v24 = vpop.f32.mrb[219].mxu1  ;;  %v8465_v37 = vpop.f32.mrb[227].mxu0  ;;  %v8704_v26 = vmax.f32 %v8347_v45, 0.0  ;;  %v8706_v50 = vmax.f32 %v8460_v16, 0.0 }
0x11c9   : > { %v8353_v32 = vadd.f32 %v8352_v24, %v18471_v52  ;;  %v8466_v34 = vadd.f32 %v8465_v37, %v18483_v54  ;;  %v8705_v8 = vmax.f32 %v8349_v0, 0.0  ;;  %v8707_v47 = vmax.f32 %v8462_v42, 0.0 }
0x11ca   : > { %v8720_v61 = vmax.f32 %v8351_v60, 0.0  ;;  %v8722_v39 = vmax.f32 %v8464_v28, 0.0  ;;  %10516 = vmatmul.mubr.bf16.gmra.mrb[68].mxu1 %v18585_v25  ;;  %10613 = vmatmul.mubr.bf16.gmra.mrb[76].mxu0 %v18587_v15  ;;  %v18696_v15 = vld [vmem:[%s19166_s14 + $0x1] ss:$0 sm:$0xff] }
0x11cb   : > { %v8721_v18 = vmax.f32 %v8353_v32, 0.0  ;;  %v8723_v29 = vmax.f32 %v8466_v34, 0.0  ;;  %10523 = vmatprep.mubr.bf16.mxu1 %v18609_v36  ;;  %10620 = vmatprep.mubr.bf16.mxu0 %v18611_v31 }
0x11cc   : > { %v18685_v17 = vpack.c.bf16 %v8720_v61, %v8704_v26  ;;  %v18687_v52 = vpack.c.bf16 %v8722_v39, %v8706_v50 }
0x11cd   : > { %v18689_v54 = vpack.c.bf16 %v8721_v18, %v8705_v8  ;;  %v18691_v41 = vpack.c.bf16 %v8723_v29, %v8707_v47  ;;  %v12569_v21 = vpop.f32.mrb[220].mxu1  ;;  %v12633_v25 = vpop.f32.mrb[228].mxu0 }
0x11ce   : > { %v12570_v27 = vpop.f32.mrb[221].mxu1  ;;  %v12634_v40 = vpop.f32.mrb[229].mxu0 }
0x11cf   : > { %v12571_v36 = vadd.f32 %v12570_v27, %v12569_v21  ;;  %v12635_v44 = vadd.f32 %v12634_v40, %v12633_v25  ;;  %v12572_v31 = vpop.f32.mrb[222].mxu1  ;;  %v12636_v20 = vpop.f32.mrb[230].mxu0 }
0x11d0   : > { %v12573_v19 = vpop.f32.mrb[223].mxu1  ;;  %v12637_v62 = vpop.f32.mrb[231].mxu0 }
0x11d1   : > { %v9920_v5 = vadd.f32 %v12571_v36, %v18696_v15  ;;  %v12574_v1 = vadd.f32 %v12573_v19, %v12572_v31  ;;  %v12638_v45 = vadd.f32 %v12637_v62, %v12636_v20 }
0x11d2   : > { %10524 = vmatmul.mubr.bf16.gmra.mrb[72].mxu1 %v18605_v4  ;;  %10621 = vmatmul.mubr.bf16.gmra.mrb[80].mxu0 %v18607_v35 }
0x11d3   : > { %v18701_v16 = vadd.f32 %v12635_v44, %v9920_v5  ;;  %v9923_v43 = vadd.f32 %v12574_v1, %v18696_v15  ;;  %10531 = vmatprep.mubr.bf16.mxu1 %v18629_v33  ;;  %10628 = vmatprep.mubr.bf16.mxu0 %v18631_v57 }
0x11d5   : > { %v18706_v58 = vadd.f32 %v12638_v45, %v9923_v43  ;;  %v12575_v0 = vpop.f32.mrb[224].mxu1  ;;  %v12639_v42 = vpop.f32.mrb[232].mxu0 }
0x11d6   : > { %v12576_v55 = vpop.f32.mrb[225].mxu1  ;;  %v12640_v23 = vpop.f32.mrb[233].mxu0 }
0x11d7   : > { %v12577_v60 = vadd.f32 %v12576_v55, %v12575_v0  ;;  %v12641_v28 = vadd.f32 %v12640_v23, %v12639_v42  ;;  %v12578_v24 = vpop.f32.mrb[226].mxu1  ;;  %v12642_v4 = vpop.f32.mrb[234].mxu0 }
0x11d8   : > { %v12579_v37 = vpop.f32.mrb[227].mxu1  ;;  %v12643_v35 = vpop.f32.mrb[235].mxu0 }
0x11d9   : > { %v9928_v32 = vadd.f32 %v12577_v60, %v18696_v15  ;;  %v12580_v34 = vadd.f32 %v12579_v37, %v12578_v24  ;;  %v12644_v26 = vadd.f32 %v12643_v35, %v12642_v4 }
0x11da   : > { %10532 = vmatmul.mubr.bf16.gmra.mrb[76].mxu1 %v18625_v7  ;;  %10629 = vmatmul.mubr.bf16.gmra.mrb[84].mxu0 %v18627_v13 }
0x11db   : > { %v18711_v33 = vadd.f32 %v12641_v28, %v9928_v32  ;;  %v9931_v57 = vadd.f32 %v12580_v34, %v18696_v15  ;;  %10539 = vmatprep.mubr.bf16.mxu1 %v18649_v59  ;;  %10636 = vmatprep.mubr.bf16.mxu0 %v18651_v2 }
0x11dd   : > { %v18716_v50 = vadd.f32 %v12644_v26, %v9931_v57  ;;  %v12581_v61 = vpop.f32.mrb[228].mxu1  ;;  %v12645_v39 = vpop.f32.mrb[236].mxu0 }
0x11de   : > { %v12582_v8 = vpop.f32.mrb[229].mxu1  ;;  %v12646_v47 = vpop.f32.mrb[237].mxu0 }
0x11df   : > { %v12583_v18 = vadd.f32 %v12582_v8, %v12581_v61  ;;  %v12647_v29 = vadd.f32 %v12646_v47, %v12645_v39  ;;  %v12584_v21 = vpop.f32.mrb[230].mxu1  ;;  %v12648_v7 = vpop.f32.mrb[238].mxu0 }
0x11e0   : > { %v12585_v25 = vpop.f32.mrb[231].mxu1  ;;  %v12649_v13 = vpop.f32.mrb[239].mxu0 }
0x11e1   : > { %v9936_v27 = vadd.f32 %v12583_v18, %v18696_v15  ;;  %v12586_v40 = vadd.f32 %v12585_v25, %v12584_v21  ;;  %v12650_v36 = vadd.f32 %v12649_v13, %v12648_v7 }
0x11e2   : > { %10540 = vmatmul.mubr.bf16.gmra.mrb[80].mxu1 %v18645_v48  ;;  %10637 = vmatmul.mubr.bf16.gmra.mrb[88].mxu0 %v18647_v11 }
0x11e3   : > { %v18721_v59 = vadd.f32 %v12647_v29, %v9936_v27  ;;  %v9939_v2 = vadd.f32 %v12586_v40, %v18696_v15  ;;  %10547 = vmatprep.mubr.bf16.mxu1 %v18669_v14  ;;  %10644 = vmatprep.mubr.bf16.mxu0 %v18671_v53 }
0x11e5   : > { %v18726_v44 = vadd.f32 %v12650_v36, %v9939_v2  ;;  %v12587_v31 = vpop.f32.mrb[232].mxu1  ;;  %v12651_v20 = vpop.f32.mrb[240].mxu0 }
0x11e6   : > { %v12588_v19 = vpop.f32.mrb[233].mxu1  ;;  %v12652_v62 = vpop.f32.mrb[241].mxu0 }
0x11e7   : > { %v12589_v5 = vadd.f32 %v12588_v19, %v12587_v31  ;;  %v12653_v1 = vadd.f32 %v12652_v62, %v12651_v20  ;;  %v12590_v45 = vpop.f32.mrb[234].mxu1  ;;  %v12654_v48 = vpop.f32.mrb[242].mxu0 }
0x11e8   : > { %v12591_v43 = vpop.f32.mrb[235].mxu1  ;;  %v12655_v11 = vpop.f32.mrb[243].mxu0 }
0x11e9   : > { %v9944_v0 = vadd.f32 %v12589_v5, %v18696_v15  ;;  %v12592_v42 = vadd.f32 %v12591_v43, %v12590_v45  ;;  %v12656_v55 = vadd.f32 %v12655_v11, %v12654_v48 }
0x11ea   : > { %10548 = vmatmul.mubr.bf16.gmra.mrb[84].mxu1 %v18665_v49  ;;  %10645 = vmatmul.mubr.bf16.gmra.mrb[92].mxu0 %v18667_v51 }
0x11eb   : > { %v18731_v14 = vadd.f32 %v12653_v1, %v9944_v0  ;;  %v9947_v53 = vadd.f32 %v12592_v42, %v18696_v15  ;;  %10555 = vmatprep.mubr.bf16.mxu1 %v18689_v54  ;;  %10652 = vmatprep.mubr.bf16.mxu0 %v18691_v41 }
0x11ed   : > { %v18736_v23 = vadd.f32 %v12656_v55, %v9947_v53  ;;  %v12593_v60 = vpop.f32.mrb[236].mxu1  ;;  %v12657_v28 = vpop.f32.mrb[244].mxu0 }
0x11ee   : > { %v12594_v24 = vpop.f32.mrb[237].mxu1  ;;  %v12658_v4 = vpop.f32.mrb[245].mxu0 }
0x11ef   : > { %v12595_v37 = vadd.f32 %v12594_v24, %v12593_v60  ;;  %v12659_v35 = vadd.f32 %v12658_v4, %v12657_v28  ;;  %v12596_v32 = vpop.f32.mrb[238].mxu1  ;;  %v12660_v49 = vpop.f32.mrb[246].mxu0 }
0x11f0   : > { %v12597_v34 = vpop.f32.mrb[239].mxu1  ;;  %v12661_v51 = vpop.f32.mrb[247].mxu0 }
0x11f1   : > { %v9952_v26 = vadd.f32 %v12595_v37, %v18696_v15  ;;  %v12598_v57 = vadd.f32 %v12597_v34, %v12596_v32  ;;  %v12662_v61 = vadd.f32 %v12661_v51, %v12660_v49 }
0x11f2   : > { %10556 = vmatmul.mubr.bf16.gmra.mrb[88].mxu1 %v18685_v17  ;;  %10653 = vmatmul.mubr.bf16.gmra.mrb[96].mxu0 %v18687_v52 }
0x11f3   : > { %v18741_v54 = vadd.f32 %v12659_v35, %v9952_v26  ;;  %v9955_v41 = vadd.f32 %v12598_v57, %v18696_v15 }
0x11f5   : > { %v18744_v39 = vadd.f32 %v12662_v61, %v9955_v41  ;;  %v12599_v8 = vpop.f32.mrb[240].mxu1  ;;  %v12663_v47 = vpop.f32.mrb[248].mxu0 }
0x11f6   : > { %v12600_v18 = vpop.f32.mrb[241].mxu1  ;;  %v12664_v29 = vpop.f32.mrb[249].mxu0 }
0x11f7   : > { %v12601_v21 = vadd.f32 %v12600_v18, %v12599_v8  ;;  %v12665_v7 = vadd.f32 %v12664_v29, %v12663_v47  ;;  %v12602_v25 = vpop.f32.mrb[242].mxu1  ;;  %v12666_v13 = vpop.f32.mrb[250].mxu0 }
0x11f8   : > { %v12603_v27 = vpop.f32.mrb[243].mxu1  ;;  %v12667_v40 = vpop.f32.mrb[251].mxu0 }
0x11f9   : > { %v9960_v17 = vadd.f32 %v12601_v21, %v18696_v15  ;;  %v12604_v36 = vadd.f32 %v12603_v27, %v12602_v25  ;;  %v12668_v52 = vadd.f32 %v12667_v40, %v12666_v13 }
0x11fb   : > { %v18747_v2 = vadd.f32 %v12665_v7, %v9960_v17  ;;  %v9963_v31 = vadd.f32 %v12604_v36, %v18696_v15 }
0x11fd   : > { %v18750_v20 = vadd.f32 %v12668_v52, %v9963_v31  ;;  %v12605_v19 = vpop.f32.mrb[244].mxu1  ;;  %v12669_v62 = vpop.f32.mrb[252].mxu0 }
0x11fe   : > { %v12606_v5 = vpop.f32.mrb[245].mxu1  ;;  %v12670_v1 = vpop.f32.mrb[253].mxu0 }
0x11ff   : > { %v12607_v45 = vadd.f32 %v12606_v5, %v12605_v19  ;;  %v12671_v48 = vadd.f32 %v12670_v1, %v12669_v62  ;;  %v12608_v43 = vpop.f32.mrb[246].mxu1  ;;  %v12672_v11 = vpop.f32.mrb[254].mxu0 }
0x1200   : > { %v12609_v0 = vpop.f32.mrb[247].mxu1  ;;  %v12673_v42 = vpop.f32.mrb[255].mxu0 }
0x1201   : > { %v9968_v55 = vadd.f32 %v12607_v45, %v18696_v15  ;;  %v12610_v53 = vadd.f32 %v12609_v0, %v12608_v43  ;;  %v12674_v60 = vadd.f32 %v12673_v42, %v12672_v11 }
0x1203   : > { %v18753_v28 = vadd.f32 %v12671_v48, %v9968_v55  ;;  %v9971_v24 = vadd.f32 %v12610_v53, %v18696_v15 }
0x1205   : > { %v18756_v4 = vadd.f32 %v12674_v60, %v9971_v24  ;;  %v12611_v37 = vpop.f32.mrb[248].mxu1  ;;  %v12675_v35 = vpop.f32.mrb[0].mxu0 }
0x1206   : > { %v12612_v32 = vpop.f32.mrb[249].mxu1  ;;  %v12676_v49 = vpop.f32.mrb[1].mxu0 }
0x1207   : > { %v12613_v34 = vadd.f32 %v12612_v32, %v12611_v37  ;;  %v12677_v51 = vadd.f32 %v12676_v49, %v12675_v35  ;;  %v12614_v26 = vpop.f32.mrb[250].mxu1  ;;  %v12678_v57 = vpop.f32.mrb[2].mxu0 }
0x1208   : > { %v12615_v61 = vpop.f32.mrb[251].mxu1  ;;  %v12679_v41 = vpop.f32.mrb[3].mxu0 }
0x1209   : > { %v9976_v8 = vadd.f32 %v12613_v34, %v18696_v15  ;;  %v12616_v47 = vadd.f32 %v12615_v61, %v12614_v26  ;;  %v12680_v18 = vadd.f32 %v12679_v41, %v12678_v57 }
0x120b   : > { %v18759_v29 = vadd.f32 %v12677_v51, %v9976_v8  ;;  %v9979_v21 = vadd.f32 %v12616_v47, %v18696_v15 }
0x120d   : > { %v18762_v7 = vadd.f32 %v12680_v18, %v9979_v21  ;;  %v12697_v25 = vpop.f32.mrb[252].mxu1  ;;  %v12761_v13 = vpop.f32.mrb[4].mxu0 }
0x120e   : > { %v12698_v27 = vpop.f32.mrb[253].mxu1  ;;  %v12762_v40 = vpop.f32.mrb[5].mxu0 }
0x120f   : > { %v12699_v17 = vadd.f32 %v12698_v27, %v12697_v25  ;;  %v12763_v36 = vadd.f32 %v12762_v40, %v12761_v13  ;;  %v12700_v52 = vpop.f32.mrb[254].mxu1  ;;  %v12764_v31 = vpop.f32.mrb[6].mxu0 }
0x1210   : > { %v12701_v19 = vpop.f32.mrb[255].mxu1  ;;  %v12765_v62 = vpop.f32.mrb[7].mxu0 }
0x1211   : > { %v10114_v5 = vadd.f32 %v12699_v17, %v18701_v16  ;;  %v12702_v1 = vadd.f32 %v12701_v19, %v12700_v52  ;;  %v12766_v45 = vadd.f32 %v12765_v62, %v12764_v31 }
0x1213   : > { %v18765_v48 = vadd.f32 %v12763_v36, %v10114_v5  ;;  %v10117_v15 = vadd.f32 %v12702_v1, %v18706_v58 }
0x1215   : > { %v18768_v43 = vadd.f32 %v12766_v45, %v10117_v15  ;;  %v12703_v11 = vpop.f32.mrb[0].mxu1  ;;  %v12767_v0 = vpop.f32.mrb[8].mxu0 }
0x1216   : > { %v12704_v42 = vpop.f32.mrb[1].mxu1  ;;  %v12768_v55 = vpop.f32.mrb[9].mxu0 }
0x1217   : > { %v12705_v53 = vadd.f32 %v12704_v42, %v12703_v11  ;;  %v12769_v60 = vadd.f32 %v12768_v55, %v12767_v0  ;;  %v12706_v24 = vpop.f32.mrb[2].mxu1  ;;  %v12770_v37 = vpop.f32.mrb[10].mxu0 }
0x1218   : > { %v12707_v35 = vpop.f32.mrb[3].mxu1  ;;  %v12771_v32 = vpop.f32.mrb[11].mxu0 }
0x1219   : > { %v10122_v16 = vadd.f32 %v12705_v53, %v18711_v33  ;;  %v12708_v49 = vadd.f32 %v12707_v35, %v12706_v24  ;;  %v12772_v34 = vadd.f32 %v12771_v32, %v12770_v37 }
0x121b   : > { %v18771_v51 = vadd.f32 %v12769_v60, %v10122_v16  ;;  %v10125_v58 = vadd.f32 %v12708_v49, %v18716_v50 }
0x121d   : > { %v18774_v26 = vadd.f32 %v12772_v34, %v10125_v58  ;;  %v12709_v57 = vpop.f32.mrb[4].mxu1  ;;  %v12773_v61 = vpop.f32.mrb[12].mxu0 }
0x121e   : > { %v12710_v41 = vpop.f32.mrb[5].mxu1  ;;  %v12774_v8 = vpop.f32.mrb[13].mxu0 }
0x121f   : > { %v12711_v47 = vadd.f32 %v12710_v41, %v12709_v57  ;;  %v12775_v18 = vadd.f32 %v12774_v8, %v12773_v61  ;;  %v12712_v21 = vpop.f32.mrb[6].mxu1  ;;  %v12776_v25 = vpop.f32.mrb[14].mxu0 }
0x1220   : > { %v12713_v13 = vpop.f32.mrb[7].mxu1  ;;  %v12777_v27 = vpop.f32.mrb[15].mxu0 }
0x1221   : > { %v10130_v33 = vadd.f32 %v12711_v47, %v18721_v59  ;;  %v12714_v40 = vadd.f32 %v12713_v13, %v12712_v21  ;;  %v12778_v17 = vadd.f32 %v12777_v27, %v12776_v25 }
0x1223   : > { %v18777_v36 = vadd.f32 %v12775_v18, %v10130_v33  ;;  %v10133_v50 = vadd.f32 %v12714_v40, %v18726_v44 }
0x1225   : > { %v18780_v52 = vadd.f32 %v12778_v17, %v10133_v50  ;;  %v12715_v31 = vpop.f32.mrb[8].mxu1  ;;  %v12779_v19 = vpop.f32.mrb[16].mxu0 }
0x1226   : > { %v12716_v62 = vpop.f32.mrb[9].mxu1  ;;  %v12780_v5 = vpop.f32.mrb[17].mxu0 }
0x1227   : > { %v12717_v1 = vadd.f32 %v12716_v62, %v12715_v31  ;;  %v12781_v45 = vadd.f32 %v12780_v5, %v12779_v19  ;;  %v12718_v15 = vpop.f32.mrb[10].mxu1  ;;  %v12782_v11 = vpop.f32.mrb[18].mxu0 }
0x1228   : > { %v12719_v0 = vpop.f32.mrb[11].mxu1  ;;  %v12783_v42 = vpop.f32.mrb[19].mxu0 }
0x1229   : > { %v10138_v59 = vadd.f32 %v12717_v1, %v18731_v14  ;;  %v12720_v55 = vadd.f32 %v12719_v0, %v12718_v15  ;;  %v12784_v53 = vadd.f32 %v12783_v42, %v12782_v11 }
0x122b   : > { %v18783_v60 = vadd.f32 %v12781_v45, %v10138_v59  ;;  %v10141_v44 = vadd.f32 %v12720_v55, %v18736_v23 }
0x122d   : > { %v18786_v24 = vadd.f32 %v12784_v53, %v10141_v44  ;;  %v12721_v37 = vpop.f32.mrb[12].mxu1  ;;  %v12785_v35 = vpop.f32.mrb[20].mxu0 }
0x122e   : > { %v12722_v32 = vpop.f32.mrb[13].mxu1  ;;  %v12786_v16 = vpop.f32.mrb[21].mxu0 }
0x122f   : > { %v12723_v49 = vadd.f32 %v12722_v32, %v12721_v37  ;;  %v12787_v34 = vadd.f32 %v12786_v16, %v12785_v35  ;;  %v12724_v58 = vpop.f32.mrb[14].mxu1  ;;  %v12788_v57 = vpop.f32.mrb[22].mxu0 }
0x1230   : > { %v12725_v61 = vpop.f32.mrb[15].mxu1  ;;  %v12789_v41 = vpop.f32.mrb[23].mxu0 }
0x1231   : > { %v10146_v14 = vadd.f32 %v12723_v49, %v18741_v54  ;;  %v12726_v8 = vadd.f32 %v12725_v61, %v12724_v58  ;;  %v12790_v47 = vadd.f32 %v12789_v41, %v12788_v57 }
0x1233   : > { %v18789_v18 = vadd.f32 %v12787_v34, %v10146_v14  ;;  %v10149_v23 = vadd.f32 %v12726_v8, %v18744_v39 }
0x1235   : > { %v18792_v21 = vadd.f32 %v12790_v47, %v10149_v23  ;;  %v12727_v25 = vpop.f32.mrb[16].mxu1  ;;  %v12791_v13 = vpop.f32.mrb[24].mxu0 }
0x1236   : > { %v12728_v27 = vpop.f32.mrb[17].mxu1  ;;  %v12792_v33 = vpop.f32.mrb[25].mxu0 }
0x1237   : > { %v12729_v40 = vadd.f32 %v12728_v27, %v12727_v25  ;;  %v12793_v17 = vadd.f32 %v12792_v33, %v12791_v13  ;;  %v12730_v50 = vpop.f32.mrb[18].mxu1  ;;  %v12794_v31 = vpop.f32.mrb[26].mxu0 }
0x1238   : > { %v12731_v19 = vpop.f32.mrb[19].mxu1  ;;  %v12795_v62 = vpop.f32.mrb[27].mxu0 }
0x1239   : > { %v10154_v54 = vadd.f32 %v12729_v40, %v18747_v2  ;;  %v12732_v5 = vadd.f32 %v12731_v19, %v12730_v50  ;;  %v12796_v1 = vadd.f32 %v12795_v62, %v12794_v31 }
0x123b   : > { %v18795_v45 = vadd.f32 %v12793_v17, %v10154_v54  ;;  %v10157_v39 = vadd.f32 %v12732_v5, %v18750_v20 }
0x123d   : > { %v18798_v15 = vadd.f32 %v12796_v1, %v10157_v39  ;;  %v12733_v11 = vpop.f32.mrb[20].mxu1  ;;  %v12797_v0 = vpop.f32.mrb[28].mxu0 }
0x123e   : > { %v12734_v42 = vpop.f32.mrb[21].mxu1  ;;  %v12798_v59 = vpop.f32.mrb[29].mxu0 }
0x123f   : > { %v12735_v55 = vadd.f32 %v12734_v42, %v12733_v11  ;;  %v12799_v53 = vadd.f32 %v12798_v59, %v12797_v0  ;;  %v12736_v44 = vpop.f32.mrb[22].mxu1  ;;  %v12800_v37 = vpop.f32.mrb[30].mxu0 }
0x1240   : > { %v12737_v35 = vpop.f32.mrb[23].mxu1  ;;  %v12801_v32 = vpop.f32.mrb[31].mxu0 }
0x1241   : > { %v10162_v2 = vadd.f32 %v12735_v55, %v18753_v28  ;;  %v12738_v16 = vadd.f32 %v12737_v35, %v12736_v44  ;;  %v12802_v49 = vadd.f32 %v12801_v32, %v12800_v37 }
0x1243   : > { %v18801_v34 = vadd.f32 %v12799_v53, %v10162_v2  ;;  %v10165_v20 = vadd.f32 %v12738_v16, %v18756_v4 }
0x1245   : > { %v18804_v58 = vadd.f32 %v12802_v49, %v10165_v20  ;;  %v12739_v57 = vpop.f32.mrb[24].mxu1  ;;  %v12803_v61 = vpop.f32.mrb[32].mxu0 }
0x1246   : > { %v12740_v41 = vpop.f32.mrb[25].mxu1  ;;  %v12804_v14 = vpop.f32.mrb[33].mxu0 }
0x1247   : > { %v12741_v8 = vadd.f32 %v12740_v41, %v12739_v57  ;;  %v12805_v47 = vadd.f32 %v12804_v14, %v12803_v61  ;;  %v12742_v23 = vpop.f32.mrb[26].mxu1  ;;  %v12806_v25 = vpop.f32.mrb[34].mxu0 }
0x1248   : > { %v12743_v13 = vpop.f32.mrb[27].mxu1  ;;  %v12807_v27 = vpop.f32.mrb[35].mxu0 }
0x1249   : > { %v10170_v28 = vadd.f32 %v12741_v8, %v18759_v29  ;;  %v12744_v33 = vadd.f32 %v12743_v13, %v12742_v23  ;;  %v12808_v40 = vadd.f32 %v12807_v27, %v12806_v25 }
0x124b   : > { %v18807_v17 = vadd.f32 %v12805_v47, %v10170_v28  ;;  %v10173_v4 = vadd.f32 %v12744_v33, %v18762_v7 }
0x124d   : > { %v18810_v50 = vadd.f32 %v12808_v40, %v10173_v4  ;;  %v12825_v31 = vpop.f32.mrb[28].mxu1  ;;  %v12889_v19 = vpop.f32.mrb[36].mxu0 }
0x124e   : > { %v12826_v62 = vpop.f32.mrb[29].mxu1  ;;  %v12890_v54 = vpop.f32.mrb[37].mxu0 }
0x124f   : > { %v12827_v5 = vadd.f32 %v12826_v62, %v12825_v31  ;;  %v12891_v1 = vadd.f32 %v12890_v54, %v12889_v19  ;;  %v12828_v39 = vpop.f32.mrb[30].mxu1  ;;  %v12892_v11 = vpop.f32.mrb[38].mxu0 }
0x1250   : > { %v12829_v0 = vpop.f32.mrb[31].mxu1  ;;  %v12893_v42 = vpop.f32.mrb[39].mxu0 }
0x1251   : > { %v10308_v29 = vadd.f32 %v12827_v5, %v18765_v48  ;;  %v12830_v59 = vadd.f32 %v12829_v0, %v12828_v39  ;;  %v12894_v55 = vadd.f32 %v12893_v42, %v12892_v11 }
0x1253   : > { %v18813_v53 = vadd.f32 %v12891_v1, %v10308_v29  ;;  %v10311_v7 = vadd.f32 %v12830_v59, %v18768_v43 }
0x1255   : > { %v18816_v44 = vadd.f32 %v12894_v55, %v10311_v7  ;;  %v12831_v37 = vpop.f32.mrb[32].mxu1  ;;  %v12895_v35 = vpop.f32.mrb[40].mxu0 }
0x1256   : > { %v12832_v32 = vpop.f32.mrb[33].mxu1  ;;  %v12896_v2 = vpop.f32.mrb[41].mxu0 }
0x1257   : > { %v12833_v16 = vadd.f32 %v12832_v32, %v12831_v37  ;;  %v12897_v49 = vadd.f32 %v12896_v2, %v12895_v35  ;;  %v12834_v20 = vpop.f32.mrb[34].mxu1  ;;  %v12898_v57 = vpop.f32.mrb[42].mxu0 }
0x1258   : > { %v12835_v61 = vpop.f32.mrb[35].mxu1  ;;  %v12899_v41 = vpop.f32.mrb[43].mxu0 }
0x1259   : > { %v10316_v48 = vadd.f32 %v12833_v16, %v18771_v51  ;;  %v12836_v14 = vadd.f32 %v12835_v61, %v12834_v20  ;;  %v12900_v8 = vadd.f32 %v12899_v41, %v12898_v57 }
0x125b   : > { %v18819_v47 = vadd.f32 %v12897_v49, %v10316_v48  ;;  %v10319_v43 = vadd.f32 %v12836_v14, %v18774_v26 }
0x125d   : > { %v18822_v23 = vadd.f32 %v12900_v8, %v10319_v43  ;;  %v12837_v25 = vpop.f32.mrb[36].mxu1  ;;  %v12901_v13 = vpop.f32.mrb[44].mxu0 }
0x125e   : > { %v12838_v27 = vpop.f32.mrb[37].mxu1  ;;  %v12902_v28 = vpop.f32.mrb[45].mxu0 }
0x125f   : > { %v12839_v33 = vadd.f32 %v12838_v27, %v12837_v25  ;;  %v12903_v40 = vadd.f32 %v12902_v28, %v12901_v13  ;;  %v12840_v4 = vpop.f32.mrb[38].mxu1  ;;  %v12904_v31 = vpop.f32.mrb[46].mxu0 }
0x1260   : > { %v12841_v19 = vpop.f32.mrb[39].mxu1  ;;  %v12905_v62 = vpop.f32.mrb[47].mxu0 }
0x1261   : > { %v10324_v51 = vadd.f32 %v12839_v33, %v18777_v36  ;;  %v12842_v54 = vadd.f32 %v12841_v19, %v12840_v4  ;;  %v12906_v5 = vadd.f32 %v12905_v62, %v12904_v31 }
0x1263   : > { %v18825_v1 = vadd.f32 %v12903_v40, %v10324_v51  ;;  %v10327_v26 = vadd.f32 %v12842_v54, %v18780_v52 }
0x1265   : > { %v18828_v39 = vadd.f32 %v12906_v5, %v10327_v26  ;;  %v12843_v11 = vpop.f32.mrb[40].mxu1  ;;  %v12907_v0 = vpop.f32.mrb[48].mxu0 }
0x1266   : > { %v12844_v42 = vpop.f32.mrb[41].mxu1  ;;  %v12908_v29 = vpop.f32.mrb[49].mxu0 }
0x1267   : > { %v12845_v59 = vadd.f32 %v12844_v42, %v12843_v11  ;;  %v12909_v55 = vadd.f32 %v12908_v29, %v12907_v0  ;;  %v12846_v7 = vpop.f32.mrb[42].mxu1  ;;  %v12910_v37 = vpop.f32.mrb[50].mxu0 }
0x1268   : > { %v12847_v35 = vpop.f32.mrb[43].mxu1  ;;  %v12911_v32 = vpop.f32.mrb[51].mxu0 }
0x1269   : > { %v10332_v36 = vadd.f32 %v12845_v59, %v18783_v60  ;;  %v12848_v2 = vadd.f32 %v12847_v35, %v12846_v7  ;;  %v12912_v16 = vadd.f32 %v12911_v32, %v12910_v37 }
0x126b   : > { %v18831_v49 = vadd.f32 %v12909_v55, %v10332_v36  ;;  %v10335_v52 = vadd.f32 %v12848_v2, %v18786_v24 }
0x126d   : > { %v18834_v20 = vadd.f32 %v12912_v16, %v10335_v52  ;;  %v12849_v57 = vpop.f32.mrb[44].mxu1  ;;  %v12913_v61 = vpop.f32.mrb[52].mxu0 }
0x126e   : > { %v12850_v41 = vpop.f32.mrb[45].mxu1  ;;  %v12914_v48 = vpop.f32.mrb[53].mxu0 }
0x126f   : > { %v12851_v14 = vadd.f32 %v12850_v41, %v12849_v57  ;;  %v12915_v8 = vadd.f32 %v12914_v48, %v12913_v61  ;;  %v12852_v43 = vpop.f32.mrb[46].mxu1  ;;  %v12916_v25 = vpop.f32.mrb[54].mxu0 }
0x1270   : > { %v12853_v13 = vpop.f32.mrb[47].mxu1  ;;  %v12917_v27 = vpop.f32.mrb[55].mxu0 }
0x1271   : > { %v10340_v60 = vadd.f32 %v12851_v14, %v18789_v18  ;;  %v12854_v28 = vadd.f32 %v12853_v13, %v12852_v43  ;;  %v12918_v33 = vadd.f32 %v12917_v27, %v12916_v25 }
0x1273   : > { %v18837_v40 = vadd.f32 %v12915_v8, %v10340_v60  ;;  %v10343_v24 = vadd.f32 %v12854_v28, %v18792_v21 }
0x1275   : > { %v18840_v4 = vadd.f32 %v12918_v33, %v10343_v24  ;;  %v12855_v31 = vpop.f32.mrb[48].mxu1  ;;  %v12919_v19 = vpop.f32.mrb[56].mxu0 }
0x1276   : > { %v12856_v62 = vpop.f32.mrb[49].mxu1  ;;  %v12920_v51 = vpop.f32.mrb[57].mxu0 }
0x1277   : > { %v12857_v54 = vadd.f32 %v12856_v62, %v12855_v31  ;;  %v12921_v5 = vadd.f32 %v12920_v51, %v12919_v19  ;;  %v12858_v26 = vpop.f32.mrb[50].mxu1  ;;  %v12922_v11 = vpop.f32.mrb[58].mxu0 }
0x1278   : > { %v12859_v0 = vpop.f32.mrb[51].mxu1  ;;  %v12923_v42 = vpop.f32.mrb[59].mxu0 }
0x1279   : > { %v10348_v18 = vadd.f32 %v12857_v54, %v18795_v45  ;;  %v12860_v29 = vadd.f32 %v12859_v0, %v12858_v26  ;;  %v12924_v59 = vadd.f32 %v12923_v42, %v12922_v11 }
0x127b   : > { %v18843_v55 = vadd.f32 %v12921_v5, %v10348_v18  ;;  %v10351_v21 = vadd.f32 %v12860_v29, %v18798_v15 }
0x127d   : > { %v18846_v7 = vadd.f32 %v12924_v59, %v10351_v21  ;;  %v12861_v37 = vpop.f32.mrb[52].mxu1  ;;  %v12925_v35 = vpop.f32.mrb[60].mxu0 }
0x127e   : > { %v12862_v32 = vpop.f32.mrb[53].mxu1  ;;  %v12926_v36 = vpop.f32.mrb[61].mxu0 }
0x127f   : > { %v12863_v2 = vadd.f32 %v12862_v32, %v12861_v37  ;;  %v12927_v16 = vadd.f32 %v12926_v36, %v12925_v35  ;;  %v12864_v52 = vpop.f32.mrb[54].mxu1  ;;  %v12928_v57 = vpop.f32.mrb[62].mxu0 }
0x1280   : > { %v12865_v61 = vpop.f32.mrb[55].mxu1  ;;  %v12929_v41 = vpop.f32.mrb[63].mxu0 }
0x1281   : > { %v10356_v45 = vadd.f32 %v12863_v2, %v18801_v34  ;;  %v12866_v48 = vadd.f32 %v12865_v61, %v12864_v52  ;;  %v12930_v14 = vadd.f32 %v12929_v41, %v12928_v57 }
0x1283   : > { %v18849_v8 = vadd.f32 %v12927_v16, %v10356_v45  ;;  %v10359_v15 = vadd.f32 %v12866_v48, %v18804_v58 }
0x1285   : > { %v18852_v43 = vadd.f32 %v12930_v14, %v10359_v15  ;;  %v12867_v25 = vpop.f32.mrb[56].mxu1  ;;  %v12931_v13 = vpop.f32.mrb[64].mxu0 }
0x1286   : > { %v12868_v27 = vpop.f32.mrb[57].mxu1  ;;  %v12932_v60 = vpop.f32.mrb[65].mxu0 }
0x1287   : > { %v12869_v28 = vadd.f32 %v12868_v27, %v12867_v25  ;;  %v12933_v33 = vadd.f32 %v12932_v60, %v12931_v13  ;;  %v12870_v24 = vpop.f32.mrb[58].mxu1  ;;  %v12934_v31 = vpop.f32.mrb[66].mxu0 }
0x1288   : > { %v12871_v19 = vpop.f32.mrb[59].mxu1  ;;  %v12935_v62 = vpop.f32.mrb[67].mxu0 }
0x1289   : > { %v10364_v34 = vadd.f32 %v12869_v28, %v18807_v17  ;;  %v12872_v51 = vadd.f32 %v12871_v19, %v12870_v24  ;;  %v12936_v54 = vadd.f32 %v12935_v62, %v12934_v31 }
0x128b   : > { %v18855_v5 = vadd.f32 %v12933_v33, %v10364_v34  ;;  %v10367_v58 = vadd.f32 %v12872_v51, %v18810_v50 }
0x128d   : > { %v18858_v26 = vadd.f32 %v12936_v54, %v10367_v58  ;;  %v12953_v11 = vpop.f32.mrb[60].mxu1  ;;  %v13017_v0 = vpop.f32.mrb[68].mxu0 }
0x128e   : > { %v12954_v42 = vpop.f32.mrb[61].mxu1  ;;  %v13018_v18 = vpop.f32.mrb[69].mxu0 }
0x128f   : > { %v12955_v29 = vadd.f32 %v12954_v42, %v12953_v11  ;;  %v13019_v59 = vadd.f32 %v13018_v18, %v13017_v0  ;;  %v12956_v21 = vpop.f32.mrb[62].mxu1  ;;  %v13020_v37 = vpop.f32.mrb[70].mxu0 }
0x1290   : > { %v12957_v35 = vpop.f32.mrb[63].mxu1  ;;  %v13021_v32 = vpop.f32.mrb[71].mxu0 }
0x1291   : > { %v10502_v17 = vadd.f32 %v12955_v29, %v18813_v53  ;;  %v12958_v36 = vadd.f32 %v12957_v35, %v12956_v21  ;;  %v13022_v2 = vadd.f32 %v13021_v32, %v13020_v37 }
0x1293   : > { %v10599_v16 = vadd.f32 %v13019_v59, %v10502_v17  ;;  %v10505_v52 = vadd.f32 %v12958_v36, %v18816_v44 }
0x1295   : > { %v10602_v50 = vadd.f32 %v13022_v2, %v10505_v52  ;;  %v12959_v57 = vpop.f32.mrb[64].mxu1  ;;  %v13023_v61 = vpop.f32.mrb[72].mxu0  ;;  %v18863_v41 = vadd.f32 %v10599_v16, %v17246_v46 }
0x1296   : > { %v12960_v45 = vpop.f32.mrb[65].mxu1  ;;  %v13024_v48 = vpop.f32.mrb[73].mxu0 }
0x1297   : > { %v12961_v14 = vadd.f32 %v12960_v45, %v12959_v57  ;;  %v13025_v15 = vadd.f32 %v13024_v48, %v13023_v61  ;;  %v12962_v25 = vpop.f32.mrb[66].mxu1  ;;  %v13026_v13 = vpop.f32.mrb[74].mxu0  ;;  %v10681_v53 = vsel %vm596_vm1, %v18863_v41, 0.0  ;;  %v18868_v27 = vadd.f32 %v10602_v50, %v17249_v6 }
0x1298   : > { %v12963_v60 = vpop.f32.mrb[67].mxu1  ;;  %v13027_v44 = vpop.f32.mrb[75].mxu0  ;;  %10682 = vadd.xlane.f32.xlu0 %v10681_v53 }
0x1299   : > { %v10510_v28 = vadd.f32 %v12961_v14, %v18819_v47  ;;  %v12964_v33 = vadd.f32 %v12963_v60, %v12962_v25  ;;  %v13028_v46 = vadd.f32 %v13027_v44, %v13026_v13  ;;  %v10684_v24 = vsel %vm596_vm1, %v18868_v27, 0.0 }
0x129a   : > { %10685 = vadd.xlane.f32.xlu1 %v10684_v24 }
0x129b   : > { %v10607_v31 = vadd.f32 %v13025_v15, %v10510_v28  ;;  %v10513_v19 = vadd.f32 %v12964_v33, %v18822_v23 }
0x129d   : > { %v10610_v62 = vadd.f32 %v13028_v46, %v10513_v19  ;;  %v12965_v34 = vpop.f32.mrb[68].mxu1  ;;  %v13029_v51 = vpop.f32.mrb[76].mxu0  ;;  %v18875_v6 = vadd.f32 %v10607_v31, %v17303_v63 }
0x129e   : > { %v12966_v54 = vpop.f32.mrb[69].mxu1  ;;  %v13030_v58 = vpop.f32.mrb[77].mxu0 }
0x129f   : > { %v12967_v11 = vadd.f32 %v12966_v54, %v12965_v34  ;;  %v13031_v0 = vadd.f32 %v13030_v58, %v13029_v51  ;;  %v12968_v47 = vpop.f32.mrb[70].mxu1  ;;  %v13032_v42 = vpop.f32.mrb[78].mxu0  ;;  %v10687_v18 = vsel %vm596_vm1, %v18875_v6, 0.0  ;;  %v18880_v29 = vadd.f32 %v10610_v62, %v17288_v12 }
0x12a0   : > { %v12969_v59 = vpop.f32.mrb[71].mxu1  ;;  %v13033_v23 = vpop.f32.mrb[79].mxu0  ;;  %10688 = vadd.xlane.f32.xlu0 %v10687_v18 }
0x12a1   : > { %v10518_v21 = vadd.f32 %v12967_v11, %v18825_v1  ;;  %v12970_v37 = vadd.f32 %v12969_v59, %v12968_v47  ;;  %v13034_v63 = vadd.f32 %v13033_v23, %v13032_v42  ;;  %v10690_v35 = vsel %vm596_vm1, %v18880_v29, 0.0 }
0x12a2   : > { %10691 = vadd.xlane.f32.xlu1 %v10690_v35 }
0x12a3   : > { %v10615_v32 = vadd.f32 %v13031_v0, %v10518_v21  ;;  %v10521_v17 = vadd.f32 %v12970_v37, %v18828_v39 }
0x12a5   : > { %v10618_v36 = vadd.f32 %v13034_v63, %v10521_v17  ;;  %v12971_v2 = vpop.f32.mrb[72].mxu1  ;;  %v13035_v16 = vpop.f32.mrb[80].mxu0  ;;  %v18887_v12 = vadd.f32 %v10615_v32, %v17320_v22 }
0x12a6   : > { %v12972_v52 = vpop.f32.mrb[73].mxu1  ;;  %v13036_v50 = vpop.f32.mrb[81].mxu0 }
0x12a7   : > { %v12973_v57 = vadd.f32 %v12972_v52, %v12971_v2  ;;  %v13037_v61 = vadd.f32 %v13036_v50, %v13035_v16  ;;  %v12974_v1 = vpop.f32.mrb[74].mxu1  ;;  %v13038_v45 = vpop.f32.mrb[82].mxu0  ;;  %v10693_v48 = vsel %vm596_vm1, %v18887_v12, 0.0  ;;  %v18892_v14 = vadd.f32 %v10618_v36, %v17323_v56 }
0x12a8   : > { %v12975_v15 = vpop.f32.mrb[75].mxu1  ;;  %v13039_v39 = vpop.f32.mrb[83].mxu0  ;;  %10694 = vadd.xlane.f32.xlu0 %v10693_v48 }
0x12a9   : > { %v10526_v25 = vadd.f32 %v12973_v57, %v18831_v49  ;;  %v12976_v13 = vadd.f32 %v12975_v15, %v12974_v1  ;;  %v13040_v22 = vadd.f32 %v13039_v39, %v13038_v45  ;;  %v10696_v53 = vsel %vm596_vm1, %v18892_v14, 0.0 }
0x12aa   : > { %10697 = vadd.xlane.f32.xlu1 %v10696_v53 }
0x12ab   : > { %v10623_v60 = vadd.f32 %v13037_v61, %v10526_v25  ;;  %v10529_v44 = vadd.f32 %v12976_v13, %v18834_v20 }
0x12ad   : > { %v10626_v28 = vadd.f32 %v13040_v22, %v10529_v44  ;;  %v12977_v33 = vpop.f32.mrb[76].mxu1  ;;  %v13041_v46 = vpop.f32.mrb[84].mxu0  ;;  %v18899_v56 = vadd.f32 %v10623_v60, %v17343_v9  ;;  %v19205_v44 = vld [vmem:[#allocation3_spill] sm:$0xff] }
0x12ae   : > { %v12978_v24 = vpop.f32.mrb[77].mxu1  ;;  %v13042_v31 = vpop.f32.mrb[85].mxu0 }
0x12af   : > { %v12979_v19 = vadd.f32 %v12978_v24, %v12977_v33  ;;  %v13043_v62 = vadd.f32 %v13042_v31, %v13041_v46  ;;  %v12980_v49 = vpop.f32.mrb[78].mxu1  ;;  %v13044_v34 = vpop.f32.mrb[86].mxu0  ;;  %v10699_v51 = vsel %vm596_vm1, %v18899_v56, 0.0  ;;  %v18904_v54 = vadd.f32 %v10626_v28, %v17340_v30 }
0x12b0   : > { %v12981_v58 = vpop.f32.mrb[79].mxu1  ;;  %v13045_v20 = vpop.f32.mrb[87].mxu0  ;;  %10700 = vadd.xlane.f32.xlu0 %v10699_v51 }
0x12b1   : > { %v10534_v11 = vadd.f32 %v12979_v19, %v18837_v40  ;;  %v12982_v0 = vadd.f32 %v12981_v58, %v12980_v49  ;;  %v13046_v9 = vadd.f32 %v13045_v20, %v13044_v34  ;;  %v10702_v47 = vsel %vm596_vm1, %v18904_v54, 0.0  ;;  %v19206_v58 = vld [vmem:[#allocation5_spill] sm:$0xff] }
0x12b2   : > { %10703 = vadd.xlane.f32.xlu1 %v10702_v47 }
0x12b3   : > { %v10631_v42 = vadd.f32 %v13043_v62, %v10534_v11  ;;  %v10537_v18 = vadd.f32 %v12982_v0, %v18840_v4 }
0x12b5   : > { %v10634_v59 = vadd.f32 %v13046_v9, %v10537_v18  ;;  %v12983_v23 = vpop.f32.mrb[80].mxu1  ;;  %v13047_v21 = vpop.f32.mrb[88].mxu0  ;;  %v18911_v30 = vadd.f32 %v10631_v42, %v17360_v3 }
0x12b6   : > { %v12984_v37 = vpop.f32.mrb[81].mxu1  ;;  %v13048_v63 = vpop.f32.mrb[89].mxu0 }
0x12b7   : > { %v12985_v35 = vadd.f32 %v12984_v37, %v12983_v23  ;;  %v13049_v32 = vadd.f32 %v13048_v63, %v13047_v21  ;;  %v12986_v40 = vpop.f32.mrb[82].mxu1  ;;  %v13050_v17 = vpop.f32.mrb[90].mxu0  ;;  %v10705_v36 = vsel %vm596_vm1, %v18911_v30, 0.0  ;;  %v18916_v2 = vadd.f32 %v10634_v59, %v17363_v10  ;;  %v19207_v59 = vld [vmem:[#allocation4_spill] sm:$0xff] }
0x12b8   : > { %v12987_v16 = vpop.f32.mrb[83].mxu1  ;;  %v13051_v4 = vpop.f32.mrb[91].mxu0  ;;  %10706 = vadd.xlane.f32.xlu0 %v10705_v36 }
0x12b9   : > { %v10542_v52 = vadd.f32 %v12985_v35, %v18843_v55  ;;  %v12988_v50 = vadd.f32 %v12987_v16, %v12986_v40  ;;  %v13052_v3 = vadd.f32 %v13051_v4, %v13050_v17  ;;  %v10708_v57 = vsel %vm596_vm1, %v18916_v2, 0.0  ;;  %v19208_v16 = vld [vmem:[#allocation7_spill] sm:$0xff] }
0x12ba   : > { %10709 = vadd.xlane.f32.xlu1 %v10708_v57 }
0x12bb   : > { %v10639_v61 = vadd.f32 %v13049_v32, %v10542_v52  ;;  %v10545_v1 = vadd.f32 %v12988_v50, %v18846_v7  ;;  %v19209_v50 = vld [vmem:[#allocation2_spill] sm:$0xff] }
0x12bd   : > { %v10642_v45 = vadd.f32 %v13052_v3, %v10545_v1  ;;  %v12989_v48 = vpop.f32.mrb[84].mxu1  ;;  %v13053_v15 = vpop.f32.mrb[92].mxu0  ;;  %v18923_v10 = vadd.f32 %v10639_v61, %v17383_v38 }
0x12be   : > { %v12990_v39 = vpop.f32.mrb[85].mxu1  ;;  %v13054_v25 = vpop.f32.mrb[93].mxu0 }
0x12bf   : > { %v12991_v13 = vadd.f32 %v12990_v39, %v12989_v48  ;;  %v13055_v22 = vadd.f32 %v13054_v25, %v13053_v15  ;;  %v12992_v55 = vpop.f32.mrb[86].mxu1  ;;  %v13056_v53 = vpop.f32.mrb[94].mxu0  ;;  %v10711_v60 = vsel %vm596_vm1, %v18923_v10, 0.0  ;;  %v18928_v28 = vadd.f32 %v10642_v45, %v19205_v44 }
0x12c0   : > { %v12993_v33 = vpop.f32.mrb[87].mxu1  ;;  %v13057_v7 = vpop.f32.mrb[95].mxu0  ;;  %10712 = vadd.xlane.f32.xlu0 %v10711_v60 }
0x12c1   : > { %v10550_v46 = vadd.f32 %v12991_v13, %v18849_v8  ;;  %v12994_v24 = vadd.f32 %v12993_v33, %v12992_v55  ;;  %v13058_v38 = vadd.f32 %v13057_v7, %v13056_v53  ;;  %v10714_v31 = vsel %vm596_vm1, %v18928_v28, 0.0 }
0x12c2   : > { %10715 = vadd.xlane.f32.xlu1 %v10714_v31 }
0x12c3   : > { %v10647_v19 = vadd.f32 %v13055_v22, %v10550_v46  ;;  %v10553_v62 = vadd.f32 %v12994_v24, %v18852_v43 }
0x12c5   : > { %v10650_v49 = vadd.f32 %v13058_v38, %v10553_v62  ;;  %v12995_v34 = vpop.f32.mrb[88].mxu1  ;;  %v13059_v51 = vpop.f32.mrb[96].mxu0  ;;  %v18935_v20 = vadd.f32 %v10647_v19, %v19206_v58 }
0x12c6   : > { %v12996_v11 = vpop.f32.mrb[89].mxu1  ;;  %v13060_v0 = vpop.f32.mrb[97].mxu0 }
0x12c7   : > { %v12997_v9 = vadd.f32 %v12996_v11, %v12995_v34  ;;  %v13061_v47 = vadd.f32 %v13060_v0, %v13059_v51  ;;  %v12998_v8 = vpop.f32.mrb[90].mxu1  ;;  %v13062_v42 = vpop.f32.mrb[98].mxu0  ;;  %v10717_v18 = vsel %vm596_vm1, %v18935_v20, 0.0  ;;  %v18940_v23 = vadd.f32 %v10650_v49, %v19207_v59 }
0x12c8   : > { %v12999_v21 = vpop.f32.mrb[91].mxu1  ;;  %v13063_v43 = vpop.f32.mrb[99].mxu0  ;;  %10718 = vadd.xlane.f32.xlu0 %v10717_v18 }
0x12c9   : > { %v10558_v37 = vadd.f32 %v12997_v9, %v18855_v5  ;;  %v13000_v63 = vadd.f32 %v12999_v21, %v12998_v8  ;;  %v13064_v35 = vadd.f32 %v13063_v43, %v13062_v42  ;;  %v10720_v32 = vsel %vm596_vm1, %v18940_v23, 0.0 }
0x12ca   : > { %10721 = vadd.xlane.f32.xlu1 %v10720_v32 }
0x12cb   : > { %v10655_v40 = vadd.f32 %v13061_v47, %v10558_v37  ;;  %v10561_v17 = vadd.f32 %v13000_v63, %v18858_v26 }
0x12cd   : > { %v10658_v36 = vadd.f32 %v13064_v35, %v10561_v17  ;;  %v18947_v4 = vadd.f32 %v10655_v40, %v19208_v16 }
0x12cf   : > { %v10723_v52 = vsel %vm596_vm1, %v18947_v4, 0.0  ;;  %v18952_v3 = vadd.f32 %v10658_v36, %v19209_v50 }
0x12d0   : > { %10724 = vadd.xlane.f32.xlu0 %v10723_v52 }
0x12d1   : > { %v10726_v5 = vsel %vm596_vm1, %v18952_v3, 0.0 }
0x12d2   : > { %10727 = vadd.xlane.f32.xlu1 %v10726_v5 }
0x1325   : > { %v10683_v57 = vpop.xlane.xlu0 %10682 }
0x1326   : > { %v10729_v61 = vmul.f32 0.05882353, %v10683_v57 }
0x1327   : > { %v10686_v1 = vpop.xlane.xlu1 %10685 }
0x1328   : > { %v18957_v26 = vsub.f32 %v18863_v41, %v10729_v61  ;;  %v10730_v45 = vmul.f32 0.05882353, %v10686_v1 }
0x132a   : > { %v18960_v48 = vsub.f32 %v18868_v27, %v10730_v45  ;;  %v10761_v15 = vmul.f32 %v18957_v26, %v18957_v26 }
0x132c   : > { %v10777_v39 = vsel %vm596_vm1, %v10761_v15, 0.0  ;;  %v10762_v25 = vmul.f32 %v18960_v48, %v18960_v48 }
0x132d   : > { %v10689_v13 = vpop.xlane.xlu0 %10688  ;;  %10778 = vadd.xlane.f32.xlu0 %v10777_v39 }
0x132e   : > { %v10731_v22 = vmul.f32 0.05882353, %v10689_v13  ;;  %v10780_v55 = vsel %vm596_vm1, %v10762_v25, 0.0 }
0x132f   : > { %v10692_v53 = vpop.xlane.xlu1 %10691  ;;  %10781 = vadd.xlane.f32.xlu1 %v10780_v55 }
0x1330   : > { %v18969_v41 = vsub.f32 %v18875_v6, %v10731_v22  ;;  %v10732_v27 = vmul.f32 0.05882353, %v10692_v53 }
0x1332   : > { %v18972_v60 = vsub.f32 %v18880_v29, %v10732_v27  ;;  %v10763_v44 = vmul.f32 %v18969_v41, %v18969_v41 }
0x1334   : > { %v10783_v33 = vsel %vm596_vm1, %v10763_v44, 0.0  ;;  %v10764_v7 = vmul.f32 %v18972_v60, %v18972_v60 }
0x1335   : > { %v10695_v46 = vpop.xlane.xlu0 %10694  ;;  %10784 = vadd.xlane.f32.xlu0 %v10783_v33 }
0x1336   : > { %v10733_v24 = vmul.f32 0.05882353, %v10695_v46  ;;  %v10786_v38 = vsel %vm596_vm1, %v10764_v7, 0.0 }
0x1337   : > { %v10698_v31 = vpop.xlane.xlu1 %10697  ;;  %10787 = vadd.xlane.f32.xlu1 %v10786_v38 }
0x1338   : > { %v18981_v6 = vsub.f32 %v18887_v12, %v10733_v24  ;;  %v10734_v29 = vmul.f32 0.05882353, %v10698_v31 }
0x133a   : > { %v18984_v19 = vsub.f32 %v18892_v14, %v10734_v29  ;;  %v10765_v62 = vmul.f32 %v18981_v6, %v18981_v6 }
0x133c   : > { %v10789_v49 = vsel %vm596_vm1, %v10765_v62, 0.0  ;;  %v10766_v34 = vmul.f32 %v18984_v19, %v18984_v19 }
0x133d   : > { %v10701_v51 = vpop.xlane.xlu0 %10700  ;;  %10790 = vadd.xlane.f32.xlu0 %v10789_v49 }
0x133e   : > { %v10735_v58 = vmul.f32 0.05882353, %v10701_v51  ;;  %v10792_v11 = vsel %vm596_vm1, %v10766_v34, 0.0 }
0x133f   : > { %v10704_v0 = vpop.xlane.xlu1 %10703  ;;  %10793 = vadd.xlane.f32.xlu1 %v10792_v11 }
0x1340   : > { %v18993_v12 = vsub.f32 %v18899_v56, %v10735_v58  ;;  %v10736_v14 = vmul.f32 0.05882353, %v10704_v0 }
0x1342   : > { %v18996_v9 = vsub.f32 %v18904_v54, %v10736_v14  ;;  %v10767_v47 = vmul.f32 %v18993_v12, %v18993_v12 }
0x1344   : > { %v10795_v8 = vsel %vm596_vm1, %v10767_v47, 0.0  ;;  %v10768_v42 = vmul.f32 %v18996_v9, %v18996_v9 }
0x1345   : > { %v10707_v18 = vpop.xlane.xlu0 %10706  ;;  %10796 = vadd.xlane.f32.xlu0 %v10795_v8  ;;  %v19055_v8 = vld [vmem:[%s19167_s15 + $0x1] ss:$0 sm:$0xff] }
0x1346   : > { %v10737_v59 = vmul.f32 0.05882353, %v10707_v18  ;;  %v10798_v21 = vsel %vm596_vm1, %v10768_v42, 0.0 }
0x1347   : > { %v10710_v43 = vpop.xlane.xlu1 %10709  ;;  %10799 = vadd.xlane.f32.xlu1 %v10798_v21  ;;  %v19061_v21 = vld [vmem:[%s19168_s16 + $0x1] ss:$0 sm:$0xff] }
0x1348   : > { %v19005_v56 = vsub.f32 %v18911_v30, %v10737_v59  ;;  %v10738_v54 = vmul.f32 0.05882353, %v10710_v43 }
0x134a   : > { %v19008_v37 = vsub.f32 %v18916_v2, %v10738_v54  ;;  %v10769_v63 = vmul.f32 %v19005_v56, %v19005_v56 }
0x134c   : > { %v10801_v35 = vsel %vm596_vm1, %v10769_v63, 0.0  ;;  %v10770_v32 = vmul.f32 %v19008_v37, %v19008_v37 }
0x134d   : > { %v10713_v40 = vpop.xlane.xlu0 %10712  ;;  %10802 = vadd.xlane.f32.xlu0 %v10801_v35 }
0x134e   : > { %v10739_v17 = vmul.f32 0.05882353, %v10713_v40  ;;  %v10804_v36 = vsel %vm596_vm1, %v10770_v32, 0.0 }
0x134f   : > { %v10716_v16 = vpop.xlane.xlu1 %10715  ;;  %10805 = vadd.xlane.f32.xlu1 %v10804_v36 }
0x1350   : > { %v19017_v30 = vsub.f32 %v18923_v10, %v10739_v17  ;;  %v10740_v2 = vmul.f32 0.05882353, %v10716_v16 }
0x1352   : > { %v19020_v52 = vsub.f32 %v18928_v28, %v10740_v2  ;;  %v10771_v50 = vmul.f32 %v19017_v30, %v19017_v30 }
0x1354   : > { %v10807_v5 = vsel %vm596_vm1, %v10771_v50, 0.0  ;;  %v10772_v57 = vmul.f32 %v19020_v52, %v19020_v52 }
0x1355   : > { %v10719_v61 = vpop.xlane.xlu0 %10718  ;;  %10808 = vadd.xlane.f32.xlu0 %v10807_v5 }
0x1356   : > { %v10741_v1 = vmul.f32 0.05882353, %v10719_v61  ;;  %v10810_v45 = vsel %vm596_vm1, %v10772_v57, 0.0 }
0x1357   : > { %v10722_v15 = vpop.xlane.xlu1 %10721  ;;  %10811 = vadd.xlane.f32.xlu1 %v10810_v45 }
0x1358   : > { %v19029_v10 = vsub.f32 %v18935_v20, %v10741_v1  ;;  %v10742_v28 = vmul.f32 0.05882353, %v10722_v15 }
0x135a   : > { %v19032_v39 = vsub.f32 %v18940_v23, %v10742_v28  ;;  %v10773_v25 = vmul.f32 %v19029_v10, %v19029_v10 }
0x135c   : > { %v10813_v13 = vsel %vm596_vm1, %v10773_v25, 0.0  ;;  %v10774_v22 = vmul.f32 %v19032_v39, %v19032_v39 }
0x135d   : > { %10814 = vadd.xlane.f32.xlu0 %v10813_v13  ;;  %v10725_v55 = vpop.xlane.xlu0 %10724 }
0x135e   : > { %v10743_v53 = vmul.f32 0.05882353, %v10725_v55  ;;  %v10816_v27 = vsel %vm596_vm1, %v10774_v22, 0.0 }
0x135f   : > { %10817 = vadd.xlane.f32.xlu1 %v10816_v27  ;;  %v10728_v20 = vpop.xlane.xlu1 %10727 }
0x1360   : > { %v19041_v44 = vsub.f32 %v18947_v4, %v10743_v53  ;;  %v10744_v23 = vmul.f32 0.05882353, %v10728_v20 }
0x1362   : > { %v19044_v33 = vsub.f32 %v18952_v3, %v10744_v23  ;;  %v10775_v7 = vmul.f32 %v19041_v44, %v19041_v44 }
0x1364   : > { %v10819_v46 = vsel %vm596_vm1, %v10775_v7, 0.0  ;;  %v10776_v24 = vmul.f32 %v19044_v33, %v19044_v33 }
0x1365   : > { %10820 = vadd.xlane.f32.xlu0 %v10819_v46 }
0x1366   : > { %v10822_v38 = vsel %vm596_vm1, %v10776_v24, 0.0 }
0x1367   : > { %10823 = vadd.xlane.f32.xlu1 %v10822_v38 }
0x13ba   : > { %v10779_v31 = vpop.xlane.xlu0 %10778 }
0x13bb   : > { %v10825_v29 = vmul.f32 0.05882353, %v10779_v31 }
0x13bc   : > { %v10782_v4 = vpop.xlane.xlu1 %10781 }
0x13bd   : > { %v10841_v62 = vadd.f32 1e-05, %v10825_v29  ;;  %v10826_v49 = vmul.f32 0.05882353, %v10782_v4 }
0x13bf   : > { %13910 = vrsqrt.f32 %v10841_v62  ;;  %v10842_v3 = vadd.f32 1e-05, %v10826_v49 }
0x13c1   : > { %13912 = vrsqrt.f32 %v10842_v3 }
0x13c2   : > { %v10785_v34 = vpop.xlane.xlu0 %10784 }
0x13c3   : > { %v10827_v51 = vmul.f32 0.05882353, %v10785_v34 }
0x13c4   : > { %v10788_v58 = vpop.xlane.xlu1 %10787 }
0x13c5   : > { %v10843_v11 = vadd.f32 1e-05, %v10827_v51  ;;  %v10828_v0 = vmul.f32 0.05882353, %v10788_v58 }
0x13c7   : > { %13914 = vrsqrt.f32 %v10843_v11  ;;  %v10844_v14 = vadd.f32 1e-05, %v10828_v0 }
0x13c9   : > { %v13911_v47 = vpop.eup %13910  ;;  %13916 = vrsqrt.f32 %v10844_v14 }
0x13ca   : > { %v10873_v42 = vmul.f32 %v13911_v47, %v18957_v26  ;;  %v10791_v18 = vpop.xlane.xlu0 %10790 }
0x13cb   : > { %v13913_v59 = vpop.eup %13912  ;;  %v10829_v43 = vmul.f32 0.05882353, %v10791_v18 }
0x13cc   : > { %v10895_v54 = vmul.f32 %v19055_v8, %v10873_v42  ;;  %v10874_v63 = vmul.f32 %v13913_v59, %v18960_v48  ;;  %v10794_v35 = vpop.xlane.xlu1 %10793 }
0x13cd   : > { %v10845_v26 = vadd.f32 1e-05, %v10829_v43  ;;  %v10830_v32 = vmul.f32 0.05882353, %v10794_v35 }
0x13ce   : > { %v10917_v40 = vadd.f32 %v19061_v21, %v10895_v54  ;;  %v10896_v17 = vmul.f32 %v19055_v8, %v10874_v63 }
0x13cf   : > { %13918 = vrsqrt.f32 %v10845_v26  ;;  %v10846_v36 = vadd.f32 1e-05, %v10830_v32 }
0x13d0   : > { %10933 = vst.msk [vmem:[%s19070_s21] sm:$0xff] %vm596_vm1, %v10917_v40  ;;  %v10918_v48 = vadd.f32 %v19061_v21, %v10896_v17 }
0x13d1   : > { %v13915_v16 = vpop.eup %13914  ;;  %13920 = vrsqrt.f32 %v10846_v36 }
0x13d2   : > { %10934 = vst.msk [vmem:[%s19070_s21 + $0x8] sm:$0xff] %vm596_vm1, %v10918_v48  ;;  %v10875_v2 = vmul.f32 %v13915_v16, %v18969_v41  ;;  %v10797_v50 = vpop.xlane.xlu0 %10796 }
0x13d3   : > { %v13917_v5 = vpop.eup %13916  ;;  %v10831_v57 = vmul.f32 0.05882353, %v10797_v50 }
0x13d4   : > { %v10897_v61 = vmul.f32 %v19055_v8, %v10875_v2  ;;  %v10876_v1 = vmul.f32 %v13917_v5, %v18972_v60  ;;  %v10800_v45 = vpop.xlane.xlu1 %10799 }
0x13d5   : > { %v10847_v15 = vadd.f32 1e-05, %v10831_v57  ;;  %v10832_v28 = vmul.f32 0.05882353, %v10800_v45 }
0x13d6   : > { %v10919_v25 = vadd.f32 %v19061_v21, %v10897_v61  ;;  %v10898_v13 = vmul.f32 %v19055_v8, %v10876_v1 }
0x13d7   : > { %13922 = vrsqrt.f32 %v10847_v15  ;;  %v10848_v22 = vadd.f32 1e-05, %v10832_v28 }
0x13d8   : > { %10935 = vst.msk [vmem:[%s19070_s21 + $0x10] sm:$0xff] %vm596_vm1, %v10919_v25  ;;  %v10920_v41 = vadd.f32 %v19061_v21, %v10898_v13 }
0x13d9   : > { %v13919_v55 = vpop.eup %13918  ;;  %13924 = vrsqrt.f32 %v10848_v22 }
0x13da   : > { %10936 = vst.msk [vmem:[%s19070_s21 + $0x18] sm:$0xff] %vm596_vm1, %v10920_v41  ;;  %v10877_v60 = vmul.f32 %v13919_v55, %v18981_v6  ;;  %v10803_v53 = vpop.xlane.xlu0 %10802 }
0x13db   : > { %v13921_v27 = vpop.eup %13920  ;;  %v10833_v20 = vmul.f32 0.05882353, %v10803_v53 }
0x13dc   : > { %v10899_v23 = vmul.f32 %v19055_v8, %v10877_v60  ;;  %v10878_v7 = vmul.f32 %v13921_v27, %v18984_v19  ;;  %v10806_v46 = vpop.xlane.xlu1 %10805 }
0x13dd   : > { %v10849_v24 = vadd.f32 1e-05, %v10833_v20  ;;  %v10834_v38 = vmul.f32 0.05882353, %v10806_v46 }
0x13de   : > { %v10921_v31 = vadd.f32 %v19061_v21, %v10899_v23  ;;  %v10900_v29 = vmul.f32 %v19055_v8, %v10878_v7 }
0x13df   : > { %13926 = vrsqrt.f32 %v10849_v24  ;;  %v10850_v4 = vadd.f32 1e-05, %v10834_v38 }
0x13e0   : > { %10937 = vst.msk [vmem:[%s19070_s21 + $0x20] sm:$0xff] %vm596_vm1, %v10921_v31  ;;  %v10922_v6 = vadd.f32 %v19061_v21, %v10900_v29 }
0x13e1   : > { %v13923_v62 = vpop.eup %13922  ;;  %13928 = vrsqrt.f32 %v10850_v4 }
0x13e2   : > { %10938 = vst.msk [vmem:[%s19070_s21 + $0x28] sm:$0xff] %vm596_vm1, %v10922_v6  ;;  %v10879_v19 = vmul.f32 %v13923_v62, %v18993_v12  ;;  %v10809_v49 = vpop.xlane.xlu0 %10808 }
0x13e3   : > { %v13925_v3 = vpop.eup %13924  ;;  %v10835_v34 = vmul.f32 0.05882353, %v10809_v49 }
0x13e4   : > { %v10901_v51 = vmul.f32 %v19055_v8, %v10879_v19  ;;  %v10880_v58 = vmul.f32 %v13925_v3, %v18996_v9  ;;  %v10812_v11 = vpop.xlane.xlu1 %10811 }
0x13e5   : > { %v10851_v0 = vadd.f32 1e-05, %v10835_v34  ;;  %v10836_v14 = vmul.f32 0.05882353, %v10812_v11 }
0x13e6   : > { %v10923_v47 = vadd.f32 %v19061_v21, %v10901_v51  ;;  %v10902_v42 = vmul.f32 %v19055_v8, %v10880_v58 }
0x13e7   : > { %13930 = vrsqrt.f32 %v10851_v0  ;;  %v10852_v18 = vadd.f32 1e-05, %v10836_v14 }
0x13e8   : > { %10939 = vst.msk [vmem:[%s19070_s21 + $0x30] sm:$0xff] %vm596_vm1, %v10923_v47  ;;  %v10924_v12 = vadd.f32 %v19061_v21, %v10902_v42 }
0x13e9   : > { %v13927_v59 = vpop.eup %13926  ;;  %13932 = vrsqrt.f32 %v10852_v18 }
0x13ea   : > { %10940 = vst.msk [vmem:[%s19070_s21 + $0x38] sm:$0xff] %vm596_vm1, %v10924_v12  ;;  %v10881_v9 = vmul.f32 %v13927_v59, %v19005_v56  ;;  %v10815_v43 = vpop.xlane.xlu0 %10814 }
0x13eb   : > { %v13929_v54 = vpop.eup %13928  ;;  %v10837_v63 = vmul.f32 0.05882353, %v10815_v43 }
0x13ec   : > { %v10903_v35 = vmul.f32 %v19055_v8, %v10881_v9  ;;  %v10882_v26 = vmul.f32 %v13929_v54, %v19008_v37  ;;  %v10818_v32 = vpop.xlane.xlu1 %10817 }
0x13ed   : > { %v10853_v40 = vadd.f32 1e-05, %v10837_v63  ;;  %v10838_v17 = vmul.f32 0.05882353, %v10818_v32 }
0x13ee   : > { %v10925_v36 = vadd.f32 %v19061_v21, %v10903_v35  ;;  %v10904_v48 = vmul.f32 %v19055_v8, %v10882_v26 }
0x13ef   : > { %13934 = vrsqrt.f32 %v10853_v40  ;;  %v10854_v16 = vadd.f32 1e-05, %v10838_v17 }
0x13f0   : > { %10941 = vst.msk [vmem:[%s19070_s21 + $0x40] sm:$0xff] %vm596_vm1, %v10925_v36  ;;  %v10926_v56 = vadd.f32 %v19061_v21, %v10904_v48 }
0x13f1   : > { %v13931_v2 = vpop.eup %13930  ;;  %13936 = vrsqrt.f32 %v10854_v16 }
0x13f2   : > { %10942 = vst.msk [vmem:[%s19070_s21 + $0x48] sm:$0xff] %vm596_vm1, %v10926_v56  ;;  %v10883_v37 = vmul.f32 %v13931_v2, %v19017_v30  ;;  %v10821_v50 = vpop.xlane.xlu0 %10820 }
0x13f3   : > { %v13933_v5 = vpop.eup %13932  ;;  %v10839_v57 = vmul.f32 0.05882353, %v10821_v50 }
0x13f4   : > { %v10905_v61 = vmul.f32 %v19055_v8, %v10883_v37  ;;  %v10884_v1 = vmul.f32 %v13933_v5, %v19020_v52  ;;  %v10824_v45 = vpop.xlane.xlu1 %10823 }
0x13f5   : > { %v10855_v15 = vadd.f32 1e-05, %v10839_v57  ;;  %v10840_v28 = vmul.f32 0.05882353, %v10824_v45 }
0x13f6   : > { %v10927_v25 = vadd.f32 %v19061_v21, %v10905_v61  ;;  %v10906_v13 = vmul.f32 %v19055_v8, %v10884_v1 }
0x13f7   : > { %13938 = vrsqrt.f32 %v10855_v15  ;;  %v10856_v22 = vadd.f32 1e-05, %v10840_v28 }
0x13f8   : > { %10943 = vst.msk [vmem:[%s19070_s21 + $0x50] sm:$0xff] %vm596_vm1, %v10927_v25  ;;  %v10928_v30 = vadd.f32 %v19061_v21, %v10906_v13 }
0x13f9   : > { %v13935_v41 = vpop.eup %13934  ;;  %13940 = vrsqrt.f32 %v10856_v22 }
0x13fa   : > { %10944 = vst.msk [vmem:[%s19070_s21 + $0x58] sm:$0xff] %vm596_vm1, %v10928_v30  ;;  %v10885_v52 = vmul.f32 %v13935_v41, %v19029_v10 }
0x13fb   : > { %v13937_v55 = vpop.eup %13936 }
0x13fc   : > { %v10907_v60 = vmul.f32 %v19055_v8, %v10885_v52  ;;  %v10886_v53 = vmul.f32 %v13937_v55, %v19032_v39 }
0x13fe   : > { %v10929_v27 = vadd.f32 %v19061_v21, %v10907_v60  ;;  %v10908_v20 = vmul.f32 %v19055_v8, %v10886_v53 }
0x1400   : > { %10945 = vst.msk [vmem:[%s19070_s21 + $0x60] sm:$0xff] %vm596_vm1, %v10929_v27  ;;  %v10930_v23 = vadd.f32 %v19061_v21, %v10908_v20 }
0x1401   : > { %v13939_v7 = vpop.eup %13938 }
0x1402   : > { %10946 = vst.msk [vmem:[%s19070_s21 + $0x68] sm:$0xff] %vm596_vm1, %v10930_v23  ;;  %v10887_v10 = vmul.f32 %v13939_v7, %v19041_v44 }
0x1403   : > { %v13941_v46 = vpop.eup %13940 }
0x1404   : > { %v10909_v24 = vmul.f32 %v19055_v8, %v10887_v10  ;;  %v10888_v38 = vmul.f32 %v13941_v46, %v19044_v33 }
0x1406   : > { %v10931_v39 = vadd.f32 %v19061_v21, %v10909_v24  ;;  %v10910_v31 = vmul.f32 %v19055_v8, %v10888_v38 }
0x1408   : > { %10947 = vst.msk [vmem:[%s19070_s21 + $0x70] sm:$0xff] %vm596_vm1, %v10931_v39  ;;  %v10932_v29 = vadd.f32 %v19061_v21, %v10910_v31 }
0x140a   : > { %10948 = vst.msk [vmem:[%s19070_s21 + $0x78] sm:$0xff] %vm596_vm1, %v10932_v29 }
0x140b PF: > { %s27_s24 = sadd.s32 1, %s13964_s24  }
0x140c   : > { %p24_p4 = scmp.ge.s32.totalorder %s27_s24, 4  }
0x140e   :  { %26 = sbr.rel (!%p24_p4) target bundleno = 3 (0x3), region = 134 }

</bundles_post_ra>
